<compile_context>
chip_gen: v5e
topology: v5e:2x2
jax: 0.10.0
libtpu: 0.0.40
codegen_flags: <defaults>
</compile_context>

<pallas_src>
import functools

import numpy as np
import jax
import jax.numpy as jnp
from jax import lax
from jax.experimental import pallas as pl
from jax.experimental.pallas import tpu as pltpu


# ----------------------------------------------------------------------------
# Fused forward kernel
# ----------------------------------------------------------------------------
def _net2_kernel(
    patches_ref,          # (4, N*169, 9) bf16 : conv1 im2col rows, one group per max-pool offset
    w1_ref, b1_ref,       # (9, 16) bf16 , (1, 16) f32
    w2_ref, b2_ref,       # (16, 16, 32) bf16 [di*4+dj, cin, cout] , (1, 32) f32
    pool_ref,             # (25*N, L2) bf16 : avg-pool-as-matmul matrix (0 / 0.25 entries)
    w3_ref, b3_ref,       # (25, 32, 64) bf16 [di*5+dj, cin, cout] , (1, 64) f32
    wf1_ref, bf1_ref,     # (64, 32) bf16 , (1, 32) f32
    wf2_ref, bf2_ref,     # (32, 10) bf16 , (1, 10) f32
    out_ref,              # (N, 10) f32
    p1_ref,               # scratch VMEM (N*169, 16) f32 : pooled conv1 map, row = n*169 + ph*13 + pw
    p2_ref,               # scratch VMEM (25*N, 32) f32  : pooled conv2 map, row = (qh*5+qw)*N + n
):
    f32, bf16 = jnp.float32, jnp.bfloat16
    n = out_ref.shape[0]
    l2 = pool_ref.shape[1]          # = (N-1)*169 + 127 rows of the conv2 output slab

    # ---- conv1 + ReLU + 2x2 max-pool (fused) --------------------------------
    # patches_ref[j] holds the im2col rows of pooling offset j = a*2+b, ordered
    # (n, ph, pw), so the max-pool is an elementwise max of 4 GEMM outputs.
    w1 = w1_ref[...]
    b1 = b1_ref[...]
    pooled = jnp.maximum(
        jnp.dot(patches_ref[0], w1, preferred_element_type=f32) + b1, 0.0)
    for j in range(1, 4):
        yj = jnp.maximum(
            jnp.dot(patches_ref[j], w1, preferred_element_type=f32) + b1, 0.0)
        pooled = jnp.maximum(pooled, yj)
    p1_ref[...] = pooled                                   # (N*169, 16)

    # ---- conv2 (4x4) + ReLU as 16 shifted GEMMs over the 13x13 map ----------
    # For r = n*169 + oh*13 + ow (oh, ow < 10) the accumulated row r equals
    # conv2(n, :, oh, ow); rows with ow in 10..12 are wrap-around junk that the
    # pooling matrix below simply never selects.
    acc2 = jnp.dot(p1_ref[pl.ds(0, l2), :].astype(bf16), w2_ref[0],
                   preferred_element_type=f32)
    for t in range(1, 16):
        di, dj = divmod(t, 4)
        off = di * 13 + dj
        acc2 = acc2 + jnp.dot(p1_ref[pl.ds(off, l2), :].astype(bf16), w2_ref[t],
                              preferred_element_type=f32)
    h2 = jnp.maximum(acc2 + b2_ref[...], 0.0).astype(bf16)  # (L2, 32)

    # ---- 2x2 avg-pool folded into one lane-dense GEMM -----------------------
    p2_ref[...] = jnp.dot(pool_ref[...], h2, preferred_element_type=f32)

    # ---- conv3 (5x5 on the 5x5 map -> 1x1) + ReLU == flatten(1) --------------
    acc3 = jnp.dot(p2_ref[pl.ds(0, n), :].astype(bf16), w3_ref[0],
                   preferred_element_type=f32)
    for k in range(1, 25):
        acc3 = acc3 + jnp.dot(p2_ref[pl.ds(k * n, n), :].astype(bf16), w3_ref[k],
                              preferred_element_type=f32)
    h3 = jnp.maximum(acc3 + b3_ref[...], 0.0)                # (N, 64)

    # dropout1 / dropout2: eval-mode identity.
    # TODO(synk): training-mode dropout would need pltpu.prng_seed/prng_random_bits.

    # ---- fc1 + tanh, fc2 + softmax ------------------------------------------
    h4 = jnp.tanh(jnp.dot(h3.astype(bf16), wf1_ref[...],
                          preferred_element_type=f32) + bf1_ref[...])
    logits = jnp.dot(h4.astype(bf16), wf2_ref[...],
                     preferred_element_type=f32) + bf2_ref[...]
    z = logits - jnp.max(logits, axis=-1, keepdims=True)
    e = jnp.exp(z)
    out_ref[...] = (e / jnp.sum(e, axis=-1, keepdims=True)).astype(out_ref.dtype)


# ----------------------------------------------------------------------------
# One-time boundary glue (input patching + constant pooling matrix)
# ----------------------------------------------------------------------------
def _conv1_pool_patches(x):
    """x: (N,1,28,28) NCHW -> (4, N*169, 9) bf16 im2col rows grouped by pool offset."""
    n = x.shape[0]
    img = x[:, 0]                                              # (N, 28, 28)
    groups = []
    for a in range(2):
        for b in range(2):
            cols = []
            for di in range(3):
                for dj in range(3):
                    s = img[:, a + di: a + di + 26: 2, b + dj: b + dj + 26: 2]
                    cols.append(s.reshape(n * 13 * 13))        # row = n*169 + ph*13 + pw
            groups.append(jnp.stack(cols, axis=-1))            # (N*169, 9)
    return jnp.stack(groups, axis=0).astype(jnp.bfloat16)      # (4, N*169, 9)


@functools.lru_cache(maxsize=None)
def _avgpool_matrix(n):
    """(25*n, (n-1)*169+127) matrix with 0.25 at the 4 avg-pool taps per row."""
    l2 = (n - 1) * 169 + 127
    m = np.zeros((25 * n, l2), np.float32)
    for qh in range(5):
        for qw in range(5):
            for i in range(n):
                p = (qh * 5 + qw) * n + i
                for a in range(2):
                    for b in range(2):
                        m[p, i * 169 + (2 * qh + a) * 13 + (2 * qw + b)] = 0.25
    return m


# ----------------------------------------------------------------------------
# Forward pass (single pallas_call)
# ----------------------------------------------------------------------------
def net2_forward(x, packed):
    """x: (N, 1, 28, 28) float32 NCHW -> (N, 10) float32 softmax probabilities."""
    n, c, h, w = x.shape
    assert (c, h, w) == (1, 28, 28), "Net2 requires 1x28x28 inputs (fc1 is Linear(64, 32))"

    patches = _conv1_pool_patches(x)
    pool_mat = jnp.asarray(_avgpool_matrix(n), jnp.bfloat16)

    return pl.pallas_call(
        _net2_kernel,
        out_shape=jax.ShapeDtypeStruct((n, 10), jnp.float32),
        in_specs=[pl.BlockSpec(memory_space=pltpu.MemorySpace.VMEM)] * 12,
        out_specs=pl.BlockSpec(memory_space=pltpu.MemorySpace.VMEM),
        scratch_shapes=[
            pltpu.VMEM((n * 169, 16), jnp.float32),   # pooled conv1 map
            pltpu.VMEM((25 * n, 32), jnp.float32),    # pooled conv2 map
        ],
    )(patches,
      packed["w1"], packed["b1"],
      packed["w2"], packed["b2"],
      pool_mat,
      packed["w3"], packed["b3"],
      packed["wf1"], packed["bf1"],
      packed["wf2"], packed["bf2"])


# ----------------------------------------------------------------------------
# Parameters: PyTorch-style init + one-time packing into kernel layout
# ----------------------------------------------------------------------------
def init_params(key):
    ks = jax.random.split(key, 10)

    def u(k, shape, fan_in):
        bound = 1.0 / (fan_in ** 0.5)
        return jax.random.uniform(k, shape, jnp.float32, -bound, bound)

    return {
        "w1": u(ks[0], (16, 1, 3, 3), 1 * 3 * 3),
        "b1": u(ks[1], (16,), 1 * 3 * 3),
        "w2": u(ks[2], (32, 16, 4, 4), 16 * 4 * 4),
        "b2": u(ks[3], (32,), 16 * 4 * 4),
        "w3": u(ks[4], (64, 32, 5, 5), 32 * 5 * 5),
        "b3": u(ks[5], (64,), 32 * 5 * 5),
        "wf1": u(ks[6], (32, 64), 64),
        "bf1": u(ks[7], (32,), 64),
        "wf2": u(ks[8], (10, 32), 32),
        "bf2": u(ks[9], (10,), 32),
    }


def pack_params(params):
    """Pre-transpose/reshape weights once (channel-last GEMM layout, bf16)."""
    bf16, f32 = jnp.bfloat16, jnp.float32
    return {
        "w1": params["w1"].reshape(16, 9).T.astype(bf16),                            # (9, 16)
        "b1": params["b1"].reshape(1, 16).astype(f32),
        "w2": jnp.transpose(params["w2"], (2, 3, 1, 0)).reshape(16, 16, 32).astype(bf16),
        "b2": params["b2"].reshape(1, 32).astype(f32),
        "w3": jnp.transpose(params["w3"], (2, 3, 1, 0)).reshape(25, 32, 64).astype(bf16),
        "b3": params["b3"].reshape(1, 64).astype(f32),
        "wf1": params["wf1"].T.astype(bf16),                                         # (64, 32)
        "bf1": params["bf1"].reshape(1, 32).astype(f32),
        "wf2": params["wf2"].T.astype(bf16),                                         # (32, 10)
        "bf2": params["bf2"].reshape(1, 10).astype(f32),
    }


# ----------------------------------------------------------------------------
# Pure-XLA float32 reference (matches PyTorch Net2 forward in eval mode)
# ----------------------------------------------------------------------------
def net2_reference(x, params):
    dn = ("NCHW", "OIHW", "NCHW")
    hp = lax.Precision.HIGHEST

    y = lax.conv_general_dilated(x, params["w1"], (1, 1), "VALID",
                                 dimension_numbers=dn, precision=hp)
    y = jnp.maximum(y + params["b1"].reshape(1, -1, 1, 1), 0.0)
    y = lax.reduce_window(y, -jnp.inf, lax.max, (1, 1, 2, 2), (1, 1, 2, 2), "VALID")
    y = lax.conv_general_dilated(y, params["w2"], (1, 1), "VALID",
                                 dimension_numbers=dn, precision=hp)
    y = jnp.maximum(y + params["b2"].reshape(1, -1, 1, 1), 0.0)
    y = lax.reduce_window(y, 0.0, lax.add, (1, 1, 2, 2), (1, 1, 2, 2), "VALID") * 0.25
    y = lax.conv_general_dilated(y, params["w3"], (1, 1), "VALID",
                                 dimension_numbers=dn, precision=hp)
    y = jnp.maximum(y + params["b3"].reshape(1, -1, 1, 1), 0.0)
    y = y.reshape(y.shape[0], -1)
    y = jnp.tanh(jnp.dot(y, params["wf1"].T, precision=hp) + params["bf1"])
    y = jnp.dot(y, params["wf2"].T, precision=hp) + params["bf2"]
    return jax.nn.softmax(y, axis=-1)


if __name__ == "__main__":
    key = jax.random.PRNGKey(0)
    kp, kx = jax.random.split(key)
    params = init_params(kp)
    packed = pack_params(params)

    # fc1 (Linear(64, 32)) forces conv3's output to be spatially 1x1, which
    # implies a 28x28 single-channel input (MNIST-like).  batch = 2.
    x = jax.random.normal(kx, (2, 1, 28, 28), dtype=jnp.float32)

    fwd = jax.jit(net2_forward)
    out = jax.block_until_ready(fwd(x, packed))

    assert out.shape == (2, 10), out.shape
    assert bool(jnp.all(jnp.isfinite(out)))
    assert jnp.allclose(jnp.sum(out, axis=1), 1.0, atol=1e-4)

    # Validate against a float32 XLA reference (loosened tolerance since the
    # kernel runs its matmuls with bf16 operands / f32 accumulation).
    ref = jax.block_until_ready(jax.jit(net2_reference)(x, params))
    assert jnp.allclose(out, ref, atol=3e-2), float(jnp.max(jnp.abs(out - ref)))

    print("KERNEL_OK")
</pallas_src>

<mosaic_0001>
module attributes {stable_mosaic.version = 11 : i64} {
  func.func @_net2_kernel(%arg0: memref<4x338x9xbf16, #tpu.memory_space<vmem>>, %arg1: memref<9x16xbf16, #tpu.memory_space<vmem>>, %arg2: memref<1x16xf32, #tpu.memory_space<vmem>>, %arg3: memref<16x16x32xbf16, #tpu.memory_space<vmem>>, %arg4: memref<1x32xf32, #tpu.memory_space<vmem>>, %arg5: memref<50x296xbf16, #tpu.memory_space<vmem>>, %arg6: memref<25x32x64xbf16, #tpu.memory_space<vmem>>, %arg7: memref<1x64xf32, #tpu.memory_space<vmem>>, %arg8: memref<64x32xbf16, #tpu.memory_space<vmem>>, %arg9: memref<1x32xf32, #tpu.memory_space<vmem>>, %arg10: memref<32x10xbf16, #tpu.memory_space<vmem>>, %arg11: memref<1x10xf32, #tpu.memory_space<vmem>>, %arg12: memref<2x10xf32, #tpu.memory_space<vmem>>, %arg13: memref<338x16xf32, #tpu.memory_space<vmem>>, %arg14: memref<50x32xf32, #tpu.memory_space<vmem>>) attributes {dimension_semantics = [], scalar_prefetch = 0 : i64, scratch_operands = 2 : i64, tpu.core_type = #tpu.core_type<tc>} {
    %c0 = arith.constant 0 : index
    %c0_0 = arith.constant 0 : index
    %0 = vector.load %arg1[%c0, %c0_0] : memref<9x16xbf16, #tpu.memory_space<vmem>>, vector<9x16xbf16>
    %c0_1 = arith.constant 0 : index
    %c0_2 = arith.constant 0 : index
    %1 = vector.load %arg2[%c0_1, %c0_2] : memref<1x16xf32, #tpu.memory_space<vmem>>, vector<1x16xf32>
    %c0_3 = arith.constant 0 : index
    %c0_4 = arith.constant 0 : index
    %c0_5 = arith.constant 0 : index
    %2 = vector.load %arg0[%c0_3, %c0_4, %c0_5] : memref<4x338x9xbf16, #tpu.memory_space<vmem>>, vector<1x338x9xbf16>
    %3 = vector.shape_cast %2 : vector<1x338x9xbf16> to vector<338x9xbf16>
    %cst = arith.constant dense<0.000000e+00> : vector<338x16xf32>
    %4 = tpu.matmul %3, %0, %cst {dimension_numbers = #tpu.dot_dimension_numbers<[1], [0], [0], [1], [0, 0, 1, 1], [], []>} : vector<338x9xbf16>, vector<9x16xbf16>, vector<338x16xf32> -> vector<338x16xf32>
    %5 = vector.broadcast %1 : vector<1x16xf32> to vector<338x16xf32>
    %6 = arith.addf %4, %5 : vector<338x16xf32>
    %cst_6 = arith.constant 0.000000e+00 : f32
    %7 = vector.broadcast %cst_6 : f32 to vector<338x16xf32>
    %8 = arith.maximumf %6, %7 : vector<338x16xf32>
    %c1 = arith.constant 1 : index
    %c0_7 = arith.constant 0 : index
    %c0_8 = arith.constant 0 : index
    %9 = vector.load %arg0[%c1, %c0_7, %c0_8] : memref<4x338x9xbf16, #tpu.memory_space<vmem>>, vector<1x338x9xbf16>
    %10 = vector.shape_cast %9 : vector<1x338x9xbf16> to vector<338x9xbf16>
    %cst_9 = arith.constant dense<0.000000e+00> : vector<338x16xf32>
    %11 = tpu.matmul %10, %0, %cst_9 {dimension_numbers = #tpu.dot_dimension_numbers<[1], [0], [0], [1], [0, 0, 1, 1], [], []>} : vector<338x9xbf16>, vector<9x16xbf16>, vector<338x16xf32> -> vector<338x16xf32>
    %12 = vector.broadcast %1 : vector<1x16xf32> to vector<338x16xf32>
    %13 = arith.addf %11, %12 : vector<338x16xf32>
    %cst_10 = arith.constant 0.000000e+00 : f32
    %14 = vector.broadcast %cst_10 : f32 to vector<338x16xf32>
    %15 = arith.maximumf %13, %14 : vector<338x16xf32>
    %16 = arith.maximumf %8, %15 : vector<338x16xf32>
    %c2 = arith.constant 2 : index
    %c0_11 = arith.constant 0 : index
    %c0_12 = arith.constant 0 : index
    %17 = vector.load %arg0[%c2, %c0_11, %c0_12] : memref<4x338x9xbf16, #tpu.memory_space<vmem>>, vector<1x338x9xbf16>
    %18 = vector.shape_cast %17 : vector<1x338x9xbf16> to vector<338x9xbf16>
    %cst_13 = arith.constant dense<0.000000e+00> : vector<338x16xf32>
    %19 = tpu.matmul %18, %0, %cst_13 {dimension_numbers = #tpu.dot_dimension_numbers<[1], [0], [0], [1], [0, 0, 1, 1], [], []>} : vector<338x9xbf16>, vector<9x16xbf16>, vector<338x16xf32> -> vector<338x16xf32>
    %20 = vector.broadcast %1 : vector<1x16xf32> to vector<338x16xf32>
    %21 = arith.addf %19, %20 : vector<338x16xf32>
    %cst_14 = arith.constant 0.000000e+00 : f32
    %22 = vector.broadcast %cst_14 : f32 to vector<338x16xf32>
    %23 = arith.maximumf %21, %22 : vector<338x16xf32>
    %24 = arith.maximumf %16, %23 : vector<338x16xf32>
    %c3 = arith.constant 3 : index
    %c0_15 = arith.constant 0 : index
    %c0_16 = arith.constant 0 : index
    %25 = vector.load %arg0[%c3, %c0_15, %c0_16] : memref<4x338x9xbf16, #tpu.memory_space<vmem>>, vector<1x338x9xbf16>
    %26 = vector.shape_cast %25 : vector<1x338x9xbf16> to vector<338x9xbf16>
    %cst_17 = arith.constant dense<0.000000e+00> : vector<338x16xf32>
    %27 = tpu.matmul %26, %0, %cst_17 {dimension_numbers = #tpu.dot_dimension_numbers<[1], [0], [0], [1], [0, 0, 1, 1], [], []>} : vector<338x9xbf16>, vector<9x16xbf16>, vector<338x16xf32> -> vector<338x16xf32>
    %28 = vector.broadcast %1 : vector<1x16xf32> to vector<338x16xf32>
    %29 = arith.addf %27, %28 : vector<338x16xf32>
    %cst_18 = arith.constant 0.000000e+00 : f32
    %30 = vector.broadcast %cst_18 : f32 to vector<338x16xf32>
    %31 = arith.maximumf %29, %30 : vector<338x16xf32>
    %32 = arith.maximumf %24, %31 : vector<338x16xf32>
    %c0_19 = arith.constant 0 : index
    %c0_20 = arith.constant 0 : index
    %33 = vector.load %arg13[%c0_19, %c0_20] : memref<338x16xf32, #tpu.memory_space<vmem>>, vector<338x16xf32>
    tpu.vector_store %arg13[%c0_19, %c0_20], %32 {strides = array<i32>} : memref<338x16xf32, #tpu.memory_space<vmem>>, vector<338x16xf32>,
    %c0_21 = arith.constant 0 : index
    %c0_22 = arith.constant 0 : index
    %34 = vector.load %arg13[%c0_21, %c0_22] : memref<338x16xf32, #tpu.memory_space<vmem>>, vector<296x16xf32>
    %35 = arith.truncf %34 : vector<296x16xf32> to vector<296x16xbf16>
    %c0_23 = arith.constant 0 : index
    %c0_24 = arith.constant 0 : index
    %c0_25 = arith.constant 0 : index
    %36 = vector.load %arg3[%c0_23, %c0_24, %c0_25] : memref<16x16x32xbf16, #tpu.memory_space<vmem>>, vector<1x16x32xbf16>
    %37 = vector.shape_cast %36 : vector<1x16x32xbf16> to vector<16x32xbf16>
    %cst_26 = arith.constant dense<0.000000e+00> : vector<296x32xf32>
    %38 = tpu.matmul %35, %37, %cst_26 {dimension_numbers = #tpu.dot_dimension_numbers<[1], [0], [0], [1], [0, 0, 1, 1], [], []>} : vector<296x16xbf16>, vector<16x32xbf16>, vector<296x32xf32> -> vector<296x32xf32>
    %c1_27 = arith.constant 1 : index
    %c0_28 = arith.constant 0 : index
    %39 = vector.load %arg13[%c1_27, %c0_28] : memref<338x16xf32, #tpu.memory_space<vmem>>, vector<296x16xf32>
    %40 = arith.truncf %39 : vector<296x16xf32> to vector<296x16xbf16>
    %c1_29 = arith.constant 1 : index
    %c0_30 = arith.constant 0 : index
    %c0_31 = arith.constant 0 : index
    %41 = vector.load %arg3[%c1_29, %c0_30, %c0_31] : memref<16x16x32xbf16, #tpu.memory_space<vmem>>, vector<1x16x32xbf16>
    %42 = vector.shape_cast %41 : vector<1x16x32xbf16> to vector<16x32xbf16>
    %cst_32 = arith.constant dense<0.000000e+00> : vector<296x32xf32>
    %43 = tpu.matmul %40, %42, %cst_32 {dimension_numbers = #tpu.dot_dimension_numbers<[1], [0], [0], [1], [0, 0, 1, 1], [], []>} : vector<296x16xbf16>, vector<16x32xbf16>, vector<296x32xf32> -> vector<296x32xf32>
    %44 = arith.addf %38, %43 : vector<296x32xf32>
    %c2_33 = arith.constant 2 : index
    %c0_34 = arith.constant 0 : index
    %45 = vector.load %arg13[%c2_33, %c0_34] : memref<338x16xf32, #tpu.memory_space<vmem>>, vector<296x16xf32>
    %46 = arith.truncf %45 : vector<296x16xf32> to vector<296x16xbf16>
    %c2_35 = arith.constant 2 : index
    %c0_36 = arith.constant 0 : index
    %c0_37 = arith.constant 0 : index
    %47 = vector.load %arg3[%c2_35, %c0_36, %c0_37] : memref<16x16x32xbf16, #tpu.memory_space<vmem>>, vector<1x16x32xbf16>
    %48 = vector.shape_cast %47 : vector<1x16x32xbf16> to vector<16x32xbf16>
    %cst_38 = arith.constant dense<0.000000e+00> : vector<296x32xf32>
    %49 = tpu.matmul %46, %48, %cst_38 {dimension_numbers = #tpu.dot_dimension_numbers<[1], [0], [0], [1], [0, 0, 1, 1], [], []>} : vector<296x16xbf16>, vector<16x32xbf16>, vector<296x32xf32> -> vector<296x32xf32>
    %50 = arith.addf %44, %49 : vector<296x32xf32>
    %c3_39 = arith.constant 3 : index
    %c0_40 = arith.constant 0 : index
    %51 = vector.load %arg13[%c3_39, %c0_40] : memref<338x16xf32, #tpu.memory_space<vmem>>, vector<296x16xf32>
    %52 = arith.truncf %51 : vector<296x16xf32> to vector<296x16xbf16>
    %c3_41 = arith.constant 3 : index
    %c0_42 = arith.constant 0 : index
    %c0_43 = arith.constant 0 : index
    %53 = vector.load %arg3[%c3_41, %c0_42, %c0_43] : memref<16x16x32xbf16, #tpu.memory_space<vmem>>, vector<1x16x32xbf16>
    %54 = vector.shape_cast %53 : vector<1x16x32xbf16> to vector<16x32xbf16>
    %cst_44 = arith.constant dense<0.000000e+00> : vector<296x32xf32>
    %55 = tpu.matmul %52, %54, %cst_44 {dimension_numbers = #tpu.dot_dimension_numbers<[1], [0], [0], [1], [0, 0, 1, 1], [], []>} : vector<296x16xbf16>, vector<16x32xbf16>, vector<296x32xf32> -> vector<296x32xf32>
    %56 = arith.addf %50, %55 : vector<296x32xf32>
    %c13 = arith.constant 13 : index
    %c0_45 = arith.constant 0 : index
    %57 = vector.load %arg13[%c13, %c0_45] : memref<338x16xf32, #tpu.memory_space<vmem>>, vector<296x16xf32>
    %58 = arith.truncf %57 : vector<296x16xf32> to vector<296x16xbf16>
    %c4 = arith.constant 4 : index
    %c0_46 = arith.constant 0 : index
    %c0_47 = arith.constant 0 : index
    %59 = vector.load %arg3[%c4, %c0_46, %c0_47] : memref<16x16x32xbf16, #tpu.memory_space<vmem>>, vector<1x16x32xbf16>
    %60 = vector.shape_cast %59 : vector<1x16x32xbf16> to vector<16x32xbf16>
    %cst_48 = arith.constant dense<0.000000e+00> : vector<296x32xf32>
    %61 = tpu.matmul %58, %60, %cst_48 {dimension_numbers = #tpu.dot_dimension_numbers<[1], [0], [0], [1], [0, 0, 1, 1], [], []>} : vector<296x16xbf16>, vector<16x32xbf16>, vector<296x32xf32> -> vector<296x32xf32>
    %62 = arith.addf %56, %61 : vector<296x32xf32>
    %c14 = arith.constant 14 : index
    %c0_49 = arith.constant 0 : index
    %63 = vector.load %arg13[%c14, %c0_49] : memref<338x16xf32, #tpu.memory_space<vmem>>, vector<296x16xf32>
    %64 = arith.truncf %63 : vector<296x16xf32> to vector<296x16xbf16>
    %c5 = arith.constant 5 : index
    %c0_50 = arith.constant 0 : index
    %c0_51 = arith.constant 0 : index
    %65 = vector.load %arg3[%c5, %c0_50, %c0_51] : memref<16x16x32xbf16, #tpu.memory_space<vmem>>, vector<1x16x32xbf16>
    %66 = vector.shape_cast %65 : vector<1x16x32xbf16> to vector<16x32xbf16>
    %cst_52 = arith.constant dense<0.000000e+00> : vector<296x32xf32>
    %67 = tpu.matmul %64, %66, %cst_52 {dimension_numbers = #tpu.dot_dimension_numbers<[1], [0], [0], [1], [0, 0, 1, 1], [], []>} : vector<296x16xbf16>, vector<16x32xbf16>, vector<296x32xf32> -> vector<296x32xf32>
    %68 = arith.addf %62, %67 : vector<296x32xf32>
    %c15 = arith.constant 15 : index
    %c0_53 = arith.constant 0 : index
    %69 = vector.load %arg13[%c15, %c0_53] : memref<338x16xf32, #tpu.memory_space<vmem>>, vector<296x16xf32>
    %70 = arith.truncf %69 : vector<296x16xf32> to vector<296x16xbf16>
    %c6 = arith.constant 6 : index
    %c0_54 = arith.constant 0 : index
    %c0_55 = arith.constant 0 : index
    %71 = vector.load %arg3[%c6, %c0_54, %c0_55] : memref<16x16x32xbf16, #tpu.memory_space<vmem>>, vector<1x16x32xbf16>
    %72 = vector.shape_cast %71 : vector<1x16x32xbf16> to vector<16x32xbf16>
    %cst_56 = arith.constant dense<0.000000e+00> : vector<296x32xf32>
    %73 = tpu.matmul %70, %72, %cst_56 {dimension_numbers = #tpu.dot_dimension_numbers<[1], [0], [0], [1], [0, 0, 1, 1], [], []>} : vector<296x16xbf16>, vector<16x32xbf16>, vector<296x32xf32> -> vector<296x32xf32>
    %74 = arith.addf %68, %73 : vector<296x32xf32>
    %c16 = arith.constant 16 : index
    %c0_57 = arith.constant 0 : index
    %75 = vector.load %arg13[%c16, %c0_57] : memref<338x16xf32, #tpu.memory_space<vmem>>, vector<296x16xf32>
    %76 = arith.truncf %75 : vector<296x16xf32> to vector<296x16xbf16>
    %c7 = arith.constant 7 : index
    %c0_58 = arith.constant 0 : index
    %c0_59 = arith.constant 0 : index
    %77 = vector.load %arg3[%c7, %c0_58, %c0_59] : memref<16x16x32xbf16, #tpu.memory_space<vmem>>, vector<1x16x32xbf16>
    %78 = vector.shape_cast %77 : vector<1x16x32xbf16> to vector<16x32xbf16>
    %cst_60 = arith.constant dense<0.000000e+00> : vector<296x32xf32>
    %79 = tpu.matmul %76, %78, %cst_60 {dimension_numbers = #tpu.dot_dimension_numbers<[1], [0], [0], [1], [0, 0, 1, 1], [], []>} : vector<296x16xbf16>, vector<16x32xbf16>, vector<296x32xf32> -> vector<296x32xf32>
    %80 = arith.addf %74, %79 : vector<296x32xf32>
    %c26 = arith.constant 26 : index
    %c0_61 = arith.constant 0 : index
    %81 = vector.load %arg13[%c26, %c0_61] : memref<338x16xf32, #tpu.memory_space<vmem>>, vector<296x16xf32>
    %82 = arith.truncf %81 : vector<296x16xf32> to vector<296x16xbf16>
    %c8 = arith.constant 8 : index
    %c0_62 = arith.constant 0 : index
    %c0_63 = arith.constant 0 : index
    %83 = vector.load %arg3[%c8, %c0_62, %c0_63] : memref<16x16x32xbf16, #tpu.memory_space<vmem>>, vector<1x16x32xbf16>
    %84 = vector.shape_cast %83 : vector<1x16x32xbf16> to vector<16x32xbf16>
    %cst_64 = arith.constant dense<0.000000e+00> : vector<296x32xf32>
    %85 = tpu.matmul %82, %84, %cst_64 {dimension_numbers = #tpu.dot_dimension_numbers<[1], [0], [0], [1], [0, 0, 1, 1], [], []>} : vector<296x16xbf16>, vector<16x32xbf16>, vector<296x32xf32> -> vector<296x32xf32>
    %86 = arith.addf %80, %85 : vector<296x32xf32>
    %c27 = arith.constant 27 : index
    %c0_65 = arith.constant 0 : index
    %87 = vector.load %arg13[%c27, %c0_65] : memref<338x16xf32, #tpu.memory_space<vmem>>, vector<296x16xf32>
    %88 = arith.truncf %87 : vector<296x16xf32> to vector<296x16xbf16>
    %c9 = arith.constant 9 : index
    %c0_66 = arith.constant 0 : index
    %c0_67 = arith.constant 0 : index
    %89 = vector.load %arg3[%c9, %c0_66, %c0_67] : memref<16x16x32xbf16, #tpu.memory_space<vmem>>, vector<1x16x32xbf16>
    %90 = vector.shape_cast %89 : vector<1x16x32xbf16> to vector<16x32xbf16>
    %cst_68 = arith.constant dense<0.000000e+00> : vector<296x32xf32>
    %91 = tpu.matmul %88, %90, %cst_68 {dimension_numbers = #tpu.dot_dimension_numbers<[1], [0], [0], [1], [0, 0, 1, 1], [], []>} : vector<296x16xbf16>, vector<16x32xbf16>, vector<296x32xf32> -> vector<296x32xf32>
    %92 = arith.addf %86, %91 : vector<296x32xf32>
    %c28 = arith.constant 28 : index
    %c0_69 = arith.constant 0 : index
    %93 = vector.load %arg13[%c28, %c0_69] : memref<338x16xf32, #tpu.memory_space<vmem>>, vector<296x16xf32>
    %94 = arith.truncf %93 : vector<296x16xf32> to vector<296x16xbf16>
    %c10 = arith.constant 10 : index
    %c0_70 = arith.constant 0 : index
    %c0_71 = arith.constant 0 : index
    %95 = vector.load %arg3[%c10, %c0_70, %c0_71] : memref<16x16x32xbf16, #tpu.memory_space<vmem>>, vector<1x16x32xbf16>
    %96 = vector.shape_cast %95 : vector<1x16x32xbf16> to vector<16x32xbf16>
    %cst_72 = arith.constant dense<0.000000e+00> : vector<296x32xf32>
    %97 = tpu.matmul %94, %96, %cst_72 {dimension_numbers = #tpu.dot_dimension_numbers<[1], [0], [0], [1], [0, 0, 1, 1], [], []>} : vector<296x16xbf16>, vector<16x32xbf16>, vector<296x32xf32> -> vector<296x32xf32>
    %98 = arith.addf %92, %97 : vector<296x32xf32>
    %c29 = arith.constant 29 : index
    %c0_73 = arith.constant 0 : index
    %99 = vector.load %arg13[%c29, %c0_73] : memref<338x16xf32, #tpu.memory_space<vmem>>, vector<296x16xf32>
    %100 = arith.truncf %99 : vector<296x16xf32> to vector<296x16xbf16>
    %c11 = arith.constant 11 : index
    %c0_74 = arith.constant 0 : index
    %c0_75 = arith.constant 0 : index
    %101 = vector.load %arg3[%c11, %c0_74, %c0_75] : memref<16x16x32xbf16, #tpu.memory_space<vmem>>, vector<1x16x32xbf16>
    %102 = vector.shape_cast %101 : vector<1x16x32xbf16> to vector<16x32xbf16>
    %cst_76 = arith.constant dense<0.000000e+00> : vector<296x32xf32>
    %103 = tpu.matmul %100, %102, %cst_76 {dimension_numbers = #tpu.dot_dimension_numbers<[1], [0], [0], [1], [0, 0, 1, 1], [], []>} : vector<296x16xbf16>, vector<16x32xbf16>, vector<296x32xf32> -> vector<296x32xf32>
    %104 = arith.addf %98, %103 : vector<296x32xf32>
    %c39 = arith.constant 39 : index
    %c0_77 = arith.constant 0 : index
    %105 = vector.load %arg13[%c39, %c0_77] : memref<338x16xf32, #tpu.memory_space<vmem>>, vector<296x16xf32>
    %106 = arith.truncf %105 : vector<296x16xf32> to vector<296x16xbf16>
    %c12 = arith.constant 12 : index
    %c0_78 = arith.constant 0 : index
    %c0_79 = arith.constant 0 : index
    %107 = vector.load %arg3[%c12, %c0_78, %c0_79] : memref<16x16x32xbf16, #tpu.memory_space<vmem>>, vector<1x16x32xbf16>
    %108 = vector.shape_cast %107 : vector<1x16x32xbf16> to vector<16x32xbf16>
    %cst_80 = arith.constant dense<0.000000e+00> : vector<296x32xf32>
    %109 = tpu.matmul %106, %108, %cst_80 {dimension_numbers = #tpu.dot_dimension_numbers<[1], [0], [0], [1], [0, 0, 1, 1], [], []>} : vector<296x16xbf16>, vector<16x32xbf16>, vector<296x32xf32> -> vector<296x32xf32>
    %110 = arith.addf %104, %109 : vector<296x32xf32>
    %c40 = arith.constant 40 : index
    %c0_81 = arith.constant 0 : index
    %111 = vector.load %arg13[%c40, %c0_81] : memref<338x16xf32, #tpu.memory_space<vmem>>, vector<296x16xf32>
    %112 = arith.truncf %111 : vector<296x16xf32> to vector<296x16xbf16>
    %c13_82 = arith.constant 13 : index
    %c0_83 = arith.constant 0 : index
    %c0_84 = arith.constant 0 : index
    %113 = vector.load %arg3[%c13_82, %c0_83, %c0_84] : memref<16x16x32xbf16, #tpu.memory_space<vmem>>, vector<1x16x32xbf16>
    %114 = vector.shape_cast %113 : vector<1x16x32xbf16> to vector<16x32xbf16>
    %cst_85 = arith.constant dense<0.000000e+00> : vector<296x32xf32>
    %115 = tpu.matmul %112, %114, %cst_85 {dimension_numbers = #tpu.dot_dimension_numbers<[1], [0], [0], [1], [0, 0, 1, 1], [], []>} : vector<296x16xbf16>, vector<16x32xbf16>, vector<296x32xf32> -> vector<296x32xf32>
    %116 = arith.addf %110, %115 : vector<296x32xf32>
    %c41 = arith.constant 41 : index
    %c0_86 = arith.constant 0 : index
    %117 = vector.load %arg13[%c41, %c0_86] : memref<338x16xf32, #tpu.memory_space<vmem>>, vector<296x16xf32>
    %118 = arith.truncf %117 : vector<296x16xf32> to vector<296x16xbf16>
    %c14_87 = arith.constant 14 : index
    %c0_88 = arith.constant 0 : index
    %c0_89 = arith.constant 0 : index
    %119 = vector.load %arg3[%c14_87, %c0_88, %c0_89] : memref<16x16x32xbf16, #tpu.memory_space<vmem>>, vector<1x16x32xbf16>
    %120 = vector.shape_cast %119 : vector<1x16x32xbf16> to vector<16x32xbf16>
    %cst_90 = arith.constant dense<0.000000e+00> : vector<296x32xf32>
    %121 = tpu.matmul %118, %120, %cst_90 {dimension_numbers = #tpu.dot_dimension_numbers<[1], [0], [0], [1], [0, 0, 1, 1], [], []>} : vector<296x16xbf16>, vector<16x32xbf16>, vector<296x32xf32> -> vector<296x32xf32>
    %122 = arith.addf %116, %121 : vector<296x32xf32>
    %c42 = arith.constant 42 : index
    %c0_91 = arith.constant 0 : index
    %123 = vector.load %arg13[%c42, %c0_91] : memref<338x16xf32, #tpu.memory_space<vmem>>, vector<296x16xf32>
    %124 = arith.truncf %123 : vector<296x16xf32> to vector<296x16xbf16>
    %c15_92 = arith.constant 15 : index
    %c0_93 = arith.constant 0 : index
    %c0_94 = arith.constant 0 : index
    %125 = vector.load %arg3[%c15_92, %c0_93, %c0_94] : memref<16x16x32xbf16, #tpu.memory_space<vmem>>, vector<1x16x32xbf16>
    %126 = vector.shape_cast %125 : vector<1x16x32xbf16> to vector<16x32xbf16>
    %cst_95 = arith.constant dense<0.000000e+00> : vector<296x32xf32>
    %127 = tpu.matmul %124, %126, %cst_95 {dimension_numbers = #tpu.dot_dimension_numbers<[1], [0], [0], [1], [0, 0, 1, 1], [], []>} : vector<296x16xbf16>, vector<16x32xbf16>, vector<296x32xf32> -> vector<296x32xf32>
    %128 = arith.addf %122, %127 : vector<296x32xf32>
    %c0_96 = arith.constant 0 : index
    %c0_97 = arith.constant 0 : index
    %129 = vector.load %arg4[%c0_96, %c0_97] : memref<1x32xf32, #tpu.memory_space<vmem>>, vector<1x32xf32>
    %130 = vector.broadcast %129 : vector<1x32xf32> to vector<296x32xf32>
    %131 = arith.addf %128, %130 : vector<296x32xf32>
    %cst_98 = arith.constant 0.000000e+00 : f32
    %132 = vector.broadcast %cst_98 : f32 to vector<296x32xf32>
    %133 = arith.maximumf %131, %132 : vector<296x32xf32>
    %134 = arith.truncf %133 : vector<296x32xf32> to vector<296x32xbf16>
    %c0_99 = arith.constant 0 : index
    %c0_100 = arith.constant 0 : index
    %135 = vector.load %arg5[%c0_99, %c0_100] : memref<50x296xbf16, #tpu.memory_space<vmem>>, vector<50x296xbf16>
    %cst_101 = arith.constant dense<0.000000e+00> : vector<50x32xf32>
    %136 = tpu.matmul %135, %134, %cst_101 {dimension_numbers = #tpu.dot_dimension_numbers<[1], [0], [0], [1], [0, 0, 1, 1], [], []>} : vector<50x296xbf16>, vector<296x32xbf16>, vector<50x32xf32> -> vector<50x32xf32>
    %c0_102 = arith.constant 0 : index
    %c0_103 = arith.constant 0 : index
    %137 = vector.load %arg14[%c0_102, %c0_103] : memref<50x32xf32, #tpu.memory_space<vmem>>, vector<50x32xf32>
    tpu.vector_store %arg14[%c0_102, %c0_103], %136 {strides = array<i32>} : memref<50x32xf32, #tpu.memory_space<vmem>>, vector<50x32xf32>,
    %c0_104 = arith.constant 0 : index
    %c0_105 = arith.constant 0 : index
    %138 = vector.load %arg14[%c0_104, %c0_105] : memref<50x32xf32, #tpu.memory_space<vmem>>, vector<2x32xf32>
    %139 = arith.truncf %138 : vector<2x32xf32> to vector<2x32xbf16>
    %c0_106 = arith.constant 0 : index
    %c0_107 = arith.constant 0 : index
    %c0_108 = arith.constant 0 : index
    %140 = vector.load %arg6[%c0_106, %c0_107, %c0_108] : memref<25x32x64xbf16, #tpu.memory_space<vmem>>, vector<1x32x64xbf16>
    %141 = vector.shape_cast %140 : vector<1x32x64xbf16> to vector<32x64xbf16>
    %cst_109 = arith.constant dense<0.000000e+00> : vector<2x64xf32>
    %142 = tpu.matmul %139, %141, %cst_109 {dimension_numbers = #tpu.dot_dimension_numbers<[1], [0], [0], [1], [0, 0, 1, 1], [], []>} : vector<2x32xbf16>, vector<32x64xbf16>, vector<2x64xf32> -> vector<2x64xf32>
    %c2_110 = arith.constant 2 : index
    %c0_111 = arith.constant 0 : index
    %143 = vector.load %arg14[%c2_110, %c0_111] : memref<50x32xf32, #tpu.memory_space<vmem>>, vector<2x32xf32>
    %144 = arith.truncf %143 : vector<2x32xf32> to vector<2x32xbf16>
    %c1_112 = arith.constant 1 : index
    %c0_113 = arith.constant 0 : index
    %c0_114 = arith.constant 0 : index
    %145 = vector.load %arg6[%c1_112, %c0_113, %c0_114] : memref<25x32x64xbf16, #tpu.memory_space<vmem>>, vector<1x32x64xbf16>
    %146 = vector.shape_cast %145 : vector<1x32x64xbf16> to vector<32x64xbf16>
    %cst_115 = arith.constant dense<0.000000e+00> : vector<2x64xf32>
    %147 = tpu.matmul %144, %146, %cst_115 {dimension_numbers = #tpu.dot_dimension_numbers<[1], [0], [0], [1], [0, 0, 1, 1], [], []>} : vector<2x32xbf16>, vector<32x64xbf16>, vector<2x64xf32> -> vector<2x64xf32>
    %148 = arith.addf %142, %147 : vector<2x64xf32>
    %c4_116 = arith.constant 4 : index
    %c0_117 = arith.constant 0 : index
    %149 = vector.load %arg14[%c4_116, %c0_117] : memref<50x32xf32, #tpu.memory_space<vmem>>, vector<2x32xf32>
    %150 = arith.truncf %149 : vector<2x32xf32> to vector<2x32xbf16>
    %c2_118 = arith.constant 2 : index
    %c0_119 = arith.constant 0 : index
    %c0_120 = arith.constant 0 : index
    %151 = vector.load %arg6[%c2_118, %c0_119, %c0_120] : memref<25x32x64xbf16, #tpu.memory_space<vmem>>, vector<1x32x64xbf16>
    %152 = vector.shape_cast %151 : vector<1x32x64xbf16> to vector<32x64xbf16>
    %cst_121 = arith.constant dense<0.000000e+00> : vector<2x64xf32>
    %153 = tpu.matmul %150, %152, %cst_121 {dimension_numbers = #tpu.dot_dimension_numbers<[1], [0], [0], [1], [0, 0, 1, 1], [], []>} : vector<2x32xbf16>, vector<32x64xbf16>, vector<2x64xf32> -> vector<2x64xf32>
    %154 = arith.addf %148, %153 : vector<2x64xf32>
    %c6_122 = arith.constant 6 : index
    %c0_123 = arith.constant 0 : index
    %155 = vector.load %arg14[%c6_122, %c0_123] : memref<50x32xf32, #tpu.memory_space<vmem>>, vector<2x32xf32>
    %156 = arith.truncf %155 : vector<2x32xf32> to vector<2x32xbf16>
    %c3_124 = arith.constant 3 : index
    %c0_125 = arith.constant 0 : index
    %c0_126 = arith.constant 0 : index
    %157 = vector.load %arg6[%c3_124, %c0_125, %c0_126] : memref<25x32x64xbf16, #tpu.memory_space<vmem>>, vector<1x32x64xbf16>
    %158 = vector.shape_cast %157 : vector<1x32x64xbf16> to vector<32x64xbf16>
    %cst_127 = arith.constant dense<0.000000e+00> : vector<2x64xf32>
    %159 = tpu.matmul %156, %158, %cst_127 {dimension_numbers = #tpu.dot_dimension_numbers<[1], [0], [0], [1], [0, 0, 1, 1], [], []>} : vector<2x32xbf16>, vector<32x64xbf16>, vector<2x64xf32> -> vector<2x64xf32>
    %160 = arith.addf %154, %159 : vector<2x64xf32>
    %c8_128 = arith.constant 8 : index
    %c0_129 = arith.constant 0 : index
    %161 = vector.load %arg14[%c8_128, %c0_129] : memref<50x32xf32, #tpu.memory_space<vmem>>, vector<2x32xf32>
    %162 = arith.truncf %161 : vector<2x32xf32> to vector<2x32xbf16>
    %c4_130 = arith.constant 4 : index
    %c0_131 = arith.constant 0 : index
    %c0_132 = arith.constant 0 : index
    %163 = vector.load %arg6[%c4_130, %c0_131, %c0_132] : memref<25x32x64xbf16, #tpu.memory_space<vmem>>, vector<1x32x64xbf16>
    %164 = vector.shape_cast %163 : vector<1x32x64xbf16> to vector<32x64xbf16>
    %cst_133 = arith.constant dense<0.000000e+00> : vector<2x64xf32>
    %165 = tpu.matmul %162, %164, %cst_133 {dimension_numbers = #tpu.dot_dimension_numbers<[1], [0], [0], [1], [0, 0, 1, 1], [], []>} : vector<2x32xbf16>, vector<32x64xbf16>, vector<2x64xf32> -> vector<2x64xf32>
    %166 = arith.addf %160, %165 : vector<2x64xf32>
    %c10_134 = arith.constant 10 : index
    %c0_135 = arith.constant 0 : index
    %167 = vector.load %arg14[%c10_134, %c0_135] : memref<50x32xf32, #tpu.memory_space<vmem>>, vector<2x32xf32>
    %168 = arith.truncf %167 : vector<2x32xf32> to vector<2x32xbf16>
    %c5_136 = arith.constant 5 : index
    %c0_137 = arith.constant 0 : index
    %c0_138 = arith.constant 0 : index
    %169 = vector.load %arg6[%c5_136, %c0_137, %c0_138] : memref<25x32x64xbf16, #tpu.memory_space<vmem>>, vector<1x32x64xbf16>
    %170 = vector.shape_cast %169 : vector<1x32x64xbf16> to vector<32x64xbf16>
    %cst_139 = arith.constant dense<0.000000e+00> : vector<2x64xf32>
    %171 = tpu.matmul %168, %170, %cst_139 {dimension_numbers = #tpu.dot_dimension_numbers<[1], [0], [0], [1], [0, 0, 1, 1], [], []>} : vector<2x32xbf16>, vector<32x64xbf16>, vector<2x64xf32> -> vector<2x64xf32>
    %172 = arith.addf %166, %171 : vector<2x64xf32>
    %c12_140 = arith.constant 12 : index
    %c0_141 = arith.constant 0 : index
    %173 = vector.load %arg14[%c12_140, %c0_141] : memref<50x32xf32, #tpu.memory_space<vmem>>, vector<2x32xf32>
    %174 = arith.truncf %173 : vector<2x32xf32> to vector<2x32xbf16>
    %c6_142 = arith.constant 6 : index
    %c0_143 = arith.constant 0 : index
    %c0_144 = arith.constant 0 : index
    %175 = vector.load %arg6[%c6_142, %c0_143, %c0_144] : memref<25x32x64xbf16, #tpu.memory_space<vmem>>, vector<1x32x64xbf16>
    %176 = vector.shape_cast %175 : vector<1x32x64xbf16> to vector<32x64xbf16>
    %cst_145 = arith.constant dense<0.000000e+00> : vector<2x64xf32>
    %177 = tpu.matmul %174, %176, %cst_145 {dimension_numbers = #tpu.dot_dimension_numbers<[1], [0], [0], [1], [0, 0, 1, 1], [], []>} : vector<2x32xbf16>, vector<32x64xbf16>, vector<2x64xf32> -> vector<2x64xf32>
    %178 = arith.addf %172, %177 : vector<2x64xf32>
    %c14_146 = arith.constant 14 : index
    %c0_147 = arith.constant 0 : index
    %179 = vector.load %arg14[%c14_146, %c0_147] : memref<50x32xf32, #tpu.memory_space<vmem>>, vector<2x32xf32>
    %180 = arith.truncf %179 : vector<2x32xf32> to vector<2x32xbf16>
    %c7_148 = arith.constant 7 : index
    %c0_149 = arith.constant 0 : index
    %c0_150 = arith.constant 0 : index
    %181 = vector.load %arg6[%c7_148, %c0_149, %c0_150] : memref<25x32x64xbf16, #tpu.memory_space<vmem>>, vector<1x32x64xbf16>
    %182 = vector.shape_cast %181 : vector<1x32x64xbf16> to vector<32x64xbf16>
    %cst_151 = arith.constant dense<0.000000e+00> : vector<2x64xf32>
    %183 = tpu.matmul %180, %182, %cst_151 {dimension_numbers = #tpu.dot_dimension_numbers<[1], [0], [0], [1], [0, 0, 1, 1], [], []>} : vector<2x32xbf16>, vector<32x64xbf16>, vector<2x64xf32> -> vector<2x64xf32>
    %184 = arith.addf %178, %183 : vector<2x64xf32>
    %c16_152 = arith.constant 16 : index
    %c0_153 = arith.constant 0 : index
    %185 = vector.load %arg14[%c16_152, %c0_153] : memref<50x32xf32, #tpu.memory_space<vmem>>, vector<2x32xf32>
    %186 = arith.truncf %185 : vector<2x32xf32> to vector<2x32xbf16>
    %c8_154 = arith.constant 8 : index
    %c0_155 = arith.constant 0 : index
    %c0_156 = arith.constant 0 : index
    %187 = vector.load %arg6[%c8_154, %c0_155, %c0_156] : memref<25x32x64xbf16, #tpu.memory_space<vmem>>, vector<1x32x64xbf16>
    %188 = vector.shape_cast %187 : vector<1x32x64xbf16> to vector<32x64xbf16>
    %cst_157 = arith.constant dense<0.000000e+00> : vector<2x64xf32>
    %189 = tpu.matmul %186, %188, %cst_157 {dimension_numbers = #tpu.dot_dimension_numbers<[1], [0], [0], [1], [0, 0, 1, 1], [], []>} : vector<2x32xbf16>, vector<32x64xbf16>, vector<2x64xf32> -> vector<2x64xf32>
    %190 = arith.addf %184, %189 : vector<2x64xf32>
    %c18 = arith.constant 18 : index
    %c0_158 = arith.constant 0 : index
    %191 = vector.load %arg14[%c18, %c0_158] : memref<50x32xf32, #tpu.memory_space<vmem>>, vector<2x32xf32>
    %192 = arith.truncf %191 : vector<2x32xf32> to vector<2x32xbf16>
    %c9_159 = arith.constant 9 : index
    %c0_160 = arith.constant 0 : index
    %c0_161 = arith.constant 0 : index
    %193 = vector.load %arg6[%c9_159, %c0_160, %c0_161] : memref<25x32x64xbf16, #tpu.memory_space<vmem>>, vector<1x32x64xbf16>
    %194 = vector.shape_cast %193 : vector<1x32x64xbf16> to vector<32x64xbf16>
    %cst_162 = arith.constant dense<0.000000e+00> : vector<2x64xf32>
    %195 = tpu.matmul %192, %194, %cst_162 {dimension_numbers = #tpu.dot_dimension_numbers<[1], [0], [0], [1], [0, 0, 1, 1], [], []>} : vector<2x32xbf16>, vector<32x64xbf16>, vector<2x64xf32> -> vector<2x64xf32>
    %196 = arith.addf %190, %195 : vector<2x64xf32>
    %c20 = arith.constant 20 : index
    %c0_163 = arith.constant 0 : index
    %197 = vector.load %arg14[%c20, %c0_163] : memref<50x32xf32, #tpu.memory_space<vmem>>, vector<2x32xf32>
    %198 = arith.truncf %197 : vector<2x32xf32> to vector<2x32xbf16>
    %c10_164 = arith.constant 10 : index
    %c0_165 = arith.constant 0 : index
    %c0_166 = arith.constant 0 : index
    %199 = vector.load %arg6[%c10_164, %c0_165, %c0_166] : memref<25x32x64xbf16, #tpu.memory_space<vmem>>, vector<1x32x64xbf16>
    %200 = vector.shape_cast %199 : vector<1x32x64xbf16> to vector<32x64xbf16>
    %cst_167 = arith.constant dense<0.000000e+00> : vector<2x64xf32>
    %201 = tpu.matmul %198, %200, %cst_167 {dimension_numbers = #tpu.dot_dimension_numbers<[1], [0], [0], [1], [0, 0, 1, 1], [], []>} : vector<2x32xbf16>, vector<32x64xbf16>, vector<2x64xf32> -> vector<2x64xf32>
    %202 = arith.addf %196, %201 : vector<2x64xf32>
    %c22 = arith.constant 22 : index
    %c0_168 = arith.constant 0 : index
    %203 = vector.load %arg14[%c22, %c0_168] : memref<50x32xf32, #tpu.memory_space<vmem>>, vector<2x32xf32>
    %204 = arith.truncf %203 : vector<2x32xf32> to vector<2x32xbf16>
    %c11_169 = arith.constant 11 : index
    %c0_170 = arith.constant 0 : index
    %c0_171 = arith.constant 0 : index
    %205 = vector.load %arg6[%c11_169, %c0_170, %c0_171] : memref<25x32x64xbf16, #tpu.memory_space<vmem>>, vector<1x32x64xbf16>
    %206 = vector.shape_cast %205 : vector<1x32x64xbf16> to vector<32x64xbf16>
    %cst_172 = arith.constant dense<0.000000e+00> : vector<2x64xf32>
    %207 = tpu.matmul %204, %206, %cst_172 {dimension_numbers = #tpu.dot_dimension_numbers<[1], [0], [0], [1], [0, 0, 1, 1], [], []>} : vector<2x32xbf16>, vector<32x64xbf16>, vector<2x64xf32> -> vector<2x64xf32>
    %208 = arith.addf %202, %207 : vector<2x64xf32>
    %c24 = arith.constant 24 : index
    %c0_173 = arith.constant 0 : index
    %209 = vector.load %arg14[%c24, %c0_173] : memref<50x32xf32, #tpu.memory_space<vmem>>, vector<2x32xf32>
    %210 = arith.truncf %209 : vector<2x32xf32> to vector<2x32xbf16>
    %c12_174 = arith.constant 12 : index
    %c0_175 = arith.constant 0 : index
    %c0_176 = arith.constant 0 : index
    %211 = vector.load %arg6[%c12_174, %c0_175, %c0_176] : memref<25x32x64xbf16, #tpu.memory_space<vmem>>, vector<1x32x64xbf16>
    %212 = vector.shape_cast %211 : vector<1x32x64xbf16> to vector<32x64xbf16>
    %cst_177 = arith.constant dense<0.000000e+00> : vector<2x64xf32>
    %213 = tpu.matmul %210, %212, %cst_177 {dimension_numbers = #tpu.dot_dimension_numbers<[1], [0], [0], [1], [0, 0, 1, 1], [], []>} : vector<2x32xbf16>, vector<32x64xbf16>, vector<2x64xf32> -> vector<2x64xf32>
    %214 = arith.addf %208, %213 : vector<2x64xf32>
    %c26_178 = arith.constant 26 : index
    %c0_179 = arith.constant 0 : index
    %215 = vector.load %arg14[%c26_178, %c0_179] : memref<50x32xf32, #tpu.memory_space<vmem>>, vector<2x32xf32>
    %216 = arith.truncf %215 : vector<2x32xf32> to vector<2x32xbf16>
    %c13_180 = arith.constant 13 : index
    %c0_181 = arith.constant 0 : index
    %c0_182 = arith.constant 0 : index
    %217 = vector.load %arg6[%c13_180, %c0_181, %c0_182] : memref<25x32x64xbf16, #tpu.memory_space<vmem>>, vector<1x32x64xbf16>
    %218 = vector.shape_cast %217 : vector<1x32x64xbf16> to vector<32x64xbf16>
    %cst_183 = arith.constant dense<0.000000e+00> : vector<2x64xf32>
    %219 = tpu.matmul %216, %218, %cst_183 {dimension_numbers = #tpu.dot_dimension_numbers<[1], [0], [0], [1], [0, 0, 1, 1], [], []>} : vector<2x32xbf16>, vector<32x64xbf16>, vector<2x64xf32> -> vector<2x64xf32>
    %220 = arith.addf %214, %219 : vector<2x64xf32>
    %c28_184 = arith.constant 28 : index
    %c0_185 = arith.constant 0 : index
    %221 = vector.load %arg14[%c28_184, %c0_185] : memref<50x32xf32, #tpu.memory_space<vmem>>, vector<2x32xf32>
    %222 = arith.truncf %221 : vector<2x32xf32> to vector<2x32xbf16>
    %c14_186 = arith.constant 14 : index
    %c0_187 = arith.constant 0 : index
    %c0_188 = arith.constant 0 : index
    %223 = vector.load %arg6[%c14_186, %c0_187, %c0_188] : memref<25x32x64xbf16, #tpu.memory_space<vmem>>, vector<1x32x64xbf16>
    %224 = vector.shape_cast %223 : vector<1x32x64xbf16> to vector<32x64xbf16>
    %cst_189 = arith.constant dense<0.000000e+00> : vector<2x64xf32>
    %225 = tpu.matmul %222, %224, %cst_189 {dimension_numbers = #tpu.dot_dimension_numbers<[1], [0], [0], [1], [0, 0, 1, 1], [], []>} : vector<2x32xbf16>, vector<32x64xbf16>, vector<2x64xf32> -> vector<2x64xf32>
    %226 = arith.addf %220, %225 : vector<2x64xf32>
    %c30 = arith.constant 30 : index
    %c0_190 = arith.constant 0 : index
    %227 = vector.load %arg14[%c30, %c0_190] : memref<50x32xf32, #tpu.memory_space<vmem>>, vector<2x32xf32>
    %228 = arith.truncf %227 : vector<2x32xf32> to vector<2x32xbf16>
    %c15_191 = arith.constant 15 : index
    %c0_192 = arith.constant 0 : index
    %c0_193 = arith.constant 0 : index
    %229 = vector.load %arg6[%c15_191, %c0_192, %c0_193] : memref<25x32x64xbf16, #tpu.memory_space<vmem>>, vector<1x32x64xbf16>
    %230 = vector.shape_cast %229 : vector<1x32x64xbf16> to vector<32x64xbf16>
    %cst_194 = arith.constant dense<0.000000e+00> : vector<2x64xf32>
    %231 = tpu.matmul %228, %230, %cst_194 {dimension_numbers = #tpu.dot_dimension_numbers<[1], [0], [0], [1], [0, 0, 1, 1], [], []>} : vector<2x32xbf16>, vector<32x64xbf16>, vector<2x64xf32> -> vector<2x64xf32>
    %232 = arith.addf %226, %231 : vector<2x64xf32>
    %c32 = arith.constant 32 : index
    %c0_195 = arith.constant 0 : index
    %233 = vector.load %arg14[%c32, %c0_195] : memref<50x32xf32, #tpu.memory_space<vmem>>, vector<2x32xf32>
    %234 = arith.truncf %233 : vector<2x32xf32> to vector<2x32xbf16>
    %c16_196 = arith.constant 16 : index
    %c0_197 = arith.constant 0 : index
    %c0_198 = arith.constant 0 : index
    %235 = vector.load %arg6[%c16_196, %c0_197, %c0_198] : memref<25x32x64xbf16, #tpu.memory_space<vmem>>, vector<1x32x64xbf16>
    %236 = vector.shape_cast %235 : vector<1x32x64xbf16> to vector<32x64xbf16>
    %cst_199 = arith.constant dense<0.000000e+00> : vector<2x64xf32>
    %237 = tpu.matmul %234, %236, %cst_199 {dimension_numbers = #tpu.dot_dimension_numbers<[1], [0], [0], [1], [0, 0, 1, 1], [], []>} : vector<2x32xbf16>, vector<32x64xbf16>, vector<2x64xf32> -> vector<2x64xf32>
    %238 = arith.addf %232, %237 : vector<2x64xf32>
    %c34 = arith.constant 34 : index
    %c0_200 = arith.constant 0 : index
    %239 = vector.load %arg14[%c34, %c0_200] : memref<50x32xf32, #tpu.memory_space<vmem>>, vector<2x32xf32>
    %240 = arith.truncf %239 : vector<2x32xf32> to vector<2x32xbf16>
    %c17 = arith.constant 17 : index
    %c0_201 = arith.constant 0 : index
    %c0_202 = arith.constant 0 : index
    %241 = vector.load %arg6[%c17, %c0_201, %c0_202] : memref<25x32x64xbf16, #tpu.memory_space<vmem>>, vector<1x32x64xbf16>
    %242 = vector.shape_cast %241 : vector<1x32x64xbf16> to vector<32x64xbf16>
    %cst_203 = arith.constant dense<0.000000e+00> : vector<2x64xf32>
    %243 = tpu.matmul %240, %242, %cst_203 {dimension_numbers = #tpu.dot_dimension_numbers<[1], [0], [0], [1], [0, 0, 1, 1], [], []>} : vector<2x32xbf16>, vector<32x64xbf16>, vector<2x64xf32> -> vector<2x64xf32>
    %244 = arith.addf %238, %243 : vector<2x64xf32>
    %c36 = arith.constant 36 : index
    %c0_204 = arith.constant 0 : index
    %245 = vector.load %arg14[%c36, %c0_204] : memref<50x32xf32, #tpu.memory_space<vmem>>, vector<2x32xf32>
    %246 = arith.truncf %245 : vector<2x32xf32> to vector<2x32xbf16>
    %c18_205 = arith.constant 18 : index
    %c0_206 = arith.constant 0 : index
    %c0_207 = arith.constant 0 : index
    %247 = vector.load %arg6[%c18_205, %c0_206, %c0_207] : memref<25x32x64xbf16, #tpu.memory_space<vmem>>, vector<1x32x64xbf16>
    %248 = vector.shape_cast %247 : vector<1x32x64xbf16> to vector<32x64xbf16>
    %cst_208 = arith.constant dense<0.000000e+00> : vector<2x64xf32>
    %249 = tpu.matmul %246, %248, %cst_208 {dimension_numbers = #tpu.dot_dimension_numbers<[1], [0], [0], [1], [0, 0, 1, 1], [], []>} : vector<2x32xbf16>, vector<32x64xbf16>, vector<2x64xf32> -> vector<2x64xf32>
    %250 = arith.addf %244, %249 : vector<2x64xf32>
    %c38 = arith.constant 38 : index
    %c0_209 = arith.constant 0 : index
    %251 = vector.load %arg14[%c38, %c0_209] : memref<50x32xf32, #tpu.memory_space<vmem>>, vector<2x32xf32>
    %252 = arith.truncf %251 : vector<2x32xf32> to vector<2x32xbf16>
    %c19 = arith.constant 19 : index
    %c0_210 = arith.constant 0 : index
    %c0_211 = arith.constant 0 : index
    %253 = vector.load %arg6[%c19, %c0_210, %c0_211] : memref<25x32x64xbf16, #tpu.memory_space<vmem>>, vector<1x32x64xbf16>
    %254 = vector.shape_cast %253 : vector<1x32x64xbf16> to vector<32x64xbf16>
    %cst_212 = arith.constant dense<0.000000e+00> : vector<2x64xf32>
    %255 = tpu.matmul %252, %254, %cst_212 {dimension_numbers = #tpu.dot_dimension_numbers<[1], [0], [0], [1], [0, 0, 1, 1], [], []>} : vector<2x32xbf16>, vector<32x64xbf16>, vector<2x64xf32> -> vector<2x64xf32>
    %256 = arith.addf %250, %255 : vector<2x64xf32>
    %c40_213 = arith.constant 40 : index
    %c0_214 = arith.constant 0 : index
    %257 = vector.load %arg14[%c40_213, %c0_214] : memref<50x32xf32, #tpu.memory_space<vmem>>, vector<2x32xf32>
    %258 = arith.truncf %257 : vector<2x32xf32> to vector<2x32xbf16>
    %c20_215 = arith.constant 20 : index
    %c0_216 = arith.constant 0 : index
    %c0_217 = arith.constant 0 : index
    %259 = vector.load %arg6[%c20_215, %c0_216, %c0_217] : memref<25x32x64xbf16, #tpu.memory_space<vmem>>, vector<1x32x64xbf16>
    %260 = vector.shape_cast %259 : vector<1x32x64xbf16> to vector<32x64xbf16>
    %cst_218 = arith.constant dense<0.000000e+00> : vector<2x64xf32>
    %261 = tpu.matmul %258, %260, %cst_218 {dimension_numbers = #tpu.dot_dimension_numbers<[1], [0], [0], [1], [0, 0, 1, 1], [], []>} : vector<2x32xbf16>, vector<32x64xbf16>, vector<2x64xf32> -> vector<2x64xf32>
    %262 = arith.addf %256, %261 : vector<2x64xf32>
    %c42_219 = arith.constant 42 : index
    %c0_220 = arith.constant 0 : index
    %263 = vector.load %arg14[%c42_219, %c0_220] : memref<50x32xf32, #tpu.memory_space<vmem>>, vector<2x32xf32>
    %264 = arith.truncf %263 : vector<2x32xf32> to vector<2x32xbf16>
    %c21 = arith.constant 21 : index
    %c0_221 = arith.constant 0 : index
    %c0_222 = arith.constant 0 : index
    %265 = vector.load %arg6[%c21, %c0_221, %c0_222] : memref<25x32x64xbf16, #tpu.memory_space<vmem>>, vector<1x32x64xbf16>
    %266 = vector.shape_cast %265 : vector<1x32x64xbf16> to vector<32x64xbf16>
    %cst_223 = arith.constant dense<0.000000e+00> : vector<2x64xf32>
    %267 = tpu.matmul %264, %266, %cst_223 {dimension_numbers = #tpu.dot_dimension_numbers<[1], [0], [0], [1], [0, 0, 1, 1], [], []>} : vector<2x32xbf16>, vector<32x64xbf16>, vector<2x64xf32> -> vector<2x64xf32>
    %268 = arith.addf %262, %267 : vector<2x64xf32>
    %c44 = arith.constant 44 : index
    %c0_224 = arith.constant 0 : index
    %269 = vector.load %arg14[%c44, %c0_224] : memref<50x32xf32, #tpu.memory_space<vmem>>, vector<2x32xf32>
    %270 = arith.truncf %269 : vector<2x32xf32> to vector<2x32xbf16>
    %c22_225 = arith.constant 22 : index
    %c0_226 = arith.constant 0 : index
    %c0_227 = arith.constant 0 : index
    %271 = vector.load %arg6[%c22_225, %c0_226, %c0_227] : memref<25x32x64xbf16, #tpu.memory_space<vmem>>, vector<1x32x64xbf16>
    %272 = vector.shape_cast %271 : vector<1x32x64xbf16> to vector<32x64xbf16>
    %cst_228 = arith.constant dense<0.000000e+00> : vector<2x64xf32>
    %273 = tpu.matmul %270, %272, %cst_228 {dimension_numbers = #tpu.dot_dimension_numbers<[1], [0], [0], [1], [0, 0, 1, 1], [], []>} : vector<2x32xbf16>, vector<32x64xbf16>, vector<2x64xf32> -> vector<2x64xf32>
    %274 = arith.addf %268, %273 : vector<2x64xf32>
    %c46 = arith.constant 46 : index
    %c0_229 = arith.constant 0 : index
    %275 = vector.load %arg14[%c46, %c0_229] : memref<50x32xf32, #tpu.memory_space<vmem>>, vector<2x32xf32>
    %276 = arith.truncf %275 : vector<2x32xf32> to vector<2x32xbf16>
    %c23 = arith.constant 23 : index
    %c0_230 = arith.constant 0 : index
    %c0_231 = arith.constant 0 : index
    %277 = vector.load %arg6[%c23, %c0_230, %c0_231] : memref<25x32x64xbf16, #tpu.memory_space<vmem>>, vector<1x32x64xbf16>
    %278 = vector.shape_cast %277 : vector<1x32x64xbf16> to vector<32x64xbf16>
    %cst_232 = arith.constant dense<0.000000e+00> : vector<2x64xf32>
    %279 = tpu.matmul %276, %278, %cst_232 {dimension_numbers = #tpu.dot_dimension_numbers<[1], [0], [0], [1], [0, 0, 1, 1], [], []>} : vector<2x32xbf16>, vector<32x64xbf16>, vector<2x64xf32> -> vector<2x64xf32>
    %280 = arith.addf %274, %279 : vector<2x64xf32>
    %c48 = arith.constant 48 : index
    %c0_233 = arith.constant 0 : index
    %281 = vector.load %arg14[%c48, %c0_233] : memref<50x32xf32, #tpu.memory_space<vmem>>, vector<2x32xf32>
    %282 = arith.truncf %281 : vector<2x32xf32> to vector<2x32xbf16>
    %c24_234 = arith.constant 24 : index
    %c0_235 = arith.constant 0 : index
    %c0_236 = arith.constant 0 : index
    %283 = vector.load %arg6[%c24_234, %c0_235, %c0_236] : memref<25x32x64xbf16, #tpu.memory_space<vmem>>, vector<1x32x64xbf16>
    %284 = vector.shape_cast %283 : vector<1x32x64xbf16> to vector<32x64xbf16>
    %cst_237 = arith.constant dense<0.000000e+00> : vector<2x64xf32>
    %285 = tpu.matmul %282, %284, %cst_237 {dimension_numbers = #tpu.dot_dimension_numbers<[1], [0], [0], [1], [0, 0, 1, 1], [], []>} : vector<2x32xbf16>, vector<32x64xbf16>, vector<2x64xf32> -> vector<2x64xf32>
    %286 = arith.addf %280, %285 : vector<2x64xf32>
    %c0_238 = arith.constant 0 : index
    %c0_239 = arith.constant 0 : index
    %287 = vector.load %arg7[%c0_238, %c0_239] : memref<1x64xf32, #tpu.memory_space<vmem>>, vector<1x64xf32>
    %288 = vector.broadcast %287 : vector<1x64xf32> to vector<2x64xf32>
    %289 = arith.addf %286, %288 : vector<2x64xf32>
    %cst_240 = arith.constant 0.000000e+00 : f32
    %290 = vector.broadcast %cst_240 : f32 to vector<2x64xf32>
    %291 = arith.maximumf %289, %290 : vector<2x64xf32>
    %292 = arith.truncf %291 : vector<2x64xf32> to vector<2x64xbf16>
    %c0_241 = arith.constant 0 : index
    %c0_242 = arith.constant 0 : index
    %293 = vector.load %arg8[%c0_241, %c0_242] : memref<64x32xbf16, #tpu.memory_space<vmem>>, vector<64x32xbf16>
    %cst_243 = arith.constant dense<0.000000e+00> : vector<2x32xf32>
    %294 = tpu.matmul %292, %293, %cst_243 {dimension_numbers = #tpu.dot_dimension_numbers<[1], [0], [0], [1], [0, 0, 1, 1], [], []>} : vector<2x64xbf16>, vector<64x32xbf16>, vector<2x32xf32> -> vector<2x32xf32>
    %c0_244 = arith.constant 0 : index
    %c0_245 = arith.constant 0 : index
    %295 = vector.load %arg9[%c0_244, %c0_245] : memref<1x32xf32, #tpu.memory_space<vmem>>, vector<1x32xf32>
    %296 = vector.broadcast %295 : vector<1x32xf32> to vector<2x32xf32>
    %297 = arith.addf %294, %296 : vector<2x32xf32>
    %298 = math.tanh %297 : vector<2x32xf32>
    %299 = arith.truncf %298 : vector<2x32xf32> to vector<2x32xbf16>
    %c0_246 = arith.constant 0 : index
    %c0_247 = arith.constant 0 : index
    %300 = vector.load %arg10[%c0_246, %c0_247] : memref<32x10xbf16, #tpu.memory_space<vmem>>, vector<32x10xbf16>
    %cst_248 = arith.constant dense<0.000000e+00> : vector<2x10xf32>
    %301 = tpu.matmul %299, %300, %cst_248 {dimension_numbers = #tpu.dot_dimension_numbers<[1], [0], [0], [1], [0, 0, 1, 1], [], []>} : vector<2x32xbf16>, vector<32x10xbf16>, vector<2x10xf32> -> vector<2x10xf32>
    %c0_249 = arith.constant 0 : index
    %c0_250 = arith.constant 0 : index
    %302 = vector.load %arg11[%c0_249, %c0_250] : memref<1x10xf32, #tpu.memory_space<vmem>>, vector<1x10xf32>
    %303 = vector.broadcast %302 : vector<1x10xf32> to vector<2x10xf32>
    %304 = arith.addf %301, %303 : vector<2x10xf32>
    %cst_251 = arith.constant dense<0xFF800000> : vector<2xf32>
    %305 = vector.multi_reduction <maximumf>, %304, %cst_251 [1] : vector<2x10xf32> to vector<2xf32>
    %306 = vector.shape_cast %305 : vector<2xf32> to vector<2x1xf32>
    %307 = vector.broadcast %306 : vector<2x1xf32> to vector<2x10xf32>
    %308 = arith.subf %304, %307 : vector<2x10xf32>
    %309 = math.exp %308 : vector<2x10xf32>
    %cst_252 = arith.constant dense<0.000000e+00> : vector<2xf32>
    %310 = vector.multi_reduction <add>, %309, %cst_252 [1] : vector<2x10xf32> to vector<2xf32>
    %311 = vector.shape_cast %310 : vector<2xf32> to vector<2x1xf32>
    %312 = vector.broadcast %311 : vector<2x1xf32> to vector<2x10xf32>
    %313 = arith.divf %309, %312 : vector<2x10xf32>
    %c0_253 = arith.constant 0 : index
    %c0_254 = arith.constant 0 : index
    %314 = vector.load %arg12[%c0_253, %c0_254] : memref<2x10xf32, #tpu.memory_space<vmem>>, vector<2x10xf32>
    tpu.vector_store %arg12[%c0_253, %c0_254], %313 {strides = array<i32>} : memref<2x10xf32, #tpu.memory_space<vmem>>, vector<2x10xf32>,
    return
  }
}

</mosaic_0001>

<bundles_post_ra>
// kernel: net2_forward.1
= control target key start
LH: loop header
LB: loop body
LE: loop exit
PB: predicated region body
PF: predicated region fallthrough
CT: control target
= control target key end

     0   :  { %vm272_vm0 = vcmask 1043456   ;;  %vm273_vm1 = vcmask 1044480   ;;  %v8729_v3 = vmov 65535   ;;  %s10419_s0 = inlined_call_operand.vmem [shape: bf16[4,338,9], index: 0, kind: input, shape index: {}]   ;;  %s10420_s1 = inlined_call_operand.vmem [shape: bf16[9,16], index: 1, kind: input, shape index: {}]   ;;  %s10421_s2 = inlined_call_operand.vmem [shape: f32[1,16], index: 2, kind: input, shape index: {}]   ;;  %s10422_s3 = inlined_call_operand.vmem [shape: bf16[16,16,32], index: 3, kind: input, shape index: {}]   ;;  %s10423_s4 = inlined_call_operand.vmem [shape: f32[1,32], index: 4, kind: input, shape index: {}]   ;;  %s10424_s5 = inlined_call_operand.vmem [shape: bf16[50,296], index: 5, kind: input, shape index: {}]   ;;  %s10425_s6 = inlined_call_operand.vmem [shape: bf16[25,32,64], index: 6, kind: input, shape index: {}]   ;;  %s10426_s7 = inlined_call_operand.vmem [shape: f32[1,64], index: 7, kind: input, shape index: {}]   ;;  %s10427_s8 = inlined_call_operand.vmem [shape: bf16[64,32], index: 8, kind: input, shape index: {}]   ;;  %s10428_s9 = inlined_call_operand.vmem [shape: f32[1,32], index: 9, kind: input, shape index: {}]   ;;  %s10429_s10 = inlined_call_operand.vmem [shape: bf16[32,10], index: 10, kind: input, shape index: {}]   ;;  %s10430_s11 = inlined_call_operand.vmem [shape: f32[1,10], index: 11, kind: input, shape index: {}]   ;;  %s10431_s12 = inlined_call_operand.hbm [shape: f32[2,10], index: 12, kind: output, shape index: {}]  }
   0x1   :  { %v7266_v0 = vld [vmem:[%s10420_s1] sm:$0xf]  ;;  %v8522_v1 = vld [vmem:[%s10420_s1] sm:$0x10]  ;;  %v274_v4 = vsel %vm272_vm0, 4294967295, %v8729_v3  ;;  %v8544_v7 = vld [vmem:[%s10419_s0 + $0xac] sm:$0xff] }
   0x2   :  { %v7267_v2 = vor.u32 %v8522_v1, %v7266_v0  ;;  %v275_v5 = vsel %vm273_vm1, %v274_v4, 0  ;;  %v8523_v6 = vld [vmem:[%s10419_s0] sm:$0xff] }
   0x4   :  { %v277_v8 = vand.u32 %v7267_v2, %v275_v5 }
   0x5   :  { %17 = vsyncpa [#allocation5], 0  ;;  %vm205_vm2 = vcmask 72704   ;;  %v8565_v9 = vld [vmem:[%s10419_s0 + $0x158] sm:$0xff]  ;;  %v8586_v10 = vld [vmem:[%s10419_s0 + $0x204] sm:$0xff]  ;;  %vm1706_vm3 = vcmask 130048  }
   0x6   :  { %286 = vmatpush.bf16.msra.mxu0 %v277_v8  ;;  %665 = vmatpush.bf16.msra.mxu1 %v277_v8  ;;  %v8524_v11 = vld [vmem:[%s10419_s0 + $0x8] sm:$0xff]  ;;  %v8545_v12 = vld [vmem:[%s10419_s0 + $0xb4] sm:$0xff]  ;;  %v8566_v13 = vld [vmem:[%s10419_s0 + $0x160] sm:$0xff]  ;;  %vm1749_vm4 = vcmask 123904   ;;  %vm6034_vm5 = vcmask 326656   ;;  %vm6134_vm6 = vcmask 261120  }
   0x7   :  { %1087 = vmatpush.bf16.msra.mxu2 %v277_v8  ;;  %1509 = vmatpush.bf16.msra.mxu3 %v277_v8  ;;  %v8587_v14 = vld [vmem:[%s10419_s0 + $0x20c] sm:$0xff]  ;;  %v8546_v16 = vld [vmem:[%s10419_s0 + $0xbc] sm:$0xff]  ;;  %v8588_v18 = vld [vmem:[%s10419_s0 + $0x214] sm:$0xff]  ;;  %vm6141_vm7 = vcmask 254976   ;;  %vm7083_vm8 = vcmask 523264   ;;  %vm7138_vm9 = vcmask 74752  }
   0x8   :  { %v8525_v15 = vld [vmem:[%s10419_s0 + $0x10] sm:$0xff]  ;;  %v8567_v17 = vld [vmem:[%s10419_s0 + $0x168] sm:$0xff]  ;;  %v8526_v19 = vld [vmem:[%s10419_s0 + $0x18] sm:$0xff]  ;;  %s7171_s20 = sshll.u32 %s10431_s12, 4  ;;  %s7172_s20 = int_to_ptr.hbm [resolvable:$true] %s7171_s20 }
   0x9   :  { %7268 = vmatmul.msk.bf16.vlgmr.msra.gmra.mxu0 %vm205_vm2, %v8523_v6  ;;  %7417 = vmatmul.msk.bf16.vlgmr.msra.gmra.mxu1 %vm205_vm2, %v8544_v7  ;;  %v8547_v20 = vld [vmem:[%s10419_s0 + $0xc4] sm:$0xff]  ;;  %v8568_v21 = vld [vmem:[%s10419_s0 + $0x170] sm:$0xff]  ;;  %v8589_v22 = vld [vmem:[%s10419_s0 + $0x21c] sm:$0xff] }
   0xa   :  { %7566 = vmatmul.msk.bf16.vlgmr.msra.gmra.mxu2 %vm205_vm2, %v8565_v9  ;;  %7715 = vmatmul.msk.bf16.vlgmr.msra.gmra.mxu3 %vm205_vm2, %v8586_v10  ;;  %v8527_v23 = vld [vmem:[%s10419_s0 + $0x20] sm:$0xff]  ;;  %v8548_v24 = vld [vmem:[%s10419_s0 + $0xcc] sm:$0xff]  ;;  %v8569_v25 = vld [vmem:[%s10419_s0 + $0x178] sm:$0xff] }
   0xb   :  { %v8590_v26 = vld [vmem:[%s10419_s0 + $0x224] sm:$0xff]  ;;  %v8549_v28 = vld [vmem:[%s10419_s0 + $0xd4] sm:$0xff]  ;;  %v8591_v30 = vld [vmem:[%s10419_s0 + $0x22c] sm:$0xff] }
   0xc   :  { %v8528_v27 = vld [vmem:[%s10419_s0 + $0x28] sm:$0xff]  ;;  %v8570_v29 = vld [vmem:[%s10419_s0 + $0x180] sm:$0xff]  ;;  %v8529_v31 = vld [vmem:[%s10419_s0 + $0x30] sm:$0xff] }
   0xd   :  { %v8550_v32 = vld [vmem:[%s10419_s0 + $0xdc] sm:$0xff]  ;;  %v8571_v33 = vld [vmem:[%s10419_s0 + $0x188] sm:$0xff]  ;;  %v8592_v34 = vld [vmem:[%s10419_s0 + $0x234] sm:$0xff] }
   0xe   :  { %v8530_v35 = vld [vmem:[%s10419_s0 + $0x38] sm:$0xff]  ;;  %v8551_v36 = vld [vmem:[%s10419_s0 + $0xe4] sm:$0xff]  ;;  %v8572_v37 = vld [vmem:[%s10419_s0 + $0x190] sm:$0xff] }
   0xf   :  { %v8593_v38 = vld [vmem:[%s10419_s0 + $0x23c] sm:$0xff]  ;;  %v8552_v41 = vld [vmem:[%s10419_s0 + $0xec] sm:$0xff]  ;;  %v8594_v45 = vld [vmem:[%s10419_s0 + $0x244] sm:$0xff] }
  0x10   :  { %v8934_v39 = vld [vmem:[%s10421_s2] ss:$0 sm:$0xff]  ;;  %v8573_v44 = vld [vmem:[%s10419_s0 + $0x198] sm:$0xff]  ;;  %v8532_v3 = vld [vmem:[%s10419_s0 + $0x48] sm:$0xff] }
  0x11   :  { %v8531_v40 = vld [vmem:[%s10419_s0 + $0x40] sm:$0xff]  ;;  %v8553_v4 = vld [vmem:[%s10419_s0 + $0xf4] sm:$0xff]  ;;  %v8595_v10 = vld [vmem:[%s10419_s0 + $0x24c] sm:$0xff] }
  0x12   :  { %v8574_v9 = vld [vmem:[%s10419_s0 + $0x1a0] sm:$0xff] }
  0x19   :  { %7269 = vmatmul.msk.bf16.gmra.mxu0 %vm205_vm2, %v8524_v11  ;;  %7418 = vmatmul.msk.bf16.gmra.mxu1 %vm205_vm2, %v8545_v12 }
  0x1a   :  { %7567 = vmatmul.msk.bf16.gmra.mxu2 %vm205_vm2, %v8566_v13  ;;  %7716 = vmatmul.msk.bf16.gmra.mxu3 %vm205_vm2, %v8587_v14 }
  0x29   :  { %7270 = vmatmul.msk.bf16.gmra.mxu0 %vm205_vm2, %v8525_v15  ;;  %7419 = vmatmul.msk.bf16.gmra.mxu1 %vm205_vm2, %v8546_v16 }
  0x2a   :  { %7568 = vmatmul.msk.bf16.gmra.mxu2 %vm205_vm2, %v8567_v17  ;;  %7717 = vmatmul.msk.bf16.gmra.mxu3 %vm205_vm2, %v8588_v18 }
  0x39   :  { %7271 = vmatmul.msk.bf16.gmra.mxu0 %vm205_vm2, %v8526_v19  ;;  %7420 = vmatmul.msk.bf16.gmra.mxu1 %vm205_vm2, %v8547_v20 }
  0x3a   :  { %7569 = vmatmul.msk.bf16.gmra.mxu2 %vm205_vm2, %v8568_v21  ;;  %7718 = vmatmul.msk.bf16.gmra.mxu3 %vm205_vm2, %v8589_v22 }
  0x49   :  { %7272 = vmatmul.msk.bf16.gmra.mxu0 %vm205_vm2, %v8527_v23  ;;  %7421 = vmatmul.msk.bf16.gmra.mxu1 %vm205_vm2, %v8548_v24 }
  0x4a   :  { %7570 = vmatmul.msk.bf16.gmra.mxu2 %vm205_vm2, %v8569_v25  ;;  %7719 = vmatmul.msk.bf16.gmra.mxu3 %vm205_vm2, %v8590_v26 }
  0x59   :  { %7273 = vmatmul.msk.bf16.gmra.mxu0 %vm205_vm2, %v8528_v27  ;;  %7422 = vmatmul.msk.bf16.gmra.mxu1 %vm205_vm2, %v8549_v28 }
  0x5a   :  { %7571 = vmatmul.msk.bf16.gmra.mxu2 %vm205_vm2, %v8570_v29  ;;  %7720 = vmatmul.msk.bf16.gmra.mxu3 %vm205_vm2, %v8591_v30 }
  0x69   :  { %7274 = vmatmul.msk.bf16.gmra.mxu0 %vm205_vm2, %v8529_v31  ;;  %7423 = vmatmul.msk.bf16.gmra.mxu1 %vm205_vm2, %v8550_v32 }
  0x6a   :  { %7572 = vmatmul.msk.bf16.gmra.mxu2 %vm205_vm2, %v8571_v33  ;;  %7721 = vmatmul.msk.bf16.gmra.mxu3 %vm205_vm2, %v8592_v34 }
  0x79   :  { %7275 = vmatmul.msk.bf16.gmra.mxu0 %vm205_vm2, %v8530_v35  ;;  %7424 = vmatmul.msk.bf16.gmra.mxu1 %vm205_vm2, %v8551_v36 }
  0x7a   :  { %7573 = vmatmul.msk.bf16.gmra.mxu2 %vm205_vm2, %v8572_v37  ;;  %7722 = vmatmul.msk.bf16.gmra.mxu3 %vm205_vm2, %v8593_v38  ;;  %v8533_v37 = vld [vmem:[%s10419_s0 + $0x50] sm:$0xff]  ;;  %v8554_v38 = vld [vmem:[%s10419_s0 + $0xfc] sm:$0xff] }
  0x86   :  { %v288_v42 = vpop.f32.mrf.mxu0  ;;  %v667_v43 = vpop.f32.mrf.mxu1 }
  0x87   :  { %v289_v46 = vadd.f32 %v8934_v39, %v288_v42  ;;  %v668_v47 = vadd.f32 %v8934_v39, %v667_v43 }
  0x89   :  { %7276 = vmatmul.msk.bf16.gmra.mxu0 %vm205_vm2, %v8531_v40  ;;  %7425 = vmatmul.msk.bf16.gmra.mxu1 %vm205_vm2, %v8552_v41  ;;  %v397_v48 = vmax.f32 %v289_v46, 0.0  ;;  %v776_v49 = vmax.f32 %v668_v47, 0.0 }
  0x8a   :  { %7574 = vmatmul.msk.bf16.gmra.mxu2 %vm205_vm2, %v8573_v44  ;;  %7723 = vmatmul.msk.bf16.gmra.mxu3 %vm205_vm2, %v8594_v45  ;;  %v8575_v44 = vld [vmem:[%s10419_s0 + $0x1a8] sm:$0xff]  ;;  %v8596_v45 = vld [vmem:[%s10419_s0 + $0x254] sm:$0xff] }
  0x8b   :  { %v819_v56 = vmax.f32 %v397_v48, %v776_v49 }
  0x8d   :  { %v1089_v50 = vpop.f32.mrf.mxu2  ;;  %v1511_v51 = vpop.f32.mrf.mxu3 }
  0x8e   :  { %v1090_v52 = vadd.f32 %v8934_v39, %v1089_v50  ;;  %v1512_v53 = vadd.f32 %v8934_v39, %v1511_v51  ;;  %v290_v54 = vpop.f32.mrf.mxu0  ;;  %v669_v55 = vpop.f32.mrf.mxu1 }
  0x8f   :  { %v291_v59 = vadd.f32 %v8934_v39, %v290_v54  ;;  %v670_v60 = vadd.f32 %v8934_v39, %v669_v55 }
  0x90   :  { %v1198_v57 = vmax.f32 %v1090_v52, 0.0  ;;  %v1620_v58 = vmax.f32 %v1512_v53, 0.0 }
  0x91   :  { %v398_v63 = vmax.f32 %v291_v59, 0.0  ;;  %v777_v0 = vmax.f32 %v670_v60, 0.0 }
  0x92   :  { %v1241_v61 = vmax.f32 %v819_v56, %v1198_v57 }
  0x93   :  { %v820_v13 = vmax.f32 %v398_v63, %v777_v0 }
  0x94   :  { %v1663_v62 = vmax.f32 %v1241_v61, %v1620_v58 }
  0x95   :  { %v1091_v1 = vpop.f32.mrf.mxu2  ;;  %v1513_v2 = vpop.f32.mrf.mxu3 }
  0x96   :  { %1707 = vst.msk [vmem:[#allocation2] sm:$0xff] %vm1706_vm3, %v1663_v62  ;;  %v1092_v5 = vadd.f32 %v8934_v39, %v1091_v1  ;;  %v1514_v6 = vadd.f32 %v8934_v39, %v1513_v2  ;;  %v293_v7 = vpop.f32.mrf.mxu0  ;;  %v672_v8 = vpop.f32.mrf.mxu1 }
  0x97   :  { %v294_v11 = vadd.f32 %v8934_v39, %v293_v7  ;;  %v673_v12 = vadd.f32 %v8934_v39, %v672_v8  ;;  %v8534_v8 = vld [vmem:[%s10419_s0 + $0x58] sm:$0xff] }
  0x98   :  { %v1199_v14 = vmax.f32 %v1092_v5, 0.0  ;;  %v1621_v16 = vmax.f32 %v1514_v6, 0.0 }
  0x99   :  { %7277 = vmatmul.msk.bf16.gmra.mxu0 %vm205_vm2, %v8532_v3  ;;  %7426 = vmatmul.msk.bf16.gmra.mxu1 %vm205_vm2, %v8553_v4  ;;  %v399_v17 = vmax.f32 %v294_v11, 0.0  ;;  %v778_v18 = vmax.f32 %v673_v12, 0.0 }
  0x9a   :  { %v1242_v15 = vmax.f32 %v820_v13, %v1199_v14  ;;  %7575 = vmatmul.msk.bf16.gmra.mxu2 %vm205_vm2, %v8574_v9  ;;  %7724 = vmatmul.msk.bf16.gmra.mxu3 %vm205_vm2, %v8595_v10  ;;  %v8555_v9 = vld [vmem:[%s10419_s0 + $0x104] sm:$0xff]  ;;  %v8576_v14 = vld [vmem:[%s10419_s0 + $0x1b0] sm:$0xff] }
  0x9b   :  { %v821_v26 = vmax.f32 %v399_v17, %v778_v18 }
  0x9c   :  { %v1664_v19 = vmax.f32 %v1242_v15, %v1621_v16  ;;  %v8597_v15 = vld [vmem:[%s10419_s0 + $0x25c] sm:$0xff] }
  0x9d   :  { %v1094_v20 = vpop.f32.mrf.mxu2  ;;  %v1516_v21 = vpop.f32.mrf.mxu3 }
  0x9e   :  { %1708 = vst.msk [vmem:[#allocation2 + $0x8] sm:$0xff] %vm1706_vm3, %v1664_v19  ;;  %v1095_v22 = vadd.f32 %v8934_v39, %v1094_v20  ;;  %v1517_v23 = vadd.f32 %v8934_v39, %v1516_v21  ;;  %v295_v24 = vpop.f32.mrf.mxu0  ;;  %v674_v25 = vpop.f32.mrf.mxu1 }
  0x9f   :  { %v296_v29 = vadd.f32 %v8934_v39, %v295_v24  ;;  %v675_v30 = vadd.f32 %v8934_v39, %v674_v25 }
  0xa0   :  { %v1200_v27 = vmax.f32 %v1095_v22, 0.0  ;;  %v1622_v28 = vmax.f32 %v1517_v23, 0.0 }
  0xa1   :  { %v400_v33 = vmax.f32 %v296_v29, 0.0  ;;  %v779_v34 = vmax.f32 %v675_v30, 0.0 }
  0xa2   :  { %v1243_v31 = vmax.f32 %v821_v26, %v1200_v27 }
  0xa3   :  { %v822_v48 = vmax.f32 %v400_v33, %v779_v34 }
  0xa4   :  { %v1665_v32 = vmax.f32 %v1243_v31, %v1622_v28 }
  0xa5   :  { %v1096_v35 = vpop.f32.mrf.mxu2  ;;  %v1518_v36 = vpop.f32.mrf.mxu3 }
  0xa6   :  { %1709 = vst.msk [vmem:[#allocation2 + $0x10] sm:$0xff] %vm1706_vm3, %v1665_v32  ;;  %v1097_v40 = vadd.f32 %v8934_v39, %v1096_v35  ;;  %v1519_v41 = vadd.f32 %v8934_v39, %v1518_v36  ;;  %v298_v42 = vpop.f32.mrf.mxu0  ;;  %v677_v43 = vpop.f32.mrf.mxu1 }
  0xa7   :  { %v299_v46 = vadd.f32 %v8934_v39, %v298_v42  ;;  %v678_v47 = vadd.f32 %v8934_v39, %v677_v43  ;;  %v8535_v43 = vld [vmem:[%s10419_s0 + $0x60] sm:$0xff] }
  0xa8   :  { %v1201_v49 = vmax.f32 %v1097_v40, 0.0  ;;  %v1623_v51 = vmax.f32 %v1519_v41, 0.0 }
  0xa9   :  { %7278 = vmatmul.msk.bf16.gmra.mxu0 %vm205_vm2, %v8533_v37  ;;  %7427 = vmatmul.msk.bf16.gmra.mxu1 %vm205_vm2, %v8554_v38  ;;  %v401_v52 = vmax.f32 %v299_v46, 0.0  ;;  %v780_v53 = vmax.f32 %v678_v47, 0.0 }
  0xaa   :  { %v1244_v50 = vmax.f32 %v822_v48, %v1201_v49  ;;  %7576 = vmatmul.msk.bf16.gmra.mxu2 %vm205_vm2, %v8575_v44  ;;  %7725 = vmatmul.msk.bf16.gmra.mxu3 %vm205_vm2, %v8596_v45  ;;  %v8556_v44 = vld [vmem:[%s10419_s0 + $0x10c] sm:$0xff]  ;;  %v8577_v49 = vld [vmem:[%s10419_s0 + $0x1b8] sm:$0xff] }
  0xab   :  { %v823_v61 = vmax.f32 %v401_v52, %v780_v53 }
  0xac   :  { %v1666_v54 = vmax.f32 %v1244_v50, %v1623_v51  ;;  %v8598_v50 = vld [vmem:[%s10419_s0 + $0x264] sm:$0xff] }
  0xad   :  { %v1099_v55 = vpop.f32.mrf.mxu2  ;;  %v1521_v56 = vpop.f32.mrf.mxu3 }
  0xae   :  { %1710 = vst.msk [vmem:[#allocation2 + $0x18] sm:$0xff] %vm1706_vm3, %v1666_v54  ;;  %v1100_v57 = vadd.f32 %v8934_v39, %v1099_v55  ;;  %v1522_v58 = vadd.f32 %v8934_v39, %v1521_v56  ;;  %v300_v59 = vpop.f32.mrf.mxu0  ;;  %v679_v60 = vpop.f32.mrf.mxu1 }
  0xaf   :  { %v301_v0 = vadd.f32 %v8934_v39, %v300_v59  ;;  %v680_v1 = vadd.f32 %v8934_v39, %v679_v60 }
  0xb0   :  { %v1202_v62 = vmax.f32 %v1100_v57, 0.0  ;;  %v1624_v63 = vmax.f32 %v1522_v58, 0.0 }
  0xb1   :  { %v402_v4 = vmax.f32 %v301_v0, 0.0  ;;  %v781_v5 = vmax.f32 %v680_v1, 0.0 }
  0xb2   :  { %v1245_v2 = vmax.f32 %v823_v61, %v1202_v62 }
  0xb3   :  { %v824_v18 = vmax.f32 %v402_v4, %v781_v5 }
  0xb4   :  { %v1667_v3 = vmax.f32 %v1245_v2, %v1624_v63 }
  0xb5   :  { %v1101_v6 = vpop.f32.mrf.mxu2  ;;  %v1523_v7 = vpop.f32.mrf.mxu3 }
  0xb6   :  { %1711 = vst.msk [vmem:[#allocation2 + $0x20] sm:$0xff] %vm1706_vm3, %v1667_v3  ;;  %v1102_v10 = vadd.f32 %v8934_v39, %v1101_v6  ;;  %v1524_v11 = vadd.f32 %v8934_v39, %v1523_v7  ;;  %v303_v12 = vpop.f32.mrf.mxu0  ;;  %v682_v13 = vpop.f32.mrf.mxu1 }
  0xb7   :  { %v304_v16 = vadd.f32 %v8934_v39, %v303_v12  ;;  %v683_v17 = vadd.f32 %v8934_v39, %v682_v13  ;;  %v8536_v13 = vld [vmem:[%s10419_s0 + $0x68] sm:$0xff] }
  0xb8   :  { %v1203_v19 = vmax.f32 %v1102_v10, 0.0  ;;  %v1625_v21 = vmax.f32 %v1524_v11, 0.0 }
  0xb9   :  { %7279 = vmatmul.msk.bf16.gmra.mxu0 %vm205_vm2, %v8534_v8  ;;  %7428 = vmatmul.msk.bf16.gmra.mxu1 %vm205_vm2, %v8555_v9  ;;  %v403_v22 = vmax.f32 %v304_v16, 0.0  ;;  %v782_v23 = vmax.f32 %v683_v17, 0.0 }
  0xba   :  { %v1246_v20 = vmax.f32 %v824_v18, %v1203_v19  ;;  %7577 = vmatmul.msk.bf16.gmra.mxu2 %vm205_vm2, %v8576_v14  ;;  %7726 = vmatmul.msk.bf16.gmra.mxu3 %vm205_vm2, %v8597_v15  ;;  %v8557_v14 = vld [vmem:[%s10419_s0 + $0x114] sm:$0xff]  ;;  %v8578_v19 = vld [vmem:[%s10419_s0 + $0x1c0] sm:$0xff] }
  0xbb   :  { %v825_v31 = vmax.f32 %v403_v22, %v782_v23 }
  0xbc   :  { %v1668_v24 = vmax.f32 %v1246_v20, %v1625_v21  ;;  %v8599_v20 = vld [vmem:[%s10419_s0 + $0x26c] sm:$0xff] }
  0xbd   :  { %v1104_v25 = vpop.f32.mrf.mxu2  ;;  %v1526_v26 = vpop.f32.mrf.mxu3 }
  0xbe   :  { %1712 = vst.msk [vmem:[#allocation2 + $0x28] sm:$0xff] %vm1706_vm3, %v1668_v24  ;;  %v1105_v27 = vadd.f32 %v8934_v39, %v1104_v25  ;;  %v1527_v28 = vadd.f32 %v8934_v39, %v1526_v26  ;;  %v305_v29 = vpop.f32.mrf.mxu0  ;;  %v684_v30 = vpop.f32.mrf.mxu1 }
  0xbf   :  { %v306_v34 = vadd.f32 %v8934_v39, %v305_v29  ;;  %v685_v35 = vadd.f32 %v8934_v39, %v684_v30 }
  0xc0   :  { %v1204_v32 = vmax.f32 %v1105_v27, 0.0  ;;  %v1626_v33 = vmax.f32 %v1527_v28, 0.0 }
  0xc1   :  { %v404_v38 = vmax.f32 %v306_v34, 0.0  ;;  %v783_v40 = vmax.f32 %v685_v35, 0.0 }
  0xc2   :  { %v1247_v36 = vmax.f32 %v825_v31, %v1204_v32 }
  0xc3   :  { %v826_v53 = vmax.f32 %v404_v38, %v783_v40 }
  0xc4   :  { %v1669_v37 = vmax.f32 %v1247_v36, %v1626_v33 }
  0xc5   :  { %v1106_v41 = vpop.f32.mrf.mxu2  ;;  %v1528_v42 = vpop.f32.mrf.mxu3 }
  0xc6   :  { %1713 = vst.msk [vmem:[#allocation2 + $0x30] sm:$0xff] %vm1706_vm3, %v1669_v37  ;;  %v1107_v45 = vadd.f32 %v8934_v39, %v1106_v41  ;;  %v1529_v46 = vadd.f32 %v8934_v39, %v1528_v42  ;;  %v308_v47 = vpop.f32.mrf.mxu0  ;;  %v687_v48 = vpop.f32.mrf.mxu1 }
  0xc7   :  { %v309_v51 = vadd.f32 %v8934_v39, %v308_v47  ;;  %v688_v52 = vadd.f32 %v8934_v39, %v687_v48  ;;  %v8537_v48 = vld [vmem:[%s10419_s0 + $0x70] sm:$0xff] }
  0xc8   :  { %v1205_v54 = vmax.f32 %v1107_v45, 0.0  ;;  %v1627_v56 = vmax.f32 %v1529_v46, 0.0 }
  0xc9   :  { %7280 = vmatmul.msk.bf16.gmra.mxu0 %vm205_vm2, %v8535_v43  ;;  %7429 = vmatmul.msk.bf16.gmra.mxu1 %vm205_vm2, %v8556_v44  ;;  %v405_v57 = vmax.f32 %v309_v51, 0.0  ;;  %v784_v58 = vmax.f32 %v688_v52, 0.0 }
  0xca   :  { %v1248_v55 = vmax.f32 %v826_v53, %v1205_v54  ;;  %7578 = vmatmul.msk.bf16.gmra.mxu2 %vm205_vm2, %v8577_v49  ;;  %7727 = vmatmul.msk.bf16.gmra.mxu3 %vm205_vm2, %v8598_v50  ;;  %v8558_v49 = vld [vmem:[%s10419_s0 + $0x11c] sm:$0xff]  ;;  %v8579_v54 = vld [vmem:[%s10419_s0 + $0x1c8] sm:$0xff] }
  0xcb   :  { %v827_v2 = vmax.f32 %v405_v57, %v784_v58 }
  0xcc   :  { %v1670_v59 = vmax.f32 %v1248_v55, %v1627_v56  ;;  %v8600_v55 = vld [vmem:[%s10419_s0 + $0x274] sm:$0xff] }
  0xcd   :  { %v1109_v60 = vpop.f32.mrf.mxu2  ;;  %v1531_v61 = vpop.f32.mrf.mxu3 }
  0xce   :  { %1714 = vst.msk [vmem:[#allocation2 + $0x38] sm:$0xff] %vm1706_vm3, %v1670_v59  ;;  %v1110_v62 = vadd.f32 %v8934_v39, %v1109_v60  ;;  %v1532_v63 = vadd.f32 %v8934_v39, %v1531_v61  ;;  %v310_v0 = vpop.f32.mrf.mxu0  ;;  %v689_v1 = vpop.f32.mrf.mxu1 }
  0xcf   :  { %v311_v5 = vadd.f32 %v8934_v39, %v310_v0  ;;  %v690_v6 = vadd.f32 %v8934_v39, %v689_v1 }
  0xd0   :  { %v1206_v3 = vmax.f32 %v1110_v62, 0.0  ;;  %v1628_v4 = vmax.f32 %v1532_v63, 0.0 }
  0xd1   :  { %v406_v9 = vmax.f32 %v311_v5, 0.0  ;;  %v785_v10 = vmax.f32 %v690_v6, 0.0 }
  0xd2   :  { %v1249_v7 = vmax.f32 %v827_v2, %v1206_v3 }
  0xd3   :  { %v828_v23 = vmax.f32 %v406_v9, %v785_v10 }
  0xd4   :  { %v1671_v8 = vmax.f32 %v1249_v7, %v1628_v4 }
  0xd5   :  { %v1111_v11 = vpop.f32.mrf.mxu2  ;;  %v1533_v12 = vpop.f32.mrf.mxu3 }
  0xd6   :  { %1715 = vst.msk [vmem:[#allocation2 + $0x40] sm:$0xff] %vm1706_vm3, %v1671_v8  ;;  %v1112_v15 = vadd.f32 %v8934_v39, %v1111_v11  ;;  %v1534_v16 = vadd.f32 %v8934_v39, %v1533_v12  ;;  %v313_v17 = vpop.f32.mrf.mxu0  ;;  %v692_v18 = vpop.f32.mrf.mxu1 }
  0xd7   :  { %v314_v21 = vadd.f32 %v8934_v39, %v313_v17  ;;  %v693_v22 = vadd.f32 %v8934_v39, %v692_v18  ;;  %v8538_v18 = vld [vmem:[%s10419_s0 + $0x78] sm:$0xff] }
  0xd8   :  { %v1207_v24 = vmax.f32 %v1112_v15, 0.0  ;;  %v1629_v26 = vmax.f32 %v1534_v16, 0.0 }
  0xd9   :  { %7281 = vmatmul.msk.bf16.gmra.mxu0 %vm205_vm2, %v8536_v13  ;;  %7430 = vmatmul.msk.bf16.gmra.mxu1 %vm205_vm2, %v8557_v14  ;;  %v407_v27 = vmax.f32 %v314_v21, 0.0  ;;  %v786_v28 = vmax.f32 %v693_v22, 0.0 }
  0xda   :  { %v1250_v25 = vmax.f32 %v828_v23, %v1207_v24  ;;  %7579 = vmatmul.msk.bf16.gmra.mxu2 %vm205_vm2, %v8578_v19  ;;  %7728 = vmatmul.msk.bf16.gmra.mxu3 %vm205_vm2, %v8599_v20  ;;  %v8559_v19 = vld [vmem:[%s10419_s0 + $0x124] sm:$0xff]  ;;  %v8580_v24 = vld [vmem:[%s10419_s0 + $0x1d0] sm:$0xff] }
  0xdb   :  { %v829_v36 = vmax.f32 %v407_v27, %v786_v28 }
  0xdc   :  { %v1672_v29 = vmax.f32 %v1250_v25, %v1629_v26  ;;  %v8601_v25 = vld [vmem:[%s10419_s0 + $0x27c] sm:$0xff] }
  0xdd   :  { %v1114_v30 = vpop.f32.mrf.mxu2  ;;  %v1536_v31 = vpop.f32.mrf.mxu3 }
  0xde   :  { %1716 = vst.msk [vmem:[#allocation2 + $0x48] sm:$0xff] %vm1706_vm3, %v1672_v29  ;;  %v1115_v32 = vadd.f32 %v8934_v39, %v1114_v30  ;;  %v1537_v33 = vadd.f32 %v8934_v39, %v1536_v31  ;;  %v315_v34 = vpop.f32.mrf.mxu0  ;;  %v694_v35 = vpop.f32.mrf.mxu1 }
  0xdf   :  { %v316_v40 = vadd.f32 %v8934_v39, %v315_v34  ;;  %v695_v41 = vadd.f32 %v8934_v39, %v694_v35 }
  0xe0   :  { %v1208_v37 = vmax.f32 %v1115_v32, 0.0  ;;  %v1630_v38 = vmax.f32 %v1537_v33, 0.0 }
  0xe1   :  { %v408_v44 = vmax.f32 %v316_v40, 0.0  ;;  %v787_v45 = vmax.f32 %v695_v41, 0.0 }
  0xe2   :  { %v1251_v42 = vmax.f32 %v829_v36, %v1208_v37 }
  0xe3   :  { %v830_v58 = vmax.f32 %v408_v44, %v787_v45 }
  0xe4   :  { %v1673_v43 = vmax.f32 %v1251_v42, %v1630_v38 }
  0xe5   :  { %v1116_v46 = vpop.f32.mrf.mxu2  ;;  %v1538_v47 = vpop.f32.mrf.mxu3 }
  0xe6   :  { %1717 = vst.msk [vmem:[#allocation2 + $0x50] sm:$0xff] %vm1706_vm3, %v1673_v43  ;;  %v1117_v50 = vadd.f32 %v8934_v39, %v1116_v46  ;;  %v1539_v51 = vadd.f32 %v8934_v39, %v1538_v47  ;;  %v318_v52 = vpop.f32.mrf.mxu0  ;;  %v697_v53 = vpop.f32.mrf.mxu1 }
  0xe7   :  { %v319_v56 = vadd.f32 %v8934_v39, %v318_v52  ;;  %v698_v57 = vadd.f32 %v8934_v39, %v697_v53  ;;  %v8539_v53 = vld [vmem:[%s10419_s0 + $0x80] sm:$0xff] }
  0xe8   :  { %v1209_v59 = vmax.f32 %v1117_v50, 0.0  ;;  %v1631_v61 = vmax.f32 %v1539_v51, 0.0 }
  0xe9   :  { %7282 = vmatmul.msk.bf16.gmra.mxu0 %vm205_vm2, %v8537_v48  ;;  %7431 = vmatmul.msk.bf16.gmra.mxu1 %vm205_vm2, %v8558_v49  ;;  %v409_v62 = vmax.f32 %v319_v56, 0.0  ;;  %v788_v63 = vmax.f32 %v698_v57, 0.0 }
  0xea   :  { %v1252_v60 = vmax.f32 %v830_v58, %v1209_v59  ;;  %7580 = vmatmul.msk.bf16.gmra.mxu2 %vm205_vm2, %v8579_v54  ;;  %7729 = vmatmul.msk.bf16.gmra.mxu3 %vm205_vm2, %v8600_v55  ;;  %v8560_v54 = vld [vmem:[%s10419_s0 + $0x12c] sm:$0xff]  ;;  %v8581_v59 = vld [vmem:[%s10419_s0 + $0x1d8] sm:$0xff] }
  0xeb   :  { %v831_v7 = vmax.f32 %v409_v62, %v788_v63 }
  0xec   :  { %v1674_v0 = vmax.f32 %v1252_v60, %v1631_v61  ;;  %v8602_v60 = vld [vmem:[%s10419_s0 + $0x284] sm:$0xff] }
  0xed   :  { %v1119_v1 = vpop.f32.mrf.mxu2  ;;  %v1541_v2 = vpop.f32.mrf.mxu3 }
  0xee   :  { %1718 = vst.msk [vmem:[#allocation2 + $0x58] sm:$0xff] %vm1706_vm3, %v1674_v0  ;;  %v1120_v3 = vadd.f32 %v8934_v39, %v1119_v1  ;;  %v1542_v4 = vadd.f32 %v8934_v39, %v1541_v2  ;;  %v320_v5 = vpop.f32.mrf.mxu0  ;;  %v699_v6 = vpop.f32.mrf.mxu1 }
  0xef   :  { %v321_v10 = vadd.f32 %v8934_v39, %v320_v5  ;;  %v700_v11 = vadd.f32 %v8934_v39, %v699_v6 }
  0xf0   :  { %v1210_v8 = vmax.f32 %v1120_v3, 0.0  ;;  %v1632_v9 = vmax.f32 %v1542_v4, 0.0 }
  0xf1   :  { %v410_v14 = vmax.f32 %v321_v10, 0.0  ;;  %v789_v15 = vmax.f32 %v700_v11, 0.0 }
  0xf2   :  { %v1253_v12 = vmax.f32 %v831_v7, %v1210_v8 }
  0xf3   :  { %v832_v28 = vmax.f32 %v410_v14, %v789_v15 }
  0xf4   :  { %v1675_v13 = vmax.f32 %v1253_v12, %v1632_v9 }
  0xf5   :  { %v1121_v16 = vpop.f32.mrf.mxu2  ;;  %v1543_v17 = vpop.f32.mrf.mxu3 }
  0xf6   :  { %1719 = vst.msk [vmem:[#allocation2 + $0x60] sm:$0xff] %vm1706_vm3, %v1675_v13  ;;  %v1122_v20 = vadd.f32 %v8934_v39, %v1121_v16  ;;  %v1544_v21 = vadd.f32 %v8934_v39, %v1543_v17  ;;  %v323_v22 = vpop.f32.mrf.mxu0  ;;  %v702_v23 = vpop.f32.mrf.mxu1 }
  0xf7   :  { %v324_v26 = vadd.f32 %v8934_v39, %v323_v22  ;;  %v703_v27 = vadd.f32 %v8934_v39, %v702_v23  ;;  %v8540_v23 = vld [vmem:[%s10419_s0 + $0x88] sm:$0xff] }
  0xf8   :  { %v1211_v29 = vmax.f32 %v1122_v20, 0.0  ;;  %v1633_v31 = vmax.f32 %v1544_v21, 0.0 }
  0xf9   :  { %7283 = vmatmul.msk.bf16.gmra.mxu0 %vm205_vm2, %v8538_v18  ;;  %7432 = vmatmul.msk.bf16.gmra.mxu1 %vm205_vm2, %v8559_v19  ;;  %v411_v32 = vmax.f32 %v324_v26, 0.0  ;;  %v790_v33 = vmax.f32 %v703_v27, 0.0 }
  0xfa   :  { %v1254_v30 = vmax.f32 %v832_v28, %v1211_v29  ;;  %7581 = vmatmul.msk.bf16.gmra.mxu2 %vm205_vm2, %v8580_v24  ;;  %7730 = vmatmul.msk.bf16.gmra.mxu3 %vm205_vm2, %v8601_v25  ;;  %v8561_v24 = vld [vmem:[%s10419_s0 + $0x134] sm:$0xff]  ;;  %v8582_v25 = vld [vmem:[%s10419_s0 + $0x1e0] sm:$0xff] }
  0xfb   :  { %v833_v42 = vmax.f32 %v411_v32, %v790_v33  ;;  %v8608_v32 = vld [vmem:[%s10422_s3 + $0x8] sm:$0xff] }
  0xfc   :  { %v1676_v34 = vmax.f32 %v1254_v30, %v1633_v31  ;;  %v8603_v30 = vld [vmem:[%s10419_s0 + $0x28c] sm:$0xff]  ;;  %1938 = vmatpush.bf16.msrb.mxu0 %v8608_v32  ;;  %v8542_v32 = vld [vmem:[%s10419_s0 + $0x98] sm:$0xff] }
  0xfd   :  { %v1124_v35 = vpop.f32.mrf.mxu2  ;;  %v1546_v36 = vpop.f32.mrf.mxu3  ;;  %v8609_v31 = vld [vmem:[%s10422_s3 + $0x10] sm:$0xff] }
  0xfe   :  { %1720 = vst.msk [vmem:[#allocation2 + $0x68] sm:$0xff] %vm1706_vm3, %v1676_v34  ;;  %v1125_v37 = vadd.f32 %v8934_v39, %v1124_v35  ;;  %v1547_v38 = vadd.f32 %v8934_v39, %v1546_v36  ;;  %v325_v40 = vpop.f32.mrf.mxu0  ;;  %v704_v41 = vpop.f32.mrf.mxu1  ;;  %v8610_v35 = vld [vmem:[%s10422_s3 + $0x18] sm:$0xff]  ;;  %v8607_v36 = vld [vmem:[%s10422_s3] sm:$0xff]  ;;  %2329 = vmatpush.bf16.msrb.mxu2 %v8609_v31 }
  0xff   :  { %v326_v45 = vadd.f32 %v8934_v39, %v325_v40  ;;  %v705_v46 = vadd.f32 %v8934_v39, %v704_v41  ;;  %2591 = vmatpush.bf16.msrb.mxu3 %v8610_v35  ;;  %2104 = vmatpush.bf16.msrb.mxu1 %v8607_v36 }
 0x100   :  { %v1212_v43 = vmax.f32 %v1125_v37, 0.0  ;;  %v1634_v44 = vmax.f32 %v1547_v38, 0.0 }
 0x101   :  { %v412_v49 = vmax.f32 %v326_v45, 0.0  ;;  %v791_v50 = vmax.f32 %v705_v46, 0.0 }
 0x102   :  { %v1255_v47 = vmax.f32 %v833_v42, %v1212_v43 }
 0x103   :  { %v834_v63 = vmax.f32 %v412_v49, %v791_v50 }
 0x104   :  { %v1677_v48 = vmax.f32 %v1255_v47, %v1634_v44 }
 0x105   :  { %v1126_v51 = vpop.f32.mrf.mxu2  ;;  %v1548_v52 = vpop.f32.mrf.mxu3 }
 0x106   :  { %1721 = vst.msk [vmem:[#allocation2 + $0x70] sm:$0xff] %vm1706_vm3, %v1677_v48  ;;  %v1127_v55 = vadd.f32 %v8934_v39, %v1126_v51  ;;  %v1549_v56 = vadd.f32 %v8934_v39, %v1548_v52  ;;  %v328_v57 = vpop.f32.mrf.mxu0  ;;  %v707_v58 = vpop.f32.mrf.mxu1 }
 0x107   :  { %v329_v61 = vadd.f32 %v8934_v39, %v328_v57  ;;  %v708_v62 = vadd.f32 %v8934_v39, %v707_v58 }
 0x108   :  { %v1213_v0 = vmax.f32 %v1127_v55, 0.0  ;;  %v1635_v2 = vmax.f32 %v1549_v56, 0.0 }
 0x109   :  { %7284 = vmatmul.msk.bf16.gmra.mxu0 %vm205_vm2, %v8539_v53  ;;  %7433 = vmatmul.msk.bf16.gmra.mxu1 %vm205_vm2, %v8560_v54  ;;  %v413_v3 = vmax.f32 %v329_v61, 0.0  ;;  %v792_v4 = vmax.f32 %v708_v62, 0.0  ;;  %v8541_v62 = vld [vmem:[%s10419_s0 + $0x90] sm:$0xff] }
 0x10a   :  { %v1256_v1 = vmax.f32 %v834_v63, %v1213_v0  ;;  %7582 = vmatmul.msk.bf16.gmra.mxu2 %vm205_vm2, %v8581_v59  ;;  %7731 = vmatmul.msk.bf16.gmra.mxu3 %vm205_vm2, %v8602_v60  ;;  %v8562_v63 = vld [vmem:[%s10419_s0 + $0x13c] sm:$0xff] }
 0x10b   :  { %v835_v12 = vmax.f32 %v413_v3, %v792_v4  ;;  %v8583_v4 = vld [vmem:[%s10419_s0 + $0x1e8] sm:$0xff] }
 0x10c   :  { %v1678_v5 = vmax.f32 %v1256_v1, %v1635_v2 }
 0x10d   :  { %v1129_v6 = vpop.f32.mrf.mxu2  ;;  %v1551_v7 = vpop.f32.mrf.mxu3 }
 0x10e   :  { %1722 = vst.msk [vmem:[#allocation2 + $0x78] sm:$0xff] %vm1706_vm3, %v1678_v5  ;;  %v1130_v8 = vadd.f32 %v8934_v39, %v1129_v6  ;;  %v1552_v9 = vadd.f32 %v8934_v39, %v1551_v7  ;;  %v330_v10 = vpop.f32.mrf.mxu0  ;;  %v709_v11 = vpop.f32.mrf.mxu1  ;;  %v8604_v5 = vld [vmem:[%s10419_s0 + $0x294] sm:$0xff] }
 0x10f   :  { %v331_v15 = vadd.f32 %v8934_v39, %v330_v10  ;;  %v710_v16 = vadd.f32 %v8934_v39, %v709_v11 }
 0x110   :  { %v1214_v13 = vmax.f32 %v1130_v8, 0.0  ;;  %v1636_v14 = vmax.f32 %v1552_v9, 0.0 }
 0x111   :  { %v414_v19 = vmax.f32 %v331_v15, 0.0  ;;  %v793_v20 = vmax.f32 %v710_v16, 0.0 }
 0x112   :  { %v1257_v17 = vmax.f32 %v835_v12, %v1214_v13 }
 0x113   :  { %v836_v37 = vmax.f32 %v414_v19, %v793_v20 }
 0x114   :  { %v1679_v18 = vmax.f32 %v1257_v17, %v1636_v14 }
 0x115   :  { %v1131_v21 = vpop.f32.mrf.mxu2  ;;  %v1553_v22 = vpop.f32.mrf.mxu3 }
 0x116   :  { %1723 = vst.msk [vmem:[#allocation2 + $0x80] sm:$0xff] %vm1706_vm3, %v1679_v18  ;;  %v1132_v26 = vadd.f32 %v8934_v39, %v1131_v21  ;;  %v1554_v27 = vadd.f32 %v8934_v39, %v1553_v22  ;;  %v333_v28 = vpop.f32.mrf.mxu0  ;;  %v712_v29 = vpop.f32.mrf.mxu1 }
 0x117   :  { %v334_v33 = vadd.f32 %v8934_v39, %v333_v28  ;;  %v713_v34 = vadd.f32 %v8934_v39, %v712_v29 }
 0x118   :  { %v1215_v38 = vmax.f32 %v1132_v26, 0.0  ;;  %v1637_v41 = vmax.f32 %v1554_v27, 0.0 }
 0x119   :  { %7285 = vmatmul.msk.bf16.gmra.mxu0 %vm205_vm2, %v8540_v23  ;;  %7434 = vmatmul.msk.bf16.gmra.mxu1 %vm205_vm2, %v8561_v24  ;;  %v415_v42 = vmax.f32 %v334_v33, 0.0  ;;  %v794_v43 = vmax.f32 %v713_v34, 0.0  ;;  %v8563_v33 = vld [vmem:[%s10419_s0 + $0x144] sm:$0xff] }
 0x11a   :  { %v1258_v40 = vmax.f32 %v836_v37, %v1215_v38  ;;  %7583 = vmatmul.msk.bf16.gmra.mxu2 %vm205_vm2, %v8582_v25  ;;  %7732 = vmatmul.msk.bf16.gmra.mxu3 %vm205_vm2, %v8603_v30  ;;  %v8584_v38 = vld [vmem:[%s10419_s0 + $0x1f0] sm:$0xff] }
 0x11b   :  { %v837_v51 = vmax.f32 %v415_v42, %v794_v43 }
 0x11c   :  { %v1680_v44 = vmax.f32 %v1258_v40, %v1637_v41  ;;  %v8605_v40 = vld [vmem:[%s10419_s0 + $0x29c] sm:$0xff] }
 0x11d   :  { %v1134_v45 = vpop.f32.mrf.mxu2  ;;  %v1556_v46 = vpop.f32.mrf.mxu3 }
 0x11e   :  { %1724 = vst.msk [vmem:[#allocation2 + $0x88] sm:$0xff] %vm1706_vm3, %v1680_v44  ;;  %v1135_v47 = vadd.f32 %v8934_v39, %v1134_v45  ;;  %v1557_v48 = vadd.f32 %v8934_v39, %v1556_v46  ;;  %v335_v49 = vpop.f32.mrf.mxu0  ;;  %v714_v50 = vpop.f32.mrf.mxu1 }
 0x11f   :  { %v336_v54 = vadd.f32 %v8934_v39, %v335_v49  ;;  %v715_v55 = vadd.f32 %v8934_v39, %v714_v50 }
 0x120   :  { %v1216_v52 = vmax.f32 %v1135_v47, 0.0  ;;  %v1638_v53 = vmax.f32 %v1557_v48, 0.0 }
 0x121   :  { %v416_v58 = vmax.f32 %v336_v54, 0.0  ;;  %v795_v59 = vmax.f32 %v715_v55, 0.0 }
 0x122   :  { %v1259_v56 = vmax.f32 %v837_v51, %v1216_v52 }
 0x123   :  { %v838_v8 = vmax.f32 %v416_v58, %v795_v59 }
 0x124   :  { %v1681_v57 = vmax.f32 %v1259_v56, %v1638_v53 }
 0x125   :  { %v1136_v60 = vpop.f32.mrf.mxu2  ;;  %v1558_v61 = vpop.f32.mrf.mxu3 }
 0x126   :  { %1725 = vst.msk [vmem:[#allocation2 + $0x90] sm:$0xff] %vm1706_vm3, %v1681_v57  ;;  %v1137_v0 = vadd.f32 %v8934_v39, %v1136_v60  ;;  %v1559_v1 = vadd.f32 %v8934_v39, %v1558_v61  ;;  %v338_v2 = vpop.f32.mrf.mxu0  ;;  %v717_v3 = vpop.f32.mrf.mxu1 }
 0x127   :  { %v339_v6 = vadd.f32 %v8934_v39, %v338_v2  ;;  %v718_v7 = vadd.f32 %v8934_v39, %v717_v3  ;;  %v8543_v3 = vld [vmem:[%s10419_s0 + $0xa0] sm:$0xff] }
 0x128   :  { %v1217_v9 = vmax.f32 %v1137_v0, 0.0  ;;  %v1639_v11 = vmax.f32 %v1559_v1, 0.0 }
 0x129   :  { %7286 = vmatmul.msk.bf16.gmra.mxu0 %vm205_vm2, %v8541_v62  ;;  %7435 = vmatmul.msk.bf16.gmra.mxu1 %vm205_vm2, %v8562_v63  ;;  %v417_v12 = vmax.f32 %v339_v6, 0.0  ;;  %v796_v13 = vmax.f32 %v718_v7, 0.0 }
 0x12a   :  { %v1260_v10 = vmax.f32 %v838_v8, %v1217_v9  ;;  %7584 = vmatmul.msk.bf16.gmra.mxu2 %vm205_vm2, %v8583_v4  ;;  %7733 = vmatmul.msk.bf16.gmra.mxu3 %vm205_vm2, %v8604_v5  ;;  %v8564_v4 = vld [vmem:[%s10419_s0 + $0x14c] sm:$0xff]  ;;  %v8585_v9 = vld [vmem:[%s10419_s0 + $0x1f8] sm:$0xff] }
 0x12b   :  { %v839_v21 = vmax.f32 %v417_v12, %v796_v13 }
 0x12c   :  { %v1682_v14 = vmax.f32 %v1260_v10, %v1639_v11  ;;  %v8606_v10 = vld [vmem:[%s10419_s0 + $0x2a4] sm:$0xff] }
 0x12d   :  { %v1139_v15 = vpop.f32.mrf.mxu2  ;;  %v1561_v16 = vpop.f32.mrf.mxu3 }
 0x12e   :  { %1726 = vst.msk [vmem:[#allocation2 + $0x98] sm:$0xff] %vm1706_vm3, %v1682_v14  ;;  %v1140_v17 = vadd.f32 %v8934_v39, %v1139_v15  ;;  %v1562_v18 = vadd.f32 %v8934_v39, %v1561_v16  ;;  %v340_v19 = vpop.f32.mrf.mxu0  ;;  %v719_v20 = vpop.f32.mrf.mxu1 }
 0x12f   :  { %v341_v24 = vadd.f32 %v8934_v39, %v340_v19  ;;  %v720_v25 = vadd.f32 %v8934_v39, %v719_v20 }
 0x130   :  { %v1218_v22 = vmax.f32 %v1140_v17, 0.0  ;;  %v1640_v23 = vmax.f32 %v1562_v18, 0.0 }
 0x131   :  { %v418_v28 = vmax.f32 %v341_v24, 0.0  ;;  %v797_v29 = vmax.f32 %v720_v25, 0.0 }
 0x132   :  { %v1261_v26 = vmax.f32 %v839_v21, %v1218_v22 }
 0x133   :  { %v840_v43 = vmax.f32 %v418_v28, %v797_v29  ;;  %v7481_v29 = vld [vmem:[%s10419_s0 + $0x200] sm:$0x1] }
 0x134   :  { %v1683_v27 = vmax.f32 %v1261_v26, %v1640_v23  ;;  %v88_v26 = vld [vmem:[%s10419_s0 + $0xa8] sm:$0x1] }
 0x135   :  { %v1141_v30 = vpop.f32.mrf.mxu2  ;;  %v1563_v31 = vpop.f32.mrf.mxu3 }
 0x136   :  { %1727 = vst.msk [vmem:[#allocation2 + $0xa0] sm:$0xff] %vm1706_vm3, %v1683_v27  ;;  %v1142_v34 = vadd.f32 %v8934_v39, %v1141_v30  ;;  %v1564_v35 = vadd.f32 %v8934_v39, %v1563_v31  ;;  %v343_v36 = vpop.f32.mrf.mxu0  ;;  %v722_v37 = vpop.f32.mrf.mxu1  ;;  %v7332_v27 = vld [vmem:[%s10419_s0 + $0x154] sm:$0x1]  ;;  %v7630_v30 = vld [vmem:[%s10419_s0 + $0x2ac] sm:$0x1] }
 0x137   :  { %v344_v41 = vadd.f32 %v8934_v39, %v343_v36  ;;  %v723_v42 = vadd.f32 %v8934_v39, %v722_v37  ;;  %v569_v36 = vunpack.c.l.b16 %v7332_v27 }
 0x138   :  { %v1219_v44 = vmax.f32 %v1142_v34, 0.0  ;;  %v1641_v46 = vmax.f32 %v1564_v35, 0.0  ;;  %v177_v35 = vunpack.c.l.b16 %v88_v26 }
 0x139   :  { %7287 = vmatmul.msk.bf16.gmra.mxu0 %vm205_vm2, %v8542_v32  ;;  %7436 = vmatmul.msk.bf16.gmra.mxu1 %vm205_vm2, %v8563_v33  ;;  %v419_v47 = vmax.f32 %v344_v41, 0.0  ;;  %v798_v48 = vmax.f32 %v723_v42, 0.0  ;;  %v9295_v32 = vld [vmem:[%s10421_s2] ss:$0 sm:$0xff] }
 0x13a   :  { %v1262_v45 = vmax.f32 %v840_v43, %v1219_v44  ;;  %7585 = vmatmul.msk.bf16.gmra.mxu2 %vm205_vm2, %v8584_v38  ;;  %7734 = vmatmul.msk.bf16.gmra.mxu3 %vm205_vm2, %v8605_v40  ;;  %v991_v38 = vunpack.c.l.b16 %v7481_v29  ;;  %v1413_v40 = vunpack.c.l.b16 %v7630_v30  ;;  %v2200_v30 = vld [vmem:[#allocation2 + $0x2] sm:$0xff] }
 0x13b   :  { %v841_v56 = vmax.f32 %v419_v47, %v798_v48  ;;  %v591_v47 = vpack.c.b16 %v569_v36, %v569_v36 }
 0x13c   :  { %v1684_v49 = vmax.f32 %v1262_v45, %v1641_v46  ;;  %v199_v46 = vpack.c.b16 %v177_v35, %v177_v35 }
 0x13d   :  { %v1144_v50 = vpop.f32.mrf.mxu2  ;;  %v1566_v51 = vpop.f32.mrf.mxu3 }
 0x13e   :  { %1728 = vst.msk [vmem:[#allocation2 + $0xa8] sm:$0xff] %vm1706_vm3, %v1684_v49  ;;  %v1145_v52 = vadd.f32 %v8934_v39, %v1144_v50  ;;  %v1567_v53 = vadd.f32 %v8934_v39, %v1566_v51  ;;  %v345_v54 = vpop.f32.mrf.mxu0  ;;  %v724_v55 = vpop.f32.mrf.mxu1 }
 0x13f   :  { %v346_v59 = vadd.f32 %v8934_v39, %v345_v54  ;;  %v725_v60 = vadd.f32 %v8934_v39, %v724_v55 }
 0x140   :  { %v1220_v57 = vmax.f32 %v1145_v52, 0.0  ;;  %v1642_v58 = vmax.f32 %v1567_v53, 0.0  ;;  %v1013_v52 = vpack.c.b16 %v991_v38, %v991_v38  ;;  %v1435_v53 = vpack.c.b16 %v1413_v40, %v1413_v40 }
 0x141   :  { %v420_v63 = vmax.f32 %v346_v59, 0.0  ;;  %v799_v0 = vmax.f32 %v725_v60, 0.0 }
 0x142   :  { %v1263_v61 = vmax.f32 %v841_v56, %v1220_v57 }
 0x143   :  { %v842_v13 = vmax.f32 %v420_v63, %v799_v0 }
 0x144   :  { %v1685_v62 = vmax.f32 %v1263_v61, %v1642_v58 }
 0x145   :  { %v1146_v1 = vpop.f32.mrf.mxu2  ;;  %v1568_v2 = vpop.f32.mrf.mxu3 }
 0x146   :  { %1729 = vst.msk [vmem:[#allocation2 + $0xb0] sm:$0xff] %vm1706_vm3, %v1685_v62  ;;  %v1147_v5 = vadd.f32 %v8934_v39, %v1146_v1  ;;  %v1569_v6 = vadd.f32 %v8934_v39, %v1568_v2  ;;  %v348_v7 = vpop.f32.mrf.mxu0  ;;  %v727_v8 = vpop.f32.mrf.mxu1 }
 0x147   :  { %v349_v11 = vadd.f32 %v8934_v39, %v348_v7  ;;  %v728_v12 = vadd.f32 %v8934_v39, %v727_v8 }
 0x148   :  { %v1221_v14 = vmax.f32 %v1147_v5, 0.0  ;;  %v1643_v16 = vmax.f32 %v1569_v6, 0.0 }
 0x149   :  { %7288 = vmatmul.msk.bf16.gmra.mxu0 %vm205_vm2, %v8543_v3  ;;  %7437 = vmatmul.msk.bf16.gmra.mxu1 %vm205_vm2, %v8564_v4  ;;  %v421_v17 = vmax.f32 %v349_v11, 0.0  ;;  %v800_v18 = vmax.f32 %v728_v12, 0.0 }
 0x14a   :  { %v1264_v15 = vmax.f32 %v842_v13, %v1221_v14  ;;  %7586 = vmatmul.msk.bf16.gmra.mxu2 %vm205_vm2, %v8585_v9  ;;  %7735 = vmatmul.msk.bf16.gmra.mxu3 %vm205_vm2, %v8606_v10  ;;  %v1810_v14 = vld [vmem:[#allocation2 + $0x9] sm:$0xff] }
 0x14b   :  { %v843_v28 = vmax.f32 %v421_v17, %v800_v18  ;;  %v2201_v18 = vld [vmem:[#allocation2 + $0xa] sm:$0xff] }
 0x14c   :  { %v1686_v19 = vmax.f32 %v1264_v15, %v1643_v16  ;;  %v1752_v15 = vld [vmem:[#allocation2 + $0x8] sm:$0xff] }
 0x14d   :  { %v1149_v20 = vpop.f32.mrf.mxu2  ;;  %v1571_v21 = vpop.f32.mrf.mxu3 }
 0x14e   :  { %1730 = vst.msk [vmem:[#allocation2 + $0xb8] sm:$0xff] %vm1706_vm3, %v1686_v19  ;;  %v1150_v22 = vadd.f32 %v8934_v39, %v1149_v20  ;;  %v1572_v23 = vadd.f32 %v8934_v39, %v1571_v21  ;;  %v350_v24 = vpop.f32.mrf.mxu0  ;;  %v729_v25 = vpop.f32.mrf.mxu1  ;;  %v2463_v19 = vld [vmem:[#allocation2 + $0xb] sm:$0xff] }
 0x14f   :  { %v351_v33 = vadd.f32 %v9295_v32, %v350_v24  ;;  %v730_v34 = vadd.f32 %v9295_v32, %v729_v25  ;;  %v1809_v24 = vld [vmem:[#allocation2 + $0x1] sm:$0xff] }
 0x150   :  { %v1222_v39 = vmax.f32 %v1150_v22, 0.0  ;;  %v1644_v31 = vmax.f32 %v1572_v23, 0.0  ;;  %v1751_v25 = vld [vmem:[#allocation2] sm:$0xff] }
 0x151   :  { %v422_v42 = vmax.f32 %v351_v33, 0.0  ;;  %v801_v43 = vmax.f32 %v730_v34, 0.0  ;;  %v1788_v29 = vpack.c.bf16 %v1752_v15, %v1751_v25  ;;  %v2237_v34 = vpack.c.bf16 %v2201_v18, %v2200_v30 }
 0x152   :  { %v1265_v37 = vmax.f32 %v843_v28, %v1222_v39  ;;  %v1846_v28 = vpack.c.bf16 %v1810_v14, %v1809_v24  ;;  %v2462_v39 = vld [vmem:[#allocation2 + $0x3] sm:$0xff] }
 0x153   :  { %v844_v56 = vmax.f32 %v422_v42, %v801_v43  ;;  %v2499_v35 = vpack.c.bf16 %v2463_v19, %v2462_v39 }
 0x154   :  { %v1687_v41 = vmax.f32 %v1265_v37, %v1644_v31 }
 0x155   :  { %v1151_v44 = vpop.f32.mrf.mxu2  ;;  %v1573_v45 = vpop.f32.mrf.mxu3 }
 0x156   :  { %1731 = vst.msk [vmem:[#allocation2 + $0xc0] sm:$0xff] %vm1706_vm3, %v1687_v41  ;;  %v1152_v48 = vadd.f32 %v9295_v32, %v1151_v44  ;;  %v1574_v49 = vadd.f32 %v9295_v32, %v1573_v45  ;;  %v353_v50 = vpop.f32.mrf.mxu0  ;;  %v732_v51 = vpop.f32.mrf.mxu1 }
 0x157   :  { %v354_v54 = vadd.f32 %v9295_v32, %v353_v50  ;;  %v733_v55 = vadd.f32 %v9295_v32, %v732_v51 }
 0x158   :  { %v1223_v57 = vmax.f32 %v1152_v48, 0.0  ;;  %v1645_v59 = vmax.f32 %v1574_v49, 0.0 }
 0x159   :  { %7289 = vmatmul.msk.bf16.gmra.mxu0 %vm205_vm2, %v199_v46  ;;  %7438 = vmatmul.msk.bf16.gmra.mxu1 %vm205_vm2, %v591_v47  ;;  %v423_v60 = vmax.f32 %v354_v54, 0.0  ;;  %v802_v61 = vmax.f32 %v733_v55, 0.0 }
 0x15a   :  { %v1266_v58 = vmax.f32 %v844_v56, %v1223_v57  ;;  %7587 = vmatmul.msk.bf16.gmra.mxu2 %vm205_vm2, %v1013_v52  ;;  %7736 = vmatmul.msk.bf16.gmra.mxu3 %vm205_vm2, %v1435_v53  ;;  %v1812_v57 = vld [vmem:[#allocation2 + $0x19] sm:$0xff] }
 0x15b   :  { %v845_v5 = vmax.f32 %v423_v60, %v802_v61  ;;  %v2203_v61 = vld [vmem:[#allocation2 + $0x1a] sm:$0xff] }
 0x15c   :  { %v1688_v62 = vmax.f32 %v1266_v58, %v1645_v59  ;;  %v1754_v58 = vld [vmem:[#allocation2 + $0x18] sm:$0xff] }
 0x15d   :  { %v1154_v63 = vpop.f32.mrf.mxu2  ;;  %v1576_v0 = vpop.f32.mrf.mxu3 }
 0x15e   :  { %1732 = vst.msk [vmem:[#allocation2 + $0xc8] sm:$0xff] %vm1706_vm3, %v1688_v62  ;;  %v1155_v1 = vadd.f32 %v9295_v32, %v1154_v63  ;;  %v1577_v2 = vadd.f32 %v9295_v32, %v1576_v0  ;;  %v355_v3 = vpop.f32.mrf.mxu0  ;;  %v734_v4 = vpop.f32.mrf.mxu1  ;;  %v2465_v62 = vld [vmem:[#allocation2 + $0x1b] sm:$0xff] }
 0x15f   :  { %v356_v8 = vadd.f32 %v9295_v32, %v355_v3  ;;  %v735_v9 = vadd.f32 %v9295_v32, %v734_v4  ;;  %v1811_v3 = vld [vmem:[#allocation2 + $0x11] sm:$0xff] }
 0x160   :  { %v1224_v6 = vmax.f32 %v1155_v1, 0.0  ;;  %v1646_v7 = vmax.f32 %v1577_v2, 0.0  ;;  %v1753_v4 = vld [vmem:[#allocation2 + $0x10] sm:$0xff] }
 0x161   :  { %v424_v12 = vmax.f32 %v356_v8, 0.0  ;;  %v803_v13 = vmax.f32 %v735_v9, 0.0  ;;  %v1789_v8 = vpack.c.bf16 %v1754_v58, %v1753_v4  ;;  %v2202_v9 = vld [vmem:[#allocation2 + $0x12] sm:$0xff] }
 0x162   :  { %v1267_v10 = vmax.f32 %v845_v5, %v1224_v6 }
 0x163   :  { %v846_v31 = vmax.f32 %v424_v12, %v803_v13  ;;  %v2238_v13 = vpack.c.bf16 %v2203_v61, %v2202_v9 }
 0x164   :  { %v1689_v11 = vmax.f32 %v1267_v10, %v1646_v7  ;;  %v1847_v7 = vpack.c.bf16 %v1812_v57, %v1811_v3  ;;  %v2464_v10 = vld [vmem:[#allocation2 + $0x13] sm:$0xff] }
 0x165   :  { %v1156_v16 = vpop.f32.mrf.mxu2  ;;  %v1578_v17 = vpop.f32.mrf.mxu3  ;;  %v2500_v14 = vpack.c.bf16 %v2465_v62, %v2464_v10 }
 0x166   :  { %1733 = vst.msk [vmem:[#allocation2 + $0xd0] sm:$0xff] %vm1706_vm3, %v1689_v11  ;;  %v1157_v20 = vadd.f32 %v9295_v32, %v1156_v16  ;;  %v1579_v21 = vadd.f32 %v9295_v32, %v1578_v17  ;;  %v358_v22 = vpop.f32.mrf.mxu0  ;;  %v737_v23 = vpop.f32.mrf.mxu1 }
 0x167   :  { %v359_v26 = vadd.f32 %v9295_v32, %v358_v22  ;;  %v738_v27 = vadd.f32 %v9295_v32, %v737_v23 }
 0x168   :  { %v1225_v33 = vmax.f32 %v1157_v20, 0.0  ;;  %v1647_v37 = vmax.f32 %v1579_v21, 0.0 }
 0x169   :  { %7743 = vmatmul.msk.bf16.vlgmr.msrb.gmra.mxu0 %vm1706_vm3, %v1846_v28  ;;  %7766 = vmatmul.msk.bf16.vlgmr.msrb.gmra.mxu1 %vm1706_vm3, %v1788_v29  ;;  %v425_v38 = vmax.f32 %v359_v26, 0.0  ;;  %v804_v40 = vmax.f32 %v738_v27, 0.0 }
 0x16a   :  { %v1268_v36 = vmax.f32 %v846_v31, %v1225_v33  ;;  %7791 = vmatmul.msk.bf16.vlgmr.msrb.gmra.mxu2 %vm1706_vm3, %v2237_v34  ;;  %7816 = vmatmul.msk.bf16.vlgmr.msrb.gmra.mxu3 %vm1706_vm3, %v2499_v35  ;;  %v1814_v35 = vld [vmem:[#allocation2 + $0x29] sm:$0xff] }
 0x16b   :  { %v847_v48 = vmax.f32 %v425_v38, %v804_v40  ;;  %v2205_v40 = vld [vmem:[#allocation2 + $0x2a] sm:$0xff] }
 0x16c   :  { %v1690_v41 = vmax.f32 %v1268_v36, %v1647_v37  ;;  %v1756_v36 = vld [vmem:[#allocation2 + $0x28] sm:$0xff] }
 0x16d   :  { %v1159_v42 = vpop.f32.mrf.mxu2  ;;  %v1581_v43 = vpop.f32.mrf.mxu3 }
 0x16e   :  { %1734 = vst.msk [vmem:[#allocation2 + $0xd8] sm:$0xff] %vm1706_vm3, %v1690_v41  ;;  %v1160_v44 = vadd.f32 %v9295_v32, %v1159_v42  ;;  %v1582_v45 = vadd.f32 %v9295_v32, %v1581_v43  ;;  %v360_v46 = vpop.f32.mrf.mxu0  ;;  %v739_v47 = vpop.f32.mrf.mxu1  ;;  %v2467_v41 = vld [vmem:[#allocation2 + $0x2b] sm:$0xff] }
 0x16f   :  { %v361_v51 = vadd.f32 %v9295_v32, %v360_v46  ;;  %v740_v52 = vadd.f32 %v9295_v32, %v739_v47  ;;  %v1813_v46 = vld [vmem:[#allocation2 + $0x21] sm:$0xff] }
 0x170   :  { %v1226_v49 = vmax.f32 %v1160_v44, 0.0  ;;  %v1648_v50 = vmax.f32 %v1582_v45, 0.0  ;;  %v1755_v47 = vld [vmem:[#allocation2 + $0x20] sm:$0xff] }
 0x171   :  { %v426_v55 = vmax.f32 %v361_v51, 0.0  ;;  %v805_v56 = vmax.f32 %v740_v52, 0.0  ;;  %v1790_v51 = vpack.c.bf16 %v1756_v36, %v1755_v47  ;;  %v2204_v52 = vld [vmem:[#allocation2 + $0x22] sm:$0xff] }
 0x172   :  { %v1269_v53 = vmax.f32 %v847_v48, %v1226_v49 }
 0x173   :  { %v848_v11 = vmax.f32 %v426_v55, %v805_v56  ;;  %v2239_v56 = vpack.c.bf16 %v2205_v40, %v2204_v52 }
 0x174   :  { %v1691_v54 = vmax.f32 %v1269_v53, %v1648_v50  ;;  %v1848_v50 = vpack.c.bf16 %v1814_v35, %v1813_v46  ;;  %v2466_v53 = vld [vmem:[#allocation2 + $0x23] sm:$0xff] }
 0x175   :  { %v1161_v59 = vpop.f32.mrf.mxu2  ;;  %v1583_v60 = vpop.f32.mrf.mxu3  ;;  %v2501_v57 = vpack.c.bf16 %v2467_v41, %v2466_v53 }
 0x176   :  { %1735 = vst.msk [vmem:[#allocation2 + $0xe0] sm:$0xff] %vm1706_vm3, %v1691_v54  ;;  %v1162_v63 = vadd.f32 %v9295_v32, %v1161_v59  ;;  %v1584_v0 = vadd.f32 %v9295_v32, %v1583_v60  ;;  %v363_v1 = vpop.f32.mrf.mxu0  ;;  %v742_v2 = vpop.f32.mrf.mxu1 }
 0x177   :  { %v364_v5 = vadd.f32 %v9295_v32, %v363_v1  ;;  %v743_v6 = vadd.f32 %v9295_v32, %v742_v2 }
 0x178   :  { %v1227_v12 = vmax.f32 %v1162_v63, 0.0  ;;  %v1649_v16 = vmax.f32 %v1584_v0, 0.0 }
 0x179   :  { %7744 = vmatmul.msk.bf16.gmra.mxu0 %vm1706_vm3, %v1847_v7  ;;  %7767 = vmatmul.msk.bf16.gmra.mxu1 %vm1706_vm3, %v1789_v8  ;;  %v427_v17 = vmax.f32 %v364_v5, 0.0  ;;  %v806_v18 = vmax.f32 %v743_v6, 0.0 }
 0x17a   :  { %v1270_v15 = vmax.f32 %v848_v11, %v1227_v12  ;;  %7792 = vmatmul.msk.bf16.gmra.mxu2 %vm1706_vm3, %v2238_v13  ;;  %7817 = vmatmul.msk.bf16.gmra.mxu3 %vm1706_vm3, %v2500_v14  ;;  %v1816_v14 = vld [vmem:[#allocation2 + $0x39] sm:$0xff] }
 0x17b   :  { %v849_v26 = vmax.f32 %v427_v17, %v806_v18  ;;  %v2207_v18 = vld [vmem:[#allocation2 + $0x3a] sm:$0xff] }
 0x17c   :  { %v1692_v19 = vmax.f32 %v1270_v15, %v1649_v16  ;;  %v1758_v15 = vld [vmem:[#allocation2 + $0x38] sm:$0xff] }
 0x17d   :  { %v1164_v20 = vpop.f32.mrf.mxu2  ;;  %v1586_v21 = vpop.f32.mrf.mxu3 }
 0x17e   :  { %1736 = vst.msk [vmem:[#allocation2 + $0xe8] sm:$0xff] %vm1706_vm3, %v1692_v19  ;;  %v1165_v22 = vadd.f32 %v9295_v32, %v1164_v20  ;;  %v1587_v23 = vadd.f32 %v9295_v32, %v1586_v21  ;;  %v365_v24 = vpop.f32.mrf.mxu0  ;;  %v744_v25 = vpop.f32.mrf.mxu1  ;;  %v2469_v19 = vld [vmem:[#allocation2 + $0x3b] sm:$0xff] }
 0x17f   :  { %v366_v29 = vadd.f32 %v9295_v32, %v365_v24  ;;  %v745_v30 = vadd.f32 %v9295_v32, %v744_v25  ;;  %v1815_v24 = vld [vmem:[#allocation2 + $0x31] sm:$0xff] }
 0x180   :  { %v1228_v27 = vmax.f32 %v1165_v22, 0.0  ;;  %v1650_v28 = vmax.f32 %v1587_v23, 0.0  ;;  %v1757_v25 = vld [vmem:[#allocation2 + $0x30] sm:$0xff] }
 0x181   :  { %v428_v33 = vmax.f32 %v366_v29, 0.0  ;;  %v807_v34 = vmax.f32 %v745_v30, 0.0  ;;  %v1791_v29 = vpack.c.bf16 %v1758_v15, %v1757_v25  ;;  %v2206_v30 = vld [vmem:[#allocation2 + $0x32] sm:$0xff] }
 0x182   :  { %v1271_v39 = vmax.f32 %v849_v26, %v1228_v27 }
 0x183   :  { %v850_v54 = vmax.f32 %v428_v33, %v807_v34  ;;  %v2240_v34 = vpack.c.bf16 %v2207_v18, %v2206_v30 }
 0x184   :  { %v1693_v31 = vmax.f32 %v1271_v39, %v1650_v28  ;;  %v1849_v28 = vpack.c.bf16 %v1816_v14, %v1815_v24  ;;  %v2468_v39 = vld [vmem:[#allocation2 + $0x33] sm:$0xff] }
 0x185   :  { %v1166_v37 = vpop.f32.mrf.mxu2  ;;  %v1588_v38 = vpop.f32.mrf.mxu3  ;;  %v2502_v35 = vpack.c.bf16 %v2469_v19, %v2468_v39 }
 0x186   :  { %1737 = vst.msk [vmem:[#allocation2 + $0xf0] sm:$0xff] %vm1706_vm3, %v1693_v31  ;;  %v1167_v42 = vadd.f32 %v9295_v32, %v1166_v37  ;;  %v1589_v43 = vadd.f32 %v9295_v32, %v1588_v38  ;;  %v368_v44 = vpop.f32.mrf.mxu0  ;;  %v747_v45 = vpop.f32.mrf.mxu1 }
 0x187   :  { %v369_v48 = vadd.f32 %v9295_v32, %v368_v44  ;;  %v748_v49 = vadd.f32 %v9295_v32, %v747_v45 }
 0x188   :  { %v1229_v55 = vmax.f32 %v1167_v42, 0.0  ;;  %v1651_v59 = vmax.f32 %v1589_v43, 0.0 }
 0x189   :  { %7745 = vmatmul.msk.bf16.gmra.mxu0 %vm1706_vm3, %v1848_v50  ;;  %7768 = vmatmul.msk.bf16.gmra.mxu1 %vm1706_vm3, %v1790_v51  ;;  %v429_v60 = vmax.f32 %v369_v48, 0.0  ;;  %v808_v61 = vmax.f32 %v748_v49, 0.0 }
 0x18a   :  { %v1272_v58 = vmax.f32 %v850_v54, %v1229_v55  ;;  %7793 = vmatmul.msk.bf16.gmra.mxu2 %vm1706_vm3, %v2239_v56  ;;  %7818 = vmatmul.msk.bf16.gmra.mxu3 %vm1706_vm3, %v2501_v57  ;;  %v1818_v57 = vld [vmem:[#allocation2 + $0x49] sm:$0xff] }
 0x18b   :  { %v851_v5 = vmax.f32 %v429_v60, %v808_v61  ;;  %v2209_v61 = vld [vmem:[#allocation2 + $0x4a] sm:$0xff] }
 0x18c   :  { %v1694_v62 = vmax.f32 %v1272_v58, %v1651_v59  ;;  %v1760_v58 = vld [vmem:[#allocation2 + $0x48] sm:$0xff] }
 0x18d   :  { %v1169_v63 = vpop.f32.mrf.mxu2  ;;  %v1591_v0 = vpop.f32.mrf.mxu3 }
 0x18e   :  { %1738 = vst.msk [vmem:[#allocation2 + $0xf8] sm:$0xff] %vm1706_vm3, %v1694_v62  ;;  %v1170_v1 = vadd.f32 %v9295_v32, %v1169_v63  ;;  %v1592_v2 = vadd.f32 %v9295_v32, %v1591_v0  ;;  %v370_v3 = vpop.f32.mrf.mxu0  ;;  %v749_v4 = vpop.f32.mrf.mxu1  ;;  %v2471_v62 = vld [vmem:[#allocation2 + $0x4b] sm:$0xff] }
 0x18f   :  { %v371_v8 = vadd.f32 %v9295_v32, %v370_v3  ;;  %v750_v9 = vadd.f32 %v9295_v32, %v749_v4  ;;  %v1817_v3 = vld [vmem:[#allocation2 + $0x41] sm:$0xff] }
 0x190   :  { %v1230_v6 = vmax.f32 %v1170_v1, 0.0  ;;  %v1652_v7 = vmax.f32 %v1592_v2, 0.0  ;;  %v1759_v4 = vld [vmem:[#allocation2 + $0x40] sm:$0xff] }
 0x191   :  { %v430_v12 = vmax.f32 %v371_v8, 0.0  ;;  %v809_v13 = vmax.f32 %v750_v9, 0.0  ;;  %v1792_v8 = vpack.c.bf16 %v1760_v58, %v1759_v4  ;;  %v2208_v9 = vld [vmem:[#allocation2 + $0x42] sm:$0xff] }
 0x192   :  { %v1273_v10 = vmax.f32 %v851_v5, %v1230_v6 }
 0x193   :  { %v852_v31 = vmax.f32 %v430_v12, %v809_v13  ;;  %v2241_v13 = vpack.c.bf16 %v2209_v61, %v2208_v9 }
 0x194   :  { %v1695_v11 = vmax.f32 %v1273_v10, %v1652_v7  ;;  %v1850_v7 = vpack.c.bf16 %v1818_v57, %v1817_v3  ;;  %v2470_v10 = vld [vmem:[#allocation2 + $0x43] sm:$0xff] }
 0x195   :  { %v1171_v16 = vpop.f32.mrf.mxu2  ;;  %v1593_v17 = vpop.f32.mrf.mxu3  ;;  %v2503_v14 = vpack.c.bf16 %v2471_v62, %v2470_v10 }
 0x196   :  { %1739 = vst.msk [vmem:[#allocation2 + $0x100] sm:$0xff] %vm1706_vm3, %v1695_v11  ;;  %v1172_v20 = vadd.f32 %v9295_v32, %v1171_v16  ;;  %v1594_v21 = vadd.f32 %v9295_v32, %v1593_v17  ;;  %v373_v22 = vpop.f32.mrf.mxu0  ;;  %v752_v23 = vpop.f32.mrf.mxu1 }
 0x197   :  { %v374_v26 = vadd.f32 %v9295_v32, %v373_v22  ;;  %v753_v27 = vadd.f32 %v9295_v32, %v752_v23 }
 0x198   :  { %v1231_v33 = vmax.f32 %v1172_v20, 0.0  ;;  %v1653_v37 = vmax.f32 %v1594_v21, 0.0 }
 0x199   :  { %7746 = vmatmul.msk.bf16.gmra.mxu0 %vm1706_vm3, %v1849_v28  ;;  %7769 = vmatmul.msk.bf16.gmra.mxu1 %vm1706_vm3, %v1791_v29  ;;  %v431_v38 = vmax.f32 %v374_v26, 0.0  ;;  %v810_v40 = vmax.f32 %v753_v27, 0.0 }
 0x19a   :  { %v1274_v36 = vmax.f32 %v852_v31, %v1231_v33  ;;  %7794 = vmatmul.msk.bf16.gmra.mxu2 %vm1706_vm3, %v2240_v34  ;;  %7819 = vmatmul.msk.bf16.gmra.mxu3 %vm1706_vm3, %v2502_v35  ;;  %v1820_v35 = vld [vmem:[#allocation2 + $0x59] sm:$0xff] }
 0x19b   :  { %v853_v48 = vmax.f32 %v431_v38, %v810_v40  ;;  %v2211_v40 = vld [vmem:[#allocation2 + $0x5a] sm:$0xff] }
 0x19c   :  { %v1696_v41 = vmax.f32 %v1274_v36, %v1653_v37  ;;  %v1762_v36 = vld [vmem:[#allocation2 + $0x58] sm:$0xff] }
 0x19d   :  { %v1174_v42 = vpop.f32.mrf.mxu2  ;;  %v1596_v43 = vpop.f32.mrf.mxu3 }
 0x19e   :  { %1740 = vst.msk [vmem:[#allocation2 + $0x108] sm:$0xff] %vm1706_vm3, %v1696_v41  ;;  %v1175_v44 = vadd.f32 %v9295_v32, %v1174_v42  ;;  %v1597_v45 = vadd.f32 %v9295_v32, %v1596_v43  ;;  %v375_v46 = vpop.f32.mrf.mxu0  ;;  %v754_v47 = vpop.f32.mrf.mxu1  ;;  %v2473_v41 = vld [vmem:[#allocation2 + $0x5b] sm:$0xff] }
 0x19f   :  { %v376_v51 = vadd.f32 %v9295_v32, %v375_v46  ;;  %v755_v52 = vadd.f32 %v9295_v32, %v754_v47  ;;  %v1819_v46 = vld [vmem:[#allocation2 + $0x51] sm:$0xff] }
 0x1a0   :  { %v1232_v49 = vmax.f32 %v1175_v44, 0.0  ;;  %v1654_v50 = vmax.f32 %v1597_v45, 0.0  ;;  %v1761_v47 = vld [vmem:[#allocation2 + $0x50] sm:$0xff] }
 0x1a1   :  { %v432_v55 = vmax.f32 %v376_v51, 0.0  ;;  %v811_v56 = vmax.f32 %v755_v52, 0.0  ;;  %v1793_v51 = vpack.c.bf16 %v1762_v36, %v1761_v47  ;;  %v2210_v52 = vld [vmem:[#allocation2 + $0x52] sm:$0xff] }
 0x1a2   :  { %v1275_v53 = vmax.f32 %v853_v48, %v1232_v49 }
 0x1a3   :  { %v854_v11 = vmax.f32 %v432_v55, %v811_v56  ;;  %v2242_v56 = vpack.c.bf16 %v2211_v40, %v2210_v52 }
 0x1a4   :  { %v1697_v54 = vmax.f32 %v1275_v53, %v1654_v50  ;;  %v1851_v50 = vpack.c.bf16 %v1820_v35, %v1819_v46  ;;  %v2472_v53 = vld [vmem:[#allocation2 + $0x53] sm:$0xff] }
 0x1a5   :  { %v1176_v59 = vpop.f32.mrf.mxu2  ;;  %v1598_v60 = vpop.f32.mrf.mxu3  ;;  %v2504_v57 = vpack.c.bf16 %v2473_v41, %v2472_v53 }
 0x1a6   :  { %1741 = vst.msk [vmem:[#allocation2 + $0x110] sm:$0xff] %vm1706_vm3, %v1697_v54  ;;  %v1177_v63 = vadd.f32 %v9295_v32, %v1176_v59  ;;  %v1599_v0 = vadd.f32 %v9295_v32, %v1598_v60  ;;  %v378_v1 = vpop.f32.mrf.mxu0  ;;  %v757_v2 = vpop.f32.mrf.mxu1 }
 0x1a7   :  { %v379_v5 = vadd.f32 %v9295_v32, %v378_v1  ;;  %v758_v6 = vadd.f32 %v9295_v32, %v757_v2 }
 0x1a8   :  { %v1233_v12 = vmax.f32 %v1177_v63, 0.0  ;;  %v1655_v16 = vmax.f32 %v1599_v0, 0.0 }
 0x1a9   :  { %7747 = vmatmul.msk.bf16.gmra.mxu0 %vm1706_vm3, %v1850_v7  ;;  %7770 = vmatmul.msk.bf16.gmra.mxu1 %vm1706_vm3, %v1792_v8  ;;  %v433_v17 = vmax.f32 %v379_v5, 0.0  ;;  %v812_v18 = vmax.f32 %v758_v6, 0.0 }
 0x1aa   :  { %v1276_v15 = vmax.f32 %v854_v11, %v1233_v12  ;;  %7795 = vmatmul.msk.bf16.gmra.mxu2 %vm1706_vm3, %v2241_v13  ;;  %7820 = vmatmul.msk.bf16.gmra.mxu3 %vm1706_vm3, %v2503_v14  ;;  %v1822_v14 = vld [vmem:[#allocation2 + $0x69] sm:$0xff] }
 0x1ab   :  { %v855_v26 = vmax.f32 %v433_v17, %v812_v18  ;;  %v2213_v18 = vld [vmem:[#allocation2 + $0x6a] sm:$0xff] }
 0x1ac   :  { %v1698_v19 = vmax.f32 %v1276_v15, %v1655_v16  ;;  %v1764_v15 = vld [vmem:[#allocation2 + $0x68] sm:$0xff] }
 0x1ad   :  { %v1179_v20 = vpop.f32.mrf.mxu2  ;;  %v1601_v21 = vpop.f32.mrf.mxu3 }
 0x1ae   :  { %1742 = vst.msk [vmem:[#allocation2 + $0x118] sm:$0xff] %vm1706_vm3, %v1698_v19  ;;  %v1180_v22 = vadd.f32 %v9295_v32, %v1179_v20  ;;  %v1602_v23 = vadd.f32 %v9295_v32, %v1601_v21  ;;  %v380_v24 = vpop.f32.mrf.mxu0  ;;  %v759_v25 = vpop.f32.mrf.mxu1  ;;  %v2475_v19 = vld [vmem:[#allocation2 + $0x6b] sm:$0xff] }
 0x1af   :  { %v381_v29 = vadd.f32 %v9295_v32, %v380_v24  ;;  %v760_v30 = vadd.f32 %v9295_v32, %v759_v25  ;;  %v1821_v24 = vld [vmem:[#allocation2 + $0x61] sm:$0xff] }
 0x1b0   :  { %v1234_v27 = vmax.f32 %v1180_v22, 0.0  ;;  %v1656_v28 = vmax.f32 %v1602_v23, 0.0  ;;  %v1763_v25 = vld [vmem:[#allocation2 + $0x60] sm:$0xff] }
 0x1b1   :  { %v434_v33 = vmax.f32 %v381_v29, 0.0  ;;  %v813_v34 = vmax.f32 %v760_v30, 0.0  ;;  %v1794_v29 = vpack.c.bf16 %v1764_v15, %v1763_v25  ;;  %v2212_v30 = vld [vmem:[#allocation2 + $0x62] sm:$0xff] }
 0x1b2   :  { %v1277_v39 = vmax.f32 %v855_v26, %v1234_v27 }
 0x1b3   :  { %v856_v54 = vmax.f32 %v434_v33, %v813_v34  ;;  %v2243_v34 = vpack.c.bf16 %v2213_v18, %v2212_v30 }
 0x1b4   :  { %v1699_v31 = vmax.f32 %v1277_v39, %v1656_v28  ;;  %v1852_v28 = vpack.c.bf16 %v1822_v14, %v1821_v24  ;;  %v2474_v39 = vld [vmem:[#allocation2 + $0x63] sm:$0xff] }
 0x1b5   :  { %v1181_v37 = vpop.f32.mrf.mxu2  ;;  %v1603_v38 = vpop.f32.mrf.mxu3  ;;  %v2505_v35 = vpack.c.bf16 %v2475_v19, %v2474_v39  ;;  %v1826_v39 = vld [vmem:[#allocation2 + $0x89] sm:$0xff] }
 0x1b6   :  { %1743 = vst.msk [vmem:[#allocation2 + $0x120] sm:$0xff] %vm1706_vm3, %v1699_v31  ;;  %v1182_v42 = vadd.f32 %v9295_v32, %v1181_v37  ;;  %v1604_v43 = vadd.f32 %v9295_v32, %v1603_v38  ;;  %v383_v44 = vpop.f32.mrf.mxu0  ;;  %v762_v45 = vpop.f32.mrf.mxu1 }
 0x1b7   :  { %v384_v48 = vadd.f32 %v9295_v32, %v383_v44  ;;  %v763_v49 = vadd.f32 %v9295_v32, %v762_v45 }
 0x1b8   :  { %v1235_v55 = vmax.f32 %v1182_v42, 0.0  ;;  %v1657_v59 = vmax.f32 %v1604_v43, 0.0 }
 0x1b9   :  { %7748 = vmatmul.msk.bf16.gmra.mxu0 %vm1706_vm3, %v1851_v50  ;;  %7771 = vmatmul.msk.bf16.gmra.mxu1 %vm1706_vm3, %v1793_v51  ;;  %v435_v60 = vmax.f32 %v384_v48, 0.0  ;;  %v814_v61 = vmax.f32 %v763_v49, 0.0 }
 0x1ba   :  { %v1278_v58 = vmax.f32 %v856_v54, %v1235_v55  ;;  %7796 = vmatmul.msk.bf16.gmra.mxu2 %vm1706_vm3, %v2242_v56  ;;  %7821 = vmatmul.msk.bf16.gmra.mxu3 %vm1706_vm3, %v2504_v57  ;;  %v1766_v54 = vld [vmem:[#allocation2 + $0x78] sm:$0xff] }
 0x1bb   :  { %v857_v5 = vmax.f32 %v435_v60, %v814_v61  ;;  %v2477_v60 = vld [vmem:[#allocation2 + $0x7b] sm:$0xff] }
 0x1bc   :  { %v1700_v62 = vmax.f32 %v1278_v58, %v1657_v59  ;;  %v1824_v58 = vld [vmem:[#allocation2 + $0x79] sm:$0xff] }
 0x1bd   :  { %v1184_v63 = vpop.f32.mrf.mxu2  ;;  %v1606_v0 = vpop.f32.mrf.mxu3  ;;  %v2215_v59 = vld [vmem:[#allocation2 + $0x7a] sm:$0xff] }
 0x1be   :  { %1744 = vst.msk [vmem:[#allocation2 + $0x128] sm:$0xff] %vm1706_vm3, %v1700_v62  ;;  %v1185_v1 = vadd.f32 %v9295_v32, %v1184_v63  ;;  %v1607_v2 = vadd.f32 %v9295_v32, %v1606_v0  ;;  %v385_v3 = vpop.f32.mrf.mxu0  ;;  %v764_v4 = vpop.f32.mrf.mxu1  ;;  %v1765_v63 = vld [vmem:[#allocation2 + $0x70] sm:$0xff] }
 0x1bf   :  { %v386_v8 = vadd.f32 %v9295_v32, %v385_v3  ;;  %v765_v9 = vadd.f32 %v9295_v32, %v764_v4  ;;  %v1823_v4 = vld [vmem:[#allocation2 + $0x71] sm:$0xff] }
 0x1c0   :  { %v1236_v6 = vmax.f32 %v1185_v1, 0.0  ;;  %v1658_v7 = vmax.f32 %v1607_v2, 0.0 }
 0x1c1   :  { %v436_v12 = vmax.f32 %v386_v8, 0.0  ;;  %v815_v13 = vmax.f32 %v765_v9, 0.0  ;;  %v1795_v8 = vpack.c.bf16 %v1766_v54, %v1765_v63 }
 0x1c2   :  { %v1279_v10 = vmax.f32 %v857_v5, %v1236_v6  ;;  %v2214_v5 = vld [vmem:[#allocation2 + $0x72] sm:$0xff] }
 0x1c3   :  { %v858_v31 = vmax.f32 %v436_v12, %v815_v13  ;;  %v2476_v6 = vld [vmem:[#allocation2 + $0x73] sm:$0xff]  ;;  %v2244_v9 = vpack.c.bf16 %v2215_v59, %v2214_v5 }
 0x1c4   :  { %v1701_v11 = vmax.f32 %v1279_v10, %v1658_v7  ;;  %v1853_v7 = vpack.c.bf16 %v1824_v58, %v1823_v4  ;;  %v2506_v10 = vpack.c.bf16 %v2477_v60, %v2476_v6  ;;  %v2219_v59 = vld [vmem:[#allocation2 + $0x9a] sm:$0xff]  ;;  %v2218_v5 = vld [vmem:[#allocation2 + $0x92] sm:$0xff] }
 0x1c5   :  { %v1186_v16 = vpop.f32.mrf.mxu2  ;;  %v1608_v17 = vpop.f32.mrf.mxu3  ;;  %v2481_v60 = vld [vmem:[#allocation2 + $0x9b] sm:$0xff]  ;;  %v2480_v6 = vld [vmem:[#allocation2 + $0x93] sm:$0xff] }
 0x1c6   :  { %1745 = vst.msk [vmem:[#allocation2 + $0x130] sm:$0xff] %vm1706_vm3, %v1701_v11  ;;  %v1187_v20 = vadd.f32 %v9295_v32, %v1186_v16  ;;  %v1609_v21 = vadd.f32 %v9295_v32, %v1608_v17  ;;  %v388_v22 = vpop.f32.mrf.mxu0  ;;  %v767_v23 = vpop.f32.mrf.mxu1 }
 0x1c7   :  { %v389_v26 = vadd.f32 %v9295_v32, %v388_v22  ;;  %v768_v27 = vadd.f32 %v9295_v32, %v767_v23 }
 0x1c8   :  { %v1237_v33 = vmax.f32 %v1187_v20, 0.0  ;;  %v1659_v37 = vmax.f32 %v1609_v21, 0.0 }
 0x1c9   :  { %7749 = vmatmul.msk.bf16.gmra.mxu0 %vm1706_vm3, %v1852_v28  ;;  %7772 = vmatmul.msk.bf16.gmra.mxu1 %vm1706_vm3, %v1794_v29  ;;  %v437_v38 = vmax.f32 %v389_v26, 0.0  ;;  %v816_v40 = vmax.f32 %v768_v27, 0.0 }
 0x1ca   :  { %v1280_v36 = vmax.f32 %v858_v31, %v1237_v33  ;;  %7797 = vmatmul.msk.bf16.gmra.mxu2 %vm1706_vm3, %v2243_v34  ;;  %7822 = vmatmul.msk.bf16.gmra.mxu3 %vm1706_vm3, %v2505_v35  ;;  %v1768_v31 = vld [vmem:[#allocation2 + $0x88] sm:$0xff] }
 0x1cb   :  { %v859_v48 = vmax.f32 %v437_v38, %v816_v40  ;;  %v2217_v35 = vld [vmem:[#allocation2 + $0x8a] sm:$0xff]  ;;  %v1825_v40 = vld [vmem:[#allocation2 + $0x81] sm:$0xff] }
 0x1cc   :  { %v1702_v41 = vmax.f32 %v1280_v36, %v1659_v37  ;;  %v2479_v36 = vld [vmem:[#allocation2 + $0x8b] sm:$0xff] }
 0x1cd   :  { %v1189_v42 = vpop.f32.mrf.mxu2  ;;  %v1611_v43 = vpop.f32.mrf.mxu3 }
 0x1ce   :  { %1746 = vst.msk [vmem:[#allocation2 + $0x138] sm:$0xff] %vm1706_vm3, %v1702_v41  ;;  %v1190_v44 = vadd.f32 %v9295_v32, %v1189_v42  ;;  %v1612_v45 = vadd.f32 %v9295_v32, %v1611_v43  ;;  %v390_v46 = vpop.f32.mrf.mxu0  ;;  %v769_v47 = vpop.f32.mrf.mxu1  ;;  %v1767_v41 = vld [vmem:[#allocation2 + $0x80] sm:$0xff]  ;;  %v1854_v42 = vpack.c.bf16 %v1826_v39, %v1825_v40 }
 0x1cf   :  { %v391_v51 = vadd.f32 %v9295_v32, %v390_v46  ;;  %v770_v52 = vadd.f32 %v9295_v32, %v769_v47  ;;  %v1796_v43 = vpack.c.bf16 %v1768_v31, %v1767_v41  ;;  %v2220_v39 = vld [vmem:[#allocation2 + $0xa2] sm:$0xff] }
 0x1d0   :  { %v1238_v49 = vmax.f32 %v1190_v44, 0.0  ;;  %v1660_v50 = vmax.f32 %v1612_v45, 0.0  ;;  %v2216_v44 = vld [vmem:[#allocation2 + $0x82] sm:$0xff] }
 0x1d1   :  { %v438_v56 = vmax.f32 %v391_v51, 0.0  ;;  %v817_v57 = vmax.f32 %v770_v52, 0.0  ;;  %v2478_v45 = vld [vmem:[#allocation2 + $0x83] sm:$0xff]  ;;  %v2245_v46 = vpack.c.bf16 %v2217_v35, %v2216_v44  ;;  %v1774_v44 = vld [vmem:[#allocation2 + $0xb8] sm:$0xff] }
 0x1d2   :  { %v1281_v53 = vmax.f32 %v859_v48, %v1238_v49  ;;  %v2507_v47 = vpack.c.bf16 %v2479_v36, %v2478_v45  ;;  %v2482_v31 = vld [vmem:[#allocation2 + $0xa3] sm:$0xff] }
 0x1d3   :  { %v860_v11 = vmax.f32 %v438_v56, %v817_v57  ;;  %v1770_v56 = vld [vmem:[#allocation2 + $0x98] sm:$0xff] }
 0x1d4   :  { %v1703_v55 = vmax.f32 %v1281_v53, %v1660_v50 }
 0x1d5   :  { %v1191_v61 = vpop.f32.mrf.mxu2  ;;  %v1613_v62 = vpop.f32.mrf.mxu3 }
 0x1d6   :  { %1747 = vst.msk [vmem:[#allocation2 + $0x140] sm:$0xff] %vm1706_vm3, %v1703_v55  ;;  %v1192_v0 = vadd.f32 %v9295_v32, %v1191_v61  ;;  %v1614_v1 = vadd.f32 %v9295_v32, %v1613_v62  ;;  %v393_v2 = vpop.f32.mrf.mxu0  ;;  %v772_v3 = vpop.f32.mrf.mxu1  ;;  %v1828_v55 = vld [vmem:[#allocation2 + $0x99] sm:$0xff] }
 0x1d7   :  { %v394_v13 = vadd.f32 %v9295_v32, %v393_v2  ;;  %v773_v14 = vadd.f32 %v9295_v32, %v772_v3 }
 0x1d8   :  { %v1239_v12 = vmax.f32 %v1192_v0, 0.0  ;;  %v1661_v16 = vmax.f32 %v1614_v1, 0.0  ;;  %v1827_v0 = vld [vmem:[#allocation2 + $0x91] sm:$0xff] }
 0x1d9   :  { %7750 = vmatmul.msk.bf16.gmra.mxu0 %vm1706_vm3, %v1853_v7  ;;  %7773 = vmatmul.msk.bf16.gmra.mxu1 %vm1706_vm3, %v1795_v8  ;;  %v439_v18 = vmax.f32 %v394_v13, 0.0  ;;  %v818_v19 = vmax.f32 %v773_v14, 0.0  ;;  %v1769_v1 = vld [vmem:[#allocation2 + $0x90] sm:$0xff]  ;;  %v1855_v3 = vpack.c.bf16 %v1828_v55, %v1827_v0  ;;  %v2246_v8 = vpack.c.bf16 %v2219_v59, %v2218_v5 }
 0x1da   :  { %v1282_v15 = vmax.f32 %v860_v11, %v1239_v12  ;;  %7798 = vmatmul.msk.bf16.gmra.mxu2 %vm1706_vm3, %v2244_v9  ;;  %7823 = vmatmul.msk.bf16.gmra.mxu3 %vm1706_vm3, %v2506_v10  ;;  %v1797_v4 = vpack.c.bf16 %v1770_v56, %v1769_v1  ;;  %v2508_v9 = vpack.c.bf16 %v2481_v60, %v2480_v6  ;;  %v2484_v59 = vld [vmem:[#allocation2 + $0xb3] sm:$0xff]  ;;  %v1834_v6 = vld [vmem:[#allocation2 + $0xc9] sm:$0xff] }
 0x1db   :  { %v861_v26 = vmax.f32 %v439_v18, %v818_v19  ;;  %v1772_v18 = vld [vmem:[#allocation2 + $0xa8] sm:$0xff] }
 0x1dc   :  { %v1704_v17 = vmax.f32 %v1282_v15, %v1661_v16 }
 0x1dd   :  { %v1194_v20 = vpop.f32.mrf.mxu2  ;;  %v1616_v21 = vpop.f32.mrf.mxu3 }
 0x1de   :  { %1748 = vst.msk [vmem:[#allocation2 + $0x148] sm:$0xff] %vm1706_vm3, %v1704_v17  ;;  %v1195_v22 = vadd.f32 %v9295_v32, %v1194_v20  ;;  %v1617_v23 = vadd.f32 %v9295_v32, %v1616_v21  ;;  %v395_v24 = vpop.f32.mrf.mxu0  ;;  %v774_v25 = vpop.f32.mrf.mxu1  ;;  %v1830_v17 = vld [vmem:[#allocation2 + $0xa9] sm:$0xff] }
 0x1df   :  { %v2221_v21 = vld [vmem:[#allocation2 + $0xaa] sm:$0xff] }
 0x1e0   :  { %v1240_v27 = vmax.f32 %v1195_v22, 0.0  ;;  %v1662_v28 = vmax.f32 %v1617_v23, 0.0  ;;  %v2483_v22 = vld [vmem:[#allocation2 + $0xab] sm:$0xff] }
 0x1e1   :  { %v2509_v35 = vpack.c.bf16 %v2483_v22, %v2482_v31  ;;  %v2224_v22 = vld [vmem:[#allocation2 + $0xc2] sm:$0xff] }
 0x1e2   :  { %v1283_v29 = vmax.f32 %v861_v26, %v1240_v27  ;;  %v1829_v26 = vld [vmem:[#allocation2 + $0xa1] sm:$0xff] }
 0x1e3   :  { %v1771_v27 = vld [vmem:[#allocation2 + $0xa0] sm:$0xff] }
 0x1e4   :  { %v1705_v30 = vmax.f32 %v1283_v29, %v1662_v28  ;;  %v1856_v29 = vpack.c.bf16 %v1830_v17, %v1829_v26  ;;  %v1833_v17 = vld [vmem:[#allocation2 + $0xc1] sm:$0xff] }
 0x1e5   :  { %v1196_v33 = vpop.f32.mrf.mxu2  ;;  %v1618_v34 = vpop.f32.mrf.mxu3 }
 0x1e6   :  { %1750 = vst.msk [vmem:[#allocation2 + $0x150] sm:$0x3] %vm1749_vm4, %v1705_v30  ;;  %v1940_v37 = vpop.f32.mrf.mxu0  ;;  %v2106_v38 = vpop.f32.mrf.mxu1  ;;  %v1798_v30 = vpack.c.bf16 %v1772_v18, %v1771_v27  ;;  %v2247_v34 = vpack.c.bf16 %v2221_v21, %v2220_v39  ;;  %v1775_v18 = vld [vmem:[#allocation2 + $0xc0] sm:$0xff] }
 0x1e7   :  { %v2107_v32 = vadd.f32 %v2106_v38, %v1940_v37 }
 0x1e9   :  { %7751 = vmatmul.msk.bf16.gmra.mxu0 %vm1706_vm3, %v1854_v42  ;;  %7774 = vmatmul.msk.bf16.gmra.mxu1 %vm1706_vm3, %v1796_v43  ;;  %v1832_v43 = vld [vmem:[#allocation2 + $0xb9] sm:$0xff] }
 0x1ea   :  { %7799 = vmatmul.msk.bf16.gmra.mxu2 %vm1706_vm3, %v2245_v46  ;;  %7824 = vmatmul.msk.bf16.gmra.mxu3 %vm1706_vm3, %v2507_v47  ;;  %v2223_v47 = vld [vmem:[#allocation2 + $0xba] sm:$0xff] }
 0x1ed   :  { %v2331_v48 = vpop.f32.mrf.mxu2  ;;  %v2593_v49 = vpop.f32.mrf.mxu3 }
 0x1ee   :  { %v2425_v50 = vadd.f32 %v2331_v48, %v2107_v32  ;;  %v1942_v51 = vpop.f32.mrf.mxu0  ;;  %v2108_v52 = vpop.f32.mrf.mxu1  ;;  %v2485_v48 = vld [vmem:[#allocation2 + $0xbb] sm:$0xff] }
 0x1ef   :  { %v2109_v53 = vadd.f32 %v2108_v52, %v1942_v51  ;;  %v1831_v52 = vld [vmem:[#allocation2 + $0xb1] sm:$0xff] }
 0x1f0   :  { %v9427_v54 = vadd.f32 %v2593_v49, %v2425_v50  ;;  %v1857_v56 = vpack.c.bf16 %v1832_v43, %v1831_v52 }
 0x1f5   :  { %v2333_v57 = vpop.f32.mrf.mxu2  ;;  %v2595_v58 = vpop.f32.mrf.mxu3 }
 0x1f6   :  { %v2426_v61 = vadd.f32 %v2333_v57, %v2109_v53  ;;  %v1945_v62 = vpop.f32.mrf.mxu0  ;;  %v2111_v63 = vpop.f32.mrf.mxu1  ;;  %v1773_v53 = vld [vmem:[#allocation2 + $0xb0] sm:$0xff] }
 0x1f7   :  { %v2112_v2 = vadd.f32 %v2111_v63, %v1945_v62  ;;  %v1799_v57 = vpack.c.bf16 %v1774_v44, %v1773_v53  ;;  %v2510_v62 = vpack.c.bf16 %v2485_v48, %v2484_v59 }
 0x1f8   :  { %v9429_v7 = vadd.f32 %v2595_v58, %v2426_v61  ;;  %v2222_v58 = vld [vmem:[#allocation2 + $0xb2] sm:$0xff] }
 0x1f9   :  { %7752 = vmatmul.msk.bf16.gmra.mxu0 %vm1706_vm3, %v1855_v3  ;;  %7775 = vmatmul.msk.bf16.gmra.mxu1 %vm1706_vm3, %v1797_v4  ;;  %v2248_v61 = vpack.c.bf16 %v2223_v47, %v2222_v58 }
 0x1fa   :  { %7800 = vmatmul.msk.bf16.gmra.mxu2 %vm1706_vm3, %v2246_v8  ;;  %7825 = vmatmul.msk.bf16.gmra.mxu3 %vm1706_vm3, %v2508_v9  ;;  %v1776_v8 = vld [vmem:[#allocation2 + $0xc8] sm:$0xff] }
 0x1fb   :  { %v1800_v21 = vpack.c.bf16 %v1776_v8, %v1775_v18  ;;  %v2490_v18 = vld [vmem:[#allocation2 + $0xe3] sm:$0xff] }
 0x1fd   :  { %v2336_v10 = vpop.f32.mrf.mxu2  ;;  %v2598_v11 = vpop.f32.mrf.mxu3 }
 0x1fe   :  { %v2427_v12 = vadd.f32 %v2336_v10, %v2112_v2  ;;  %v1947_v13 = vpop.f32.mrf.mxu0  ;;  %v2113_v14 = vpop.f32.mrf.mxu1 }
 0x1ff   :  { %v2114_v15 = vadd.f32 %v2113_v14, %v1947_v13 }
 0x200   :  { %v9435_v16 = vadd.f32 %v2598_v11, %v2427_v12  ;;  %v2225_v11 = vld [vmem:[#allocation2 + $0xca] sm:$0xff] }
 0x201   :  { %v2487_v12 = vld [vmem:[#allocation2 + $0xcb] sm:$0xff] }
 0x205   :  { %v2338_v19 = vpop.f32.mrf.mxu2  ;;  %v2600_v20 = vpop.f32.mrf.mxu3 }
 0x206   :  { %v2428_v23 = vadd.f32 %v2338_v19, %v2114_v15  ;;  %v1950_v24 = vpop.f32.mrf.mxu0  ;;  %v2116_v25 = vpop.f32.mrf.mxu1 }
 0x207   :  { %v2117_v28 = vadd.f32 %v2116_v25, %v1950_v24  ;;  %v2249_v25 = vpack.c.bf16 %v2225_v11, %v2224_v22  ;;  %v1837_v11 = vld [vmem:[#allocation2 + $0xe1] sm:$0xff] }
 0x208   :  { %v9437_v33 = vadd.f32 %v2600_v20, %v2428_v23  ;;  %v1858_v20 = vpack.c.bf16 %v1834_v6, %v1833_v17  ;;  %v2486_v23 = vld [vmem:[#allocation2 + $0xc3] sm:$0xff]  ;;  %v2491_v6 = vld [vmem:[#allocation2 + $0xeb] sm:$0xff] }
 0x209   :  { %7753 = vmatmul.msk.bf16.gmra.mxu0 %vm1706_vm3, %v1856_v29  ;;  %7776 = vmatmul.msk.bf16.gmra.mxu1 %vm1706_vm3, %v1798_v30  ;;  %v2511_v26 = vpack.c.bf16 %v2487_v12, %v2486_v23  ;;  %v1779_v12 = vld [vmem:[#allocation2 + $0xe0] sm:$0xff] }
 0x20a   :  { %7801 = vmatmul.msk.bf16.gmra.mxu2 %vm1706_vm3, %v2247_v34  ;;  %7826 = vmatmul.msk.bf16.gmra.mxu3 %vm1706_vm3, %v2509_v35  ;;  %v1836_v35 = vld [vmem:[#allocation2 + $0xd9] sm:$0xff]  ;;  %v2228_v17 = vld [vmem:[#allocation2 + $0xe2] sm:$0xff] }
 0x20d   :  { %v2341_v36 = vpop.f32.mrf.mxu2  ;;  %v2603_v37 = vpop.f32.mrf.mxu3 }
 0x20e   :  { %v2429_v38 = vadd.f32 %v2341_v36, %v2117_v28  ;;  %v1952_v40 = vpop.f32.mrf.mxu0  ;;  %v2118_v41 = vpop.f32.mrf.mxu1  ;;  %v1778_v36 = vld [vmem:[#allocation2 + $0xd8] sm:$0xff] }
 0x20f   :  { %v2119_v32 = vadd.f32 %v2118_v41, %v1952_v40  ;;  %v2227_v40 = vld [vmem:[#allocation2 + $0xda] sm:$0xff] }
 0x210   :  { %v9443_v42 = vadd.f32 %v2603_v37, %v2429_v38  ;;  %v2489_v41 = vld [vmem:[#allocation2 + $0xdb] sm:$0xff] }
 0x215   :  { %v2343_v45 = vpop.f32.mrf.mxu2  ;;  %v2605_v46 = vpop.f32.mrf.mxu3 }
 0x216   :  { %v2430_v49 = vadd.f32 %v2343_v45, %v2119_v32  ;;  %v1955_v50 = vpop.f32.mrf.mxu0  ;;  %v2121_v51 = vpop.f32.mrf.mxu1  ;;  %v1835_v45 = vld [vmem:[#allocation2 + $0xd1] sm:$0xff] }
 0x217   :  { %v2122_v55 = vadd.f32 %v2121_v51, %v1955_v50  ;;  %v1859_v48 = vpack.c.bf16 %v1836_v35, %v1835_v45  ;;  %v2226_v50 = vld [vmem:[#allocation2 + $0xd2] sm:$0xff] }
 0x218   :  { %v9445_v60 = vadd.f32 %v2605_v46, %v2430_v49  ;;  %v1777_v46 = vld [vmem:[#allocation2 + $0xd0] sm:$0xff]  ;;  %v2250_v53 = vpack.c.bf16 %v2227_v40, %v2226_v50 }
 0x219   :  { %7754 = vmatmul.msk.bf16.gmra.mxu0 %vm1706_vm3, %v1857_v56  ;;  %7777 = vmatmul.msk.bf16.gmra.mxu1 %vm1706_vm3, %v1799_v57  ;;  %v1801_v49 = vpack.c.bf16 %v1778_v36, %v1777_v46  ;;  %v2488_v51 = vld [vmem:[#allocation2 + $0xd3] sm:$0xff] }
 0x21a   :  { %7802 = vmatmul.msk.bf16.gmra.mxu2 %vm1706_vm3, %v2248_v61  ;;  %7827 = vmatmul.msk.bf16.gmra.mxu3 %vm1706_vm3, %v2510_v62  ;;  %v2231_v36 = vld [vmem:[#allocation2 + $0xfa] sm:$0xff] }
 0x21d   :  { %v2346_v63 = vpop.f32.mrf.mxu2  ;;  %v2608_v0 = vpop.f32.mrf.mxu3 }
 0x21e   :  { %v2431_v1 = vadd.f32 %v2346_v63, %v2122_v55  ;;  %v1957_v2 = vpop.f32.mrf.mxu0  ;;  %v2123_v3 = vpop.f32.mrf.mxu1  ;;  %v2512_v55 = vpack.c.bf16 %v2489_v41, %v2488_v51 }
 0x21f   :  { %v2124_v4 = vadd.f32 %v2123_v3, %v1957_v2 }
 0x220   :  { %v9451_v5 = vadd.f32 %v2608_v0, %v2431_v1  ;;  %v1838_v0 = vld [vmem:[#allocation2 + $0xe9] sm:$0xff] }
 0x221   :  { %v1780_v1 = vld [vmem:[#allocation2 + $0xe8] sm:$0xff] }
 0x225   :  { %v2348_v9 = vpop.f32.mrf.mxu2  ;;  %v2610_v10 = vpop.f32.mrf.mxu3 }
 0x226   :  { %v2432_v13 = vadd.f32 %v2348_v9, %v2124_v4  ;;  %v1960_v14 = vpop.f32.mrf.mxu0  ;;  %v2126_v15 = vpop.f32.mrf.mxu1  ;;  %v2229_v4 = vld [vmem:[#allocation2 + $0xea] sm:$0xff] }
 0x227   :  { %v2127_v19 = vadd.f32 %v2126_v15, %v1960_v14  ;;  %v1860_v14 = vpack.c.bf16 %v1838_v0, %v1837_v11  ;;  %v1802_v15 = vpack.c.bf16 %v1780_v1, %v1779_v12  ;;  %v1784_v0 = vld [vmem:[#allocation2 + $0x108] sm:$0xff]  ;;  %v1783_v11 = vld [vmem:[#allocation2 + $0x100] sm:$0xff] }
 0x228   :  { %v9453_v24 = vadd.f32 %v2610_v10, %v2432_v13 }
 0x229   :  { %7755 = vmatmul.msk.bf16.gmra.mxu0 %vm1706_vm3, %v1858_v20  ;;  %7778 = vmatmul.msk.bf16.gmra.mxu1 %vm1706_vm3, %v1800_v21  ;;  %v2251_v20 = vpack.c.bf16 %v2229_v4, %v2228_v17  ;;  %v2513_v21 = vpack.c.bf16 %v2491_v6, %v2490_v18  ;;  %v2495_v4 = vld [vmem:[#allocation2 + $0x10b] sm:$0xff]  ;;  %v2494_v17 = vld [vmem:[#allocation2 + $0x103] sm:$0xff] }
 0x22a   :  { %7803 = vmatmul.msk.bf16.gmra.mxu2 %vm1706_vm3, %v2249_v25  ;;  %7828 = vmatmul.msk.bf16.gmra.mxu3 %vm1706_vm3, %v2511_v26 }
 0x22d   :  { %v2351_v27 = vpop.f32.mrf.mxu2  ;;  %v2613_v28 = vpop.f32.mrf.mxu3 }
 0x22e   :  { %v2433_v29 = vadd.f32 %v2351_v27, %v2127_v19  ;;  %v1962_v30 = vpop.f32.mrf.mxu0  ;;  %v2128_v39 = vpop.f32.mrf.mxu1 }
 0x22f   :  { %v2129_v31 = vadd.f32 %v2128_v39, %v1962_v30  ;;  %v1840_v30 = vld [vmem:[#allocation2 + $0xf9] sm:$0xff] }
 0x230   :  { %v9459_v34 = vadd.f32 %v2613_v28, %v2433_v29  ;;  %v1782_v39 = vld [vmem:[#allocation2 + $0xf8] sm:$0xff] }
 0x235   :  { %v2353_v37 = vpop.f32.mrf.mxu2  ;;  %v2615_v38 = vpop.f32.mrf.mxu3 }
 0x236   :  { %v2434_v32 = vadd.f32 %v2353_v37, %v2129_v31  ;;  %v1965_v43 = vpop.f32.mrf.mxu0  ;;  %v2131_v44 = vpop.f32.mrf.mxu1  ;;  %v2493_v37 = vld [vmem:[#allocation2 + $0xfb] sm:$0xff] }
 0x237   :  { %v2132_v47 = vadd.f32 %v2131_v44, %v1965_v43  ;;  %v1781_v43 = vld [vmem:[#allocation2 + $0xf0] sm:$0xff] }
 0x238   :  { %v9461_v52 = vadd.f32 %v2615_v38, %v2434_v32  ;;  %v1839_v32 = vld [vmem:[#allocation2 + $0xf1] sm:$0xff]  ;;  %v1803_v46 = vpack.c.bf16 %v1782_v39, %v1781_v43  ;;  %v2497_v43 = vld [vmem:[#allocation2 + $0x11b] sm:$0xff] }
 0x239   :  { %7756 = vmatmul.msk.bf16.gmra.mxu0 %vm1706_vm3, %v1859_v48  ;;  %7779 = vmatmul.msk.bf16.gmra.mxu1 %vm1706_vm3, %v1801_v49  ;;  %v1861_v45 = vpack.c.bf16 %v1840_v30, %v1839_v32  ;;  %v2492_v48 = vld [vmem:[#allocation2 + $0xf3] sm:$0xff] }
 0x23a   :  { %7804 = vmatmul.msk.bf16.gmra.mxu2 %vm1706_vm3, %v2250_v53  ;;  %7829 = vmatmul.msk.bf16.gmra.mxu3 %vm1706_vm3, %v2512_v55  ;;  %v2514_v51 = vpack.c.bf16 %v2493_v37, %v2492_v48  ;;  %v8613_v39 = vld [vmem:[%s10422_s3 + $0x30] sm:$0xff]  ;;  %v1844_v37 = vld [vmem:[#allocation2 + $0x119] sm:$0xff] }
 0x23b   :  { %3377 = vmatpush.bf16.msra.mxu2 %v8613_v39  ;;  %v2235_v32 = vld [vmem:[#allocation2 + $0x11a] sm:$0xff]  ;;  %v1785_v48 = vld [vmem:[#allocation2 + $0x110] sm:$0xff] }
 0x23d   :  { %v2356_v56 = vpop.f32.mrf.mxu2  ;;  %v2618_v57 = vpop.f32.mrf.mxu3 }
 0x23e   :  { %v2435_v58 = vadd.f32 %v2356_v56, %v2132_v47  ;;  %v1967_v59 = vpop.f32.mrf.mxu0  ;;  %v2133_v61 = vpop.f32.mrf.mxu1  ;;  %v2230_v47 = vld [vmem:[#allocation2 + $0xf2] sm:$0xff] }
 0x23f   :  { %v2134_v62 = vadd.f32 %v2133_v61, %v1967_v59  ;;  %v2252_v50 = vpack.c.bf16 %v2231_v36, %v2230_v47  ;;  %v8612_v36 = vld [vmem:[%s10422_s3 + $0x28] sm:$0xff]  ;;  %v1843_v47 = vld [vmem:[#allocation2 + $0x111] sm:$0xff] }
 0x240   :  { %v9467_v63 = vadd.f32 %v2618_v57, %v2435_v58  ;;  %3115 = vmatpush.bf16.msra.mxu1 %v8612_v36 }
 0x245   :  { %v2358_v2 = vpop.f32.mrf.mxu2  ;;  %v2620_v3 = vpop.f32.mrf.mxu3 }
 0x246   :  { %v2436_v8 = vadd.f32 %v2358_v2, %v2134_v62  ;;  %v1970_v9 = vpop.f32.mrf.mxu0  ;;  %v2136_v10 = vpop.f32.mrf.mxu1  ;;  %v1842_v62 = vld [vmem:[#allocation2 + $0x109] sm:$0xff] }
 0x247   :  { %v2137_v13 = vadd.f32 %v2136_v10, %v1970_v9  ;;  %v1841_v10 = vld [vmem:[#allocation2 + $0x101] sm:$0xff] }
 0x248   :  { %v9469_v19 = vadd.f32 %v2620_v3, %v2436_v8  ;;  %v2233_v3 = vld [vmem:[#allocation2 + $0x10a] sm:$0xff] }
 0x249   :  { %7757 = vmatmul.msk.bf16.gmra.mxu0 %vm1706_vm3, %v1860_v14  ;;  %7780 = vmatmul.msk.bf16.gmra.mxu1 %vm1706_vm3, %v1802_v15  ;;  %v1804_v14 = vpack.c.bf16 %v1784_v0, %v1783_v11  ;;  %v2232_v15 = vld [vmem:[#allocation2 + $0x102] sm:$0xff] }
 0x24a   :  { %7805 = vmatmul.msk.bf16.gmra.mxu2 %vm1706_vm3, %v2251_v20  ;;  %7830 = vmatmul.msk.bf16.gmra.mxu3 %vm1706_vm3, %v2513_v21  ;;  %v2253_v20 = vpack.c.bf16 %v2233_v3, %v2232_v15  ;;  %v2515_v21 = vpack.c.bf16 %v2495_v4, %v2494_v17 }
 0x24d   :  { %v2361_v22 = vpop.f32.mrf.mxu2  ;;  %v2623_v23 = vpop.f32.mrf.mxu3 }
 0x24e   :  { %v2437_v25 = vadd.f32 %v2361_v22, %v2137_v13  ;;  %v1972_v26 = vpop.f32.mrf.mxu0  ;;  %v2138_v27 = vpop.f32.mrf.mxu1  ;;  %v1862_v13 = vpack.c.bf16 %v1842_v62, %v1841_v10 }
 0x24f   :  { %v2139_v28 = vadd.f32 %v2138_v27, %v1972_v26 }
 0x250   :  { %v9475_v29 = vadd.f32 %v2623_v23, %v2437_v25 }
 0x255   :  { %v2363_v31 = vpop.f32.mrf.mxu2  ;;  %v2625_v35 = vpop.f32.mrf.mxu3 }
 0x256   :  { %v2438_v38 = vadd.f32 %v2363_v31, %v2139_v28  ;;  %v1975_v40 = vpop.f32.mrf.mxu0  ;;  %v2141_v41 = vpop.f32.mrf.mxu1  ;;  %v8611_v31 = vld [vmem:[%s10422_s3 + $0x20] sm:$0xff] }
 0x257   :  { %v2142_v44 = vadd.f32 %v2141_v41, %v1975_v40  ;;  %2853 = vmatpush.bf16.msra.mxu0 %v8611_v31 }
 0x258   :  { %v9477_v49 = vadd.f32 %v2625_v35, %v2438_v38  ;;  %v8614_v35 = vld [vmem:[%s10422_s3 + $0x38] sm:$0xff] }
 0x259   :  { %7758 = vmatmul.msk.bf16.gmra.mxu0 %vm1706_vm3, %v1861_v45  ;;  %7781 = vmatmul.msk.bf16.gmra.mxu1 %vm1706_vm3, %v1803_v46  ;;  %v1786_v38 = vld [vmem:[#allocation2 + $0x118] sm:$0xff] }
 0x25a   :  { %7806 = vmatmul.msk.bf16.gmra.mxu2 %vm1706_vm3, %v2252_v50  ;;  %7831 = vmatmul.msk.bf16.gmra.mxu3 %vm1706_vm3, %v2514_v51  ;;  %v1863_v51 = vpack.c.bf16 %v1844_v37, %v1843_v47 }
 0x25b   :  { %3639 = vmatpush.bf16.msra.mxu3 %v8614_v35 }
 0x25d   :  { %v2366_v53 = vpop.f32.mrf.mxu2  ;;  %v2628_v55 = vpop.f32.mrf.mxu3 }
 0x25e   :  { %v2439_v56 = vadd.f32 %v2366_v53, %v2142_v44  ;;  %v1977_v57 = vpop.f32.mrf.mxu0  ;;  %v2143_v58 = vpop.f32.mrf.mxu1  ;;  %v1805_v53 = vpack.c.bf16 %v1786_v38, %v1785_v48  ;;  %v2725_v38 = vld [vmem:[#allocation2 + $0x15] sm:$0xff]  ;;  %v2724_v48 = vld [vmem:[#allocation2 + $0xd] sm:$0xff] }
 0x25f   :  { %v2144_v59 = vadd.f32 %v2143_v58, %v1977_v57 }
 0x260   :  { %v9483_v61 = vadd.f32 %v2628_v55, %v2439_v56  ;;  %v2234_v55 = vld [vmem:[#allocation2 + $0x112] sm:$0xff] }
 0x261   :  { %v2496_v56 = vld [vmem:[#allocation2 + $0x113] sm:$0xff]  ;;  %v2254_v58 = vpack.c.bf16 %v2235_v32, %v2234_v55 }
 0x265   :  { %v2368_v1 = vpop.f32.mrf.mxu2  ;;  %v2630_v2 = vpop.f32.mrf.mxu3 }
 0x266   :  { %v2440_v6 = vadd.f32 %v2368_v1, %v2144_v59  ;;  %v1980_v8 = vpop.f32.mrf.mxu0  ;;  %v2146_v9 = vpop.f32.mrf.mxu1  ;;  %v2516_v59 = vpack.c.bf16 %v2497_v43, %v2496_v56  ;;  %v3249_v43 = vld [vmem:[#allocation2 + $0x17] sm:$0xff]  ;;  %v3248_v56 = vld [vmem:[#allocation2 + $0xf] sm:$0xff] }
 0x267   :  { %v2147_v12 = vadd.f32 %v2146_v9, %v1980_v8  ;;  %v1845_v8 = vld [vmem:[#allocation2 + $0x121] sm:$0xff] }
 0x268   :  { %v9485_v18 = vadd.f32 %v2630_v2, %v2440_v6  ;;  %v1787_v9 = vld [vmem:[#allocation2 + $0x120] sm:$0xff] }
 0x269   :  { %7759 = vmatmul.msk.bf16.gmra.mxu0 %vm1706_vm3, %v1862_v13  ;;  %7782 = vmatmul.msk.bf16.gmra.mxu1 %vm1706_vm3, %v1804_v14  ;;  %v2498_v13 = vld [vmem:[#allocation2 + $0x123] sm:$0xff] }
 0x26a   :  { %7807 = vmatmul.msk.bf16.gmra.mxu2 %vm1706_vm3, %v2253_v20  ;;  %7832 = vmatmul.msk.bf16.gmra.mxu3 %vm1706_vm3, %v2515_v21  ;;  %v1864_v21 = vpack.c.bf16 %v1845_v8, %v1845_v8 }
 0x26d   :  { %v2371_v22 = vpop.f32.mrf.mxu2  ;;  %v2633_v23 = vpop.f32.mrf.mxu3 }
 0x26e   :  { %v2441_v25 = vadd.f32 %v2371_v22, %v2147_v12  ;;  %v1982_v26 = vpop.f32.mrf.mxu0  ;;  %v2148_v27 = vpop.f32.mrf.mxu1  ;;  %v2236_v12 = vld [vmem:[#allocation2 + $0x122] sm:$0xff]  ;;  %v1806_v22 = vpack.c.bf16 %v1787_v9, %v1787_v9 }
 0x26f   :  { %v2149_v28 = vadd.f32 %v2148_v27, %v1982_v26  ;;  %v2517_v26 = vpack.c.bf16 %v2498_v13, %v2498_v13 }
 0x270   :  { %v9491_v30 = vadd.f32 %v2633_v23, %v2441_v25  ;;  %v2255_v25 = vpack.c.bf16 %v2236_v12, %v2236_v12  ;;  %v2989_v12 = vld [vmem:[#allocation2 + $0x26] sm:$0xff] }
 0x275   :  { %v2373_v40 = vpop.f32.mrf.mxu2  ;;  %v2635_v41 = vpop.f32.mrf.mxu3 }
 0x276   :  { %v2442_v44 = vadd.f32 %v2373_v40, %v2149_v28  ;;  %v1985_v45 = vpop.f32.mrf.mxu0  ;;  %v2151_v46 = vpop.f32.mrf.mxu1  ;;  %v2987_v40 = vld [vmem:[#allocation2 + $0x16] sm:$0xff] }
 0x277   :  { %v2152_v50 = vadd.f32 %v2151_v46, %v1985_v45 }
 0x278   :  { %v9505_v57 = vadd.f32 %v2635_v41, %v2442_v44  ;;  %v3511_v44 = vld [vmem:[#allocation2 + $0x18] sm:$0xff] }
 0x279   :  { %7760 = vmatmul.msk.bf16.gmra.mxu0 %vm1706_vm3, %v1863_v51  ;;  %7783 = vmatmul.msk.bf16.gmra.mxu1 %vm1706_vm3, %v1805_v53  ;;  %v2761_v53 = vpack.c.bf16 %v2725_v38, %v2724_v48  ;;  %v2729_v48 = vld [vmem:[#allocation2 + $0x35] sm:$0xff] }
 0x27a   :  { %7808 = vmatmul.msk.bf16.gmra.mxu2 %vm1706_vm3, %v2254_v58  ;;  %7833 = vmatmul.msk.bf16.gmra.mxu3 %vm1706_vm3, %v2516_v59  ;;  %v3510_v58 = vld [vmem:[#allocation2 + $0x10] sm:$0xff] }
 0x27d   :  { %v2376_v62 = vpop.f32.mrf.mxu2  ;;  %v2638_v0 = vpop.f32.mrf.mxu3 }
 0x27e   :  { %v2443_v1 = vadd.f32 %v2376_v62, %v2152_v50  ;;  %v1987_v2 = vpop.f32.mrf.mxu0  ;;  %v2153_v3 = vpop.f32.mrf.mxu1  ;;  %v2986_v50 = vld [vmem:[#allocation2 + $0xe] sm:$0xff]  ;;  %v3285_v62 = vpack.c.bf16 %v3249_v43, %v3248_v56  ;;  %v3515_v56 = vld [vmem:[#allocation2 + $0x38] sm:$0xff] }
 0x27f   :  { %v2154_v4 = vadd.f32 %v2153_v3, %v1987_v2  ;;  %v3023_v55 = vpack.c.bf16 %v2987_v40, %v2986_v50  ;;  %v2991_v50 = vld [vmem:[#allocation2 + $0x36] sm:$0xff] }
 0x280   :  { %v9511_v6 = vadd.f32 %v2638_v0, %v2443_v1  ;;  %v3547_v0 = vpack.c.bf16 %v3511_v44, %v3510_v58 }
 0x285   :  { %v2378_v10 = vpop.f32.mrf.mxu2  ;;  %v2640_v11 = vpop.f32.mrf.mxu3 }
 0x286   :  { %v2444_v14 = vadd.f32 %v2378_v10, %v2154_v4  ;;  %v1990_v15 = vpop.f32.mrf.mxu0  ;;  %v2156_v17 = vpop.f32.mrf.mxu1 }
 0x287   :  { %v2157_v20 = vadd.f32 %v2156_v17, %v1990_v15  ;;  %v3251_v15 = vld [vmem:[#allocation2 + $0x27] sm:$0xff] }
 0x288   :  { %v9513_v23 = vadd.f32 %v2640_v11, %v2444_v14  ;;  %v2727_v11 = vld [vmem:[#allocation2 + $0x25] sm:$0xff] }
 0x289   :  { %7761 = vmatmul.msk.bf16.gmra.mxu0 %vm1706_vm3, %v1864_v21  ;;  %7784 = vmatmul.msk.bf16.gmra.mxu1 %vm1706_vm3, %v1806_v22  ;;  %v3513_v17 = vld [vmem:[#allocation2 + $0x28] sm:$0xff] }
 0x28a   :  { %7809 = vmatmul.msk.bf16.gmra.mxu2 %vm1706_vm3, %v2255_v25  ;;  %7834 = vmatmul.msk.bf16.gmra.mxu3 %vm1706_vm3, %v2517_v26  ;;  %v2726_v25 = vld [vmem:[#allocation2 + $0x1d] sm:$0xff] }
 0x28b   :  { %v2988_v26 = vld [vmem:[#allocation2 + $0x1e] sm:$0xff] }
 0x28d   :  { %v2381_v27 = vpop.f32.mrf.mxu2  ;;  %v2643_v28 = vpop.f32.mrf.mxu3 }
 0x28e   :  { %v2445_v39 = vadd.f32 %v2381_v27, %v2157_v20  ;;  %v1992_v31 = vpop.f32.mrf.mxu0  ;;  %v2158_v35 = vpop.f32.mrf.mxu1 }
 0x28f   :  { %v2159_v36 = vadd.f32 %v2158_v35, %v1992_v31  ;;  %v3250_v31 = vld [vmem:[#allocation2 + $0x1f] sm:$0xff] }
 0x290   :  { %v9519_v37 = vadd.f32 %v2643_v28, %v2445_v39  ;;  %v2762_v28 = vpack.c.bf16 %v2727_v11, %v2726_v25  ;;  %v3024_v39 = vpack.c.bf16 %v2989_v12, %v2988_v26  ;;  %v3512_v35 = vld [vmem:[#allocation2 + $0x20] sm:$0xff]  ;;  %v3286_v38 = vpack.c.bf16 %v3251_v15, %v3250_v31  ;;  %v3514_v11 = vld [vmem:[#allocation2 + $0x30] sm:$0xff] }
 0x291   :  { %v3548_v40 = vpack.c.bf16 %v3513_v17, %v3512_v35  ;;  %v3255_v35 = vld [vmem:[#allocation2 + $0x47] sm:$0xff] }
 0x295   :  { %v2383_v41 = vpop.f32.mrf.mxu2  ;;  %v2645_v32 = vpop.f32.mrf.mxu3 }
 0x296   :  { %v2446_v45 = vadd.f32 %v2383_v41, %v2159_v36  ;;  %v1995_v46 = vpop.f32.mrf.mxu0  ;;  %v2161_v47 = vpop.f32.mrf.mxu1 }
 0x297   :  { %v2162_v51 = vadd.f32 %v2161_v47, %v1995_v46 }
 0x298   :  { %v9521_v59 = vadd.f32 %v2645_v32, %v2446_v45 }
 0x299   :  { %7841 = vmatmul.msk.bf16.vlgmr.msra.gmra.mxu0 %vm1706_vm3, %v2761_v53  ;;  %7866 = vmatmul.msk.bf16.vlgmr.msra.gmra.mxu1 %vm1706_vm3, %v3023_v55  ;;  %v3253_v55 = vld [vmem:[#allocation2 + $0x37] sm:$0xff] }
 0x29a   :  { %7891 = vmatmul.msk.bf16.vlgmr.msra.gmra.mxu2 %vm1706_vm3, %v3285_v62  ;;  %7916 = vmatmul.msk.bf16.vlgmr.msra.gmra.mxu3 %vm1706_vm3, %v3547_v0 }
 0x29d   :  { %v2386_v1 = vpop.f32.mrf.mxu2  ;;  %v2648_v2 = vpop.f32.mrf.mxu3 }
 0x29e   :  { %v2447_v3 = vadd.f32 %v2386_v1, %v2162_v51  ;;  %v1997_v4 = vpop.f32.mrf.mxu0  ;;  %v2163_v8 = vpop.f32.mrf.mxu1  ;;  %v2728_v1 = vld [vmem:[#allocation2 + $0x2d] sm:$0xff] }
 0x29f   :  { %v2164_v9 = vadd.f32 %v2163_v8, %v1997_v4  ;;  %v2763_v4 = vpack.c.bf16 %v2729_v48, %v2728_v1 }
 0x2a0   :  { %v9527_v10 = vadd.f32 %v2648_v2, %v2447_v3  ;;  %v2990_v2 = vld [vmem:[#allocation2 + $0x2e] sm:$0xff] }
 0x2a1   :  { %v3025_v8 = vpack.c.bf16 %v2991_v50, %v2990_v2  ;;  %v3254_v50 = vld [vmem:[#allocation2 + $0x3f] sm:$0xff] }
 0x2a5   :  { %v2388_v13 = vpop.f32.mrf.mxu2  ;;  %v2650_v14 = vpop.f32.mrf.mxu3 }
 0x2a6   :  { %v2448_v20 = vadd.f32 %v2388_v13, %v2164_v9  ;;  %v2000_v21 = vpop.f32.mrf.mxu0  ;;  %v2166_v22 = vpop.f32.mrf.mxu1  ;;  %v3252_v9 = vld [vmem:[#allocation2 + $0x2f] sm:$0xff] }
 0x2a7   :  { %v2167_v27 = vadd.f32 %v2166_v22, %v2000_v21  ;;  %v3287_v13 = vpack.c.bf16 %v3253_v55, %v3252_v9  ;;  %v3288_v55 = vpack.c.bf16 %v3255_v35, %v3254_v50  ;;  %v2995_v9 = vld [vmem:[#allocation2 + $0x56] sm:$0xff] }
 0x2a8   :  { %v9529_v36 = vadd.f32 %v2650_v14, %v2448_v20  ;;  %v3549_v14 = vpack.c.bf16 %v3515_v56, %v3514_v11  ;;  %v3518_v35 = vld [vmem:[#allocation2 + $0x50] sm:$0xff] }
 0x2a9   :  { %7842 = vmatmul.msk.bf16.gmra.mxu0 %vm1706_vm3, %v2762_v28  ;;  %7867 = vmatmul.msk.bf16.gmra.mxu1 %vm1706_vm3, %v3024_v39  ;;  %v2993_v28 = vld [vmem:[#allocation2 + $0x46] sm:$0xff] }
 0x2aa   :  { %7892 = vmatmul.msk.bf16.gmra.mxu2 %vm1706_vm3, %v3286_v38  ;;  %7917 = vmatmul.msk.bf16.gmra.mxu3 %vm1706_vm3, %v3548_v40  ;;  %v3517_v38 = vld [vmem:[#allocation2 + $0x48] sm:$0xff] }
 0x2ad   :  { %v2391_v41 = vpop.f32.mrf.mxu2  ;;  %v2653_v32 = vpop.f32.mrf.mxu3 }
 0x2ae   :  { %v2449_v43 = vadd.f32 %v2391_v41, %v2167_v27  ;;  %v2002_v44 = vpop.f32.mrf.mxu0  ;;  %v2168_v45 = vpop.f32.mrf.mxu1  ;;  %v2731_v27 = vld [vmem:[#allocation2 + $0x45] sm:$0xff] }
 0x2af   :  { %v2169_v46 = vadd.f32 %v2168_v45, %v2002_v44  ;;  %v2992_v44 = vld [vmem:[#allocation2 + $0x3e] sm:$0xff] }
 0x2b0   :  { %v9535_v47 = vadd.f32 %v2653_v32, %v2449_v43  ;;  %v2730_v43 = vld [vmem:[#allocation2 + $0x3d] sm:$0xff]  ;;  %v3026_v48 = vpack.c.bf16 %v2993_v28, %v2992_v44 }
 0x2b5   :  { %v2393_v51 = vpop.f32.mrf.mxu2  ;;  %v2655_v53 = vpop.f32.mrf.mxu3 }
 0x2b6   :  { %v2450_v58 = vadd.f32 %v2393_v51, %v2169_v46  ;;  %v2005_v62 = vpop.f32.mrf.mxu0  ;;  %v2171_v0 = vpop.f32.mrf.mxu1  ;;  %v2764_v46 = vpack.c.bf16 %v2731_v27, %v2730_v43  ;;  %v3516_v51 = vld [vmem:[#allocation2 + $0x40] sm:$0xff] }
 0x2b7   :  { %v2172_v3 = vadd.f32 %v2171_v0, %v2005_v62  ;;  %v3550_v56 = vpack.c.bf16 %v3517_v38, %v3516_v51  ;;  %v2735_v51 = vld [vmem:[#allocation2 + $0x65] sm:$0xff] }
 0x2b8   :  { %v9537_v12 = vadd.f32 %v2655_v53, %v2450_v58 }
 0x2b9   :  { %7843 = vmatmul.msk.bf16.gmra.mxu0 %vm1706_vm3, %v2763_v4  ;;  %7868 = vmatmul.msk.bf16.gmra.mxu1 %vm1706_vm3, %v3025_v8  ;;  %v2733_v8 = vld [vmem:[#allocation2 + $0x55] sm:$0xff] }
 0x2ba   :  { %7893 = vmatmul.msk.bf16.gmra.mxu2 %vm1706_vm3, %v3287_v13  ;;  %7918 = vmatmul.msk.bf16.gmra.mxu3 %vm1706_vm3, %v3549_v14  ;;  %v3257_v14 = vld [vmem:[#allocation2 + $0x57] sm:$0xff] }
 0x2bd   :  { %v2396_v15 = vpop.f32.mrf.mxu2  ;;  %v2658_v17 = vpop.f32.mrf.mxu3 }
 0x2be   :  { %v2451_v20 = vadd.f32 %v2396_v15, %v2172_v3  ;;  %v2007_v21 = vpop.f32.mrf.mxu0  ;;  %v2173_v22 = vpop.f32.mrf.mxu1  ;;  %v3519_v15 = vld [vmem:[#allocation2 + $0x58] sm:$0xff] }
 0x2bf   :  { %v2174_v25 = vadd.f32 %v2173_v22, %v2007_v21  ;;  %v2732_v22 = vld [vmem:[#allocation2 + $0x4d] sm:$0xff] }
 0x2c0   :  { %v9543_v26 = vadd.f32 %v2658_v17, %v2451_v20  ;;  %v2765_v28 = vpack.c.bf16 %v2733_v8, %v2732_v22  ;;  %v2734_v8 = vld [vmem:[#allocation2 + $0x5d] sm:$0xff] }
 0x2c5   :  { %v2398_v39 = vpop.f32.mrf.mxu2  ;;  %v2660_v31 = vpop.f32.mrf.mxu3 }
 0x2c6   :  { %v2452_v40 = vadd.f32 %v2398_v39, %v2174_v25  ;;  %v2010_v41 = vpop.f32.mrf.mxu0  ;;  %v2176_v32 = vpop.f32.mrf.mxu1  ;;  %v2994_v25 = vld [vmem:[#allocation2 + $0x4e] sm:$0xff] }
 0x2c7   :  { %v2177_v45 = vadd.f32 %v2176_v32, %v2010_v41  ;;  %v3027_v39 = vpack.c.bf16 %v2995_v9, %v2994_v25  ;;  %v3551_v41 = vpack.c.bf16 %v3519_v15, %v3518_v35  ;;  %v2996_v9 = vld [vmem:[#allocation2 + $0x5e] sm:$0xff] }
 0x2c8   :  { %v9545_v53 = vadd.f32 %v2660_v31, %v2452_v40  ;;  %v3256_v31 = vld [vmem:[#allocation2 + $0x4f] sm:$0xff]  ;;  %v3258_v15 = vld [vmem:[#allocation2 + $0x5f] sm:$0xff] }
 0x2c9   :  { %7844 = vmatmul.msk.bf16.gmra.mxu0 %vm1706_vm3, %v2764_v46  ;;  %7869 = vmatmul.msk.bf16.gmra.mxu1 %vm1706_vm3, %v3026_v48  ;;  %v3289_v40 = vpack.c.bf16 %v3257_v14, %v3256_v31 }
 0x2ca   :  { %7894 = vmatmul.msk.bf16.gmra.mxu2 %vm1706_vm3, %v3288_v55  ;;  %7919 = vmatmul.msk.bf16.gmra.mxu3 %vm1706_vm3, %v3550_v56  ;;  %v2997_v55 = vld [vmem:[#allocation2 + $0x66] sm:$0xff] }
 0x2cb   :  { %v3028_v14 = vpack.c.bf16 %v2997_v55, %v2996_v9 }
 0x2cd   :  { %v2401_v58 = vpop.f32.mrf.mxu2  ;;  %v2663_v62 = vpop.f32.mrf.mxu3 }
 0x2ce   :  { %v2453_v0 = vadd.f32 %v2401_v58, %v2177_v45  ;;  %v2012_v1 = vpop.f32.mrf.mxu0  ;;  %v2178_v2 = vpop.f32.mrf.mxu1 }
 0x2cf   :  { %v2179_v3 = vadd.f32 %v2178_v2, %v2012_v1 }
 0x2d0   :  { %v9551_v4 = vadd.f32 %v2663_v62, %v2453_v0  ;;  %v3259_v62 = vld [vmem:[#allocation2 + $0x67] sm:$0xff] }
 0x2d1   :  { %v3521_v0 = vld [vmem:[#allocation2 + $0x68] sm:$0xff] }
 0x2d5   :  { %v2403_v11 = vpop.f32.mrf.mxu2  ;;  %v2665_v13 = vpop.f32.mrf.mxu3 }
 0x2d6   :  { %v2454_v17 = vadd.f32 %v2403_v11, %v2179_v3  ;;  %v2015_v20 = vpop.f32.mrf.mxu0  ;;  %v2181_v21 = vpop.f32.mrf.mxu1 }
 0x2d7   :  { %v2182_v27 = vadd.f32 %v2181_v21, %v2015_v20  ;;  %v3290_v21 = vpack.c.bf16 %v3259_v62, %v3258_v15 }
 0x2d8   :  { %v9553_v38 = vadd.f32 %v2665_v13, %v2454_v17  ;;  %v2766_v13 = vpack.c.bf16 %v2735_v51, %v2734_v8  ;;  %v3520_v17 = vld [vmem:[#allocation2 + $0x60] sm:$0xff] }
 0x2d9   :  { %7845 = vmatmul.msk.bf16.gmra.mxu0 %vm1706_vm3, %v2765_v28  ;;  %7870 = vmatmul.msk.bf16.gmra.mxu1 %vm1706_vm3, %v3027_v39  ;;  %v3552_v22 = vpack.c.bf16 %v3521_v0, %v3520_v17 }
 0x2da   :  { %7895 = vmatmul.msk.bf16.gmra.mxu2 %vm1706_vm3, %v3289_v40  ;;  %7920 = vmatmul.msk.bf16.gmra.mxu3 %vm1706_vm3, %v3551_v41  ;;  %v2737_v41 = vld [vmem:[#allocation2 + $0x75] sm:$0xff] }
 0x2dd   :  { %v2406_v32 = vpop.f32.mrf.mxu2  ;;  %v2668_v43 = vpop.f32.mrf.mxu3 }
 0x2de   :  { %v2455_v44 = vadd.f32 %v2406_v32, %v2182_v27  ;;  %v2017_v45 = vpop.f32.mrf.mxu0  ;;  %v2183_v46 = vpop.f32.mrf.mxu1  ;;  %v2999_v32 = vld [vmem:[#allocation2 + $0x76] sm:$0xff] }
 0x2df   :  { %v2184_v48 = vadd.f32 %v2183_v46, %v2017_v45  ;;  %v3261_v45 = vld [vmem:[#allocation2 + $0x77] sm:$0xff] }
 0x2e0   :  { %v9559_v50 = vadd.f32 %v2668_v43, %v2455_v44  ;;  %v3523_v46 = vld [vmem:[#allocation2 + $0x78] sm:$0xff] }
 0x2e5   :  { %v2408_v56 = vpop.f32.mrf.mxu2  ;;  %v2670_v58 = vpop.f32.mrf.mxu3 }
 0x2e6   :  { %v2456_v1 = vadd.f32 %v2408_v56, %v2184_v48  ;;  %v2020_v2 = vpop.f32.mrf.mxu0  ;;  %v2186_v3 = vpop.f32.mrf.mxu1  ;;  %v2736_v56 = vld [vmem:[#allocation2 + $0x6d] sm:$0xff] }
 0x2e7   :  { %v2187_v11 = vadd.f32 %v2186_v3, %v2020_v2  ;;  %v2767_v0 = vpack.c.bf16 %v2737_v41, %v2736_v56  ;;  %v3260_v2 = vld [vmem:[#allocation2 + $0x6f] sm:$0xff]  ;;  %v3262_v56 = vld [vmem:[#allocation2 + $0x7f] sm:$0xff] }
 0x2e8   :  { %v9561_v20 = vadd.f32 %v2670_v58, %v2456_v1  ;;  %v2998_v58 = vld [vmem:[#allocation2 + $0x6e] sm:$0xff]  ;;  %v3291_v9 = vpack.c.bf16 %v3261_v45, %v3260_v2  ;;  %v2738_v45 = vld [vmem:[#allocation2 + $0x7d] sm:$0xff] }
 0x2e9   :  { %7846 = vmatmul.msk.bf16.gmra.mxu0 %vm1706_vm3, %v2766_v13  ;;  %7871 = vmatmul.msk.bf16.gmra.mxu1 %vm1706_vm3, %v3028_v14  ;;  %v3029_v1 = vpack.c.bf16 %v2999_v32, %v2998_v58  ;;  %v3522_v3 = vld [vmem:[#allocation2 + $0x70] sm:$0xff]  ;;  %v3525_v41 = vld [vmem:[#allocation2 + $0x88] sm:$0xff]  ;;  %v3524_v58 = vld [vmem:[#allocation2 + $0x80] sm:$0xff] }
 0x2ea   :  { %7896 = vmatmul.msk.bf16.gmra.mxu2 %vm1706_vm3, %v3290_v21  ;;  %7921 = vmatmul.msk.bf16.gmra.mxu3 %vm1706_vm3, %v3552_v22 }
 0x2ed   :  { %v2411_v25 = vpop.f32.mrf.mxu2  ;;  %v2673_v27 = vpop.f32.mrf.mxu3 }
 0x2ee   :  { %v2457_v28 = vadd.f32 %v2411_v25, %v2187_v11  ;;  %v2022_v39 = vpop.f32.mrf.mxu0  ;;  %v2188_v31 = vpop.f32.mrf.mxu1  ;;  %v3553_v11 = vpack.c.bf16 %v3523_v46, %v3522_v3  ;;  %v3000_v46 = vld [vmem:[#allocation2 + $0x7e] sm:$0xff] }
 0x2ef   :  { %v2189_v35 = vadd.f32 %v2188_v31, %v2022_v39 }
 0x2f0   :  { %v9567_v40 = vadd.f32 %v2673_v27, %v2457_v28  ;;  %v2739_v27 = vld [vmem:[#allocation2 + $0x85] sm:$0xff] }
 0x2f1   :  { %v3001_v28 = vld [vmem:[#allocation2 + $0x86] sm:$0xff] }
 0x2f5   :  { %v2413_v43 = vpop.f32.mrf.mxu2  ;;  %v2675_v44 = vpop.f32.mrf.mxu3 }
 0x2f6   :  { %v2458_v48 = vadd.f32 %v2413_v43, %v2189_v35  ;;  %v2025_v51 = vpop.f32.mrf.mxu0  ;;  %v2191_v55 = vpop.f32.mrf.mxu1  ;;  %v3263_v35 = vld [vmem:[#allocation2 + $0x87] sm:$0xff] }
 0x2f7   :  { %v2192_v62 = vadd.f32 %v2191_v55, %v2025_v51  ;;  %v2768_v51 = vpack.c.bf16 %v2739_v27, %v2738_v45  ;;  %v3030_v55 = vpack.c.bf16 %v3001_v28, %v3000_v46  ;;  %v3265_v27 = vld [vmem:[#allocation2 + $0x97] sm:$0xff]  ;;  %v3264_v45 = vld [vmem:[#allocation2 + $0x8f] sm:$0xff] }
 0x2f8   :  { %v9569_v8 = vadd.f32 %v2675_v44, %v2458_v48  ;;  %v3527_v28 = vld [vmem:[#allocation2 + $0x98] sm:$0xff]  ;;  %v3526_v46 = vld [vmem:[#allocation2 + $0x90] sm:$0xff] }
 0x2f9   :  { %7847 = vmatmul.msk.bf16.gmra.mxu0 %vm1706_vm3, %v2767_v0  ;;  %7872 = vmatmul.msk.bf16.gmra.mxu1 %vm1706_vm3, %v3029_v1  ;;  %v3292_v0 = vpack.c.bf16 %v3263_v35, %v3262_v56  ;;  %v3554_v1 = vpack.c.bf16 %v3525_v41, %v3524_v58  ;;  %v2740_v35 = vld [vmem:[#allocation2 + $0x8d] sm:$0xff] }
 0x2fa   :  { %7897 = vmatmul.msk.bf16.gmra.mxu2 %vm1706_vm3, %v3291_v9  ;;  %7922 = vmatmul.msk.bf16.gmra.mxu3 %vm1706_vm3, %v3553_v11  ;;  %v3002_v41 = vld [vmem:[#allocation2 + $0x8e] sm:$0xff] }
 0x2fd   :  { %v2416_v13 = vpop.f32.mrf.mxu2  ;;  %v2678_v14 = vpop.f32.mrf.mxu3 }
 0x2fe   :  { %v2459_v15 = vadd.f32 %v2416_v13, %v2192_v62  ;;  %v2027_v17 = vpop.f32.mrf.mxu0  ;;  %v2193_v21 = vpop.f32.mrf.mxu1 }
 0x2ff   :  { %v2194_v22 = vadd.f32 %v2193_v21, %v2027_v17  ;;  %v3003_v17 = vld [vmem:[#allocation2 + $0x96] sm:$0xff] }
 0x300   :  { %v9575_v25 = vadd.f32 %v2678_v14, %v2459_v15  ;;  %v2741_v15 = vld [vmem:[#allocation2 + $0x95] sm:$0xff] }
 0x305   :  { %v2418_v39 = vpop.f32.mrf.mxu2  ;;  %v2680_v31 = vpop.f32.mrf.mxu3 }
 0x306   :  { %v2460_v32 = vadd.f32 %v2418_v39, %v2194_v22  ;;  %v2030_v43 = vpop.f32.mrf.mxu0  ;;  %v2196_v44 = vpop.f32.mrf.mxu1 }
 0x307   :  { %v2197_v48 = vadd.f32 %v2196_v44, %v2030_v43  ;;  %v2769_v43 = vpack.c.bf16 %v2741_v15, %v2740_v35  ;;  %v3031_v44 = vpack.c.bf16 %v3003_v17, %v3002_v41  ;;  %v3004_v35 = vld [vmem:[#allocation2 + $0x9e] sm:$0xff] }
 0x308   :  { %v9577_v62 = vadd.f32 %v2680_v31, %v2460_v32 }
 0x309   :  { %7848 = vmatmul.msk.bf16.gmra.mxu0 %vm1706_vm3, %v2768_v51  ;;  %7873 = vmatmul.msk.bf16.gmra.mxu1 %vm1706_vm3, %v3030_v55  ;;  %v3555_v51 = vpack.c.bf16 %v3527_v28, %v3526_v46 }
 0x30a   :  { %7898 = vmatmul.msk.bf16.gmra.mxu2 %vm1706_vm3, %v3292_v0  ;;  %7923 = vmatmul.msk.bf16.gmra.mxu3 %vm1706_vm3, %v3554_v1 }
 0x30d   :  { %v2421_v2 = vpop.f32.mrf.mxu2  ;;  %v2683_v3 = vpop.f32.mrf.mxu3 }
 0x30e   :  { %v2461_v9 = vadd.f32 %v2421_v2, %v2197_v48  ;;  %v2032_v11 = vpop.f32.mrf.mxu0  ;;  %v2198_v13 = vpop.f32.mrf.mxu1  ;;  %v3293_v48 = vpack.c.bf16 %v3265_v27, %v3264_v45 }
 0x30f   :  { %v2743_v11 = vld [vmem:[#allocation2 + $0xa5] sm:$0xff] }
 0x310   :  { %v9583_v14 = vadd.f32 %v2683_v3, %v2461_v9  ;;  %v3005_v13 = vld [vmem:[#allocation2 + $0xa6] sm:$0xff] }
 0x315   :  { %v2423_v21 = vpop.f32.mrf.mxu2  ;;  %v2685_v22 = vpop.f32.mrf.mxu3 }
 0x316   :  { %v2855_v39 = vpop.f32.mrf.mxu0  ;;  %v3117_v31 = vpop.f32.mrf.mxu1  ;;  %v3267_v21 = vld [vmem:[#allocation2 + $0xa7] sm:$0xff] }
 0x317   :  { %v2949_v32 = vadd.f32 %v2855_v39, %v9427_v54  ;;  %v3529_v22 = vld [vmem:[#allocation2 + $0xa8] sm:$0xff] }
 0x319   :  { %v3211_v55 = vadd.f32 %v3117_v31, %v2949_v32  ;;  %7849 = vmatmul.msk.bf16.gmra.mxu0 %vm1706_vm3, %v2769_v43  ;;  %7874 = vmatmul.msk.bf16.gmra.mxu1 %vm1706_vm3, %v3031_v44  ;;  %v2742_v31 = vld [vmem:[#allocation2 + $0x9d] sm:$0xff]  ;;  %v3032_v43 = vpack.c.bf16 %v3005_v13, %v3004_v35 }
 0x31a   :  { %7899 = vmatmul.msk.bf16.gmra.mxu2 %vm1706_vm3, %v3293_v48  ;;  %7924 = vmatmul.msk.bf16.gmra.mxu3 %vm1706_vm3, %v3555_v51  ;;  %v2770_v32 = vpack.c.bf16 %v2743_v11, %v2742_v31  ;;  %v3266_v44 = vld [vmem:[#allocation2 + $0x9f] sm:$0xff]  ;;  %v3007_v11 = vld [vmem:[#allocation2 + $0xb6] sm:$0xff]  ;;  %v3006_v31 = vld [vmem:[#allocation2 + $0xae] sm:$0xff] }
 0x31b   :  { %v3294_v46 = vpack.c.bf16 %v3267_v21, %v3266_v44  ;;  %v3531_v21 = vld [vmem:[#allocation2 + $0xb8] sm:$0xff] }
 0x31d   :  { %v3379_v56 = vpop.f32.mrf.mxu2  ;;  %v3641_v58 = vpop.f32.mrf.mxu3 }
 0x31e   :  { %v3473_v0 = vadd.f32 %v3379_v56, %v3211_v55  ;;  %v2857_v1 = vpop.f32.mrf.mxu0  ;;  %v3119_v54 = vpop.f32.mrf.mxu1 }
 0x31f   :  { %v2950_v2 = vadd.f32 %v2857_v1, %v9429_v7  ;;  %v3528_v7 = vld [vmem:[#allocation2 + $0xa0] sm:$0xff] }
 0x320   :  { %v9591_v3 = vadd.f32 %v3641_v58, %v3473_v0  ;;  %v3556_v48 = vpack.c.bf16 %v3529_v22, %v3528_v7 }
 0x321   :  { %v3212_v9 = vadd.f32 %v3119_v54, %v2950_v2 }
 0x325   :  { %v3381_v15 = vpop.f32.mrf.mxu2  ;;  %v3643_v17 = vpop.f32.mrf.mxu3 }
 0x326   :  { %v3474_v27 = vadd.f32 %v3381_v15, %v3212_v9  ;;  %v2860_v28 = vpop.f32.mrf.mxu0  ;;  %v3122_v39 = vpop.f32.mrf.mxu1  ;;  %v2745_v9 = vld [vmem:[#allocation2 + $0xb5] sm:$0xff] }
 0x327   :  { %v2951_v41 = vadd.f32 %v2860_v28, %v9435_v16 }
 0x328   :  { %v9594_v45 = vadd.f32 %v3643_v17, %v3474_v27  ;;  %v3269_v17 = vld [vmem:[#allocation2 + $0xb7] sm:$0xff] }
 0x329   :  { %v3213_v51 = vadd.f32 %v3122_v39, %v2951_v41  ;;  %7850 = vmatmul.msk.bf16.gmra.mxu0 %vm1706_vm3, %v2770_v32  ;;  %7875 = vmatmul.msk.bf16.gmra.mxu1 %vm1706_vm3, %v3032_v43  ;;  %v2744_v39 = vld [vmem:[#allocation2 + $0xad] sm:$0xff]  ;;  %v3033_v32 = vpack.c.bf16 %v3007_v11, %v3006_v31 }
 0x32a   :  { %7900 = vmatmul.msk.bf16.gmra.mxu2 %vm1706_vm3, %v3294_v46  ;;  %7925 = vmatmul.msk.bf16.gmra.mxu3 %vm1706_vm3, %v3556_v48  ;;  %v2771_v41 = vpack.c.bf16 %v2745_v9, %v2744_v39  ;;  %v3268_v43 = vld [vmem:[#allocation2 + $0xaf] sm:$0xff]  ;;  %v3009_v9 = vld [vmem:[#allocation2 + $0xc6] sm:$0xff]  ;;  %v3008_v39 = vld [vmem:[#allocation2 + $0xbe] sm:$0xff] }
 0x32b   :  { %v3295_v7 = vpack.c.bf16 %v3269_v17, %v3268_v43  ;;  %v3533_v17 = vld [vmem:[#allocation2 + $0xc8] sm:$0xff] }
 0x32d   :  { %v3384_v55 = vpop.f32.mrf.mxu2  ;;  %v3646_v56 = vpop.f32.mrf.mxu3 }
 0x32e   :  { %v3475_v16 = vadd.f32 %v3384_v55, %v3213_v51  ;;  %v2862_v58 = vpop.f32.mrf.mxu0  ;;  %v3124_v0 = vpop.f32.mrf.mxu1 }
 0x32f   :  { %v2952_v1 = vadd.f32 %v2862_v58, %v9437_v33  ;;  %v3530_v33 = vld [vmem:[#allocation2 + $0xb0] sm:$0xff] }
 0x330   :  { %v9601_v54 = vadd.f32 %v3646_v56, %v3475_v16  ;;  %v3557_v46 = vpack.c.bf16 %v3531_v21, %v3530_v33 }
 0x331   :  { %v3214_v2 = vadd.f32 %v3124_v0, %v2952_v1 }
 0x335   :  { %v3386_v13 = vpop.f32.mrf.mxu2  ;;  %v3648_v15 = vpop.f32.mrf.mxu3 }
 0x336   :  { %v3476_v22 = vadd.f32 %v3386_v13, %v3214_v2  ;;  %v2865_v27 = vpop.f32.mrf.mxu0  ;;  %v3127_v28 = vpop.f32.mrf.mxu1  ;;  %v2747_v2 = vld [vmem:[#allocation2 + $0xc5] sm:$0xff] }
 0x337   :  { %v2953_v35 = vadd.f32 %v2865_v27, %v9443_v42 }
 0x338   :  { %v9604_v44 = vadd.f32 %v3648_v15, %v3476_v22  ;;  %v3271_v15 = vld [vmem:[#allocation2 + $0xc7] sm:$0xff] }
 0x339   :  { %v3215_v48 = vadd.f32 %v3127_v28, %v2953_v35  ;;  %7851 = vmatmul.msk.bf16.gmra.mxu0 %vm1706_vm3, %v2771_v41  ;;  %7876 = vmatmul.msk.bf16.gmra.mxu1 %vm1706_vm3, %v3033_v32  ;;  %v2746_v28 = vld [vmem:[#allocation2 + $0xbd] sm:$0xff]  ;;  %v3034_v41 = vpack.c.bf16 %v3009_v9, %v3008_v39 }
 0x33a   :  { %7901 = vmatmul.msk.bf16.gmra.mxu2 %vm1706_vm3, %v3295_v7  ;;  %7926 = vmatmul.msk.bf16.gmra.mxu3 %vm1706_vm3, %v3557_v46  ;;  %v2772_v35 = vpack.c.bf16 %v2747_v2, %v2746_v28  ;;  %v3270_v32 = vld [vmem:[#allocation2 + $0xbf] sm:$0xff]  ;;  %v3011_v2 = vld [vmem:[#allocation2 + $0xd6] sm:$0xff]  ;;  %v3010_v28 = vld [vmem:[#allocation2 + $0xce] sm:$0xff] }
 0x33b   :  { %v3296_v33 = vpack.c.bf16 %v3271_v15, %v3270_v32  ;;  %v3535_v15 = vld [vmem:[#allocation2 + $0xd8] sm:$0xff] }
 0x33d   :  { %v3389_v51 = vpop.f32.mrf.mxu2  ;;  %v3651_v55 = vpop.f32.mrf.mxu3 }
 0x33e   :  { %v3477_v42 = vadd.f32 %v3389_v51, %v3215_v48  ;;  %v2867_v56 = vpop.f32.mrf.mxu0  ;;  %v3129_v16 = vpop.f32.mrf.mxu1 }
 0x33f   :  { %v2954_v58 = vadd.f32 %v2867_v56, %v9445_v60  ;;  %v3532_v60 = vld [vmem:[#allocation2 + $0xc0] sm:$0xff] }
 0x340   :  { %v9611_v0 = vadd.f32 %v3651_v55, %v3477_v42  ;;  %v3558_v7 = vpack.c.bf16 %v3533_v17, %v3532_v60 }
 0x341   :  { %v3216_v1 = vadd.f32 %v3129_v16, %v2954_v58 }
 0x345   :  { %v3391_v11 = vpop.f32.mrf.mxu2  ;;  %v3653_v13 = vpop.f32.mrf.mxu3 }
 0x346   :  { %v3478_v21 = vadd.f32 %v3391_v11, %v3216_v1  ;;  %v2870_v22 = vpop.f32.mrf.mxu0  ;;  %v3132_v27 = vpop.f32.mrf.mxu1  ;;  %v2749_v1 = vld [vmem:[#allocation2 + $0xd5] sm:$0xff] }
 0x347   :  { %v2955_v31 = vadd.f32 %v2870_v22, %v9451_v5 }
 0x348   :  { %v9614_v43 = vadd.f32 %v3653_v13, %v3478_v21  ;;  %v3273_v13 = vld [vmem:[#allocation2 + $0xd7] sm:$0xff] }
 0x349   :  { %v3217_v46 = vadd.f32 %v3132_v27, %v2955_v31  ;;  %7852 = vmatmul.msk.bf16.gmra.mxu0 %vm1706_vm3, %v2772_v35  ;;  %7877 = vmatmul.msk.bf16.gmra.mxu1 %vm1706_vm3, %v3034_v41  ;;  %v2748_v27 = vld [vmem:[#allocation2 + $0xcd] sm:$0xff]  ;;  %v3035_v35 = vpack.c.bf16 %v3011_v2, %v3010_v28 }
 0x34a   :  { %7902 = vmatmul.msk.bf16.gmra.mxu2 %vm1706_vm3, %v3296_v33  ;;  %7927 = vmatmul.msk.bf16.gmra.mxu3 %vm1706_vm3, %v3558_v7  ;;  %v2773_v31 = vpack.c.bf16 %v2749_v1, %v2748_v27  ;;  %v3272_v41 = vld [vmem:[#allocation2 + $0xcf] sm:$0xff]  ;;  %v3013_v1 = vld [vmem:[#allocation2 + $0xe6] sm:$0xff]  ;;  %v3012_v27 = vld [vmem:[#allocation2 + $0xde] sm:$0xff] }
 0x34b   :  { %v3297_v60 = vpack.c.bf16 %v3273_v13, %v3272_v41  ;;  %v3537_v13 = vld [vmem:[#allocation2 + $0xe8] sm:$0xff] }
 0x34d   :  { %v3394_v48 = vpop.f32.mrf.mxu2  ;;  %v3656_v51 = vpop.f32.mrf.mxu3 }
 0x34e   :  { %v3479_v5 = vadd.f32 %v3394_v48, %v3217_v46  ;;  %v2872_v55 = vpop.f32.mrf.mxu0  ;;  %v3134_v42 = vpop.f32.mrf.mxu1 }
 0x34f   :  { %v2956_v56 = vadd.f32 %v2872_v55, %v9453_v24  ;;  %v3534_v24 = vld [vmem:[#allocation2 + $0xd0] sm:$0xff] }
 0x350   :  { %v9621_v16 = vadd.f32 %v3656_v51, %v3479_v5  ;;  %v3559_v33 = vpack.c.bf16 %v3535_v15, %v3534_v24 }
 0x351   :  { %v3218_v58 = vadd.f32 %v3134_v42, %v2956_v56 }
 0x355   :  { %v3396_v9 = vpop.f32.mrf.mxu2  ;;  %v3658_v11 = vpop.f32.mrf.mxu3 }
 0x356   :  { %v3480_v17 = vadd.f32 %v3396_v9, %v3218_v58  ;;  %v2875_v21 = vpop.f32.mrf.mxu0  ;;  %v3137_v22 = vpop.f32.mrf.mxu1  ;;  %v2751_v58 = vld [vmem:[#allocation2 + $0xe5] sm:$0xff] }
 0x357   :  { %v2957_v39 = vadd.f32 %v2875_v21, %v9459_v34 }
 0x358   :  { %v9624_v32 = vadd.f32 %v3658_v11, %v3480_v17  ;;  %v3275_v11 = vld [vmem:[#allocation2 + $0xe7] sm:$0xff] }
 0x359   :  { %v3219_v7 = vadd.f32 %v3137_v22, %v2957_v39  ;;  %7853 = vmatmul.msk.bf16.gmra.mxu0 %vm1706_vm3, %v2773_v31  ;;  %7878 = vmatmul.msk.bf16.gmra.mxu1 %vm1706_vm3, %v3035_v35  ;;  %v2750_v22 = vld [vmem:[#allocation2 + $0xdd] sm:$0xff]  ;;  %v3036_v31 = vpack.c.bf16 %v3013_v1, %v3012_v27 }
 0x35a   :  { %7903 = vmatmul.msk.bf16.gmra.mxu2 %vm1706_vm3, %v3297_v60  ;;  %7928 = vmatmul.msk.bf16.gmra.mxu3 %vm1706_vm3, %v3559_v33  ;;  %v2774_v39 = vpack.c.bf16 %v2751_v58, %v2750_v22  ;;  %v3274_v35 = vld [vmem:[#allocation2 + $0xdf] sm:$0xff]  ;;  %v3015_v58 = vld [vmem:[#allocation2 + $0xf6] sm:$0xff]  ;;  %v3014_v22 = vld [vmem:[#allocation2 + $0xee] sm:$0xff] }
 0x35b   :  { %v3298_v24 = vpack.c.bf16 %v3275_v11, %v3274_v35  ;;  %v3539_v11 = vld [vmem:[#allocation2 + $0xf8] sm:$0xff] }
 0x35d   :  { %v3399_v46 = vpop.f32.mrf.mxu2  ;;  %v3661_v48 = vpop.f32.mrf.mxu3 }
 0x35e   :  { %v3481_v34 = vadd.f32 %v3399_v46, %v3219_v7  ;;  %v2877_v51 = vpop.f32.mrf.mxu0  ;;  %v3139_v5 = vpop.f32.mrf.mxu1 }
 0x35f   :  { %v2958_v55 = vadd.f32 %v2877_v51, %v9461_v52  ;;  %v3536_v52 = vld [vmem:[#allocation2 + $0xe0] sm:$0xff] }
 0x360   :  { %v9631_v42 = vadd.f32 %v3661_v48, %v3481_v34  ;;  %v3560_v60 = vpack.c.bf16 %v3537_v13, %v3536_v52 }
 0x361   :  { %v3220_v56 = vadd.f32 %v3139_v5, %v2958_v55 }
 0x365   :  { %v3401_v2 = vpop.f32.mrf.mxu2  ;;  %v3663_v9 = vpop.f32.mrf.mxu3 }
 0x366   :  { %v3482_v15 = vadd.f32 %v3401_v2, %v3220_v56  ;;  %v2880_v17 = vpop.f32.mrf.mxu0  ;;  %v3142_v21 = vpop.f32.mrf.mxu1  ;;  %v2753_v56 = vld [vmem:[#allocation2 + $0xf5] sm:$0xff] }
 0x367   :  { %v2959_v28 = vadd.f32 %v2880_v17, %v9467_v63 }
 0x368   :  { %v9634_v41 = vadd.f32 %v3663_v9, %v3482_v15  ;;  %v3277_v9 = vld [vmem:[#allocation2 + $0xf7] sm:$0xff] }
 0x369   :  { %v3221_v33 = vadd.f32 %v3142_v21, %v2959_v28  ;;  %7854 = vmatmul.msk.bf16.gmra.mxu0 %vm1706_vm3, %v2774_v39  ;;  %7879 = vmatmul.msk.bf16.gmra.mxu1 %vm1706_vm3, %v3036_v31  ;;  %v2752_v21 = vld [vmem:[#allocation2 + $0xed] sm:$0xff]  ;;  %v3037_v39 = vpack.c.bf16 %v3015_v58, %v3014_v22 }
 0x36a   :  { %7904 = vmatmul.msk.bf16.gmra.mxu2 %vm1706_vm3, %v3298_v24  ;;  %7929 = vmatmul.msk.bf16.gmra.mxu3 %vm1706_vm3, %v3560_v60  ;;  %v2775_v28 = vpack.c.bf16 %v2753_v56, %v2752_v21  ;;  %v3276_v31 = vld [vmem:[#allocation2 + $0xef] sm:$0xff]  ;;  %v3017_v56 = vld [vmem:[#allocation2 + $0x106] sm:$0xff]  ;;  %v3016_v21 = vld [vmem:[#allocation2 + $0xfe] sm:$0xff] }
 0x36b   :  { %v3299_v52 = vpack.c.bf16 %v3277_v9, %v3276_v31  ;;  %v3541_v9 = vld [vmem:[#allocation2 + $0x108] sm:$0xff] }
 0x36d   :  { %v3404_v7 = vpop.f32.mrf.mxu2  ;;  %v3666_v46 = vpop.f32.mrf.mxu3 }
 0x36e   :  { %v3483_v63 = vadd.f32 %v3404_v7, %v3221_v33  ;;  %v2882_v48 = vpop.f32.mrf.mxu0  ;;  %v3144_v34 = vpop.f32.mrf.mxu1 }
 0x36f   :  { %v2960_v51 = vadd.f32 %v2882_v48, %v9469_v19  ;;  %v3538_v19 = vld [vmem:[#allocation2 + $0xf0] sm:$0xff] }
 0x370   :  { %v9641_v5 = vadd.f32 %v3666_v46, %v3483_v63  ;;  %v3561_v24 = vpack.c.bf16 %v3539_v11, %v3538_v19 }
 0x371   :  { %v3222_v55 = vadd.f32 %v3144_v34, %v2960_v51 }
 0x375   :  { %v3406_v1 = vpop.f32.mrf.mxu2  ;;  %v3668_v2 = vpop.f32.mrf.mxu3 }
 0x376   :  { %v3484_v13 = vadd.f32 %v3406_v1, %v3222_v55  ;;  %v2885_v15 = vpop.f32.mrf.mxu0  ;;  %v3147_v17 = vpop.f32.mrf.mxu1  ;;  %v2755_v55 = vld [vmem:[#allocation2 + $0x105] sm:$0xff] }
 0x377   :  { %v2961_v27 = vadd.f32 %v2885_v15, %v9475_v29 }
 0x378   :  { %v9644_v35 = vadd.f32 %v3668_v2, %v3484_v13  ;;  %v3279_v2 = vld [vmem:[#allocation2 + $0x107] sm:$0xff] }
 0x379   :  { %v3223_v60 = vadd.f32 %v3147_v17, %v2961_v27  ;;  %7855 = vmatmul.msk.bf16.gmra.mxu0 %vm1706_vm3, %v2775_v28  ;;  %7880 = vmatmul.msk.bf16.gmra.mxu1 %vm1706_vm3, %v3037_v39  ;;  %v2754_v17 = vld [vmem:[#allocation2 + $0xfd] sm:$0xff]  ;;  %v3038_v28 = vpack.c.bf16 %v3017_v56, %v3016_v21 }
 0x37a   :  { %7905 = vmatmul.msk.bf16.gmra.mxu2 %vm1706_vm3, %v3299_v52  ;;  %7930 = vmatmul.msk.bf16.gmra.mxu3 %vm1706_vm3, %v3561_v24  ;;  %v2776_v27 = vpack.c.bf16 %v2755_v55, %v2754_v17  ;;  %v3278_v39 = vld [vmem:[#allocation2 + $0xff] sm:$0xff]  ;;  %v3019_v55 = vld [vmem:[#allocation2 + $0x116] sm:$0xff]  ;;  %v3018_v17 = vld [vmem:[#allocation2 + $0x10e] sm:$0xff] }
 0x37b   :  { %v3300_v19 = vpack.c.bf16 %v3279_v2, %v3278_v39  ;;  %v3543_v2 = vld [vmem:[#allocation2 + $0x118] sm:$0xff] }
 0x37d   :  { %v3409_v33 = vpop.f32.mrf.mxu2  ;;  %v3671_v7 = vpop.f32.mrf.mxu3 }
 0x37e   :  { %v3485_v29 = vadd.f32 %v3409_v33, %v3223_v60  ;;  %v2887_v46 = vpop.f32.mrf.mxu0  ;;  %v3149_v63 = vpop.f32.mrf.mxu1 }
 0x37f   :  { %v2962_v48 = vadd.f32 %v2887_v46, %v9477_v49  ;;  %v3540_v49 = vld [vmem:[#allocation2 + $0x100] sm:$0xff] }
 0x380   :  { %v9651_v34 = vadd.f32 %v3671_v7, %v3485_v29  ;;  %v3562_v52 = vpack.c.bf16 %v3541_v9, %v3540_v49 }
 0x381   :  { %v3224_v51 = vadd.f32 %v3149_v63, %v2962_v48 }
 0x385   :  { %v3411_v58 = vpop.f32.mrf.mxu2  ;;  %v3673_v1 = vpop.f32.mrf.mxu3 }
 0x386   :  { %v3486_v11 = vadd.f32 %v3411_v58, %v3224_v51  ;;  %v2890_v13 = vpop.f32.mrf.mxu0  ;;  %v3152_v15 = vpop.f32.mrf.mxu1  ;;  %v2757_v51 = vld [vmem:[#allocation2 + $0x115] sm:$0xff] }
 0x387   :  { %v2963_v22 = vadd.f32 %v2890_v13, %v9483_v61 }
 0x388   :  { %v9654_v31 = vadd.f32 %v3673_v1, %v3486_v11  ;;  %v3281_v1 = vld [vmem:[#allocation2 + $0x117] sm:$0xff] }
 0x389   :  { %v3225_v24 = vadd.f32 %v3152_v15, %v2963_v22  ;;  %7856 = vmatmul.msk.bf16.gmra.mxu0 %vm1706_vm3, %v2776_v27  ;;  %7881 = vmatmul.msk.bf16.gmra.mxu1 %vm1706_vm3, %v3038_v28  ;;  %v2756_v15 = vld [vmem:[#allocation2 + $0x10d] sm:$0xff]  ;;  %v3039_v27 = vpack.c.bf16 %v3019_v55, %v3018_v17  ;;  %v8618_v55 = vld [vmem:[%s10422_s3 + $0x58] sm:$0xff] }
 0x38a   :  { %7906 = vmatmul.msk.bf16.gmra.mxu2 %vm1706_vm3, %v3300_v19  ;;  %7931 = vmatmul.msk.bf16.gmra.mxu3 %vm1706_vm3, %v3562_v52  ;;  %v2777_v22 = vpack.c.bf16 %v2757_v51, %v2756_v15  ;;  %v3280_v28 = vld [vmem:[#allocation2 + $0x10f] sm:$0xff]  ;;  %v8615_v51 = vld [vmem:[%s10422_s3 + $0x40] sm:$0xff] }
 0x38b   :  { %v3301_v49 = vpack.c.bf16 %v3281_v1, %v3280_v28  ;;  %3901 = vmatpush.bf16.msrb.mxu0 %v8615_v51  ;;  %4687 = vmatpush.bf16.msrb.mxu3 %v8618_v55 }
 0x38d   :  { %v3414_v60 = vpop.f32.mrf.mxu2  ;;  %v3676_v33 = vpop.f32.mrf.mxu3 }
 0x38e   :  { %v3487_v61 = vadd.f32 %v3414_v60, %v3225_v24  ;;  %v2892_v7 = vpop.f32.mrf.mxu0  ;;  %v3154_v29 = vpop.f32.mrf.mxu1 }
 0x38f   :  { %v2964_v46 = vadd.f32 %v2892_v7, %v9485_v18  ;;  %v3542_v18 = vld [vmem:[#allocation2 + $0x110] sm:$0xff] }
 0x390   :  { %v9661_v63 = vadd.f32 %v3676_v33, %v3487_v61  ;;  %v3563_v19 = vpack.c.bf16 %v3543_v2, %v3542_v18 }
 0x391   :  { %v3226_v48 = vadd.f32 %v3154_v29, %v2964_v46 }
 0x395   :  { %v3416_v56 = vpop.f32.mrf.mxu2  ;;  %v3678_v58 = vpop.f32.mrf.mxu3 }
 0x396   :  { %v3488_v9 = vadd.f32 %v3416_v56, %v3226_v48  ;;  %v2895_v11 = vpop.f32.mrf.mxu0  ;;  %v3157_v13 = vpop.f32.mrf.mxu1  ;;  %v8617_v48 = vld [vmem:[%s10422_s3 + $0x50] sm:$0xff]  ;;  %v8616_v56 = vld [vmem:[%s10422_s3 + $0x48] sm:$0xff] }
 0x397   :  { %v2965_v21 = vadd.f32 %v2895_v11, %v9491_v30  ;;  %4425 = vmatpush.bf16.msrb.mxu2 %v8617_v48  ;;  %4163 = vmatpush.bf16.msrb.mxu1 %v8616_v56  ;;  %v3545_v11 = vld [vmem:[#allocation2 + $0x128] sm:$0xff] }
 0x398   :  { %v9664_v39 = vadd.f32 %v3678_v58, %v3488_v9  ;;  %v3021_v58 = vld [vmem:[#allocation2 + $0x126] sm:$0xff] }
 0x399   :  { %v3227_v52 = vadd.f32 %v3157_v13, %v2965_v21  ;;  %7857 = vmatmul.msk.bf16.gmra.mxu0 %vm1706_vm3, %v2777_v22  ;;  %7882 = vmatmul.msk.bf16.gmra.mxu1 %vm1706_vm3, %v3039_v27  ;;  %v3283_v9 = vld [vmem:[#allocation2 + $0x127] sm:$0xff]  ;;  %v2758_v21 = vld [vmem:[#allocation2 + $0x11d] sm:$0xff] }
 0x39a   :  { %7907 = vmatmul.msk.bf16.gmra.mxu2 %vm1706_vm3, %v3301_v49  ;;  %7932 = vmatmul.msk.bf16.gmra.mxu3 %vm1706_vm3, %v3563_v19  ;;  %v3020_v22 = vld [vmem:[#allocation2 + $0x11e] sm:$0xff]  ;;  %v2760_v56 = vld [vmem:[#allocation2 + $0x12d] sm:$0xff] }
 0x39b   :  { %v3040_v18 = vpack.c.bf16 %v3021_v58, %v3020_v22  ;;  %v3282_v49 = vld [vmem:[#allocation2 + $0x11f] sm:$0xff] }
 0x39c   :  { %v3544_v19 = vld [vmem:[#allocation2 + $0x120] sm:$0xff] }
 0x39d   :  { %v3419_v24 = vpop.f32.mrf.mxu2  ;;  %v3681_v60 = vpop.f32.mrf.mxu3 }
 0x39e   :  { %v3489_v30 = vadd.f32 %v3419_v24, %v3227_v52  ;;  %v2897_v33 = vpop.f32.mrf.mxu0  ;;  %v3159_v61 = vpop.f32.mrf.mxu1  ;;  %v3302_v24 = vpack.c.bf16 %v3283_v9, %v3282_v49  ;;  %v3546_v9 = vld [vmem:[#allocation2 + $0x130] sm:$0xff] }
 0x39f   :  { %v2966_v7 = vadd.f32 %v2897_v33, %v9505_v57  ;;  %v2759_v57 = vld [vmem:[#allocation2 + $0x125] sm:$0xff] }
 0x3a0   :  { %v9671_v29 = vadd.f32 %v3681_v60, %v3489_v30  ;;  %v2778_v28 = vpack.c.bf16 %v2759_v57, %v2758_v21  ;;  %v3564_v60 = vpack.c.bf16 %v3545_v11, %v3544_v19  ;;  %v3022_v57 = vld [vmem:[#allocation2 + $0x12e] sm:$0xff]  ;;  %v2779_v21 = vpack.c.bf16 %v2760_v56, %v2760_v56  ;;  %v4559_v56 = vld [vmem:[#allocation2 + $0x25] sm:$0xff] }
 0x3a1   :  { %v3228_v46 = vadd.f32 %v3159_v61, %v2966_v7  ;;  %v3041_v22 = vpack.c.bf16 %v3022_v57, %v3022_v57 }
 0x3a5   :  { %v3421_v1 = vpop.f32.mrf.mxu2  ;;  %v3683_v2 = vpop.f32.mrf.mxu3 }
 0x3a6   :  { %v3490_v13 = vadd.f32 %v3421_v1, %v3228_v46  ;;  %v2900_v15 = vpop.f32.mrf.mxu0  ;;  %v3162_v17 = vpop.f32.mrf.mxu1 }
 0x3a7   :  { %v2967_v27 = vadd.f32 %v2900_v15, %v9511_v6 }
 0x3a8   :  { %v9686_v52 = vadd.f32 %v3683_v2, %v3490_v13  ;;  %v3284_v2 = vld [vmem:[#allocation2 + $0x12f] sm:$0xff] }
 0x3a9   :  { %v3229_v30 = vadd.f32 %v3162_v17, %v2967_v27  ;;  %7858 = vmatmul.msk.bf16.gmra.mxu0 %vm1706_vm3, %v2778_v28  ;;  %7883 = vmatmul.msk.bf16.gmra.mxu1 %vm1706_vm3, %v3040_v18  ;;  %v3303_v28 = vpack.c.bf16 %v3284_v2, %v3284_v2  ;;  %v3772_v2 = vld [vmem:[#allocation2 + $0x1a] sm:$0xff] }
 0x3aa   :  { %7908 = vmatmul.msk.bf16.gmra.mxu2 %vm1706_vm3, %v3302_v24  ;;  %7933 = vmatmul.msk.bf16.gmra.mxu3 %vm1706_vm3, %v3564_v60 }
 0x3ad   :  { %v3424_v33 = vpop.f32.mrf.mxu2  ;;  %v3686_v61 = vpop.f32.mrf.mxu3 }
 0x3ae   :  { %v3491_v6 = vadd.f32 %v3424_v33, %v3229_v30  ;;  %v2902_v7 = vpop.f32.mrf.mxu0  ;;  %v3164_v46 = vpop.f32.mrf.mxu1 }
 0x3af   :  { %v2968_v48 = vadd.f32 %v2902_v7, %v9513_v23  ;;  %v3565_v23 = vpack.c.bf16 %v3546_v9, %v3546_v9  ;;  %v4035_v7 = vld [vmem:[#allocation2 + $0x23] sm:$0xff]  ;;  %v4034_v9 = vld [vmem:[#allocation2 + $0x1b] sm:$0xff] }
 0x3b0   :  { %v9693_v51 = vadd.f32 %v3686_v61, %v3491_v6  ;;  %v3773_v6 = vld [vmem:[#allocation2 + $0x22] sm:$0xff] }
 0x3b1   :  { %v3230_v55 = vadd.f32 %v3164_v46, %v2968_v48 }
 0x3b5   :  { %v3426_v58 = vpop.f32.mrf.mxu2  ;;  %v3688_v1 = vpop.f32.mrf.mxu3 }
 0x3b6   :  { %v3492_v11 = vadd.f32 %v3426_v58, %v3230_v55  ;;  %v2905_v13 = vpop.f32.mrf.mxu0  ;;  %v3167_v15 = vpop.f32.mrf.mxu1  ;;  %v4297_v55 = vld [vmem:[#allocation2 + $0x24] sm:$0xff] }
 0x3b7   :  { %v2969_v17 = vadd.f32 %v2905_v13, %v9519_v37  ;;  %v3809_v13 = vpack.c.bf16 %v3773_v6, %v3772_v2  ;;  %v4037_v6 = vld [vmem:[#allocation2 + $0x33] sm:$0xff]  ;;  %v4036_v2 = vld [vmem:[#allocation2 + $0x2b] sm:$0xff] }
 0x3b8   :  { %v9696_v27 = vadd.f32 %v3688_v1, %v3492_v11 }
 0x3b9   :  { %v3231_v18 = vadd.f32 %v3167_v15, %v2969_v17  ;;  %7859 = vmatmul.msk.bf16.gmra.mxu0 %vm1706_vm3, %v2779_v21  ;;  %7884 = vmatmul.msk.bf16.gmra.mxu1 %vm1706_vm3, %v3041_v22  ;;  %v4071_v15 = vpack.c.bf16 %v4035_v7, %v4034_v9  ;;  %v4296_v17 = vld [vmem:[#allocation2 + $0x1c] sm:$0xff] }
 0x3ba   :  { %7909 = vmatmul.msk.bf16.gmra.mxu2 %vm1706_vm3, %v3303_v28  ;;  %7934 = vmatmul.msk.bf16.gmra.mxu3 %vm1706_vm3, %v3565_v23  ;;  %v4333_v22 = vpack.c.bf16 %v4297_v55, %v4296_v17  ;;  %v4561_v55 = vld [vmem:[#allocation2 + $0x35] sm:$0xff] }
 0x3bd   :  { %v3429_v49 = vpop.f32.mrf.mxu2  ;;  %v3691_v19 = vpop.f32.mrf.mxu3 }
 0x3be   :  { %v3493_v24 = vadd.f32 %v3429_v49, %v3231_v18  ;;  %v2907_v60 = vpop.f32.mrf.mxu0  ;;  %v3169_v37 = vpop.f32.mrf.mxu1 }
 0x3bf   :  { %v2970_v30 = vadd.f32 %v2907_v60, %v9521_v59  ;;  %v4558_v59 = vld [vmem:[#allocation2 + $0x1d] sm:$0xff] }
 0x3c0   :  { %v9703_v33 = vadd.f32 %v3691_v19, %v3493_v24  ;;  %v4595_v28 = vpack.c.bf16 %v4559_v56, %v4558_v59 }
 0x3c1   :  { %v3232_v61 = vadd.f32 %v3169_v37, %v2970_v30 }
 0x3c5   :  { %v3431_v46 = vpop.f32.mrf.mxu2  ;;  %v3693_v48 = vpop.f32.mrf.mxu3 }
 0x3c6   :  { %v3494_v57 = vadd.f32 %v3431_v46, %v3232_v61  ;;  %v2910_v58 = vpop.f32.mrf.mxu0  ;;  %v3172_v1 = vpop.f32.mrf.mxu1  ;;  %v3775_v61 = vld [vmem:[#allocation2 + $0x32] sm:$0xff] }
 0x3c7   :  { %v2971_v11 = vadd.f32 %v2910_v58, %v9527_v10 }
 0x3c8   :  { %v9706_v21 = vadd.f32 %v3693_v48, %v3494_v57  ;;  %v4299_v48 = vld [vmem:[#allocation2 + $0x34] sm:$0xff] }
 0x3c9   :  { %v3233_v23 = vadd.f32 %v3172_v1, %v2971_v11  ;;  %7941 = vmatmul.msk.bf16.vlgmr.msrb.gmra.mxu0 %vm1706_vm3, %v3809_v13  ;;  %7966 = vmatmul.msk.bf16.vlgmr.msrb.gmra.mxu1 %vm1706_vm3, %v4071_v15  ;;  %v3774_v1 = vld [vmem:[#allocation2 + $0x2a] sm:$0xff]  ;;  %v4072_v13 = vpack.c.bf16 %v4037_v6, %v4036_v2 }
 0x3ca   :  { %7991 = vmatmul.msk.bf16.vlgmr.msrb.gmra.mxu2 %vm1706_vm3, %v4333_v22  ;;  %8016 = vmatmul.msk.bf16.vlgmr.msrb.gmra.mxu3 %vm1706_vm3, %v4595_v28  ;;  %v3810_v11 = vpack.c.bf16 %v3775_v61, %v3774_v1  ;;  %v4298_v15 = vld [vmem:[#allocation2 + $0x2c] sm:$0xff]  ;;  %v4039_v61 = vld [vmem:[#allocation2 + $0x43] sm:$0xff]  ;;  %v4038_v1 = vld [vmem:[#allocation2 + $0x3b] sm:$0xff] }
 0x3cb   :  { %v4334_v59 = vpack.c.bf16 %v4299_v48, %v4298_v15  ;;  %v4563_v48 = vld [vmem:[#allocation2 + $0x45] sm:$0xff] }
 0x3cd   :  { %v3434_v18 = vpop.f32.mrf.mxu2  ;;  %v3696_v49 = vpop.f32.mrf.mxu3 }
 0x3ce   :  { %v3495_v10 = vadd.f32 %v3434_v18, %v3233_v23  ;;  %v2912_v19 = vpop.f32.mrf.mxu0  ;;  %v3174_v24 = vpop.f32.mrf.mxu1 }
 0x3cf   :  { %v2972_v60 = vadd.f32 %v2912_v19, %v9529_v36  ;;  %v4560_v36 = vld [vmem:[#allocation2 + $0x2d] sm:$0xff] }
 0x3d0   :  { %v9713_v37 = vadd.f32 %v3696_v49, %v3495_v10  ;;  %v4596_v22 = vpack.c.bf16 %v4561_v55, %v4560_v36 }
 0x3d1   :  { %v3234_v30 = vadd.f32 %v3174_v24, %v2972_v60 }
 0x3d5   :  { %v3436_v7 = vpop.f32.mrf.mxu2  ;;  %v3698_v46 = vpop.f32.mrf.mxu3 }
 0x3d6   :  { %v3496_v56 = vadd.f32 %v3436_v7, %v3234_v30  ;;  %v2915_v57 = vpop.f32.mrf.mxu0  ;;  %v3177_v58 = vpop.f32.mrf.mxu1  ;;  %v3777_v30 = vld [vmem:[#allocation2 + $0x42] sm:$0xff] }
 0x3d7   :  { %v2973_v9 = vadd.f32 %v2915_v57, %v9535_v47 }
 0x3d8   :  { %v9716_v17 = vadd.f32 %v3698_v46, %v3496_v56  ;;  %v4301_v46 = vld [vmem:[#allocation2 + $0x44] sm:$0xff] }
 0x3d9   :  { %v3235_v28 = vadd.f32 %v3177_v58, %v2973_v9  ;;  %7942 = vmatmul.msk.bf16.gmra.mxu0 %vm1706_vm3, %v3810_v11  ;;  %7967 = vmatmul.msk.bf16.gmra.mxu1 %vm1706_vm3, %v4072_v13  ;;  %v3776_v58 = vld [vmem:[#allocation2 + $0x3a] sm:$0xff]  ;;  %v4073_v11 = vpack.c.bf16 %v4039_v61, %v4038_v1 }
 0x3da   :  { %7992 = vmatmul.msk.bf16.gmra.mxu2 %vm1706_vm3, %v4334_v59  ;;  %8017 = vmatmul.msk.bf16.gmra.mxu3 %vm1706_vm3, %v4596_v22  ;;  %v3811_v9 = vpack.c.bf16 %v3777_v30, %v3776_v58  ;;  %v4300_v13 = vld [vmem:[#allocation2 + $0x3c] sm:$0xff]  ;;  %v4041_v30 = vld [vmem:[#allocation2 + $0x53] sm:$0xff]  ;;  %v4040_v58 = vld [vmem:[#allocation2 + $0x4b] sm:$0xff] }
 0x3db   :  { %v4335_v36 = vpack.c.bf16 %v4301_v46, %v4300_v13  ;;  %v4565_v46 = vld [vmem:[#allocation2 + $0x55] sm:$0xff] }
 0x3dd   :  { %v3439_v23 = vpop.f32.mrf.mxu2  ;;  %v3701_v18 = vpop.f32.mrf.mxu3 }
 0x3de   :  { %v3497_v47 = vadd.f32 %v3439_v23, %v3235_v28  ;;  %v2917_v49 = vpop.f32.mrf.mxu0  ;;  %v3179_v10 = vpop.f32.mrf.mxu1 }
 0x3df   :  { %v2974_v19 = vadd.f32 %v2917_v49, %v9537_v12  ;;  %v4562_v12 = vld [vmem:[#allocation2 + $0x3d] sm:$0xff] }
 0x3e0   :  { %v9723_v24 = vadd.f32 %v3701_v18, %v3497_v47  ;;  %v4597_v59 = vpack.c.bf16 %v4563_v48, %v4562_v12 }
 0x3e1   :  { %v3236_v60 = vadd.f32 %v3179_v10, %v2974_v19 }
 0x3e5   :  { %v3441_v6 = vpop.f32.mrf.mxu2  ;;  %v3703_v7 = vpop.f32.mrf.mxu3 }
 0x3e6   :  { %v3498_v55 = vadd.f32 %v3441_v6, %v3236_v60  ;;  %v2920_v56 = vpop.f32.mrf.mxu0  ;;  %v3182_v57 = vpop.f32.mrf.mxu1  ;;  %v3779_v60 = vld [vmem:[#allocation2 + $0x52] sm:$0xff] }
 0x3e7   :  { %v2975_v2 = vadd.f32 %v2920_v56, %v9543_v26 }
 0x3e8   :  { %v9726_v15 = vadd.f32 %v3703_v7, %v3498_v55  ;;  %v4303_v7 = vld [vmem:[#allocation2 + $0x54] sm:$0xff] }
 0x3e9   :  { %v3237_v22 = vadd.f32 %v3182_v57, %v2975_v2  ;;  %7943 = vmatmul.msk.bf16.gmra.mxu0 %vm1706_vm3, %v3811_v9  ;;  %7968 = vmatmul.msk.bf16.gmra.mxu1 %vm1706_vm3, %v4073_v11  ;;  %v3778_v57 = vld [vmem:[#allocation2 + $0x4a] sm:$0xff]  ;;  %v4074_v9 = vpack.c.bf16 %v4041_v30, %v4040_v58 }
 0x3ea   :  { %7993 = vmatmul.msk.bf16.gmra.mxu2 %vm1706_vm3, %v4335_v36  ;;  %8018 = vmatmul.msk.bf16.gmra.mxu3 %vm1706_vm3, %v4597_v59  ;;  %v3812_v2 = vpack.c.bf16 %v3779_v60, %v3778_v57  ;;  %v4302_v11 = vld [vmem:[#allocation2 + $0x4c] sm:$0xff]  ;;  %v4043_v60 = vld [vmem:[#allocation2 + $0x63] sm:$0xff]  ;;  %v4042_v57 = vld [vmem:[#allocation2 + $0x5b] sm:$0xff] }
 0x3eb   :  { %v4336_v12 = vpack.c.bf16 %v4303_v7, %v4302_v11  ;;  %v4567_v7 = vld [vmem:[#allocation2 + $0x65] sm:$0xff] }
 0x3ed   :  { %v3444_v28 = vpop.f32.mrf.mxu2  ;;  %v3706_v23 = vpop.f32.mrf.mxu3 }
 0x3ee   :  { %v3499_v26 = vadd.f32 %v3444_v28, %v3237_v22  ;;  %v2922_v18 = vpop.f32.mrf.mxu0  ;;  %v3184_v47 = vpop.f32.mrf.mxu1 }
 0x3ef   :  { %v2976_v49 = vadd.f32 %v2922_v18, %v9545_v53  ;;  %v4564_v53 = vld [vmem:[#allocation2 + $0x4d] sm:$0xff] }
 0x3f0   :  { %v9733_v10 = vadd.f32 %v3706_v23, %v3499_v26  ;;  %v4598_v36 = vpack.c.bf16 %v4565_v46, %v4564_v53 }
 0x3f1   :  { %v3238_v19 = vadd.f32 %v3184_v47, %v2976_v49 }
 0x3f5   :  { %v3446_v61 = vpop.f32.mrf.mxu2  ;;  %v3708_v6 = vpop.f32.mrf.mxu3 }
 0x3f6   :  { %v3500_v48 = vadd.f32 %v3446_v61, %v3238_v19  ;;  %v2925_v55 = vpop.f32.mrf.mxu0  ;;  %v3187_v56 = vpop.f32.mrf.mxu1  ;;  %v3781_v19 = vld [vmem:[#allocation2 + $0x62] sm:$0xff] }
 0x3f7   :  { %v2977_v1 = vadd.f32 %v2925_v55, %v9551_v4 }
 0x3f8   :  { %v9736_v13 = vadd.f32 %v3708_v6, %v3500_v48  ;;  %v4305_v6 = vld [vmem:[#allocation2 + $0x64] sm:$0xff] }
 0x3f9   :  { %v3239_v59 = vadd.f32 %v3187_v56, %v2977_v1  ;;  %7944 = vmatmul.msk.bf16.gmra.mxu0 %vm1706_vm3, %v3812_v2  ;;  %7969 = vmatmul.msk.bf16.gmra.mxu1 %vm1706_vm3, %v4074_v9  ;;  %v3780_v56 = vld [vmem:[#allocation2 + $0x5a] sm:$0xff]  ;;  %v4075_v2 = vpack.c.bf16 %v4043_v60, %v4042_v57 }
 0x3fa   :  { %7994 = vmatmul.msk.bf16.gmra.mxu2 %vm1706_vm3, %v4336_v12  ;;  %8019 = vmatmul.msk.bf16.gmra.mxu3 %vm1706_vm3, %v4598_v36  ;;  %v3813_v1 = vpack.c.bf16 %v3781_v19, %v3780_v56  ;;  %v4304_v9 = vld [vmem:[#allocation2 + $0x5c] sm:$0xff]  ;;  %v4045_v19 = vld [vmem:[#allocation2 + $0x73] sm:$0xff]  ;;  %v4044_v56 = vld [vmem:[#allocation2 + $0x6b] sm:$0xff] }
 0x3fb   :  { %v4337_v53 = vpack.c.bf16 %v4305_v6, %v4304_v9  ;;  %v4569_v6 = vld [vmem:[#allocation2 + $0x75] sm:$0xff] }
 0x3fd   :  { %v3449_v22 = vpop.f32.mrf.mxu2  ;;  %v3711_v28 = vpop.f32.mrf.mxu3 }
 0x3fe   :  { %v3501_v4 = vadd.f32 %v3449_v22, %v3239_v59  ;;  %v2927_v23 = vpop.f32.mrf.mxu0  ;;  %v3189_v26 = vpop.f32.mrf.mxu1 }
 0x3ff   :  { %v2978_v18 = vadd.f32 %v2927_v23, %v9553_v38  ;;  %v4566_v38 = vld [vmem:[#allocation2 + $0x5d] sm:$0xff] }
 0x400   :  { %v9743_v47 = vadd.f32 %v3711_v28, %v3501_v4  ;;  %v4599_v12 = vpack.c.bf16 %v4567_v7, %v4566_v38 }
 0x401   :  { %v3240_v49 = vadd.f32 %v3189_v26, %v2978_v18 }
 0x405   :  { %v3451_v30 = vpop.f32.mrf.mxu2  ;;  %v3713_v61 = vpop.f32.mrf.mxu3 }
 0x406   :  { %v3502_v46 = vadd.f32 %v3451_v30, %v3240_v49  ;;  %v2930_v48 = vpop.f32.mrf.mxu0  ;;  %v3192_v55 = vpop.f32.mrf.mxu1  ;;  %v3783_v49 = vld [vmem:[#allocation2 + $0x72] sm:$0xff] }
 0x407   :  { %v2979_v58 = vadd.f32 %v2930_v48, %v9559_v50 }
 0x408   :  { %v9746_v11 = vadd.f32 %v3713_v61, %v3502_v46  ;;  %v4307_v61 = vld [vmem:[#allocation2 + $0x74] sm:$0xff] }
 0x409   :  { %v3241_v36 = vadd.f32 %v3192_v55, %v2979_v58  ;;  %7945 = vmatmul.msk.bf16.gmra.mxu0 %vm1706_vm3, %v3813_v1  ;;  %7970 = vmatmul.msk.bf16.gmra.mxu1 %vm1706_vm3, %v4075_v2  ;;  %v3782_v55 = vld [vmem:[#allocation2 + $0x6a] sm:$0xff]  ;;  %v4076_v1 = vpack.c.bf16 %v4045_v19, %v4044_v56 }
 0x40a   :  { %7995 = vmatmul.msk.bf16.gmra.mxu2 %vm1706_vm3, %v4337_v53  ;;  %8020 = vmatmul.msk.bf16.gmra.mxu3 %vm1706_vm3, %v4599_v12  ;;  %v3814_v58 = vpack.c.bf16 %v3783_v49, %v3782_v55  ;;  %v4306_v2 = vld [vmem:[#allocation2 + $0x6c] sm:$0xff]  ;;  %v4047_v49 = vld [vmem:[#allocation2 + $0x83] sm:$0xff]  ;;  %v4046_v55 = vld [vmem:[#allocation2 + $0x7b] sm:$0xff] }
 0x40b   :  { %v4338_v38 = vpack.c.bf16 %v4307_v61, %v4306_v2  ;;  %v4571_v61 = vld [vmem:[#allocation2 + $0x85] sm:$0xff] }
 0x40d   :  { %v3454_v59 = vpop.f32.mrf.mxu2  ;;  %v3716_v22 = vpop.f32.mrf.mxu3 }
 0x40e   :  { %v3503_v50 = vadd.f32 %v3454_v59, %v3241_v36  ;;  %v2932_v28 = vpop.f32.mrf.mxu0  ;;  %v3194_v4 = vpop.f32.mrf.mxu1 }
 0x40f   :  { %v2980_v23 = vadd.f32 %v2932_v28, %v9561_v20  ;;  %v4568_v20 = vld [vmem:[#allocation2 + $0x6d] sm:$0xff] }
 0x410   :  { %v9753_v26 = vadd.f32 %v3716_v22, %v3503_v50  ;;  %v4600_v53 = vpack.c.bf16 %v4569_v6, %v4568_v20 }
 0x411   :  { %v3242_v18 = vadd.f32 %v3194_v4, %v2980_v23 }
 0x415   :  { %v3456_v60 = vpop.f32.mrf.mxu2  ;;  %v3718_v30 = vpop.f32.mrf.mxu3 }
 0x416   :  { %v3504_v7 = vadd.f32 %v3456_v60, %v3242_v18  ;;  %v2935_v46 = vpop.f32.mrf.mxu0  ;;  %v3197_v48 = vpop.f32.mrf.mxu1  ;;  %v3785_v18 = vld [vmem:[#allocation2 + $0x82] sm:$0xff] }
 0x417   :  { %v2981_v57 = vadd.f32 %v2935_v46, %v9567_v40 }
 0x418   :  { %v9756_v9 = vadd.f32 %v3718_v30, %v3504_v7  ;;  %v4309_v30 = vld [vmem:[#allocation2 + $0x84] sm:$0xff] }
 0x419   :  { %v3243_v12 = vadd.f32 %v3197_v48, %v2981_v57  ;;  %7946 = vmatmul.msk.bf16.gmra.mxu0 %vm1706_vm3, %v3814_v58  ;;  %7971 = vmatmul.msk.bf16.gmra.mxu1 %vm1706_vm3, %v4076_v1  ;;  %v3784_v48 = vld [vmem:[#allocation2 + $0x7a] sm:$0xff]  ;;  %v4077_v58 = vpack.c.bf16 %v4047_v49, %v4046_v55 }
 0x41a   :  { %7996 = vmatmul.msk.bf16.gmra.mxu2 %vm1706_vm3, %v4338_v38  ;;  %8021 = vmatmul.msk.bf16.gmra.mxu3 %vm1706_vm3, %v4600_v53  ;;  %v3815_v57 = vpack.c.bf16 %v3785_v18, %v3784_v48  ;;  %v4308_v1 = vld [vmem:[#allocation2 + $0x7c] sm:$0xff]  ;;  %v4049_v18 = vld [vmem:[#allocation2 + $0x93] sm:$0xff]  ;;  %v4048_v48 = vld [vmem:[#allocation2 + $0x8b] sm:$0xff] }
 0x41b   :  { %v4339_v20 = vpack.c.bf16 %v4309_v30, %v4308_v1  ;;  %v4573_v30 = vld [vmem:[#allocation2 + $0x95] sm:$0xff] }
 0x41d   :  { %v3459_v36 = vpop.f32.mrf.mxu2  ;;  %v3721_v59 = vpop.f32.mrf.mxu3 }
 0x41e   :  { %v3505_v40 = vadd.f32 %v3459_v36, %v3243_v12  ;;  %v2937_v22 = vpop.f32.mrf.mxu0  ;;  %v3199_v50 = vpop.f32.mrf.mxu1 }
 0x41f   :  { %v2982_v28 = vadd.f32 %v2937_v22, %v9569_v8  ;;  %v4570_v8 = vld [vmem:[#allocation2 + $0x7d] sm:$0xff] }
 0x420   :  { %v9763_v4 = vadd.f32 %v3721_v59, %v3505_v40  ;;  %v4601_v38 = vpack.c.bf16 %v4571_v61, %v4570_v8 }
 0x421   :  { %v3244_v23 = vadd.f32 %v3199_v50, %v2982_v28 }
 0x425   :  { %v3461_v19 = vpop.f32.mrf.mxu2  ;;  %v3723_v60 = vpop.f32.mrf.mxu3 }
 0x426   :  { %v3506_v6 = vadd.f32 %v3461_v19, %v3244_v23  ;;  %v2940_v7 = vpop.f32.mrf.mxu0  ;;  %v3202_v46 = vpop.f32.mrf.mxu1  ;;  %v3787_v23 = vld [vmem:[#allocation2 + $0x92] sm:$0xff] }
 0x427   :  { %v2983_v56 = vadd.f32 %v2940_v7, %v9575_v25 }
 0x428   :  { %v9766_v2 = vadd.f32 %v3723_v60, %v3506_v6  ;;  %v4311_v60 = vld [vmem:[#allocation2 + $0x94] sm:$0xff] }
 0x429   :  { %v3245_v53 = vadd.f32 %v3202_v46, %v2983_v56  ;;  %7947 = vmatmul.msk.bf16.gmra.mxu0 %vm1706_vm3, %v3815_v57  ;;  %7972 = vmatmul.msk.bf16.gmra.mxu1 %vm1706_vm3, %v4077_v58  ;;  %v3786_v46 = vld [vmem:[#allocation2 + $0x8a] sm:$0xff]  ;;  %v4078_v57 = vpack.c.bf16 %v4049_v18, %v4048_v48  ;;  %v4312_v48 = vld [vmem:[#allocation2 + $0x9c] sm:$0xff] }
 0x42a   :  { %7997 = vmatmul.msk.bf16.gmra.mxu2 %vm1706_vm3, %v4339_v20  ;;  %8022 = vmatmul.msk.bf16.gmra.mxu3 %vm1706_vm3, %v4601_v38  ;;  %v3816_v56 = vpack.c.bf16 %v3787_v23, %v3786_v46  ;;  %v4310_v58 = vld [vmem:[#allocation2 + $0x8c] sm:$0xff]  ;;  %v4313_v18 = vld [vmem:[#allocation2 + $0xa4] sm:$0xff] }
 0x42b   :  { %v4340_v8 = vpack.c.bf16 %v4311_v60, %v4310_v58 }
 0x42d   :  { %v3464_v12 = vpop.f32.mrf.mxu2  ;;  %v3726_v36 = vpop.f32.mrf.mxu3 }
 0x42e   :  { %v3507_v25 = vadd.f32 %v3464_v12, %v3245_v53  ;;  %v2942_v59 = vpop.f32.mrf.mxu0  ;;  %v3204_v40 = vpop.f32.mrf.mxu1 }
 0x42f   :  { %v2984_v22 = vadd.f32 %v2942_v59, %v9577_v62  ;;  %v4572_v62 = vld [vmem:[#allocation2 + $0x8d] sm:$0xff] }
 0x430   :  { %v9773_v50 = vadd.f32 %v3726_v36, %v3507_v25  ;;  %v4602_v20 = vpack.c.bf16 %v4573_v30, %v4572_v62  ;;  %v3788_v30 = vld [vmem:[#allocation2 + $0x9a] sm:$0xff] }
 0x431   :  { %v3246_v28 = vadd.f32 %v3204_v40, %v2984_v22  ;;  %v3789_v40 = vld [vmem:[#allocation2 + $0xa2] sm:$0xff] }
 0x432   :  { %v4051_v22 = vld [vmem:[#allocation2 + $0xa3] sm:$0xff] }
 0x435   :  { %v3466_v49 = vpop.f32.mrf.mxu2  ;;  %v3728_v19 = vpop.f32.mrf.mxu3 }
 0x436   :  { %v3508_v61 = vadd.f32 %v3466_v49, %v3246_v28  ;;  %v2945_v6 = vpop.f32.mrf.mxu0  ;;  %v3207_v7 = vpop.f32.mrf.mxu1  ;;  %v4575_v49 = vld [vmem:[#allocation2 + $0xa5] sm:$0xff] }
 0x437   :  { %v2985_v55 = vadd.f32 %v2945_v6, %v9583_v14 }
 0x438   :  { %v9776_v1 = vadd.f32 %v3728_v19, %v3508_v61  ;;  %v4050_v61 = vld [vmem:[#allocation2 + $0x9b] sm:$0xff] }
 0x439   :  { %v3247_v38 = vadd.f32 %v3207_v7, %v2985_v55  ;;  %7948 = vmatmul.msk.bf16.gmra.mxu0 %vm1706_vm3, %v3816_v56  ;;  %7973 = vmatmul.msk.bf16.gmra.mxu1 %vm1706_vm3, %v4078_v57  ;;  %v3817_v7 = vpack.c.bf16 %v3789_v40, %v3788_v30  ;;  %v4079_v46 = vpack.c.bf16 %v4051_v22, %v4050_v61  ;;  %v4574_v55 = vld [vmem:[#allocation2 + $0x9d] sm:$0xff]  ;;  %v4052_v30 = vld [vmem:[#allocation2 + $0xab] sm:$0xff] }
 0x43a   :  { %7998 = vmatmul.msk.bf16.gmra.mxu2 %vm1706_vm3, %v4340_v8  ;;  %8023 = vmatmul.msk.bf16.gmra.mxu3 %vm1706_vm3, %v4602_v20  ;;  %v4341_v56 = vpack.c.bf16 %v4313_v18, %v4312_v48  ;;  %v4603_v57 = vpack.c.bf16 %v4575_v49, %v4574_v55 }
 0x43d   :  { %v3469_v53 = vpop.f32.mrf.mxu2  ;;  %v3731_v12 = vpop.f32.mrf.mxu3 }
 0x43e   :  { %v3509_v14 = vadd.f32 %v3469_v53, %v3247_v38  ;;  %v2947_v36 = vpop.f32.mrf.mxu0  ;;  %v3209_v25 = vpop.f32.mrf.mxu1 }
 0x43f   :  { %v3791_v36 = vld [vmem:[#allocation2 + $0xb2] sm:$0xff] }
 0x440   :  { %v9782_v59 = vadd.f32 %v3731_v12, %v3509_v14  ;;  %v4053_v25 = vld [vmem:[#allocation2 + $0xb3] sm:$0xff] }
 0x445   :  { %v3471_v28 = vpop.f32.mrf.mxu2  ;;  %v3733_v23 = vpop.f32.mrf.mxu3 }
 0x446   :  { %v3903_v19 = vpop.f32.mrf.mxu0  ;;  %v4165_v60 = vpop.f32.mrf.mxu1  ;;  %v4315_v28 = vld [vmem:[#allocation2 + $0xb4] sm:$0xff] }
 0x447   :  { %v3997_v6 = vadd.f32 %v3903_v19, %v9591_v3  ;;  %v4577_v23 = vld [vmem:[#allocation2 + $0xb5] sm:$0xff] }
 0x449   :  { %v4259_v58 = vadd.f32 %v4165_v60, %v3997_v6  ;;  %7949 = vmatmul.msk.bf16.gmra.mxu0 %vm1706_vm3, %v3817_v7  ;;  %7974 = vmatmul.msk.bf16.gmra.mxu1 %vm1706_vm3, %v4079_v46  ;;  %v3790_v60 = vld [vmem:[#allocation2 + $0xaa] sm:$0xff]  ;;  %v4080_v7 = vpack.c.bf16 %v4053_v25, %v4052_v30 }
 0x44a   :  { %7999 = vmatmul.msk.bf16.gmra.mxu2 %vm1706_vm3, %v4341_v56  ;;  %8024 = vmatmul.msk.bf16.gmra.mxu3 %vm1706_vm3, %v4603_v57  ;;  %v3818_v6 = vpack.c.bf16 %v3791_v36, %v3790_v60  ;;  %v4314_v46 = vld [vmem:[#allocation2 + $0xac] sm:$0xff]  ;;  %v4055_v36 = vld [vmem:[#allocation2 + $0xc3] sm:$0xff]  ;;  %v4054_v60 = vld [vmem:[#allocation2 + $0xbb] sm:$0xff] }
 0x44b   :  { %v4342_v55 = vpack.c.bf16 %v4315_v28, %v4314_v46  ;;  %v4579_v28 = vld [vmem:[#allocation2 + $0xc5] sm:$0xff] }
 0x44d   :  { %v4427_v62 = vpop.f32.mrf.mxu2  ;;  %v4689_v8 = vpop.f32.mrf.mxu3 }
 0x44e   :  { %v4521_v20 = vadd.f32 %v4427_v62, %v4259_v58  ;;  %v3905_v38 = vpop.f32.mrf.mxu0  ;;  %v4167_v3 = vpop.f32.mrf.mxu1 }
 0x44f   :  { %v3998_v53 = vadd.f32 %v3905_v38, %v9594_v45  ;;  %v4576_v45 = vld [vmem:[#allocation2 + $0xad] sm:$0xff] }
 0x450   :  { %v9790_v12 = vadd.f32 %v4689_v8, %v4521_v20  ;;  %v4604_v56 = vpack.c.bf16 %v4577_v23, %v4576_v45 }
 0x451   :  { %v4260_v14 = vadd.f32 %v4167_v3, %v3998_v53 }
 0x455   :  { %v4429_v40 = vpop.f32.mrf.mxu2  ;;  %v4691_v22 = vpop.f32.mrf.mxu3 }
 0x456   :  { %v4522_v18 = vadd.f32 %v4429_v40, %v4260_v14  ;;  %v3908_v49 = vpop.f32.mrf.mxu0  ;;  %v4170_v19 = vpop.f32.mrf.mxu1  ;;  %v3793_v14 = vld [vmem:[#allocation2 + $0xc2] sm:$0xff] }
 0x457   :  { %v3999_v61 = vadd.f32 %v3908_v49, %v9601_v54 }
 0x458   :  { %v9793_v48 = vadd.f32 %v4691_v22, %v4522_v18  ;;  %v4317_v22 = vld [vmem:[#allocation2 + $0xc4] sm:$0xff] }
 0x459   :  { %v4261_v57 = vadd.f32 %v4170_v19, %v3999_v61  ;;  %7950 = vmatmul.msk.bf16.gmra.mxu0 %vm1706_vm3, %v3818_v6  ;;  %7975 = vmatmul.msk.bf16.gmra.mxu1 %vm1706_vm3, %v4080_v7  ;;  %v3792_v19 = vld [vmem:[#allocation2 + $0xba] sm:$0xff]  ;;  %v4081_v6 = vpack.c.bf16 %v4055_v36, %v4054_v60 }
 0x45a   :  { %8000 = vmatmul.msk.bf16.gmra.mxu2 %vm1706_vm3, %v4342_v55  ;;  %8025 = vmatmul.msk.bf16.gmra.mxu3 %vm1706_vm3, %v4604_v56  ;;  %v3819_v61 = vpack.c.bf16 %v3793_v14, %v3792_v19  ;;  %v4316_v7 = vld [vmem:[#allocation2 + $0xbc] sm:$0xff]  ;;  %v4057_v14 = vld [vmem:[#allocation2 + $0xd3] sm:$0xff]  ;;  %v4056_v19 = vld [vmem:[#allocation2 + $0xcb] sm:$0xff] }
 0x45b   :  { %v4343_v45 = vpack.c.bf16 %v4317_v22, %v4316_v7  ;;  %v4581_v22 = vld [vmem:[#allocation2 + $0xd5] sm:$0xff] }
 0x45d   :  { %v4432_v58 = vpop.f32.mrf.mxu2  ;;  %v4694_v62 = vpop.f32.mrf.mxu3 }
 0x45e   :  { %v4523_v54 = vadd.f32 %v4432_v58, %v4261_v57  ;;  %v3910_v8 = vpop.f32.mrf.mxu0  ;;  %v4172_v20 = vpop.f32.mrf.mxu1 }
 0x45f   :  { %v4000_v38 = vadd.f32 %v3910_v8, %v9604_v44  ;;  %v4578_v44 = vld [vmem:[#allocation2 + $0xbd] sm:$0xff] }
 0x460   :  { %v9800_v3 = vadd.f32 %v4694_v62, %v4523_v54  ;;  %v4605_v55 = vpack.c.bf16 %v4579_v28, %v4578_v44 }
 0x461   :  { %v4262_v53 = vadd.f32 %v4172_v20, %v4000_v38 }
 0x465   :  { %v4434_v25 = vpop.f32.mrf.mxu2  ;;  %v4696_v40 = vpop.f32.mrf.mxu3 }
 0x466   :  { %v4524_v23 = vadd.f32 %v4434_v25, %v4262_v53  ;;  %v3913_v18 = vpop.f32.mrf.mxu0  ;;  %v4175_v49 = vpop.f32.mrf.mxu1  ;;  %v3795_v53 = vld [vmem:[#allocation2 + $0xd2] sm:$0xff] }
 0x467   :  { %v4001_v30 = vadd.f32 %v3913_v18, %v9611_v0 }
 0x468   :  { %v9803_v46 = vadd.f32 %v4696_v40, %v4524_v23  ;;  %v4319_v40 = vld [vmem:[#allocation2 + $0xd4] sm:$0xff] }
 0x469   :  { %v4263_v56 = vadd.f32 %v4175_v49, %v4001_v30  ;;  %7951 = vmatmul.msk.bf16.gmra.mxu0 %vm1706_vm3, %v3819_v61  ;;  %7976 = vmatmul.msk.bf16.gmra.mxu1 %vm1706_vm3, %v4081_v6  ;;  %v3794_v49 = vld [vmem:[#allocation2 + $0xca] sm:$0xff]  ;;  %v4082_v61 = vpack.c.bf16 %v4057_v14, %v4056_v19 }
 0x46a   :  { %8001 = vmatmul.msk.bf16.gmra.mxu2 %vm1706_vm3, %v4343_v45  ;;  %8026 = vmatmul.msk.bf16.gmra.mxu3 %vm1706_vm3, %v4605_v55  ;;  %v3820_v30 = vpack.c.bf16 %v3795_v53, %v3794_v49  ;;  %v4318_v6 = vld [vmem:[#allocation2 + $0xcc] sm:$0xff]  ;;  %v4059_v53 = vld [vmem:[#allocation2 + $0xe3] sm:$0xff]  ;;  %v4058_v49 = vld [vmem:[#allocation2 + $0xdb] sm:$0xff] }
 0x46b   :  { %v4344_v44 = vpack.c.bf16 %v4319_v40, %v4318_v6  ;;  %v4583_v40 = vld [vmem:[#allocation2 + $0xe5] sm:$0xff] }
 0x46d   :  { %v4437_v57 = vpop.f32.mrf.mxu2  ;;  %v4699_v58 = vpop.f32.mrf.mxu3 }
 0x46e   :  { %v4525_v0 = vadd.f32 %v4437_v57, %v4263_v56  ;;  %v3915_v62 = vpop.f32.mrf.mxu0  ;;  %v4177_v54 = vpop.f32.mrf.mxu1 }
 0x46f   :  { %v4002_v8 = vadd.f32 %v3915_v62, %v9614_v43  ;;  %v4580_v43 = vld [vmem:[#allocation2 + $0xcd] sm:$0xff] }
 0x470   :  { %v9810_v20 = vadd.f32 %v4699_v58, %v4525_v0  ;;  %v4606_v45 = vpack.c.bf16 %v4581_v22, %v4580_v43 }
 0x471   :  { %v4264_v38 = vadd.f32 %v4177_v54, %v4002_v8 }
 0x475   :  { %v4439_v36 = vpop.f32.mrf.mxu2  ;;  %v4701_v25 = vpop.f32.mrf.mxu3 }
 0x476   :  { %v4526_v28 = vadd.f32 %v4439_v36, %v4264_v38  ;;  %v3918_v23 = vpop.f32.mrf.mxu0  ;;  %v4180_v18 = vpop.f32.mrf.mxu1  ;;  %v3797_v38 = vld [vmem:[#allocation2 + $0xe2] sm:$0xff] }
 0x477   :  { %v4003_v60 = vadd.f32 %v3918_v23, %v9621_v16 }
 0x478   :  { %v9813_v7 = vadd.f32 %v4701_v25, %v4526_v28  ;;  %v4321_v25 = vld [vmem:[#allocation2 + $0xe4] sm:$0xff] }
 0x479   :  { %v4265_v55 = vadd.f32 %v4180_v18, %v4003_v60  ;;  %7952 = vmatmul.msk.bf16.gmra.mxu0 %vm1706_vm3, %v3820_v30  ;;  %7977 = vmatmul.msk.bf16.gmra.mxu1 %vm1706_vm3, %v4082_v61  ;;  %v3796_v18 = vld [vmem:[#allocation2 + $0xda] sm:$0xff]  ;;  %v4083_v30 = vpack.c.bf16 %v4059_v53, %v4058_v49 }
 0x47a   :  { %8002 = vmatmul.msk.bf16.gmra.mxu2 %vm1706_vm3, %v4344_v44  ;;  %8027 = vmatmul.msk.bf16.gmra.mxu3 %vm1706_vm3, %v4606_v45  ;;  %v3821_v60 = vpack.c.bf16 %v3797_v38, %v3796_v18  ;;  %v4320_v61 = vld [vmem:[#allocation2 + $0xdc] sm:$0xff]  ;;  %v4061_v38 = vld [vmem:[#allocation2 + $0xf3] sm:$0xff]  ;;  %v4060_v18 = vld [vmem:[#allocation2 + $0xeb] sm:$0xff] }
 0x47b   :  { %v4345_v43 = vpack.c.bf16 %v4321_v25, %v4320_v61  ;;  %v4585_v25 = vld [vmem:[#allocation2 + $0xf5] sm:$0xff] }
 0x47d   :  { %v4442_v56 = vpop.f32.mrf.mxu2  ;;  %v4704_v57 = vpop.f32.mrf.mxu3 }
 0x47e   :  { %v4527_v16 = vadd.f32 %v4442_v56, %v4265_v55  ;;  %v3920_v58 = vpop.f32.mrf.mxu0  ;;  %v4182_v0 = vpop.f32.mrf.mxu1 }
 0x47f   :  { %v4004_v62 = vadd.f32 %v3920_v58, %v9624_v32  ;;  %v4582_v32 = vld [vmem:[#allocation2 + $0xdd] sm:$0xff] }
 0x480   :  { %v9820_v54 = vadd.f32 %v4704_v57, %v4527_v16  ;;  %v4607_v44 = vpack.c.bf16 %v4583_v40, %v4582_v32 }
 0x481   :  { %v4266_v8 = vadd.f32 %v4182_v0, %v4004_v62 }
 0x485   :  { %v4444_v14 = vpop.f32.mrf.mxu2  ;;  %v4706_v36 = vpop.f32.mrf.mxu3 }
 0x486   :  { %v4528_v22 = vadd.f32 %v4444_v14, %v4266_v8  ;;  %v3923_v28 = vpop.f32.mrf.mxu0  ;;  %v4185_v23 = vpop.f32.mrf.mxu1  ;;  %v3799_v8 = vld [vmem:[#allocation2 + $0xf2] sm:$0xff] }
 0x487   :  { %v4005_v19 = vadd.f32 %v3923_v28, %v9631_v42 }
 0x488   :  { %v9823_v6 = vadd.f32 %v4706_v36, %v4528_v22  ;;  %v4323_v36 = vld [vmem:[#allocation2 + $0xf4] sm:$0xff] }
 0x489   :  { %v4267_v45 = vadd.f32 %v4185_v23, %v4005_v19  ;;  %7953 = vmatmul.msk.bf16.gmra.mxu0 %vm1706_vm3, %v3821_v60  ;;  %7978 = vmatmul.msk.bf16.gmra.mxu1 %vm1706_vm3, %v4083_v30  ;;  %v3798_v23 = vld [vmem:[#allocation2 + $0xea] sm:$0xff]  ;;  %v4084_v60 = vpack.c.bf16 %v4061_v38, %v4060_v18 }
 0x48a   :  { %8003 = vmatmul.msk.bf16.gmra.mxu2 %vm1706_vm3, %v4345_v43  ;;  %8028 = vmatmul.msk.bf16.gmra.mxu3 %vm1706_vm3, %v4607_v44  ;;  %v3822_v19 = vpack.c.bf16 %v3799_v8, %v3798_v23  ;;  %v4322_v30 = vld [vmem:[#allocation2 + $0xec] sm:$0xff]  ;;  %v4063_v8 = vld [vmem:[#allocation2 + $0x103] sm:$0xff]  ;;  %v4062_v23 = vld [vmem:[#allocation2 + $0xfb] sm:$0xff] }
 0x48b   :  { %v4346_v32 = vpack.c.bf16 %v4323_v36, %v4322_v30  ;;  %v4587_v36 = vld [vmem:[#allocation2 + $0x105] sm:$0xff] }
 0x48d   :  { %v4447_v55 = vpop.f32.mrf.mxu2  ;;  %v4709_v56 = vpop.f32.mrf.mxu3 }
 0x48e   :  { %v4529_v42 = vadd.f32 %v4447_v55, %v4267_v45  ;;  %v3925_v57 = vpop.f32.mrf.mxu0  ;;  %v4187_v16 = vpop.f32.mrf.mxu1 }
 0x48f   :  { %v4006_v58 = vadd.f32 %v3925_v57, %v9634_v41  ;;  %v4584_v41 = vld [vmem:[#allocation2 + $0xed] sm:$0xff] }
 0x490   :  { %v9830_v0 = vadd.f32 %v4709_v56, %v4529_v42  ;;  %v4608_v43 = vpack.c.bf16 %v4585_v25, %v4584_v41 }
 0x491   :  { %v4268_v62 = vadd.f32 %v4187_v16, %v4006_v58 }
 0x495   :  { %v4449_v53 = vpop.f32.mrf.mxu2  ;;  %v4711_v14 = vpop.f32.mrf.mxu3 }
 0x496   :  { %v4530_v40 = vadd.f32 %v4449_v53, %v4268_v62  ;;  %v3928_v22 = vpop.f32.mrf.mxu0  ;;  %v4190_v28 = vpop.f32.mrf.mxu1  ;;  %v3801_v62 = vld [vmem:[#allocation2 + $0x102] sm:$0xff] }
 0x497   :  { %v4007_v49 = vadd.f32 %v3928_v22, %v9641_v5 }
 0x498   :  { %v9833_v61 = vadd.f32 %v4711_v14, %v4530_v40  ;;  %v4325_v14 = vld [vmem:[#allocation2 + $0x104] sm:$0xff] }
 0x499   :  { %v4269_v44 = vadd.f32 %v4190_v28, %v4007_v49  ;;  %7954 = vmatmul.msk.bf16.gmra.mxu0 %vm1706_vm3, %v3822_v19  ;;  %7979 = vmatmul.msk.bf16.gmra.mxu1 %vm1706_vm3, %v4084_v60  ;;  %v3800_v28 = vld [vmem:[#allocation2 + $0xfa] sm:$0xff]  ;;  %v4085_v19 = vpack.c.bf16 %v4063_v8, %v4062_v23 }
 0x49a   :  { %8004 = vmatmul.msk.bf16.gmra.mxu2 %vm1706_vm3, %v4346_v32  ;;  %8029 = vmatmul.msk.bf16.gmra.mxu3 %vm1706_vm3, %v4608_v43  ;;  %v3823_v49 = vpack.c.bf16 %v3801_v62, %v3800_v28  ;;  %v4324_v60 = vld [vmem:[#allocation2 + $0xfc] sm:$0xff]  ;;  %v4065_v62 = vld [vmem:[#allocation2 + $0x113] sm:$0xff]  ;;  %v4064_v28 = vld [vmem:[#allocation2 + $0x10b] sm:$0xff] }
 0x49b   :  { %v4347_v41 = vpack.c.bf16 %v4325_v14, %v4324_v60  ;;  %v4589_v14 = vld [vmem:[#allocation2 + $0x115] sm:$0xff] }
 0x49d   :  { %v4452_v45 = vpop.f32.mrf.mxu2  ;;  %v4714_v55 = vpop.f32.mrf.mxu3 }
 0x49e   :  { %v4531_v5 = vadd.f32 %v4452_v45, %v4269_v44  ;;  %v3930_v56 = vpop.f32.mrf.mxu0  ;;  %v4192_v42 = vpop.f32.mrf.mxu1 }
 0x49f   :  { %v4008_v57 = vadd.f32 %v3930_v56, %v9644_v35  ;;  %v4586_v35 = vld [vmem:[#allocation2 + $0xfd] sm:$0xff] }
 0x4a0   :  { %v9840_v16 = vadd.f32 %v4714_v55, %v4531_v5  ;;  %v4609_v32 = vpack.c.bf16 %v4587_v36, %v4586_v35 }
 0x4a1   :  { %v4270_v58 = vadd.f32 %v4192_v42, %v4008_v57 }
 0x4a5   :  { %v4454_v38 = vpop.f32.mrf.mxu2  ;;  %v4716_v53 = vpop.f32.mrf.mxu3 }
 0x4a6   :  { %v4532_v25 = vadd.f32 %v4454_v38, %v4270_v58  ;;  %v3933_v40 = vpop.f32.mrf.mxu0  ;;  %v4195_v22 = vpop.f32.mrf.mxu1  ;;  %v3803_v58 = vld [vmem:[#allocation2 + $0x112] sm:$0xff] }
 0x4a7   :  { %v4009_v18 = vadd.f32 %v3933_v40, %v9651_v34 }
 0x4a8   :  { %v9843_v30 = vadd.f32 %v4716_v53, %v4532_v25  ;;  %v4327_v53 = vld [vmem:[#allocation2 + $0x114] sm:$0xff] }
 0x4a9   :  { %v4271_v43 = vadd.f32 %v4195_v22, %v4009_v18  ;;  %7955 = vmatmul.msk.bf16.gmra.mxu0 %vm1706_vm3, %v3823_v49  ;;  %7980 = vmatmul.msk.bf16.gmra.mxu1 %vm1706_vm3, %v4085_v19  ;;  %v3802_v22 = vld [vmem:[#allocation2 + $0x10a] sm:$0xff]  ;;  %v4086_v49 = vpack.c.bf16 %v4065_v62, %v4064_v28 }
 0x4aa   :  { %8005 = vmatmul.msk.bf16.gmra.mxu2 %vm1706_vm3, %v4347_v41  ;;  %8030 = vmatmul.msk.bf16.gmra.mxu3 %vm1706_vm3, %v4609_v32  ;;  %v3824_v18 = vpack.c.bf16 %v3803_v58, %v3802_v22  ;;  %v4326_v19 = vld [vmem:[#allocation2 + $0x10c] sm:$0xff]  ;;  %v4067_v58 = vld [vmem:[#allocation2 + $0x123] sm:$0xff]  ;;  %v4066_v22 = vld [vmem:[#allocation2 + $0x11b] sm:$0xff] }
 0x4ab   :  { %v4348_v35 = vpack.c.bf16 %v4327_v53, %v4326_v19  ;;  %v4591_v53 = vld [vmem:[#allocation2 + $0x125] sm:$0xff] }
 0x4ad   :  { %v4457_v44 = vpop.f32.mrf.mxu2  ;;  %v4719_v45 = vpop.f32.mrf.mxu3 }
 0x4ae   :  { %v4533_v34 = vadd.f32 %v4457_v44, %v4271_v43  ;;  %v3935_v55 = vpop.f32.mrf.mxu0  ;;  %v4197_v5 = vpop.f32.mrf.mxu1 }
 0x4af   :  { %v4010_v56 = vadd.f32 %v3935_v55, %v9654_v31  ;;  %v4588_v31 = vld [vmem:[#allocation2 + $0x10d] sm:$0xff] }
 0x4b0   :  { %v9850_v42 = vadd.f32 %v4719_v45, %v4533_v34  ;;  %v4610_v41 = vpack.c.bf16 %v4589_v14, %v4588_v31 }
 0x4b1   :  { %v4272_v57 = vadd.f32 %v4197_v5, %v4010_v56 }
 0x4b5   :  { %v4459_v8 = vpop.f32.mrf.mxu2  ;;  %v4721_v38 = vpop.f32.mrf.mxu3 }
 0x4b6   :  { %v4534_v36 = vadd.f32 %v4459_v8, %v4272_v57  ;;  %v3938_v25 = vpop.f32.mrf.mxu0  ;;  %v4200_v40 = vpop.f32.mrf.mxu1  ;;  %v3805_v57 = vld [vmem:[#allocation2 + $0x122] sm:$0xff] }
 0x4b7   :  { %v4011_v23 = vadd.f32 %v3938_v25, %v9661_v63 }
 0x4b8   :  { %v9853_v60 = vadd.f32 %v4721_v38, %v4534_v36  ;;  %v4329_v38 = vld [vmem:[#allocation2 + $0x124] sm:$0xff] }
 0x4b9   :  { %v4273_v32 = vadd.f32 %v4200_v40, %v4011_v23  ;;  %7956 = vmatmul.msk.bf16.gmra.mxu0 %vm1706_vm3, %v3824_v18  ;;  %7981 = vmatmul.msk.bf16.gmra.mxu1 %vm1706_vm3, %v4086_v49  ;;  %v3804_v40 = vld [vmem:[#allocation2 + $0x11a] sm:$0xff]  ;;  %v4087_v18 = vpack.c.bf16 %v4067_v58, %v4066_v22 }
 0x4ba   :  { %8006 = vmatmul.msk.bf16.gmra.mxu2 %vm1706_vm3, %v4348_v35  ;;  %8031 = vmatmul.msk.bf16.gmra.mxu3 %vm1706_vm3, %v4610_v41  ;;  %v3825_v23 = vpack.c.bf16 %v3805_v57, %v3804_v40  ;;  %v4328_v49 = vld [vmem:[#allocation2 + $0x11c] sm:$0xff] }
 0x4bb   :  { %v4349_v31 = vpack.c.bf16 %v4329_v38, %v4328_v49  ;;  %v8619_v57 = vld [vmem:[%s10422_s3 + $0x60] sm:$0xff]  ;;  %v8622_v58 = vld [vmem:[%s10422_s3 + $0x78] sm:$0xff] }
 0x4bc   :  { %4949 = vmatpush.bf16.msra.mxu0 %v8619_v57  ;;  %5735 = vmatpush.bf16.msra.mxu3 %v8622_v58 }
 0x4bd   :  { %v4462_v43 = vpop.f32.mrf.mxu2  ;;  %v4724_v44 = vpop.f32.mrf.mxu3 }
 0x4be   :  { %v4535_v63 = vadd.f32 %v4462_v43, %v4273_v32  ;;  %v3940_v45 = vpop.f32.mrf.mxu0  ;;  %v4202_v34 = vpop.f32.mrf.mxu1 }
 0x4bf   :  { %v4012_v55 = vadd.f32 %v3940_v45, %v9664_v39  ;;  %v4590_v39 = vld [vmem:[#allocation2 + $0x11d] sm:$0xff] }
 0x4c0   :  { %v9860_v5 = vadd.f32 %v4724_v44, %v4535_v63  ;;  %v4611_v35 = vpack.c.bf16 %v4591_v53, %v4590_v39 }
 0x4c1   :  { %v4274_v56 = vadd.f32 %v4202_v34, %v4012_v55 }
 0x4c5   :  { %v4464_v62 = vpop.f32.mrf.mxu2  ;;  %v4726_v8 = vpop.f32.mrf.mxu3 }
 0x4c6   :  { %v4536_v14 = vadd.f32 %v4464_v62, %v4274_v56  ;;  %v3943_v36 = vpop.f32.mrf.mxu0  ;;  %v4205_v25 = vpop.f32.mrf.mxu1  ;;  %v8621_v56 = vld [vmem:[%s10422_s3 + $0x70] sm:$0xff]  ;;  %v8620_v62 = vld [vmem:[%s10422_s3 + $0x68] sm:$0xff] }
 0x4c7   :  { %v4013_v28 = vadd.f32 %v3943_v36, %v9671_v29  ;;  %5473 = vmatpush.bf16.msra.mxu2 %v8621_v56  ;;  %5211 = vmatpush.bf16.msra.mxu1 %v8620_v62  ;;  %v4593_v36 = vld [vmem:[#allocation2 + $0x135] sm:$0xff] }
 0x4c8   :  { %v9863_v19 = vadd.f32 %v4726_v8, %v4536_v14  ;;  %v4069_v8 = vld [vmem:[#allocation2 + $0x133] sm:$0xff] }
 0x4c9   :  { %v4275_v41 = vadd.f32 %v4205_v25, %v4013_v28  ;;  %7957 = vmatmul.msk.bf16.gmra.mxu0 %vm1706_vm3, %v3825_v23  ;;  %7982 = vmatmul.msk.bf16.gmra.mxu1 %vm1706_vm3, %v4087_v18  ;;  %v4331_v14 = vld [vmem:[#allocation2 + $0x134] sm:$0xff]  ;;  %v3806_v28 = vld [vmem:[#allocation2 + $0x12a] sm:$0xff] }
 0x4ca   :  { %8007 = vmatmul.msk.bf16.gmra.mxu2 %vm1706_vm3, %v4349_v31  ;;  %8032 = vmatmul.msk.bf16.gmra.mxu3 %vm1706_vm3, %v4611_v35  ;;  %v4068_v23 = vld [vmem:[#allocation2 + $0x12b] sm:$0xff]  ;;  %v3808_v62 = vld [vmem:[#allocation2 + $0x13a] sm:$0xff] }
 0x4cb   :  { %v4088_v39 = vpack.c.bf16 %v4069_v8, %v4068_v23  ;;  %v4330_v31 = vld [vmem:[#allocation2 + $0x12c] sm:$0xff] }
 0x4cc   :  { %v4592_v35 = vld [vmem:[#allocation2 + $0x12d] sm:$0xff] }
 0x4cd   :  { %v4467_v32 = vpop.f32.mrf.mxu2  ;;  %v4729_v43 = vpop.f32.mrf.mxu3 }
 0x4ce   :  { %v4537_v29 = vadd.f32 %v4467_v32, %v4275_v41  ;;  %v3945_v44 = vpop.f32.mrf.mxu0  ;;  %v4207_v63 = vpop.f32.mrf.mxu1  ;;  %v4350_v32 = vpack.c.bf16 %v4331_v14, %v4330_v31  ;;  %v4594_v14 = vld [vmem:[#allocation2 + $0x13d] sm:$0xff] }
 0x4cf   :  { %v4014_v45 = vadd.f32 %v3945_v44, %v9686_v52  ;;  %v3807_v52 = vld [vmem:[#allocation2 + $0x132] sm:$0xff] }
 0x4d0   :  { %v9870_v34 = vadd.f32 %v4729_v43, %v4537_v29  ;;  %v3826_v49 = vpack.c.bf16 %v3807_v52, %v3806_v28  ;;  %v4612_v43 = vpack.c.bf16 %v4593_v36, %v4592_v35  ;;  %v4070_v52 = vld [vmem:[#allocation2 + $0x13b] sm:$0xff]  ;;  %v3827_v28 = vpack.c.bf16 %v3808_v62, %v3808_v62  ;;  %v5607_v62 = vld [vmem:[#allocation2 + $0x32] sm:$0xff] }
 0x4d1   :  { %v4276_v55 = vadd.f32 %v4207_v63, %v4014_v45  ;;  %v4089_v23 = vpack.c.bf16 %v4070_v52, %v4070_v52 }
 0x4d5   :  { %v4469_v38 = vpop.f32.mrf.mxu2  ;;  %v4731_v53 = vpop.f32.mrf.mxu3 }
 0x4d6   :  { %v4538_v25 = vadd.f32 %v4469_v38, %v4276_v55  ;;  %v3948_v40 = vpop.f32.mrf.mxu0  ;;  %v4210_v22 = vpop.f32.mrf.mxu1 }
 0x4d7   :  { %v4015_v18 = vadd.f32 %v3948_v40, %v9693_v51 }
 0x4d8   :  { %v9885_v41 = vadd.f32 %v4731_v53, %v4538_v25  ;;  %v4332_v53 = vld [vmem:[#allocation2 + $0x13c] sm:$0xff] }
 0x4d9   :  { %v4277_v29 = vadd.f32 %v4210_v22, %v4015_v18  ;;  %7958 = vmatmul.msk.bf16.gmra.mxu0 %vm1706_vm3, %v3826_v49  ;;  %7983 = vmatmul.msk.bf16.gmra.mxu1 %vm1706_vm3, %v4088_v39  ;;  %v4351_v49 = vpack.c.bf16 %v4332_v53, %v4332_v53  ;;  %v4820_v53 = vld [vmem:[#allocation2 + $0x27] sm:$0xff] }
 0x4da   :  { %8008 = vmatmul.msk.bf16.gmra.mxu2 %vm1706_vm3, %v4350_v32  ;;  %8033 = vmatmul.msk.bf16.gmra.mxu3 %vm1706_vm3, %v4612_v43 }
 0x4dd   :  { %v4472_v44 = vpop.f32.mrf.mxu2  ;;  %v4734_v63 = vpop.f32.mrf.mxu3 }
 0x4de   :  { %v4539_v51 = vadd.f32 %v4472_v44, %v4277_v29  ;;  %v3950_v45 = vpop.f32.mrf.mxu0  ;;  %v4212_v55 = vpop.f32.mrf.mxu1 }
 0x4df   :  { %v4016_v56 = vadd.f32 %v3950_v45, %v9696_v27  ;;  %v4613_v27 = vpack.c.bf16 %v4594_v14, %v4594_v14  ;;  %v5083_v45 = vld [vmem:[#allocation2 + $0x30] sm:$0xff]  ;;  %v5082_v14 = vld [vmem:[#allocation2 + $0x28] sm:$0xff] }
 0x4e0   :  { %v9892_v57 = vadd.f32 %v4734_v63, %v4539_v51  ;;  %v4821_v51 = vld [vmem:[#allocation2 + $0x2f] sm:$0xff] }
 0x4e1   :  { %v4278_v58 = vadd.f32 %v4212_v55, %v4016_v56 }
 0x4e5   :  { %v4474_v8 = vpop.f32.mrf.mxu2  ;;  %v4736_v38 = vpop.f32.mrf.mxu3 }
 0x4e6   :  { %v4540_v36 = vadd.f32 %v4474_v8, %v4278_v58  ;;  %v3953_v25 = vpop.f32.mrf.mxu0  ;;  %v4215_v40 = vpop.f32.mrf.mxu1  ;;  %v5345_v58 = vld [vmem:[#allocation2 + $0x31] sm:$0xff] }
 0x4e7   :  { %v4017_v22 = vadd.f32 %v3953_v25, %v9703_v33  ;;  %v4857_v25 = vpack.c.bf16 %v4821_v51, %v4820_v53  ;;  %v5085_v51 = vld [vmem:[#allocation2 + $0x40] sm:$0xff]  ;;  %v5084_v53 = vld [vmem:[#allocation2 + $0x38] sm:$0xff] }
 0x4e8   :  { %v9895_v18 = vadd.f32 %v4736_v38, %v4540_v36 }
 0x4e9   :  { %v4279_v39 = vadd.f32 %v4215_v40, %v4017_v22  ;;  %7959 = vmatmul.msk.bf16.gmra.mxu0 %vm1706_vm3, %v3827_v28  ;;  %7984 = vmatmul.msk.bf16.gmra.mxu1 %vm1706_vm3, %v4089_v23  ;;  %v5119_v40 = vpack.c.bf16 %v5083_v45, %v5082_v14  ;;  %v5344_v22 = vld [vmem:[#allocation2 + $0x29] sm:$0xff] }
 0x4ea   :  { %8009 = vmatmul.msk.bf16.gmra.mxu2 %vm1706_vm3, %v4351_v49  ;;  %8034 = vmatmul.msk.bf16.gmra.mxu3 %vm1706_vm3, %v4613_v27  ;;  %v5381_v23 = vpack.c.bf16 %v5345_v58, %v5344_v22  ;;  %v5609_v58 = vld [vmem:[#allocation2 + $0x42] sm:$0xff] }
 0x4ed   :  { %v4477_v31 = vpop.f32.mrf.mxu2  ;;  %v4739_v35 = vpop.f32.mrf.mxu3 }
 0x4ee   :  { %v4541_v32 = vadd.f32 %v4477_v31, %v4279_v39  ;;  %v3955_v43 = vpop.f32.mrf.mxu0  ;;  %v4217_v33 = vpop.f32.mrf.mxu1 }
 0x4ef   :  { %v4018_v29 = vadd.f32 %v3955_v43, %v9706_v21  ;;  %v5606_v21 = vld [vmem:[#allocation2 + $0x2a] sm:$0xff] }
 0x4f0   :  { %v9902_v44 = vadd.f32 %v4739_v35, %v4541_v32  ;;  %v5643_v49 = vpack.c.bf16 %v5607_v62, %v5606_v21 }
 0x4f1   :  { %v4280_v63 = vadd.f32 %v4217_v33, %v4018_v29 }
 0x4f5   :  { %v4479_v55 = vpop.f32.mrf.mxu2  ;;  %v4741_v56 = vpop.f32.mrf.mxu3 }
 0x4f6   :  { %v4542_v52 = vadd.f32 %v4479_v55, %v4280_v63  ;;  %v3958_v8 = vpop.f32.mrf.mxu0  ;;  %v4220_v38 = vpop.f32.mrf.mxu1  ;;  %v4823_v63 = vld [vmem:[#allocation2 + $0x3f] sm:$0xff] }
 0x4f7   :  { %v4019_v36 = vadd.f32 %v3958_v8, %v9713_v37 }
 0x4f8   :  { %v9905_v28 = vadd.f32 %v4741_v56, %v4542_v52  ;;  %v5347_v56 = vld [vmem:[#allocation2 + $0x41] sm:$0xff] }
 0x4f9   :  { %v4281_v27 = vadd.f32 %v4220_v38, %v4019_v36  ;;  %8041 = vmatmul.msk.bf16.vlgmr.msra.gmra.mxu0 %vm1706_vm3, %v4857_v25  ;;  %8066 = vmatmul.msk.bf16.vlgmr.msra.gmra.mxu1 %vm1706_vm3, %v5119_v40  ;;  %v4822_v38 = vld [vmem:[#allocation2 + $0x37] sm:$0xff]  ;;  %v5120_v25 = vpack.c.bf16 %v5085_v51, %v5084_v53 }
 0x4fa   :  { %8091 = vmatmul.msk.bf16.vlgmr.msra.gmra.mxu2 %vm1706_vm3, %v5381_v23  ;;  %8116 = vmatmul.msk.bf16.vlgmr.msra.gmra.mxu3 %vm1706_vm3, %v5643_v49  ;;  %v4858_v36 = vpack.c.bf16 %v4823_v63, %v4822_v38  ;;  %v5346_v40 = vld [vmem:[#allocation2 + $0x39] sm:$0xff]  ;;  %v5087_v63 = vld [vmem:[#allocation2 + $0x50] sm:$0xff]  ;;  %v5086_v38 = vld [vmem:[#allocation2 + $0x48] sm:$0xff] }
 0x4fb   :  { %v5382_v21 = vpack.c.bf16 %v5347_v56, %v5346_v40  ;;  %v5611_v56 = vld [vmem:[#allocation2 + $0x52] sm:$0xff] }
 0x4fd   :  { %v4482_v39 = vpop.f32.mrf.mxu2  ;;  %v4744_v31 = vpop.f32.mrf.mxu3 }
 0x4fe   :  { %v4543_v37 = vadd.f32 %v4482_v39, %v4281_v27  ;;  %v3960_v35 = vpop.f32.mrf.mxu0  ;;  %v4222_v32 = vpop.f32.mrf.mxu1 }
 0x4ff   :  { %v4020_v43 = vadd.f32 %v3960_v35, %v9716_v17  ;;  %v5608_v17 = vld [vmem:[#allocation2 + $0x3a] sm:$0xff] }
 0x500   :  { %v9912_v33 = vadd.f32 %v4744_v31, %v4543_v37  ;;  %v5644_v23 = vpack.c.bf16 %v5609_v58, %v5608_v17 }
 0x501   :  { %v4282_v29 = vadd.f32 %v4222_v32, %v4020_v43 }
 0x505   :  { %v4484_v45 = vpop.f32.mrf.mxu2  ;;  %v4746_v55 = vpop.f32.mrf.mxu3 }
 0x506   :  { %v4544_v62 = vadd.f32 %v4484_v45, %v4282_v29  ;;  %v3963_v52 = vpop.f32.mrf.mxu0  ;;  %v4225_v8 = vpop.f32.mrf.mxu1  ;;  %v4825_v29 = vld [vmem:[#allocation2 + $0x4f] sm:$0xff] }
 0x507   :  { %v4021_v14 = vadd.f32 %v3963_v52, %v9723_v24 }
 0x508   :  { %v9915_v22 = vadd.f32 %v4746_v55, %v4544_v62  ;;  %v5349_v55 = vld [vmem:[#allocation2 + $0x51] sm:$0xff] }
 0x509   :  { %v4283_v49 = vadd.f32 %v4225_v8, %v4021_v14  ;;  %8042 = vmatmul.msk.bf16.gmra.mxu0 %vm1706_vm3, %v4858_v36  ;;  %8067 = vmatmul.msk.bf16.gmra.mxu1 %vm1706_vm3, %v5120_v25  ;;  %v4824_v8 = vld [vmem:[#allocation2 + $0x47] sm:$0xff]  ;;  %v5121_v36 = vpack.c.bf16 %v5087_v63, %v5086_v38 }
 0x50a   :  { %8092 = vmatmul.msk.bf16.gmra.mxu2 %vm1706_vm3, %v5382_v21  ;;  %8117 = vmatmul.msk.bf16.gmra.mxu3 %vm1706_vm3, %v5644_v23  ;;  %v4859_v14 = vpack.c.bf16 %v4825_v29, %v4824_v8  ;;  %v5348_v25 = vld [vmem:[#allocation2 + $0x49] sm:$0xff]  ;;  %v5089_v29 = vld [vmem:[#allocation2 + $0x60] sm:$0xff]  ;;  %v5088_v8 = vld [vmem:[#allocation2 + $0x58] sm:$0xff] }
 0x50b   :  { %v5383_v17 = vpack.c.bf16 %v5349_v55, %v5348_v25  ;;  %v5613_v55 = vld [vmem:[#allocation2 + $0x62] sm:$0xff] }
 0x50d   :  { %v4487_v27 = vpop.f32.mrf.mxu2  ;;  %v4749_v39 = vpop.f32.mrf.mxu3 }
 0x50e   :  { %v4545_v24 = vadd.f32 %v4487_v27, %v4283_v49  ;;  %v3965_v31 = vpop.f32.mrf.mxu0  ;;  %v4227_v37 = vpop.f32.mrf.mxu1 }
 0x50f   :  { %v4022_v35 = vadd.f32 %v3965_v31, %v9726_v15  ;;  %v5610_v15 = vld [vmem:[#allocation2 + $0x4a] sm:$0xff] }
 0x510   :  { %v9922_v32 = vadd.f32 %v4749_v39, %v4545_v24  ;;  %v5645_v21 = vpack.c.bf16 %v5611_v56, %v5610_v15 }
 0x511   :  { %v4284_v43 = vadd.f32 %v4227_v37, %v4022_v35 }
 0x515   :  { %v4489_v51 = vpop.f32.mrf.mxu2  ;;  %v4751_v45 = vpop.f32.mrf.mxu3 }
 0x516   :  { %v4546_v58 = vadd.f32 %v4489_v51, %v4284_v43  ;;  %v3968_v62 = vpop.f32.mrf.mxu0  ;;  %v4230_v52 = vpop.f32.mrf.mxu1  ;;  %v4827_v43 = vld [vmem:[#allocation2 + $0x5f] sm:$0xff] }
 0x517   :  { %v4023_v53 = vadd.f32 %v3968_v62, %v9733_v10 }
 0x518   :  { %v9925_v40 = vadd.f32 %v4751_v45, %v4546_v58  ;;  %v5351_v45 = vld [vmem:[#allocation2 + $0x61] sm:$0xff] }
 0x519   :  { %v4285_v23 = vadd.f32 %v4230_v52, %v4023_v53  ;;  %8043 = vmatmul.msk.bf16.gmra.mxu0 %vm1706_vm3, %v4859_v14  ;;  %8068 = vmatmul.msk.bf16.gmra.mxu1 %vm1706_vm3, %v5121_v36  ;;  %v4826_v52 = vld [vmem:[#allocation2 + $0x57] sm:$0xff]  ;;  %v5122_v14 = vpack.c.bf16 %v5089_v29, %v5088_v8 }
 0x51a   :  { %8093 = vmatmul.msk.bf16.gmra.mxu2 %vm1706_vm3, %v5383_v17  ;;  %8118 = vmatmul.msk.bf16.gmra.mxu3 %vm1706_vm3, %v5645_v21  ;;  %v4860_v53 = vpack.c.bf16 %v4827_v43, %v4826_v52  ;;  %v5350_v36 = vld [vmem:[#allocation2 + $0x59] sm:$0xff]  ;;  %v5091_v43 = vld [vmem:[#allocation2 + $0x70] sm:$0xff]  ;;  %v5090_v52 = vld [vmem:[#allocation2 + $0x68] sm:$0xff] }
 0x51b   :  { %v5384_v15 = vpack.c.bf16 %v5351_v45, %v5350_v36  ;;  %v5615_v45 = vld [vmem:[#allocation2 + $0x72] sm:$0xff] }
 0x51d   :  { %v4492_v49 = vpop.f32.mrf.mxu2  ;;  %v4754_v27 = vpop.f32.mrf.mxu3 }
 0x51e   :  { %v4547_v10 = vadd.f32 %v4492_v49, %v4285_v23  ;;  %v3970_v39 = vpop.f32.mrf.mxu0  ;;  %v4232_v24 = vpop.f32.mrf.mxu1 }
 0x51f   :  { %v4024_v31 = vadd.f32 %v3970_v39, %v9736_v13  ;;  %v5612_v13 = vld [vmem:[#allocation2 + $0x5a] sm:$0xff] }
 0x520   :  { %v9932_v37 = vadd.f32 %v4754_v27, %v4547_v10  ;;  %v5646_v17 = vpack.c.bf16 %v5613_v55, %v5612_v13 }
 0x521   :  { %v4286_v35 = vadd.f32 %v4232_v24, %v4024_v31 }
 0x525   :  { %v4494_v63 = vpop.f32.mrf.mxu2  ;;  %v4756_v51 = vpop.f32.mrf.mxu3 }
 0x526   :  { %v4548_v56 = vadd.f32 %v4494_v63, %v4286_v35  ;;  %v3973_v58 = vpop.f32.mrf.mxu0  ;;  %v4235_v62 = vpop.f32.mrf.mxu1  ;;  %v4829_v35 = vld [vmem:[#allocation2 + $0x6f] sm:$0xff] }
 0x527   :  { %v4025_v38 = vadd.f32 %v3973_v58, %v9743_v47 }
 0x528   :  { %v9935_v25 = vadd.f32 %v4756_v51, %v4548_v56  ;;  %v5353_v51 = vld [vmem:[#allocation2 + $0x71] sm:$0xff] }
 0x529   :  { %v4287_v21 = vadd.f32 %v4235_v62, %v4025_v38  ;;  %8044 = vmatmul.msk.bf16.gmra.mxu0 %vm1706_vm3, %v4860_v53  ;;  %8069 = vmatmul.msk.bf16.gmra.mxu1 %vm1706_vm3, %v5122_v14  ;;  %v4828_v62 = vld [vmem:[#allocation2 + $0x67] sm:$0xff]  ;;  %v5123_v53 = vpack.c.bf16 %v5091_v43, %v5090_v52 }
 0x52a   :  { %8094 = vmatmul.msk.bf16.gmra.mxu2 %vm1706_vm3, %v5384_v15  ;;  %8119 = vmatmul.msk.bf16.gmra.mxu3 %vm1706_vm3, %v5646_v17  ;;  %v4861_v38 = vpack.c.bf16 %v4829_v35, %v4828_v62  ;;  %v5352_v14 = vld [vmem:[#allocation2 + $0x69] sm:$0xff]  ;;  %v5093_v35 = vld [vmem:[#allocation2 + $0x80] sm:$0xff]  ;;  %v5092_v62 = vld [vmem:[#allocation2 + $0x78] sm:$0xff] }
 0x52b   :  { %v5385_v13 = vpack.c.bf16 %v5353_v51, %v5352_v14  ;;  %v5617_v51 = vld [vmem:[#allocation2 + $0x82] sm:$0xff] }
 0x52d   :  { %v4497_v23 = vpop.f32.mrf.mxu2  ;;  %v4759_v49 = vpop.f32.mrf.mxu3 }
 0x52e   :  { %v4549_v47 = vadd.f32 %v4497_v23, %v4287_v21  ;;  %v3975_v27 = vpop.f32.mrf.mxu0  ;;  %v4237_v10 = vpop.f32.mrf.mxu1 }
 0x52f   :  { %v4026_v39 = vadd.f32 %v3975_v27, %v9746_v11  ;;  %v5614_v11 = vld [vmem:[#allocation2 + $0x6a] sm:$0xff] }
 0x530   :  { %v9942_v24 = vadd.f32 %v4759_v49, %v4549_v47  ;;  %v5647_v15 = vpack.c.bf16 %v5615_v45, %v5614_v11 }
 0x531   :  { %v4288_v31 = vadd.f32 %v4237_v10, %v4026_v39 }
 0x535   :  { %v4499_v29 = vpop.f32.mrf.mxu2  ;;  %v4761_v63 = vpop.f32.mrf.mxu3 }
 0x536   :  { %v4550_v55 = vadd.f32 %v4499_v29, %v4288_v31  ;;  %v3978_v56 = vpop.f32.mrf.mxu0  ;;  %v4240_v58 = vpop.f32.mrf.mxu1  ;;  %v4831_v31 = vld [vmem:[#allocation2 + $0x7f] sm:$0xff] }
 0x537   :  { %v4027_v8 = vadd.f32 %v3978_v56, %v9753_v26 }
 0x538   :  { %v9945_v36 = vadd.f32 %v4761_v63, %v4550_v55  ;;  %v5355_v63 = vld [vmem:[#allocation2 + $0x81] sm:$0xff] }
 0x539   :  { %v4289_v17 = vadd.f32 %v4240_v58, %v4027_v8  ;;  %8045 = vmatmul.msk.bf16.gmra.mxu0 %vm1706_vm3, %v4861_v38  ;;  %8070 = vmatmul.msk.bf16.gmra.mxu1 %vm1706_vm3, %v5123_v53  ;;  %v4830_v58 = vld [vmem:[#allocation2 + $0x77] sm:$0xff]  ;;  %v5124_v38 = vpack.c.bf16 %v5093_v35, %v5092_v62 }
 0x53a   :  { %8095 = vmatmul.msk.bf16.gmra.mxu2 %vm1706_vm3, %v5385_v13  ;;  %8120 = vmatmul.msk.bf16.gmra.mxu3 %vm1706_vm3, %v5647_v15  ;;  %v4862_v8 = vpack.c.bf16 %v4831_v31, %v4830_v58  ;;  %v5354_v53 = vld [vmem:[#allocation2 + $0x79] sm:$0xff]  ;;  %v5095_v31 = vld [vmem:[#allocation2 + $0x90] sm:$0xff]  ;;  %v5094_v58 = vld [vmem:[#allocation2 + $0x88] sm:$0xff] }
 0x53b   :  { %v5386_v11 = vpack.c.bf16 %v5355_v63, %v5354_v53  ;;  %v5619_v63 = vld [vmem:[#allocation2 + $0x92] sm:$0xff] }
 0x53d   :  { %v4502_v21 = vpop.f32.mrf.mxu2  ;;  %v4764_v23 = vpop.f32.mrf.mxu3 }
 0x53e   :  { %v4551_v26 = vadd.f32 %v4502_v21, %v4289_v17  ;;  %v3980_v49 = vpop.f32.mrf.mxu0  ;;  %v4242_v47 = vpop.f32.mrf.mxu1 }
 0x53f   :  { %v4028_v27 = vadd.f32 %v3980_v49, %v9756_v9  ;;  %v5616_v9 = vld [vmem:[#allocation2 + $0x7a] sm:$0xff] }
 0x540   :  { %v9952_v10 = vadd.f32 %v4764_v23, %v4551_v26  ;;  %v5648_v13 = vpack.c.bf16 %v5617_v51, %v5616_v9 }
 0x541   :  { %v4290_v39 = vadd.f32 %v4242_v47, %v4028_v27 }
 0x545   :  { %v4504_v43 = vpop.f32.mrf.mxu2  ;;  %v4766_v29 = vpop.f32.mrf.mxu3 }
 0x546   :  { %v4552_v45 = vadd.f32 %v4504_v43, %v4290_v39  ;;  %v3983_v55 = vpop.f32.mrf.mxu0  ;;  %v4245_v56 = vpop.f32.mrf.mxu1  ;;  %v4833_v39 = vld [vmem:[#allocation2 + $0x8f] sm:$0xff] }
 0x547   :  { %v4029_v52 = vadd.f32 %v3983_v55, %v9763_v4 }
 0x548   :  { %v9955_v14 = vadd.f32 %v4766_v29, %v4552_v45  ;;  %v5357_v29 = vld [vmem:[#allocation2 + $0x91] sm:$0xff] }
 0x549   :  { %v4291_v15 = vadd.f32 %v4245_v56, %v4029_v52  ;;  %8046 = vmatmul.msk.bf16.gmra.mxu0 %vm1706_vm3, %v4862_v8  ;;  %8071 = vmatmul.msk.bf16.gmra.mxu1 %vm1706_vm3, %v5124_v38  ;;  %v4832_v56 = vld [vmem:[#allocation2 + $0x87] sm:$0xff]  ;;  %v5125_v8 = vpack.c.bf16 %v5095_v31, %v5094_v58 }
 0x54a   :  { %8096 = vmatmul.msk.bf16.gmra.mxu2 %vm1706_vm3, %v5386_v11  ;;  %8121 = vmatmul.msk.bf16.gmra.mxu3 %vm1706_vm3, %v5648_v13  ;;  %v4863_v52 = vpack.c.bf16 %v4833_v39, %v4832_v56  ;;  %v5356_v38 = vld [vmem:[#allocation2 + $0x89] sm:$0xff]  ;;  %v5097_v39 = vld [vmem:[#allocation2 + $0xa0] sm:$0xff]  ;;  %v5096_v56 = vld [vmem:[#allocation2 + $0x98] sm:$0xff] }
 0x54b   :  { %v5387_v9 = vpack.c.bf16 %v5357_v29, %v5356_v38  ;;  %v5621_v29 = vld [vmem:[#allocation2 + $0xa2] sm:$0xff] }
 0x54d   :  { %v4507_v17 = vpop.f32.mrf.mxu2  ;;  %v4769_v21 = vpop.f32.mrf.mxu3 }
 0x54e   :  { %v4553_v4 = vadd.f32 %v4507_v17, %v4291_v15  ;;  %v3985_v23 = vpop.f32.mrf.mxu0  ;;  %v4247_v26 = vpop.f32.mrf.mxu1 }
 0x54f   :  { %v4030_v49 = vadd.f32 %v3985_v23, %v9766_v2  ;;  %v5618_v2 = vld [vmem:[#allocation2 + $0x8a] sm:$0xff] }
 0x550   :  { %v9962_v47 = vadd.f32 %v4769_v21, %v4553_v4  ;;  %v5649_v11 = vpack.c.bf16 %v5619_v63, %v5618_v2 }
 0x551   :  { %v4292_v27 = vadd.f32 %v4247_v26, %v4030_v49 }
 0x555   :  { %v4509_v35 = vpop.f32.mrf.mxu2  ;;  %v4771_v43 = vpop.f32.mrf.mxu3 }
 0x556   :  { %v4554_v51 = vadd.f32 %v4509_v35, %v4292_v27  ;;  %v3988_v45 = vpop.f32.mrf.mxu0  ;;  %v4250_v55 = vpop.f32.mrf.mxu1  ;;  %v4835_v27 = vld [vmem:[#allocation2 + $0x9f] sm:$0xff] }
 0x557   :  { %v4031_v62 = vadd.f32 %v3988_v45, %v9773_v50 }
 0x558   :  { %v9965_v53 = vadd.f32 %v4771_v43, %v4554_v51  ;;  %v5359_v43 = vld [vmem:[#allocation2 + $0xa1] sm:$0xff] }
 0x559   :  { %v4293_v13 = vadd.f32 %v4250_v55, %v4031_v62  ;;  %8047 = vmatmul.msk.bf16.gmra.mxu0 %vm1706_vm3, %v4863_v52  ;;  %8072 = vmatmul.msk.bf16.gmra.mxu1 %vm1706_vm3, %v5125_v8  ;;  %v4834_v55 = vld [vmem:[#allocation2 + $0x97] sm:$0xff]  ;;  %v5126_v52 = vpack.c.bf16 %v5097_v39, %v5096_v56  ;;  %v5360_v56 = vld [vmem:[#allocation2 + $0xa9] sm:$0xff] }
 0x55a   :  { %8097 = vmatmul.msk.bf16.gmra.mxu2 %vm1706_vm3, %v5387_v9  ;;  %8122 = vmatmul.msk.bf16.gmra.mxu3 %vm1706_vm3, %v5649_v11  ;;  %v4864_v62 = vpack.c.bf16 %v4835_v27, %v4834_v55  ;;  %v5358_v8 = vld [vmem:[#allocation2 + $0x99] sm:$0xff]  ;;  %v5361_v39 = vld [vmem:[#allocation2 + $0xb1] sm:$0xff] }
 0x55b   :  { %v5388_v2 = vpack.c.bf16 %v5359_v43, %v5358_v8 }
 0x55d   :  { %v4512_v15 = vpop.f32.mrf.mxu2  ;;  %v4774_v17 = vpop.f32.mrf.mxu3 }
 0x55e   :  { %v4555_v50 = vadd.f32 %v4512_v15, %v4293_v13  ;;  %v3990_v21 = vpop.f32.mrf.mxu0  ;;  %v4252_v4 = vpop.f32.mrf.mxu1 }
 0x55f   :  { %v4032_v23 = vadd.f32 %v3990_v21, %v9776_v1  ;;  %v5620_v1 = vld [vmem:[#allocation2 + $0x9a] sm:$0xff] }
 0x560   :  { %v9972_v26 = vadd.f32 %v4774_v17, %v4555_v50  ;;  %v5650_v9 = vpack.c.bf16 %v5621_v29, %v5620_v1  ;;  %v4836_v29 = vld [vmem:[#allocation2 + $0xa7] sm:$0xff] }
 0x561   :  { %v4294_v49 = vadd.f32 %v4252_v4, %v4032_v23  ;;  %v4837_v4 = vld [vmem:[#allocation2 + $0xaf] sm:$0xff] }
 0x562   :  { %v5099_v23 = vld [vmem:[#allocation2 + $0xb0] sm:$0xff] }
 0x565   :  { %v4514_v31 = vpop.f32.mrf.mxu2  ;;  %v4776_v35 = vpop.f32.mrf.mxu3 }
 0x566   :  { %v4556_v63 = vadd.f32 %v4514_v31, %v4294_v49  ;;  %v3993_v51 = vpop.f32.mrf.mxu0  ;;  %v4255_v45 = vpop.f32.mrf.mxu1  ;;  %v5623_v31 = vld [vmem:[#allocation2 + $0xb2] sm:$0xff] }
 0x567   :  { %v4033_v58 = vadd.f32 %v3993_v51, %v9782_v59 }
 0x568   :  { %v9975_v38 = vadd.f32 %v4776_v35, %v4556_v63  ;;  %v5098_v63 = vld [vmem:[#allocation2 + $0xa8] sm:$0xff] }
 0x569   :  { %v4295_v11 = vadd.f32 %v4255_v45, %v4033_v58  ;;  %8048 = vmatmul.msk.bf16.gmra.mxu0 %vm1706_vm3, %v4864_v62  ;;  %8073 = vmatmul.msk.bf16.gmra.mxu1 %vm1706_vm3, %v5126_v52  ;;  %v4865_v45 = vpack.c.bf16 %v4837_v4, %v4836_v29  ;;  %v5127_v55 = vpack.c.bf16 %v5099_v23, %v5098_v63  ;;  %v5622_v58 = vld [vmem:[#allocation2 + $0xaa] sm:$0xff]  ;;  %v5101_v4 = vld [vmem:[#allocation2 + $0xc0] sm:$0xff]  ;;  %v4838_v29 = vld [vmem:[#allocation2 + $0xb7] sm:$0xff] }
 0x56a   :  { %8098 = vmatmul.msk.bf16.gmra.mxu2 %vm1706_vm3, %v5388_v2  ;;  %8123 = vmatmul.msk.bf16.gmra.mxu3 %vm1706_vm3, %v5650_v9  ;;  %v5389_v62 = vpack.c.bf16 %v5361_v39, %v5360_v56  ;;  %v5651_v52 = vpack.c.bf16 %v5623_v31, %v5622_v58  ;;  %v5625_v39 = vld [vmem:[#allocation2 + $0xc2] sm:$0xff]  ;;  %v5100_v63 = vld [vmem:[#allocation2 + $0xb8] sm:$0xff] }
 0x56b   :  { %v5624_v56 = vld [vmem:[#allocation2 + $0xba] sm:$0xff] }
 0x56d   :  { %v4517_v13 = vpop.f32.mrf.mxu2  ;;  %v4779_v15 = vpop.f32.mrf.mxu3 }
 0x56e   :  { %v4557_v59 = vadd.f32 %v4517_v13, %v4295_v11  ;;  %v3995_v17 = vpop.f32.mrf.mxu0  ;;  %v4257_v50 = vpop.f32.mrf.mxu1 }
 0x56f   :  { %v9992_v17 = vld [vmem:[%s10423_s4] ss:$0 sm:$0xff] }
 0x570   :  { %v9981_v21 = vadd.f32 %v4779_v15, %v4557_v59  ;;  %v4839_v50 = vld [vmem:[#allocation2 + $0xbf] sm:$0xff] }
 0x575   :  { %v4519_v49 = vpop.f32.mrf.mxu2  ;;  %v4781_v27 = vpop.f32.mrf.mxu3 }
 0x576   :  { %v4951_v35 = vpop.f32.mrf.mxu0  ;;  %v5213_v43 = vpop.f32.mrf.mxu1  ;;  %v5363_v27 = vld [vmem:[#allocation2 + $0xc1] sm:$0xff] }
 0x577   :  { %v5045_v51 = vadd.f32 %v4951_v35, %v9790_v12 }
 0x579   :  { %v5307_v8 = vadd.f32 %v5213_v43, %v5045_v51  ;;  %8049 = vmatmul.msk.bf16.gmra.mxu0 %vm1706_vm3, %v4865_v45  ;;  %8074 = vmatmul.msk.bf16.gmra.mxu1 %vm1706_vm3, %v5127_v55  ;;  %v4866_v51 = vpack.c.bf16 %v4839_v50, %v4838_v29  ;;  %v5128_v45 = vpack.c.bf16 %v5101_v4, %v5100_v63  ;;  %v5362_v55 = vld [vmem:[#allocation2 + $0xb9] sm:$0xff] }
 0x57a   :  { %8099 = vmatmul.msk.bf16.gmra.mxu2 %vm1706_vm3, %v5389_v62  ;;  %8124 = vmatmul.msk.bf16.gmra.mxu3 %vm1706_vm3, %v5651_v52  ;;  %v5390_v52 = vpack.c.bf16 %v5363_v27, %v5362_v55  ;;  %v4841_v27 = vld [vmem:[#allocation2 + $0xcf] sm:$0xff] }
 0x57b   :  { %v5627_v29 = vld [vmem:[#allocation2 + $0xd2] sm:$0xff]  ;;  %v5102_v55 = vld [vmem:[#allocation2 + $0xc8] sm:$0xff] }
 0x57d   :  { %v5475_v1 = vpop.f32.mrf.mxu2  ;;  %v5737_v2 = vpop.f32.mrf.mxu3 }
 0x57e   :  { %v5569_v9 = vadd.f32 %v5475_v1, %v5307_v8  ;;  %v4953_v11 = vpop.f32.mrf.mxu0  ;;  %v5215_v12 = vpop.f32.mrf.mxu1  ;;  %v5652_v8 = vpack.c.bf16 %v5625_v39, %v5624_v56  ;;  %v5103_v39 = vld [vmem:[#allocation2 + $0xd0] sm:$0xff] }
 0x57f   :  { %v5046_v13 = vadd.f32 %v4953_v11, %v9793_v48 }
 0x580   :  { %v5831_v15 = vadd.f32 %v5737_v2, %v5569_v9 }
 0x581   :  { %v5308_v59 = vadd.f32 %v5215_v12, %v5046_v13 }
 0x582   :  { %v5872_v58 = vadd.f32 %v9992_v17, %v5831_v15 }
 0x585   :  { %v5477_v23 = vpop.f32.mrf.mxu2  ;;  %v5739_v49 = vpop.f32.mrf.mxu3 }
 0x586   :  { %v5570_v31 = vadd.f32 %v5477_v23, %v5308_v59  ;;  %v4956_v35 = vpop.f32.mrf.mxu0  ;;  %v5218_v43 = vpop.f32.mrf.mxu1 }
 0x587   :  { %v5047_v48 = vadd.f32 %v4956_v35, %v9800_v3  ;;  %v5909_v3 = vmax.f32 %v5872_v58, 0.0 }
 0x588   :  { %v5832_v62 = vadd.f32 %v5739_v49, %v5570_v31 }
 0x589   :  { %v5309_v1 = vadd.f32 %v5218_v43, %v5047_v48  ;;  %8050 = vmatmul.msk.bf16.gmra.mxu0 %vm1706_vm3, %v4866_v51  ;;  %8075 = vmatmul.msk.bf16.gmra.mxu1 %vm1706_vm3, %v5128_v45  ;;  %v5365_v43 = vld [vmem:[#allocation2 + $0xd1] sm:$0xff]  ;;  %v4840_v45 = vld [vmem:[#allocation2 + $0xc7] sm:$0xff] }
 0x58a   :  { %v5873_v2 = vadd.f32 %v9992_v17, %v5832_v62  ;;  %8100 = vmatmul.msk.bf16.gmra.mxu2 %vm1706_vm3, %v5390_v52  ;;  %8125 = vmatmul.msk.bf16.gmra.mxu3 %vm1706_vm3, %v5652_v8  ;;  %v4867_v58 = vpack.c.bf16 %v4841_v27, %v4840_v45  ;;  %v5129_v62 = vpack.c.bf16 %v5103_v39, %v5102_v55  ;;  %v5364_v52 = vld [vmem:[#allocation2 + $0xc9] sm:$0xff] }
 0x58b   :  { %v5626_v8 = vld [vmem:[#allocation2 + $0xca] sm:$0xff] }
 0x58c   :  { %v5910_v9 = vmax.f32 %v5873_v2, 0.0  ;;  %v5391_v2 = vpack.c.bf16 %v5365_v43, %v5364_v52  ;;  %v5105_v43 = vld [vmem:[#allocation2 + $0xe0] sm:$0xff] }
 0x58d   :  { %v5480_v11 = vpop.f32.mrf.mxu2  ;;  %v5742_v12 = vpop.f32.mrf.mxu3 }
 0x58e   :  { %v5571_v13 = vadd.f32 %v5480_v11, %v5309_v1  ;;  %v4958_v15 = vpop.f32.mrf.mxu0  ;;  %v5220_v59 = vpop.f32.mrf.mxu1  ;;  %v10001_v50 = vpack.c.bf16 %v5910_v9, %v5909_v3  ;;  %v5653_v3 = vpack.c.bf16 %v5627_v29, %v5626_v8 }
 0x58f   :  { %v5048_v4 = vadd.f32 %v4958_v15, %v9803_v46 }
 0x590   :  { %v5833_v23 = vadd.f32 %v5742_v12, %v5571_v13 }
 0x591   :  { %v5310_v49 = vadd.f32 %v5220_v59, %v5048_v4 }
 0x592   :  { %v5874_v46 = vadd.f32 %v9992_v17, %v5833_v23 }
 0x595   :  { %v5482_v31 = vpop.f32.mrf.mxu2  ;;  %v5744_v35 = vpop.f32.mrf.mxu3 }
 0x596   :  { %v5572_v63 = vadd.f32 %v5482_v31, %v5310_v49  ;;  %v4961_v48 = vpop.f32.mrf.mxu0  ;;  %v5223_v51 = vpop.f32.mrf.mxu1 }
 0x597   :  { %v5049_v56 = vadd.f32 %v4961_v48, %v9810_v20  ;;  %v5911_v20 = vmax.f32 %v5874_v46, 0.0  ;;  %v5367_v48 = vld [vmem:[#allocation2 + $0xe1] sm:$0xff] }
 0x598   :  { %v5834_v1 = vadd.f32 %v5744_v35, %v5572_v63  ;;  %v4843_v35 = vld [vmem:[#allocation2 + $0xdf] sm:$0xff] }
 0x599   :  { %v5311_v9 = vadd.f32 %v5223_v51, %v5049_v56  ;;  %8051 = vmatmul.msk.bf16.gmra.mxu0 %vm1706_vm3, %v4867_v58  ;;  %8076 = vmatmul.msk.bf16.gmra.mxu1 %vm1706_vm3, %v5129_v62  ;;  %v5629_v51 = vld [vmem:[#allocation2 + $0xe2] sm:$0xff]  ;;  %v4842_v58 = vld [vmem:[#allocation2 + $0xd7] sm:$0xff] }
 0x59a   :  { %v5875_v11 = vadd.f32 %v9992_v17, %v5834_v1  ;;  %8101 = vmatmul.msk.bf16.gmra.mxu2 %vm1706_vm3, %v5391_v2  ;;  %8126 = vmatmul.msk.bf16.gmra.mxu3 %vm1706_vm3, %v5653_v3  ;;  %v5104_v62 = vld [vmem:[#allocation2 + $0xd8] sm:$0xff]  ;;  %v4868_v8 = vpack.c.bf16 %v4843_v35, %v4842_v58 }
 0x59b   :  { %v5130_v46 = vpack.c.bf16 %v5105_v43, %v5104_v62  ;;  %v5366_v1 = vld [vmem:[#allocation2 + $0xd9] sm:$0xff] }
 0x59c   :  { %v5912_v12 = vmax.f32 %v5875_v11, 0.0  ;;  %v5628_v2 = vld [vmem:[#allocation2 + $0xda] sm:$0xff] }
 0x59d   :  { %v5485_v13 = vpop.f32.mrf.mxu2  ;;  %v5747_v15 = vpop.f32.mrf.mxu3  ;;  %v5654_v11 = vpack.c.bf16 %v5629_v51, %v5628_v2 }
 0x59e   :  { %v5573_v59 = vadd.f32 %v5485_v13, %v5311_v9  ;;  %v4963_v4 = vpop.f32.mrf.mxu0  ;;  %v5225_v23 = vpop.f32.mrf.mxu1  ;;  %v10011_v49 = vpack.c.bf16 %v5912_v12, %v5911_v20  ;;  %v5392_v9 = vpack.c.bf16 %v5367_v48, %v5366_v1 }
 0x59f   :  { %v5050_v27 = vadd.f32 %v4963_v4, %v9813_v7 }
 0x5a0   :  { %v5835_v39 = vadd.f32 %v5747_v15, %v5573_v59 }
 0x5a1   :  { %v5312_v31 = vadd.f32 %v5225_v23, %v5050_v27 }
 0x5a2   :  { %v5876_v7 = vadd.f32 %v9992_v17, %v5835_v39 }
 0x5a5   :  { %v5487_v29 = vpop.f32.mrf.mxu2  ;;  %v5749_v63 = vpop.f32.mrf.mxu3 }
 0x5a6   :  { %v5574_v45 = vadd.f32 %v5487_v29, %v5312_v31  ;;  %v4966_v55 = vpop.f32.mrf.mxu0  ;;  %v5228_v56 = vpop.f32.mrf.mxu1  ;;  %v4845_v29 = vld [vmem:[#allocation2 + $0xef] sm:$0xff] }
 0x5a7   :  { %v5051_v52 = vadd.f32 %v4966_v55, %v9820_v54  ;;  %v5913_v54 = vmax.f32 %v5876_v7, 0.0  ;;  %v5631_v55 = vld [vmem:[#allocation2 + $0xf2] sm:$0xff]  ;;  %v5368_v7 = vld [vmem:[#allocation2 + $0xe9] sm:$0xff] }
 0x5a8   :  { %v5836_v3 = vadd.f32 %v5749_v63, %v5574_v45  ;;  %v5107_v63 = vld [vmem:[#allocation2 + $0xf0] sm:$0xff] }
 0x5a9   :  { %v5313_v20 = vadd.f32 %v5228_v56, %v5051_v52  ;;  %8052 = vmatmul.msk.bf16.gmra.mxu0 %vm1706_vm3, %v4868_v8  ;;  %8077 = vmatmul.msk.bf16.gmra.mxu1 %vm1706_vm3, %v5130_v46  ;;  %v5369_v45 = vld [vmem:[#allocation2 + $0xf1] sm:$0xff]  ;;  %v4844_v52 = vld [vmem:[#allocation2 + $0xe7] sm:$0xff] }
 0x5aa   :  { %v5877_v12 = vadd.f32 %v9992_v17, %v5836_v3  ;;  %8102 = vmatmul.msk.bf16.gmra.mxu2 %vm1706_vm3, %v5392_v9  ;;  %8127 = vmatmul.msk.bf16.gmra.mxu3 %vm1706_vm3, %v5654_v11  ;;  %v5106_v8 = vld [vmem:[#allocation2 + $0xe8] sm:$0xff]  ;;  %v4869_v1 = vpack.c.bf16 %v4845_v29, %v4844_v52  ;;  %v5393_v11 = vpack.c.bf16 %v5369_v45, %v5368_v7  ;;  %v5370_v7 = vld [vmem:[#allocation2 + $0xf9] sm:$0xff] }
 0x5ab   :  { %v5131_v2 = vpack.c.bf16 %v5107_v63, %v5106_v8  ;;  %v5630_v3 = vld [vmem:[#allocation2 + $0xea] sm:$0xff]  ;;  %v4847_v63 = vld [vmem:[#allocation2 + $0xff] sm:$0xff]  ;;  %v4846_v8 = vld [vmem:[#allocation2 + $0xf7] sm:$0xff] }
 0x5ac   :  { %v5914_v13 = vmax.f32 %v5877_v12, 0.0 }
 0x5ad   :  { %v5490_v15 = vpop.f32.mrf.mxu2  ;;  %v5752_v59 = vpop.f32.mrf.mxu3 }
 0x5ae   :  { %v5575_v4 = vadd.f32 %v5490_v15, %v5313_v20  ;;  %v4968_v23 = vpop.f32.mrf.mxu0  ;;  %v5230_v27 = vpop.f32.mrf.mxu1  ;;  %v10021_v39 = vpack.c.bf16 %v5914_v13, %v5913_v54  ;;  %v5655_v20 = vpack.c.bf16 %v5631_v55, %v5630_v3  ;;  %v5371_v55 = vld [vmem:[#allocation2 + $0x101] sm:$0xff] }
 0x5af   :  { %v5052_v31 = vadd.f32 %v4968_v23, %v9823_v6  ;;  %v5632_v3 = vld [vmem:[#allocation2 + $0xfa] sm:$0xff] }
 0x5b0   :  { %v5837_v35 = vadd.f32 %v5752_v59, %v5575_v4 }
 0x5b1   :  { %v5314_v43 = vadd.f32 %v5230_v27, %v5052_v31 }
 0x5b2   :  { %v5878_v6 = vadd.f32 %v9992_v17, %v5837_v35 }
 0x5b5   :  { %v5492_v48 = vpop.f32.mrf.mxu2  ;;  %v5754_v51 = vpop.f32.mrf.mxu3 }
 0x5b6   :  { %v5576_v56 = vadd.f32 %v5492_v48, %v5314_v43  ;;  %v4971_v58 = vpop.f32.mrf.mxu0  ;;  %v5233_v62 = vpop.f32.mrf.mxu1  ;;  %v5109_v48 = vld [vmem:[#allocation2 + $0x100] sm:$0xff] }
 0x5b7   :  { %v5053_v46 = vadd.f32 %v4971_v58, %v9830_v0  ;;  %v5915_v0 = vmax.f32 %v5878_v6, 0.0 }
 0x5b8   :  { %v5838_v9 = vadd.f32 %v5754_v51, %v5576_v56  ;;  %v5633_v56 = vld [vmem:[#allocation2 + $0x102] sm:$0xff] }
 0x5b9   :  { %v5315_v12 = vadd.f32 %v5233_v62, %v5053_v46  ;;  %8053 = vmatmul.msk.bf16.gmra.mxu0 %vm1706_vm3, %v4869_v1  ;;  %8078 = vmatmul.msk.bf16.gmra.mxu1 %vm1706_vm3, %v5131_v2  ;;  %v5108_v46 = vld [vmem:[#allocation2 + $0xf8] sm:$0xff]  ;;  %v4870_v1 = vpack.c.bf16 %v4847_v63, %v4846_v8 }
 0x5ba   :  { %v5879_v54 = vadd.f32 %v9992_v17, %v5838_v9  ;;  %8103 = vmatmul.msk.bf16.gmra.mxu2 %vm1706_vm3, %v5393_v11  ;;  %8128 = vmatmul.msk.bf16.gmra.mxu3 %vm1706_vm3, %v5655_v20  ;;  %v5132_v2 = vpack.c.bf16 %v5109_v48, %v5108_v46  ;;  %v5394_v9 = vpack.c.bf16 %v5371_v55, %v5370_v7  ;;  %v4849_v48 = vld [vmem:[#allocation2 + $0x10f] sm:$0xff]  ;;  %v4848_v46 = vld [vmem:[#allocation2 + $0x107] sm:$0xff] }
 0x5bb   :  { %v5656_v11 = vpack.c.bf16 %v5633_v56, %v5632_v3  ;;  %v5373_v55 = vld [vmem:[#allocation2 + $0x111] sm:$0xff]  ;;  %v5372_v7 = vld [vmem:[#allocation2 + $0x109] sm:$0xff] }
 0x5bc   :  { %v5916_v13 = vmax.f32 %v5879_v54, 0.0  ;;  %v5635_v56 = vld [vmem:[#allocation2 + $0x112] sm:$0xff]  ;;  %v5634_v3 = vld [vmem:[#allocation2 + $0x10a] sm:$0xff] }
 0x5bd   :  { %v5495_v15 = vpop.f32.mrf.mxu2  ;;  %v5757_v59 = vpop.f32.mrf.mxu3 }
 0x5be   :  { %v5577_v4 = vadd.f32 %v5495_v15, %v5315_v12  ;;  %v4973_v23 = vpop.f32.mrf.mxu0  ;;  %v5235_v27 = vpop.f32.mrf.mxu1  ;;  %v10031_v31 = vpack.c.bf16 %v5916_v13, %v5915_v0 }
 0x5bf   :  { %v5054_v35 = vadd.f32 %v4973_v23, %v9833_v61 }
 0x5c0   :  { %v5839_v43 = vadd.f32 %v5757_v59, %v5577_v4 }
 0x5c1   :  { %v5316_v29 = vadd.f32 %v5235_v27, %v5054_v35 }
 0x5c2   :  { %v5880_v6 = vadd.f32 %v9992_v17, %v5839_v43 }
 0x5c4   :  { %v5917_v54 = vmax.f32 %v5880_v6, 0.0 }
 0x5c5   :  { %v5497_v51 = vpop.f32.mrf.mxu2  ;;  %v5759_v45 = vpop.f32.mrf.mxu3 }
 0x5c6   :  { %v5578_v58 = vadd.f32 %v5497_v51, %v5316_v29  ;;  %v4976_v62 = vpop.f32.mrf.mxu0  ;;  %v5238_v52 = vpop.f32.mrf.mxu1 }
 0x5c7   :  { %v5055_v12 = vadd.f32 %v4976_v62, %v9840_v16  ;;  %v5111_v16 = vld [vmem:[#allocation2 + $0x110] sm:$0xff] }
 0x5c8   :  { %v5840_v61 = vadd.f32 %v5759_v45, %v5578_v58 }
 0x5c9   :  { %8054 = vmatmul.msk.bf16.gmra.mxu0 %vm1706_vm3, %v4870_v1  ;;  %8079 = vmatmul.msk.bf16.gmra.mxu1 %vm1706_vm3, %v5132_v2  ;;  %v5317_v59 = vadd.f32 %v5238_v52, %v5055_v12  ;;  %v5110_v52 = vld [vmem:[#allocation2 + $0x108] sm:$0xff]  ;;  %v4871_v1 = vpack.c.bf16 %v4849_v48, %v4848_v46  ;;  %v4851_v48 = vld [vmem:[#allocation2 + $0x11f] sm:$0xff]  ;;  %v4850_v46 = vld [vmem:[#allocation2 + $0x117] sm:$0xff] }
 0x5ca   :  { %v5881_v20 = vadd.f32 %v9992_v17, %v5840_v61  ;;  %8104 = vmatmul.msk.bf16.gmra.mxu2 %vm1706_vm3, %v5394_v9  ;;  %8129 = vmatmul.msk.bf16.gmra.mxu3 %vm1706_vm3, %v5656_v11  ;;  %v5133_v2 = vpack.c.bf16 %v5111_v16, %v5110_v52  ;;  %v5395_v61 = vpack.c.bf16 %v5373_v55, %v5372_v7  ;;  %v5637_v55 = vld [vmem:[#allocation2 + $0x122] sm:$0xff]  ;;  %v5636_v7 = vld [vmem:[#allocation2 + $0x11a] sm:$0xff] }
 0x5cb   :  { %v5657_v9 = vpack.c.bf16 %v5635_v56, %v5634_v3  ;;  %v4872_v52 = vpack.c.bf16 %v4851_v48, %v4850_v46  ;;  %v5115_v48 = vld [vmem:[#allocation2 + $0x130] sm:$0xff]  ;;  %v5114_v46 = vld [vmem:[#allocation2 + $0x128] sm:$0xff] }
 0x5cc   :  { %v5918_v0 = vmax.f32 %v5881_v20, 0.0 }
 0x5cd   :  { %v5500_v13 = vpop.f32.mrf.mxu2  ;;  %v5762_v15 = vpop.f32.mrf.mxu3 }
 0x5ce   :  { %v4978_v4 = vpop.f32.mrf.mxu0  ;;  %v5240_v23 = vpop.f32.mrf.mxu1  ;;  %v10041_v27 = vpack.c.bf16 %v5918_v0, %v5917_v54  ;;  %v5579_v35 = vadd.f32 %v5500_v13, %v5317_v59 }
 0x5cf   :  { %v5056_v43 = vadd.f32 %v4978_v4, %v9843_v30 }
 0x5d0   :  { %v5841_v29 = vadd.f32 %v5762_v15, %v5579_v35 }
 0x5d1   :  { %v5318_v63 = vadd.f32 %v5240_v23, %v5056_v43 }
 0x5d2   :  { %v5882_v6 = vadd.f32 %v9992_v17, %v5841_v29 }
 0x5d4   :  { %v5919_v12 = vmax.f32 %v5882_v6, 0.0 }
 0x5d5   :  { %v5502_v51 = vpop.f32.mrf.mxu2  ;;  %v5764_v45 = vpop.f32.mrf.mxu3 }
 0x5d6   :  { %v5580_v58 = vadd.f32 %v5502_v51, %v5318_v63  ;;  %v4981_v62 = vpop.f32.mrf.mxu0  ;;  %v5243_v8 = vpop.f32.mrf.mxu1 }
 0x5d7   :  { %v5057_v20 = vadd.f32 %v4981_v62, %v9850_v42  ;;  %v5113_v42 = vld [vmem:[#allocation2 + $0x120] sm:$0xff] }
 0x5d8   :  { %v5842_v30 = vadd.f32 %v5764_v45, %v5580_v58  ;;  %v5375_v45 = vld [vmem:[#allocation2 + $0x121] sm:$0xff] }
 0x5d9   :  { %8055 = vmatmul.msk.bf16.gmra.mxu0 %vm1706_vm3, %v4871_v1  ;;  %8080 = vmatmul.msk.bf16.gmra.mxu1 %vm1706_vm3, %v5133_v2  ;;  %v5319_v15 = vadd.f32 %v5243_v8, %v5057_v20  ;;  %v5112_v8 = vld [vmem:[#allocation2 + $0x118] sm:$0xff] }
 0x5da   :  { %v5883_v11 = vadd.f32 %v9992_v17, %v5842_v30  ;;  %8105 = vmatmul.msk.bf16.gmra.mxu2 %vm1706_vm3, %v5395_v61  ;;  %8130 = vmatmul.msk.bf16.gmra.mxu3 %vm1706_vm3, %v5657_v9  ;;  %v5134_v1 = vpack.c.bf16 %v5113_v42, %v5112_v8  ;;  %v5374_v2 = vld [vmem:[#allocation2 + $0x119] sm:$0xff]  ;;  %v5658_v30 = vpack.c.bf16 %v5637_v55, %v5636_v7 }
 0x5db   :  { %v5396_v6 = vpack.c.bf16 %v5375_v45, %v5374_v2  ;;  %v5638_v2 = vld [vmem:[#allocation2 + $0x12a] sm:$0xff] }
 0x5dc   :  { %v5920_v54 = vmax.f32 %v5883_v11, 0.0 }
 0x5dd   :  { %v5505_v0 = vpop.f32.mrf.mxu2  ;;  %v5767_v13 = vpop.f32.mrf.mxu3 }
 0x5de   :  { %v4983_v59 = vpop.f32.mrf.mxu0  ;;  %v5245_v4 = vpop.f32.mrf.mxu1  ;;  %v10051_v23 = vpack.c.bf16 %v5920_v54, %v5919_v12  ;;  %v5581_v35 = vadd.f32 %v5505_v0, %v5319_v15 }
 0x5df   :  { %v5058_v43 = vadd.f32 %v4983_v59, %v9853_v60 }
 0x5e0   :  { %v5843_v29 = vadd.f32 %v5767_v13, %v5581_v35 }
 0x5e1   :  { %v5320_v63 = vadd.f32 %v5245_v4, %v5058_v43 }
 0x5e2   :  { %v5884_v3 = vadd.f32 %v9992_v17, %v5843_v29 }
 0x5e4   :  { %v5921_v11 = vmax.f32 %v5884_v3, 0.0 }
 0x5e5   :  { %v5507_v16 = vpop.f32.mrf.mxu2  ;;  %v5769_v51 = vpop.f32.mrf.mxu3 }
 0x5e6   :  { %v5582_v56 = vadd.f32 %v5507_v16, %v5320_v63  ;;  %v4986_v58 = vpop.f32.mrf.mxu0  ;;  %v5248_v62 = vpop.f32.mrf.mxu1  ;;  %v4853_v63 = vld [vmem:[#allocation2 + $0x12f] sm:$0xff] }
 0x5e7   :  { %v5059_v9 = vadd.f32 %v4986_v58, %v9860_v5  ;;  %v5377_v16 = vld [vmem:[#allocation2 + $0x131] sm:$0xff]  ;;  %v4852_v58 = vld [vmem:[#allocation2 + $0x127] sm:$0xff] }
 0x5e8   :  { %v5844_v60 = vadd.f32 %v5769_v51, %v5582_v56  ;;  %v5639_v51 = vld [vmem:[#allocation2 + $0x132] sm:$0xff]  ;;  %v4873_v8 = vpack.c.bf16 %v4853_v63, %v4852_v58 }
 0x5e9   :  { %8056 = vmatmul.msk.bf16.gmra.mxu0 %vm1706_vm3, %v4872_v52  ;;  %8081 = vmatmul.msk.bf16.gmra.mxu1 %vm1706_vm3, %v5134_v1  ;;  %v5321_v0 = vadd.f32 %v5248_v62, %v5059_v9  ;;  %v5135_v52 = vpack.c.bf16 %v5115_v48, %v5114_v46  ;;  %v5376_v1 = vld [vmem:[#allocation2 + $0x129] sm:$0xff]  ;;  %v5379_v48 = vld [vmem:[#allocation2 + $0x141] sm:$0xff] }
 0x5ea   :  { %v5885_v61 = vadd.f32 %v9992_v17, %v5844_v60  ;;  %8106 = vmatmul.msk.bf16.gmra.mxu2 %vm1706_vm3, %v5396_v6  ;;  %8131 = vmatmul.msk.bf16.gmra.mxu3 %vm1706_vm3, %v5658_v30  ;;  %v5397_v3 = vpack.c.bf16 %v5377_v16, %v5376_v1  ;;  %v5659_v60 = vpack.c.bf16 %v5639_v51, %v5638_v2 }
 0x5ec   :  { %v5922_v20 = vmax.f32 %v5885_v61, 0.0 }
 0x5ed   :  { %v5510_v12 = vpop.f32.mrf.mxu2  ;;  %v5772_v54 = vpop.f32.mrf.mxu3 }
 0x5ee   :  { %v4988_v13 = vpop.f32.mrf.mxu0  ;;  %v5250_v15 = vpop.f32.mrf.mxu1  ;;  %v5952_v59 = vpack.c.bf16 %v5922_v20, %v5921_v11  ;;  %v5583_v4 = vadd.f32 %v5510_v12, %v5321_v0 }
 0x5ef   :  { %v5060_v35 = vadd.f32 %v4988_v13, %v9863_v19 }
 0x5f0   :  { %v5845_v43 = vadd.f32 %v5772_v54, %v5583_v4 }
 0x5f1   :  { %v5322_v29 = vadd.f32 %v5250_v15, %v5060_v35  ;;  %v4855_v35 = vld [vmem:[#allocation2 + $0x13f] sm:$0xff] }
 0x5f2   :  { %v5886_v19 = vadd.f32 %v9992_v17, %v5845_v43  ;;  %v5117_v43 = vld [vmem:[#allocation2 + $0x140] sm:$0xff] }
 0x5f5   :  { %v5512_v5 = vpop.f32.mrf.mxu2  ;;  %v5774_v42 = vpop.f32.mrf.mxu3 }
 0x5f6   :  { %v5584_v45 = vadd.f32 %v5512_v5, %v5322_v29  ;;  %v4991_v55 = vpop.f32.mrf.mxu0  ;;  %v5253_v56 = vpop.f32.mrf.mxu1  ;;  %v5641_v5 = vld [vmem:[#allocation2 + $0x142] sm:$0xff] }
 0x5f7   :  { %v5061_v62 = vadd.f32 %v4991_v55, %v9870_v34  ;;  %v5923_v34 = vmax.f32 %v5886_v19, 0.0  ;;  %v5116_v55 = vld [vmem:[#allocation2 + $0x138] sm:$0xff] }
 0x5f8   :  { %v5846_v7 = vadd.f32 %v5774_v42, %v5584_v45  ;;  %v4854_v45 = vld [vmem:[#allocation2 + $0x137] sm:$0xff]  ;;  %v5136_v46 = vpack.c.bf16 %v5117_v43, %v5116_v55 }
 0x5f9   :  { %v5323_v6 = vadd.f32 %v5253_v56, %v5061_v62  ;;  %8057 = vmatmul.msk.bf16.gmra.mxu0 %vm1706_vm3, %v4873_v8  ;;  %8082 = vmatmul.msk.bf16.gmra.mxu1 %vm1706_vm3, %v5135_v52  ;;  %v4874_v58 = vpack.c.bf16 %v4855_v35, %v4854_v45  ;;  %v5378_v62 = vld [vmem:[#allocation2 + $0x139] sm:$0xff] }
 0x5fa   :  { %v5887_v30 = vadd.f32 %v9992_v17, %v5846_v7  ;;  %8107 = vmatmul.msk.bf16.gmra.mxu2 %vm1706_vm3, %v5397_v3  ;;  %8132 = vmatmul.msk.bf16.gmra.mxu3 %vm1706_vm3, %v5659_v60  ;;  %v5398_v52 = vpack.c.bf16 %v5379_v48, %v5378_v62 }
 0x5fc   :  { %v5924_v61 = vmax.f32 %v5887_v30, 0.0 }
 0x5fd   :  { %v5515_v9 = vpop.f32.mrf.mxu2  ;;  %v5777_v11 = vpop.f32.mrf.mxu3 }
 0x5fe   :  { %v5953_v20 = vpack.c.bf16 %v5924_v61, %v5923_v34  ;;  %v5585_v12 = vadd.f32 %v5515_v9, %v5323_v6  ;;  %v4993_v54 = vpop.f32.mrf.mxu0  ;;  %v5255_v0 = vpop.f32.mrf.mxu1 }
 0x5ff   :  { %v5062_v15 = vadd.f32 %v4993_v54, %v9885_v41  ;;  %v5640_v41 = vld [vmem:[#allocation2 + $0x13a] sm:$0xff] }
 0x600   :  { %v5847_v13 = vadd.f32 %v5777_v11, %v5585_v12  ;;  %6050 = vmatpush.bf16.msrb.mxu0 %v5953_v20  ;;  %v5660_v1 = vpack.c.bf16 %v5641_v5, %v5640_v41  ;;  %v4856_v20 = vld [vmem:[#allocation2 + $0x147] sm:$0xff] }
 0x601   :  { %v5324_v4 = vadd.f32 %v5255_v0, %v5062_v15  ;;  %v5118_v12 = vld [vmem:[#allocation2 + $0x148] sm:$0xff] }
 0x602   :  { %v5888_v8 = vadd.f32 %v9992_v17, %v5847_v13  ;;  %v5642_v13 = vld [vmem:[#allocation2 + $0x14a] sm:$0xff] }
 0x604   :  { %6051 = vmatpush.bf16.msrb.mxu0 %v5952_v59 }
 0x605   :  { %v5517_v29 = vpop.f32.mrf.mxu2  ;;  %v5779_v63 = vpop.f32.mrf.mxu3 }
 0x606   :  { %v5586_v42 = vadd.f32 %v5517_v29, %v5324_v4  ;;  %v4996_v16 = vpop.f32.mrf.mxu0  ;;  %v5258_v51 = vpop.f32.mrf.mxu1  ;;  %v4875_v29 = vpack.c.bf16 %v4856_v20, %v4856_v20 }
 0x607   :  { %v5063_v56 = vadd.f32 %v4996_v16, %v9892_v57  ;;  %v5925_v57 = vmax.f32 %v5888_v8, 0.0 }
 0x608   :  { %v5848_v59 = vadd.f32 %v5779_v63, %v5586_v42  ;;  %6052 = vmatpush.bf16.msrb.mxu0 %v10051_v23  ;;  %v5137_v63 = vpack.c.bf16 %v5118_v12, %v5118_v12 }
 0x609   :  { %v5325_v2 = vadd.f32 %v5258_v51, %v5063_v56  ;;  %8058 = vmatmul.msk.bf16.gmra.mxu0 %vm1706_vm3, %v4874_v58  ;;  %8083 = vmatmul.msk.bf16.gmra.mxu1 %vm1706_vm3, %v5136_v46 }
 0x60a   :  { %v5889_v19 = vadd.f32 %v9992_v17, %v5848_v59  ;;  %8108 = vmatmul.msk.bf16.gmra.mxu2 %vm1706_vm3, %v5398_v52  ;;  %8133 = vmatmul.msk.bf16.gmra.mxu3 %vm1706_vm3, %v5660_v1 }
 0x60c   :  { %v5926_v7 = vmax.f32 %v5889_v19, 0.0  ;;  %6053 = vmatpush.bf16.msrb.mxu0 %v10041_v27  ;;  %v5380_v27 = vld [vmem:[#allocation2 + $0x149] sm:$0xff] }
 0x60d   :  { %v5520_v3 = vpop.f32.mrf.mxu2  ;;  %v5782_v60 = vpop.f32.mrf.mxu3 }
 0x60e   :  { %v5587_v23 = vadd.f32 %v5520_v3, %v5325_v2  ;;  %v4998_v6 = vpop.f32.mrf.mxu0  ;;  %v5260_v30 = vpop.f32.mrf.mxu1  ;;  %v10079_v34 = vpack.c.bf16 %v5926_v7, %v5925_v57 }
 0x60f   :  { %v5064_v9 = vadd.f32 %v4998_v6, %v9895_v18 }
 0x610   :  { %v5849_v61 = vadd.f32 %v5782_v60, %v5587_v23  ;;  %6054 = vmatpush.bf16.msrb.mxu0 %v10031_v31  ;;  %v5399_v31 = vpack.c.bf16 %v5380_v27, %v5380_v27 }
 0x611   :  { %v5326_v11 = vadd.f32 %v5260_v30, %v5064_v9 }
 0x612   :  { %v5890_v18 = vadd.f32 %v9992_v17, %v5849_v61 }
 0x614   :  { %6055 = vmatpush.bf16.msrb.mxu0 %v10021_v39  ;;  %v5661_v39 = vpack.c.bf16 %v5642_v13, %v5642_v13 }
 0x615   :  { %v5522_v54 = vpop.f32.mrf.mxu2  ;;  %v5784_v0 = vpop.f32.mrf.mxu3 }
 0x616   :  { %v5588_v15 = vadd.f32 %v5522_v54, %v5326_v11  ;;  %v5001_v4 = vpop.f32.mrf.mxu0  ;;  %v5263_v35 = vpop.f32.mrf.mxu1 }
 0x617   :  { %v5065_v43 = vadd.f32 %v5001_v4, %v9902_v44  ;;  %v5927_v44 = vmax.f32 %v5890_v18, 0.0 }
 0x618   :  { %v5850_v48 = vadd.f32 %v5784_v0, %v5588_v15  ;;  %6056 = vmatpush.bf16.msrb.mxu0 %v10011_v49 }
 0x619   :  { %v5327_v5 = vadd.f32 %v5263_v35, %v5065_v43  ;;  %8059 = vmatmul.msk.bf16.gmra.mxu0 %vm1706_vm3, %v4875_v29  ;;  %8084 = vmatmul.msk.bf16.gmra.mxu1 %vm1706_vm3, %v5137_v63 }
 0x61a   :  { %v5891_v42 = vadd.f32 %v9992_v17, %v5850_v48  ;;  %8109 = vmatmul.msk.bf16.gmra.mxu2 %vm1706_vm3, %v5399_v31  ;;  %8134 = vmatmul.msk.bf16.gmra.mxu3 %vm1706_vm3, %v5661_v39 }
 0x61c   :  { %v5928_v16 = vmax.f32 %v5891_v42, 0.0  ;;  %6057 = vmatpush.bf16.msrb.mxu0 %v10001_v50 }
 0x61d   :  { %v5525_v51 = vpop.f32.mrf.mxu2  ;;  %v5787_v45 = vpop.f32.mrf.mxu3 }
 0x61e   :  { %v5589_v49 = vadd.f32 %v5525_v51, %v5327_v5  ;;  %v5003_v55 = vpop.f32.mrf.mxu0  ;;  %v5265_v56 = vpop.f32.mrf.mxu1  ;;  %v10093_v58 = vpack.c.bf16 %v5928_v16, %v5927_v44 }
 0x61f   :  { %v5066_v62 = vadd.f32 %v5003_v55, %v9905_v28 }
 0x620   :  { %v5851_v46 = vadd.f32 %v5787_v45, %v5589_v49 }
 0x621   :  { %v5328_v41 = vadd.f32 %v5265_v56, %v5066_v62 }
 0x622   :  { %v5892_v50 = vadd.f32 %v9992_v17, %v5851_v46 }
 0x624   :  { %v5929_v60 = vmax.f32 %v5892_v50, 0.0 }
 0x625   :  { %v5527_v8 = vpop.f32.mrf.mxu2  ;;  %v5789_v59 = vpop.f32.mrf.mxu3 }
 0x626   :  { %v5590_v52 = vadd.f32 %v5527_v8, %v5328_v41  ;;  %v5006_v1 = vpop.f32.mrf.mxu0  ;;  %v5268_v2 = vpop.f32.mrf.mxu1 }
 0x627   :  { %v5067_v19 = vadd.f32 %v5006_v1, %v9912_v33 }
 0x628   :  { %v5852_v57 = vadd.f32 %v5789_v59, %v5590_v52 }
 0x629   :  { %v5329_v7 = vadd.f32 %v5268_v2, %v5067_v19 }
 0x62a   :  { %v5893_v3 = vadd.f32 %v9992_v17, %v5852_v57 }
 0x62c   :  { %v5930_v23 = vmax.f32 %v5893_v3, 0.0 }
 0x62d   :  { %v5530_v6 = vpop.f32.mrf.mxu2  ;;  %v5792_v30 = vpop.f32.mrf.mxu3 }
 0x62e   :  { %v5591_v61 = vadd.f32 %v5530_v6, %v5329_v7  ;;  %v5008_v28 = vpop.f32.mrf.mxu0  ;;  %v5270_v9 = vpop.f32.mrf.mxu1  ;;  %v10099_v11 = vpack.c.bf16 %v5930_v23, %v5929_v60 }
 0x62f   :  { %v5068_v12 = vadd.f32 %v5008_v28, %v9915_v22 }
 0x630   :  { %v5853_v20 = vadd.f32 %v5792_v30, %v5591_v61 }
 0x631   :  { %v5330_v54 = vadd.f32 %v5270_v9, %v5068_v12 }
 0x632   :  { %v5894_v35 = vadd.f32 %v9992_v17, %v5853_v20 }
 0x634   :  { %v5931_v18 = vmax.f32 %v5894_v35, 0.0 }
 0x635   :  { %v5532_v33 = vpop.f32.mrf.mxu2  ;;  %v5794_v0 = vpop.f32.mrf.mxu3 }
 0x636   :  { %v5592_v27 = vadd.f32 %v5532_v33, %v5330_v54  ;;  %v5011_v13 = vpop.f32.mrf.mxu0  ;;  %v5273_v15 = vpop.f32.mrf.mxu1 }
 0x637   :  { %v5069_v4 = vadd.f32 %v5011_v13, %v9922_v32 }
 0x638   :  { %v5854_v43 = vadd.f32 %v5794_v0, %v5592_v27 }
 0x639   :  { %v5331_v29 = vadd.f32 %v5273_v15, %v5069_v4 }
 0x63a   :  { %v5895_v63 = vadd.f32 %v9992_v17, %v5854_v43 }
 0x63c   :  { %v5932_v48 = vmax.f32 %v5895_v63, 0.0 }
 0x63d   :  { %v5535_v31 = vpop.f32.mrf.mxu2  ;;  %v5797_v39 = vpop.f32.mrf.mxu3 }
 0x63e   :  { %v5593_v5 = vadd.f32 %v5535_v31, %v5331_v29  ;;  %v5013_v22 = vpop.f32.mrf.mxu0  ;;  %v5275_v42 = vpop.f32.mrf.mxu1  ;;  %v10105_v44 = vpack.c.bf16 %v5932_v48, %v5931_v18 }
 0x63f   :  { %v5070_v51 = vadd.f32 %v5013_v22, %v9925_v40 }
 0x640   :  { %v5855_v16 = vadd.f32 %v5797_v39, %v5593_v5 }
 0x641   :  { %v5332_v45 = vadd.f32 %v5275_v42, %v5070_v51 }
 0x642   :  { %v5896_v62 = vadd.f32 %v9992_v17, %v5855_v16 }
 0x644   :  { %v5933_v52 = vmax.f32 %v5896_v62, 0.0 }
 0x645   :  { %v5537_v32 = vpop.f32.mrf.mxu2  ;;  %v5799_v49 = vpop.f32.mrf.mxu3 }
 0x646   :  { %v5594_v55 = vadd.f32 %v5537_v32, %v5332_v45  ;;  %v5016_v56 = vpop.f32.mrf.mxu0  ;;  %v5278_v46 = vpop.f32.mrf.mxu1 }
 0x647   :  { %v5071_v59 = vadd.f32 %v5016_v56, %v9932_v37 }
 0x648   :  { %v5856_v41 = vadd.f32 %v5799_v49, %v5594_v55 }
 0x649   :  { %v5333_v50 = vadd.f32 %v5278_v46, %v5071_v59 }
 0x64a   :  { %v5897_v8 = vadd.f32 %v9992_v17, %v5856_v41 }
 0x64c   :  { %v5934_v1 = vmax.f32 %v5897_v8, 0.0 }
 0x64d   :  { %v5540_v2 = vpop.f32.mrf.mxu2  ;;  %v5802_v19 = vpop.f32.mrf.mxu3 }
 0x64e   :  { %v5018_v57 = vpop.f32.mrf.mxu0  ;;  %v5280_v40 = vpop.f32.mrf.mxu1  ;;  %v10111_v7 = vpack.c.bf16 %v5934_v1, %v5933_v52  ;;  %v5595_v3 = vadd.f32 %v5540_v2, %v5333_v50 }
 0x64f   :  { %v5072_v60 = vadd.f32 %v5018_v57, %v9935_v25 }
 0x650   :  { %v5857_v23 = vadd.f32 %v5802_v19, %v5595_v3 }
 0x651   :  { %v5334_v6 = vadd.f32 %v5280_v40, %v5072_v60 }
 0x652   :  { %v5898_v37 = vadd.f32 %v9992_v17, %v5857_v23 }
 0x654   :  { %v5935_v0 = vmax.f32 %v5898_v37, 0.0 }
 0x655   :  { %v5542_v30 = vpop.f32.mrf.mxu2  ;;  %v5804_v61 = vpop.f32.mrf.mxu3 }
 0x656   :  { %v5596_v28 = vadd.f32 %v5542_v30, %v5334_v6  ;;  %v5021_v9 = vpop.f32.mrf.mxu0  ;;  %v5283_v20 = vpop.f32.mrf.mxu1 }
 0x657   :  { %v5073_v33 = vadd.f32 %v5021_v9, %v9942_v24 }
 0x658   :  { %v5858_v12 = vadd.f32 %v5804_v61, %v5596_v28 }
 0x659   :  { %v5335_v4 = vadd.f32 %v5283_v20, %v5073_v33 }
 0x65a   :  { %v5899_v54 = vadd.f32 %v9992_v17, %v5858_v12 }
 0x65c   :  { %v5936_v27 = vmax.f32 %v5899_v54, 0.0 }
 0x65d   :  { %v5545_v13 = vpop.f32.mrf.mxu2  ;;  %v5807_v15 = vpop.f32.mrf.mxu3 }
 0x65e   :  { %v5023_v25 = vpop.f32.mrf.mxu0  ;;  %v5285_v35 = vpop.f32.mrf.mxu1  ;;  %v5959_v43 = vpack.c.bf16 %v5936_v27, %v5935_v0  ;;  %v5597_v29 = vadd.f32 %v5545_v13, %v5335_v4 }
 0x65f   :  { %v5074_v63 = vadd.f32 %v5023_v25, %v9945_v36 }
 0x660   :  { %v5859_v18 = vadd.f32 %v5807_v15, %v5597_v29 }
 0x661   :  { %v5336_v48 = vadd.f32 %v5285_v35, %v5074_v63 }
 0x662   :  { %v5900_v24 = vadd.f32 %v9992_v17, %v5859_v18 }
 0x664   :  { %v5937_v32 = vmax.f32 %v5900_v24, 0.0 }
 0x665   :  { %v5547_v31 = vpop.f32.mrf.mxu2  ;;  %v5809_v39 = vpop.f32.mrf.mxu3 }
 0x666   :  { %v5598_v5 = vadd.f32 %v5547_v31, %v5336_v48  ;;  %v5026_v22 = vpop.f32.mrf.mxu0  ;;  %v5288_v42 = vpop.f32.mrf.mxu1 }
 0x667   :  { %v5075_v45 = vadd.f32 %v5026_v22, %v9952_v10 }
 0x668   :  { %v5860_v16 = vadd.f32 %v5809_v39, %v5598_v5 }
 0x669   :  { %v5337_v46 = vadd.f32 %v5288_v42, %v5075_v45 }
 0x66a   :  { %v5901_v51 = vadd.f32 %v9992_v17, %v5860_v16 }
 0x66c   :  { %v5938_v49 = vmax.f32 %v5901_v51, 0.0 }
 0x66d   :  { %v5550_v55 = vpop.f32.mrf.mxu2  ;;  %v5812_v56 = vpop.f32.mrf.mxu3 }
 0x66e   :  { %v5028_v36 = vpop.f32.mrf.mxu0  ;;  %v5290_v62 = vpop.f32.mrf.mxu1  ;;  %v5960_v41 = vpack.c.bf16 %v5938_v49, %v5937_v32  ;;  %v5599_v8 = vadd.f32 %v5550_v55, %v5337_v46 }
 0x66f   :  { %v5076_v59 = vadd.f32 %v5028_v36, %v9955_v14  ;;  %v8623_v36 = vld [vmem:[%s10424_s5 + $0x4] sm:$0xf] }
 0x670   :  { %v5861_v52 = vadd.f32 %v5812_v56, %v5599_v8 }
 0x671   :  { %v5338_v1 = vadd.f32 %v5290_v62, %v5076_v59  ;;  %v8139_v62 = vld [vmem:[%s10424_s5 + $0xc] sm:$0xf0] }
 0x672   :  { %v5902_v10 = vadd.f32 %v9992_v17, %v5861_v52  ;;  %v8142_v8 = vor.u32 %v8623_v36, %v8139_v62 }
 0x674   :  { %v5939_v6 = vmax.f32 %v5902_v10, 0.0 }
 0x675   :  { %v5552_v2 = vpop.f32.mrf.mxu2  ;;  %v5814_v19 = vpop.f32.mrf.mxu3 }
 0x676   :  { %v5600_v50 = vadd.f32 %v5552_v2, %v5338_v1  ;;  %v5031_v57 = vpop.f32.mrf.mxu0  ;;  %v5293_v40 = vpop.f32.mrf.mxu1 }
 0x677   :  { %v5077_v23 = vadd.f32 %v5031_v57, %v9962_v47 }
 0x678   :  { %v5862_v3 = vadd.f32 %v5814_v19, %v5600_v50 }
 0x679   :  { %v5339_v14 = vadd.f32 %v5293_v40, %v5077_v23  ;;  %v8627_v23 = vld [vmem:[%s10424_s5 + $0x20] sm:$0xf0] }
 0x67a   :  { %v5903_v60 = vadd.f32 %v9992_v17, %v5862_v3 }
 0x67c   :  { %v5940_v30 = vmax.f32 %v5903_v60, 0.0  ;;  %v8149_v60 = vld [vmem:[%s10424_s5 + $0x18] sm:$0xf] }
 0x67d   :  { %v5555_v61 = vpop.f32.mrf.mxu2  ;;  %v5817_v28 = vpop.f32.mrf.mxu3 }
 0x67e   :  { %v5961_v9 = vpack.c.bf16 %v5940_v30, %v5939_v6  ;;  %v5033_v20 = vpop.f32.mrf.mxu0  ;;  %v5295_v37 = vpop.f32.mrf.mxu1  ;;  %v5601_v12 = vadd.f32 %v5555_v61, %v5339_v14  ;;  %v8150_v30 = vor.u32 %v8627_v23, %v8149_v60  ;;  %v8151_v14 = vld [vmem:[%s10424_s5 + $0x24] sm:$0xf0] }
 0x67f   :  { %v5078_v54 = vadd.f32 %v5033_v20, %v9965_v53 }
 0x680   :  { %6078 = vmatpush.bf16.msrb.mxu1 %v5961_v9  ;;  %v5863_v33 = vadd.f32 %v5817_v28, %v5601_v12  ;;  %v8626_v9 = vld [vmem:[%s10424_s5 + $0x1c] sm:$0xf]  ;;  %v8625_v12 = vld [vmem:[%s10424_s5 + $0x10] sm:$0xf0] }
 0x681   :  { %v5340_v0 = vadd.f32 %v5295_v37, %v5078_v54  ;;  %v8154_v20 = vor.u32 %v8626_v9, %v8151_v14  ;;  %v8145_v37 = vld [vmem:[%s10424_s5 + $0x8] sm:$0xf] }
 0x682   :  { %v5904_v25 = vadd.f32 %v9992_v17, %v5863_v33  ;;  %v8146_v54 = vor.u32 %v8625_v12, %v8145_v37  ;;  %v8161_v33 = vld [vmem:[%s10424_s5 + $0x30] sm:$0xf]  ;;  %v8649_v9 = vld [vmem:[%s10425_s6 + $0x88] sm:$0xff]  ;;  %v8648_v12 = vld [vmem:[%s10425_s6 + $0x80] sm:$0xff] }
 0x683   :  { %v8653_v14 = vld [vmem:[%s10425_s6 + $0xa8] sm:$0xff]  ;;  %v8638_v37 = vld [vmem:[%s10425_s6 + $0x30] sm:$0xff] }
 0x684   :  { %6079 = vmatpush.bf16.msrb.mxu1 %v5960_v41  ;;  %v5941_v18 = vmax.f32 %v5904_v25, 0.0  ;;  %v8628_v25 = vld [vmem:[%s10424_s5 + $0x28] sm:$0xf0] }
 0x685   :  { %v5557_v27 = vpop.f32.mrf.mxu2  ;;  %v5819_v13 = vpop.f32.mrf.mxu3 }
 0x686   :  { %v5602_v15 = vadd.f32 %v5557_v27, %v5340_v0  ;;  %v5036_v4 = vpop.f32.mrf.mxu0  ;;  %v5298_v47 = vpop.f32.mrf.mxu1  ;;  %v8630_v0 = vld [vmem:[%s10424_s5 + $0x38] sm:$0xf0] }
 0x687   :  { %v5079_v63 = vadd.f32 %v5036_v4, %v9972_v26  ;;  %v8137_v26 = vld [vmem:[%s10424_s5] sm:$0xf]  ;;  %v8162_v27 = vor.u32 %v8630_v0, %v8161_v33  ;;  %v8650_v33 = vld [vmem:[%s10425_s6 + $0x90] sm:$0xff] }
 0x688   :  { %v5864_v35 = vadd.f32 %v5819_v13, %v5602_v15  ;;  %6080 = vmatpush.bf16.msrb.mxu1 %v5959_v43  ;;  %v8629_v13 = vld [vmem:[%s10424_s5 + $0x34] sm:$0xf]  ;;  %v8163_v15 = vld [vmem:[%s10424_s5 + $0x3c] sm:$0xf0] }
 0x689   :  { %v5341_v39 = vadd.f32 %v5298_v47, %v5079_v63  ;;  %v8166_v4 = vor.u32 %v8629_v13, %v8163_v15  ;;  %v8157_v47 = vld [vmem:[%s10424_s5 + $0x20] sm:$0xf]  ;;  %v8631_v63 = vld [vmem:[%s10424_s5 + $0x40] sm:$0xf0] }
 0x68a   :  { %v5905_v29 = vadd.f32 %v9992_v17, %v5864_v35  ;;  %v8624_v17 = vld [vmem:[%s10424_s5 + $0x8] sm:$0xf0]  ;;  %v8158_v35 = vor.u32 %v8628_v25, %v8157_v47 }
 0x68b   :  { %v8138_v32 = vor.u32 %v8624_v17, %v8137_v26  ;;  %v8632_v26 = vld [vmem:[%s10425_s6] sm:$0xff]  ;;  %v8641_v17 = vld [vmem:[%s10425_s6 + $0x48] sm:$0xff] }
 0x68c   :  { %v5942_v48 = vmax.f32 %v5905_v29, 0.0  ;;  %6081 = vmatpush.bf16.msrb.mxu1 %v10111_v7  ;;  %v8169_v29 = vld [vmem:[%s10424_s5 + $0x38] sm:$0xf]  ;;  %6312 = vmatpush.bf16.msra.mxu0 %v8641_v17 }
 0x68d   :  { %v5560_v53 = vpop.f32.mrf.mxu2  ;;  %v5822_v31 = vpop.f32.mrf.mxu3  ;;  %6058 = vmatmul.bf16.vlgmr.msrb.gmra.mxu0 %v8138_v32  ;;  %v8640_v32 = vld [vmem:[%s10425_s6 + $0x40] sm:$0xff] }
 0x68e   :  { %v5038_v5 = vpop.f32.mrf.mxu0  ;;  %v5300_v22 = vpop.f32.mrf.mxu1  ;;  %v5962_v42 = vpack.c.bf16 %v5942_v48, %v5941_v18  ;;  %v5603_v24 = vadd.f32 %v5560_v53, %v5341_v39  ;;  %v8170_v18 = vor.u32 %v8631_v63, %v8169_v29  ;;  %v5978_v48 = vld [vmem:[%s10424_s5 + $0x50] sm:$0x1]  ;;  %v8635_v39 = vld [vmem:[%s10425_s6 + $0x18] sm:$0xff] }
 0x68f   :  { %v5080_v16 = vadd.f32 %v5038_v5, %v9975_v38  ;;  %v6013_v53 = vunpack.c.l.b16 %v5978_v48  ;;  %v5977_v5 = vld [vmem:[%s10424_s5 + $0x48] sm:$0x11]  ;;  %6177 = vmatpush.bf16.msrb.mxu3 %v8635_v39 }
 0x690   :  { %6082 = vmatpush.bf16.msrb.mxu1 %v10105_v44  ;;  %v5865_v43 = vadd.f32 %v5822_v31, %v5603_v24  ;;  %v8702_v44 = vld [vmem:[%s10423_s4] ss:$0 sm:$0xff]  ;;  %v8634_v24 = vld [vmem:[%s10425_s6 + $0x10] sm:$0xff]  ;;  %6313 = vmatpush.bf16.msra.mxu0 %v8640_v32  ;;  %v8657_v39 = vld [vmem:[%s10425_s6 + $0xc8] sm:$0xff] }
 0x691   :  { %v5342_v51 = vadd.f32 %v5300_v22, %v5080_v16  ;;  %v6025_v31 = vpack.c.b16 %v6013_v53, %v6013_v53  ;;  %v6011_v22 = vunpack.c.l.b16 %v5977_v5  ;;  %v8647_v53 = vld [vmem:[%s10425_s6 + $0x78] sm:$0xff] }
 0x693   :  { %v6023_v16 = vpack.c.b16 %v6011_v22, %v6011_v22  ;;  %6178 = vmatpush.bf16.msrb.mxu3 %v8634_v24  ;;  %v8659_v22 = vld [vmem:[%s10425_s6 + $0xd8] sm:$0xff]  ;;  %v8656_v24 = vld [vmem:[%s10425_s6 + $0xc0] sm:$0xff] }
 0x694   :  { %6083 = vmatpush.bf16.msrb.mxu1 %v10099_v11  ;;  %v5906_v11 = vadd.f32 %v8702_v44, %v5865_v43  ;;  %6456 = vmatpush.bf16.msrb.mxu0 %v8649_v9  ;;  %v8677_v9 = vld [vmem:[%s10425_s6 + $0x168] sm:$0xff] }
 0x695   :  { %v5562_v7 = vpop.f32.mrf.mxu2  ;;  %v5824_v45 = vpop.f32.mrf.mxu3 }
 0x696   :  { %v5604_v49 = vadd.f32 %v5562_v7, %v5342_v51  ;;  %v5041_v55 = vpop.f32.mrf.mxu0  ;;  %v5303_v38 = vpop.f32.mrf.mxu1  ;;  %v5943_v59 = vmax.f32 %v5906_v11, 0.0  ;;  %v8633_v51 = vld [vmem:[%s10425_s6 + $0x8] sm:$0xff] }
 0x697   :  { %v5081_v46 = vadd.f32 %v5041_v55, %v9981_v21  ;;  %6205 = vmatpush.bf16.msra.mxu3 %v8633_v51  ;;  %v8645_v7 = vld [vmem:[%s10425_s6 + $0x68] sm:$0xff]  ;;  %v8642_v55 = vld [vmem:[%s10425_s6 + $0x50] sm:$0xff] }
 0x698   :  { %v5866_v56 = vadd.f32 %v5824_v45, %v5604_v49  ;;  %6084 = vmatpush.bf16.msrb.mxu1 %v10093_v58  ;;  %v8643_v45 = vld [vmem:[%s10425_s6 + $0x58] sm:$0xff]  ;;  %v8644_v49 = vld [vmem:[%s10425_s6 + $0x60] sm:$0xff]  ;;  %6457 = vmatpush.bf16.msrb.mxu0 %v8648_v12 }
 0x699   :  { %v5343_v1 = vadd.f32 %v5303_v38, %v5081_v46  ;;  %v8676_v12 = vld [vmem:[%s10425_s6 + $0x160] sm:$0xff] }
 0x69a   :  { %v5907_v41 = vadd.f32 %v8702_v44, %v5866_v56 }
 0x69b   :  { %6206 = vmatpush.bf16.msra.mxu3 %v8632_v26 }
 0x69c   :  { %v5944_v52 = vmax.f32 %v5907_v41, 0.0  ;;  %6085 = vmatpush.bf16.msrb.mxu1 %v10079_v34 }
 0x69d   :  { %v5565_v2 = vpop.f32.mrf.mxu2  ;;  %v5827_v19 = vpop.f32.mrf.mxu3  ;;  %6063 = vmatmul.bf16.gmra.mxu0 %v8150_v30 }
 0x69e   :  { %v5605_v21 = vadd.f32 %v5565_v2, %v5343_v1  ;;  %v5043_v50 = vpop.f32.mrf.mxu0  ;;  %v5305_v58 = vpop.f32.mrf.mxu1  ;;  %v5963_v57 = vpack.c.bf16 %v5944_v52, %v5943_v59  ;;  %v8637_v1 = vld [vmem:[%s10425_s6 + $0x28] sm:$0xff] }
 0x69f   :  { %6086 = vmatmul.bf16.vlgmr.msrb.gmra.mxu1 %v8142_v8 }
 0x6a0   :  { %v5867_v40 = vadd.f32 %v5827_v19, %v5605_v21  ;;  %6348 = vmatpush.bf16.msra.mxu1 %v8643_v45  ;;  %v8636_v19 = vld [vmem:[%s10425_s6 + $0x20] sm:$0xff] }
 0x6a2   :  { %v5908_v10 = vadd.f32 %v8702_v44, %v5867_v40 }
 0x6a4   :  { %v5945_v3 = vmax.f32 %v5908_v10, 0.0  ;;  %6349 = vmatpush.bf16.msra.mxu1 %v8642_v55 }
 0x6a5   :  { %v5567_v6 = vpop.f32.mrf.mxu2  ;;  %v5829_v34 = vpop.f32.mrf.mxu3 }
 0x6a6   :  { %v5964_v61 = vpack.c.bf16 %v5945_v3, %v5945_v3 }
 0x6a8   :  { %v6048_v28 = vsel %vm272_vm0, %v5964_v61, 0  ;;  %v8639_v61 = vld [vmem:[%s10425_s6 + $0x38] sm:$0xff] }
 0x6a9   :  { %6111 = vmatpush.bf16.msrb.mxu2 %v6048_v28 }
 0x6ad   :  { %6112 = vmatpush.bf16.msrb.mxu2 %v5963_v57  ;;  %6068 = vmatmul.bf16.gmra.mxu0 %v8162_v27 }
 0x6af   :  { %6091 = vmatmul.bf16.gmra.mxu1 %v8154_v20  ;;  %v8651_v20 = vld [vmem:[%s10425_s6 + $0x98] sm:$0xff] }
 0x6b0   :  { %6492 = vmatpush.bf16.msrb.mxu1 %v8651_v20  ;;  %v8662_v20 = vld [vmem:[%s10425_s6 + $0xf0] sm:$0xff] }
 0x6b1   :  { %6113 = vmatpush.bf16.msrb.mxu2 %v5962_v42  ;;  %v6012_v42 = vunpack.c.h.b16 %v5977_v5  ;;  %v8661_v5 = vld [vmem:[%s10425_s6 + $0xe8] sm:$0xff] }
 0x6b3   :  { %v6024_v43 = vpack.c.b16 %v6012_v42, %v6012_v42  ;;  %v8646_v42 = vld [vmem:[%s10425_s6 + $0x70] sm:$0xff] }
 0x6b4   :  { %8171 = vmatmul.msk.bf16.vlgmr.msrb.gmra.mxu2 %vm6034_vm5, %v8146_v54  ;;  %v8652_v54 = vld [vmem:[%s10425_s6 + $0xa0] sm:$0xff]  ;;  %6493 = vmatpush.bf16.msrb.mxu1 %v8650_v33 }
 0x6b5   :  { %6384 = vmatpush.bf16.msra.mxu2 %v8645_v7 }
 0x6b9   :  { %6385 = vmatpush.bf16.msra.mxu2 %v8644_v49 }
 0x6bd   :  { %6073 = vmatmul.bf16.gmra.mxu0 %v6023_v16  ;;  %6528 = vmatpush.bf16.msrb.mxu2 %v8653_v14  ;;  %v8660_v16 = vld [vmem:[%s10425_s6 + $0xe0] sm:$0xff]  ;;  %v8675_v14 = vld [vmem:[%s10425_s6 + $0x158] sm:$0xff] }
 0x6bf   :  { %6096 = vmatmul.bf16.gmra.mxu1 %v8166_v4 }
 0x6c1   :  { %6529 = vmatpush.bf16.msrb.mxu2 %v8652_v54  ;;  %v8674_v54 = vld [vmem:[%s10425_s6 + $0x150] sm:$0xff] }
 0x6c4   :  { %8172 = vmatmul.msk.bf16.gmra.mxu2 %vm6034_vm5, %v8158_v35 }
 0x6cf   :  { %6101 = vmatmul.bf16.gmra.mxu1 %v6024_v43  ;;  %v8658_v43 = vld [vmem:[%s10425_s6 + $0xd0] sm:$0xff] }
 0x6d4   :  { %8173 = vmatmul.msk.bf16.gmra.mxu2 %vm6034_vm5, %v8170_v18 }
 0x6e4   :  { %8174 = vmatmul.msk.bf16.gmra.mxu2 %vm6034_vm5, %v6025_v31 }
 0x70a   :  { %v6059_v38 = vpop.f32.mrf.mxu0 }
 0x712   :  { %v6061_v36 = vpop.f32.mrf.mxu0 }
 0x71a   :  { %v6064_v3 = vpop.f32.mrf.mxu0 }
 0x71c   :  { %v6087_v44 = vpop.f32.mrf.mxu1 }
 0x71d   :  { %v6088_v11 = vadd.f32 %v6087_v44, %v6059_v38 }
 0x722   :  { %v6066_v25 = vpop.f32.mrf.mxu0 }
 0x724   :  { %v6089_v62 = vpop.f32.mrf.mxu1 }
 0x725   :  { %v6090_v41 = vadd.f32 %v6089_v62, %v6061_v36  ;;  %v8665_v62 = vld [vmem:[%s10425_s6 + $0x108] sm:$0xff] }
 0x72a   :  { %v6069_v49 = vpop.f32.mrf.mxu0 }
 0x72c   :  { %v6092_v60 = vpop.f32.mrf.mxu1 }
 0x72d   :  { %v6093_v23 = vadd.f32 %v6092_v60, %v6064_v3 }
 0x734   :  { %v6094_v35 = vpop.f32.mrf.mxu1 }
 0x735   :  { %v6095_v29 = vadd.f32 %v6094_v35, %v6066_v25  ;;  %v8671_v25 = vld [vmem:[%s10425_s6 + $0x138] sm:$0xff] }
 0x737   :  { %v6115_v56 = vpop.f32.mrf.mxu2 }
 0x738   :  { %v6116_v46 = vadd.f32 %v6115_v56, %v6088_v11 }
 0x73a   :  { %6135 = vst.msk [vmem:[#allocation3] sm:$0xff] %vm6134_vm6, %v6116_v46  ;;  %v8655_v46 = vld [vmem:[%s10425_s6 + $0xb8] sm:$0xff] }
 0x73c   :  { %v6097_v55 = vpop.f32.mrf.mxu1 }
 0x73d   :  { %v6098_v38 = vadd.f32 %v6097_v55, %v6069_v49 }
 0x73f   :  { %v6117_v8 = vpop.f32.mrf.mxu2 }
 0x740   :  { %v6118_v59 = vadd.f32 %v6117_v8, %v6090_v41  ;;  %v8669_v41 = vld [vmem:[%s10425_s6 + $0x128] sm:$0xff]  ;;  %v8667_v8 = vld [vmem:[%s10425_s6 + $0x118] sm:$0xff] }
 0x741   :  { %v6149_v52 = vld [vmem:[#allocation3 + $0x2] sm:$0x3]  ;;  %v6143_v34 = vld [vmem:[#allocation3] sm:$0x3]  ;;  %v6212_v18 = vld [vmem:[#allocation3 + $0x4] sm:$0x3] }
 0x742   :  { %v6150_v2 = vpack.c.bf16 %v6149_v52, %v6149_v52  ;;  %6136 = vst.msk [vmem:[#allocation3 + $0x8] sm:$0xff] %vm6134_vm6, %v6118_v59  ;;  %v6144_v28 = vpack.c.bf16 %v6143_v34, %v6143_v34  ;;  %v6213_v31 = vpack.c.bf16 %v6212_v18, %v6212_v18  ;;  %v6248_v11 = vld [vmem:[#allocation3 + $0x6] sm:$0x3]  ;;  %v8654_v59 = vld [vmem:[%s10425_s6 + $0xb0] sm:$0xff]  ;;  %v8664_v52 = vld [vmem:[%s10425_s6 + $0x100] sm:$0xff] }
 0x743   :  { %v6249_v36 = vpack.c.bf16 %v6248_v11, %v6248_v11 }
 0x744   :  { %8187 = vmatmul.msk.bf16.vlgmr.msrb.gmra.mxu3 %vm6134_vm6, %v6150_v2  ;;  %v8666_v2 = vld [vmem:[%s10425_s6 + $0x110] sm:$0xff]  ;;  %v6099_v3 = vpop.f32.mrf.mxu1 }
 0x745   :  { %6240 = vmatpush.bf16.msrb.mxu3 %v8637_v1  ;;  %v8668_v1 = vld [vmem:[%s10425_s6 + $0x120] sm:$0xff] }
 0x747   :  { %v6120_v6 = vpop.f32.mrf.mxu2 }
 0x748   :  { %v6121_v30 = vadd.f32 %v6120_v6, %v6093_v23 }
 0x749   :  { %6241 = vmatpush.bf16.msrb.mxu3 %v8636_v19  ;;  %v6284_v21 = vld [vmem:[#allocation3 + $0x8] sm:$0x3]  ;;  %v6356_v50 = vld [vmem:[#allocation3 + $0xc] sm:$0x3]  ;;  %v6320_v40 = vld [vmem:[#allocation3 + $0xa] sm:$0x3] }
 0x74a   :  { %v6285_v58 = vpack.c.bf16 %v6284_v21, %v6284_v21  ;;  %v6357_v57 = vpack.c.bf16 %v6356_v50, %v6356_v50  ;;  %v6321_v10 = vpack.c.bf16 %v6320_v40, %v6320_v40  ;;  %6137 = vst.msk [vmem:[#allocation3 + $0x10] sm:$0xff] %vm6134_vm6, %v6121_v30  ;;  %v6392_v6 = vld [vmem:[#allocation3 + $0xe] sm:$0x3]  ;;  %v8663_v30 = vld [vmem:[%s10425_s6 + $0xf8] sm:$0xff] }
 0x74c   :  { %8235 = vmatmul.msk.bf16.vlgmr.msra.gmra.mxu0 %vm6134_vm6, %v6285_v58  ;;  %8261 = vmatmul.msk.bf16.vlgmr.msra.gmra.mxu2 %vm6134_vm6, %v6357_v57  ;;  %v6102_v18 = vpop.f32.mrf.mxu1 }
 0x74d   :  { %8248 = vmatmul.msk.bf16.vlgmr.msra.gmra.mxu1 %vm6134_vm6, %v6321_v10  ;;  %6600 = vmatpush.bf16.msra.mxu0 %v8657_v39  ;;  %v6071_v10 = vpop.f32.mrf.mxu0 }
 0x74e   :  { %6672 = vmatpush.bf16.msra.mxu2 %v8661_v5  ;;  %6636 = vmatpush.bf16.msra.mxu1 %v8659_v22  ;;  %v6100_v60 = vadd.f32 %v6099_v3, %v6071_v10  ;;  %v8679_v5 = vld [vmem:[%s10425_s6 + $0x178] sm:$0xff] }
 0x74f   :  { %v6122_v63 = vpop.f32.mrf.mxu2 }
 0x750   :  { %v6123_v48 = vadd.f32 %v6122_v63, %v6095_v29  ;;  %v8670_v29 = vld [vmem:[%s10425_s6 + $0x130] sm:$0xff] }
 0x751   :  { %v6428_v0 = vld [vmem:[#allocation3 + $0x10] sm:$0x3]  ;;  %v6500_v27 = vld [vmem:[#allocation3 + $0x14] sm:$0x3]  ;;  %v6464_v13 = vld [vmem:[#allocation3 + $0x12] sm:$0x3]  ;;  %6601 = vmatpush.bf16.msra.mxu0 %v8656_v24 }
 0x752   :  { %v6429_v15 = vpack.c.bf16 %v6428_v0, %v6428_v0  ;;  %v6501_v4 = vpack.c.bf16 %v6500_v27, %v6500_v27  ;;  %v6465_v47 = vpack.c.bf16 %v6464_v13, %v6464_v13  ;;  %6138 = vst.msk [vmem:[#allocation3 + $0x18] sm:$0xff] %vm6134_vm6, %v6123_v48  ;;  %6673 = vmatpush.bf16.msra.mxu2 %v8660_v16 }
 0x753   :  { %6637 = vmatpush.bf16.msra.mxu1 %v8658_v43  ;;  %v8678_v43 = vld [vmem:[%s10425_s6 + $0x170] sm:$0xff] }
 0x754   :  { %8196 = vmatmul.msk.bf16.vlgmr.msra.gmra.mxu3 %vm6134_vm6, %v6144_v28  ;;  %v8673_v28 = vld [vmem:[%s10425_s6 + $0x148] sm:$0xff]  ;;  %v6104_v16 = vpop.f32.mrf.mxu1 }
 0x755   :  { %6276 = vmatpush.bf16.msra.mxu3 %v8639_v61  ;;  %v6393_v61 = vpack.c.bf16 %v6392_v6, %v6392_v6  ;;  %v6074_v63 = vpop.f32.mrf.mxu0 }
 0x756   :  { %v6103_v48 = vadd.f32 %v6102_v18, %v6074_v63 }
 0x757   :  { %v6125_v44 = vpop.f32.mrf.mxu2 }
 0x758   :  { %v6126_v56 = vadd.f32 %v6125_v44, %v6098_v38 }
 0x759   :  { %6277 = vmatpush.bf16.msra.mxu3 %v8638_v37  ;;  %v6572_v51 = vld [vmem:[#allocation3 + $0x18] sm:$0x3]  ;;  %v6644_v26 = vld [vmem:[#allocation3 + $0x1c] sm:$0x3]  ;;  %v6608_v17 = vld [vmem:[#allocation3 + $0x1a] sm:$0x3] }
 0x75a   :  { %v6573_v7 = vpack.c.bf16 %v6572_v51, %v6572_v51  ;;  %v6645_v45 = vpack.c.bf16 %v6644_v26, %v6644_v26  ;;  %v6609_v32 = vpack.c.bf16 %v6608_v17, %v6608_v17  ;;  %6139 = vst.msk [vmem:[#allocation3 + $0x20] sm:$0xff] %vm6134_vm6, %v6126_v56  ;;  %v8672_v37 = vld [vmem:[%s10425_s6 + $0x140] sm:$0xff] }
 0x75b   :  { %v8680_v51 = vld [vmem:[%s10425_s6 + $0x180] sm:$0xff] }
 0x75c   :  { %8287 = vmatmul.msk.bf16.vlgmr.msrb.gmra.mxu0 %vm6134_vm6, %v6429_v15  ;;  %8313 = vmatmul.msk.bf16.vlgmr.msrb.gmra.mxu2 %vm6134_vm6, %v6501_v4 }
 0x75d   :  { %8300 = vmatmul.msk.bf16.vlgmr.msrb.gmra.mxu1 %vm6134_vm6, %v6465_v47  ;;  %6744 = vmatpush.bf16.msrb.mxu0 %v8665_v62  ;;  %v6536_v47 = vld [vmem:[#allocation3 + $0x16] sm:$0x3]  ;;  %v6076_v24 = vpop.f32.mrf.mxu0 }
 0x75e   :  { %6816 = vmatpush.bf16.msrb.mxu2 %v8669_v41  ;;  %6780 = vmatpush.bf16.msrb.mxu1 %v8667_v8  ;;  %v6537_v35 = vpack.c.bf16 %v6536_v47, %v6536_v47 }
 0x75f   :  { %v6127_v23 = vpop.f32.mrf.mxu2 }
 0x760   :  { %v6128_v34 = vadd.f32 %v6127_v23, %v6100_v60 }
 0x761   :  { %6745 = vmatpush.bf16.msrb.mxu0 %v8664_v52  ;;  %v6716_v19 = vld [vmem:[#allocation3 + $0x20] sm:$0x3]  ;;  %v6788_v21 = vld [vmem:[#allocation3 + $0x24] sm:$0x3]  ;;  %v6752_v50 = vld [vmem:[#allocation3 + $0x22] sm:$0x3] }
 0x762   :  { %v6717_v58 = vpack.c.bf16 %v6716_v19, %v6716_v19  ;;  %6817 = vmatpush.bf16.msrb.mxu2 %v8668_v1  ;;  %v6789_v57 = vpack.c.bf16 %v6788_v21, %v6788_v21  ;;  %v6753_v40 = vpack.c.bf16 %v6752_v50, %v6752_v50  ;;  %6781 = vmatpush.bf16.msrb.mxu1 %v8666_v2 }
 0x763   :  { %6140 = vst.msk [vmem:[#allocation3 + $0x28] sm:$0xff] %vm6134_vm6, %v6128_v34 }
 0x764   :  { %8209 = vmatmul.msk.bf16.vlgmr.msrb.gmra.mxu3 %vm6134_vm6, %v6213_v31  ;;  %v6680_v31 = vld [vmem:[#allocation3 + $0x1e] sm:$0x3] }
 0x765   :  { %6420 = vmatpush.bf16.msrb.mxu3 %v8647_v53  ;;  %v6681_v22 = vpack.c.bf16 %v6680_v31, %v6680_v31 }
 0x767   :  { %v6130_v53 = vpop.f32.mrf.mxu2 }
 0x768   :  { %v6131_v39 = vadd.f32 %v6130_v53, %v6103_v48 }
 0x769   :  { %6421 = vmatpush.bf16.msrb.mxu3 %v8646_v42  ;;  %v8681_v42 = vld [vmem:[%s10425_s6 + $0x188] sm:$0xff] }
 0x76a   :  { %v6860_v33 = vld [vmem:[#allocation3 + $0x28] sm:$0x3]  ;;  %v6932_v0 = vld [vmem:[#allocation3 + $0x2c] sm:$0x3]  ;;  %v6896_v27 = vld [vmem:[#allocation3 + $0x2a] sm:$0x3] }
 0x76b   :  { %v6861_v13 = vpack.c.bf16 %v6860_v33, %v6860_v33  ;;  %v6933_v15 = vpack.c.bf16 %v6932_v0, %v6932_v0  ;;  %v6897_v4 = vpack.c.bf16 %v6896_v27, %v6896_v27  ;;  %6142 = vst.msk [vmem:[#allocation3 + $0x30] sm:$0x3] %vm6141_vm7, %v6131_v39  ;;  %v6968_v49 = vld [vmem:[#allocation3 + $0x2e] sm:$0x3] }
 0x76c   :  { %8339 = vmatmul.msk.bf16.vlgmr.msra.gmra.mxu0 %vm6134_vm6, %v6573_v7  ;;  %8365 = vmatmul.msk.bf16.vlgmr.msra.gmra.mxu2 %vm6134_vm6, %v6645_v45  ;;  %v6824_v45 = vld [vmem:[#allocation3 + $0x26] sm:$0x3]  ;;  %v6969_v55 = vpack.c.bf16 %v6968_v49, %v6968_v49 }
 0x76d   :  { %8352 = vmatmul.msk.bf16.vlgmr.msra.gmra.mxu1 %vm6134_vm6, %v6609_v32  ;;  %6888 = vmatpush.bf16.msra.mxu0 %v8673_v28  ;;  %v6825_v32 = vpack.c.bf16 %v6824_v45, %v6824_v45 }
 0x76e   :  { %6960 = vmatpush.bf16.msra.mxu2 %v8677_v9  ;;  %6924 = vmatpush.bf16.msra.mxu1 %v8675_v14 }
 0x76f   :  { %v6132_v26 = vpop.f32.mrf.mxu2 }
 0x771   :  { %6889 = vmatpush.bf16.msra.mxu0 %v8672_v37 }
 0x772   :  { %6961 = vmatpush.bf16.msra.mxu2 %v8676_v12  ;;  %6925 = vmatpush.bf16.msra.mxu1 %v8674_v54  ;;  %v7004_v17 = vld [vmem:[#allocation3 + $0x30] sm:$0x3] }
 0x773   :  { %v7005_v7 = vpack.c.bf16 %v7004_v17, %v7004_v17 }
 0x774   :  { %8222 = vmatmul.msk.bf16.vlgmr.msra.gmra.mxu3 %vm6134_vm6, %v6249_v36 }
 0x775   :  { %6564 = vmatpush.bf16.msra.mxu3 %v8655_v46 }
 0x779   :  { %6565 = vmatpush.bf16.msra.mxu3 %v8654_v59 }
 0x77c   :  { %8391 = vmatmul.msk.bf16.vlgmr.msrb.gmra.mxu0 %vm6134_vm6, %v6717_v58  ;;  %8417 = vmatmul.msk.bf16.vlgmr.msrb.gmra.mxu2 %vm6134_vm6, %v6789_v57 }
 0x77d   :  { %8404 = vmatmul.msk.bf16.vlgmr.msrb.gmra.mxu1 %vm6134_vm6, %v6753_v40  ;;  %7032 = vmatpush.bf16.msrb.mxu0 %v8681_v42 }
 0x781   :  { %7033 = vmatpush.bf16.msrb.mxu0 %v8680_v51  ;;  %v8685_v51 = vld [vmem:[%s10427_s8 + $0x18] sm:$0xff] }
 0x782   :  { %7091 = vmatpush.bf16.msrb.mxu1 %v8685_v51 }
 0x784   :  { %8274 = vmatmul.msk.bf16.vlgmr.msrb.gmra.mxu3 %vm6134_vm6, %v6393_v61 }
 0x785   :  { %6708 = vmatpush.bf16.msrb.mxu3 %v8663_v30 }
 0x789   :  { %6709 = vmatpush.bf16.msrb.mxu3 %v8662_v20 }
 0x78c   :  { %8443 = vmatmul.msk.bf16.vlgmr.msra.gmra.mxu0 %vm6134_vm6, %v6861_v13  ;;  %8469 = vmatmul.msk.bf16.vlgmr.msra.gmra.mxu2 %vm6134_vm6, %v6933_v15 }
 0x78d   :  { %8456 = vmatmul.msk.bf16.vlgmr.msra.gmra.mxu1 %vm6134_vm6, %v6897_v4 }
 0x794   :  { %8326 = vmatmul.msk.bf16.vlgmr.msra.gmra.mxu3 %vm6134_vm6, %v6537_v35 }
 0x795   :  { %6852 = vmatpush.bf16.msra.mxu3 %v8671_v25 }
 0x799   :  { %6853 = vmatpush.bf16.msra.mxu3 %v8670_v29 }
 0x79c   :  { %8495 = vmatmul.msk.bf16.vlgmr.msrb.gmra.mxu0 %vm6134_vm6, %v7005_v7  ;;  %v8684_v7 = vld [vmem:[%s10427_s8 + $0x10] sm:$0xff] }
 0x79d   :  { %7092 = vmatpush.bf16.msrb.mxu1 %v8684_v7 }
 0x7a4   :  { %8378 = vmatmul.msk.bf16.vlgmr.msrb.gmra.mxu3 %vm6134_vm6, %v6681_v22 }
 0x7a5   :  { %6996 = vmatpush.bf16.msrb.mxu3 %v8679_v5 }
 0x7a9   :  { %6997 = vmatpush.bf16.msrb.mxu3 %v8678_v43 }
 0x7b4   :  { %8430 = vmatmul.msk.bf16.vlgmr.msra.gmra.mxu3 %vm6134_vm6, %v6825_v32 }
 0x7c4   :  { %8482 = vmatmul.msk.bf16.vlgmr.msrb.gmra.mxu3 %vm6134_vm6, %v6969_v55 }
 0x7c7   :  { %v6180_v38 = vpop.f32.mrf.mxu3 }
 0x7c9   :  { %v6315_v44 = vpop.f32.mrf.mxu0 }
 0x7ca   :  { %v6351_v11 = vpop.f32.mrf.mxu1 }
 0x7cf   :  { %v6182_v56 = vpop.f32.mrf.mxu3  ;;  %v6387_v46 = vpop.f32.mrf.mxu2 }
 0x7d1   :  { %v6317_v36 = vpop.f32.mrf.mxu0 }
 0x7d2   :  { %v6353_v62 = vpop.f32.mrf.mxu1 }
 0x7d7   :  { %v6208_v41 = vpop.f32.mrf.mxu3  ;;  %v6389_v8 = vpop.f32.mrf.mxu2 }
 0x7d8   :  { %v6209_v59 = vadd.f32 %v6208_v41, %v6180_v38  ;;  %v8683_v38 = vld [vmem:[%s10427_s8 + $0x8] sm:$0xff] }
 0x7d9   :  { %v6459_v52 = vpop.f32.mrf.mxu0  ;;  %7093 = vmatpush.bf16.msrb.mxu1 %v8683_v38 }
 0x7da   :  { %v6495_v1 = vpop.f32.mrf.mxu1 }
 0x7df   :  { %v6210_v2 = vpop.f32.mrf.mxu3  ;;  %v6531_v19 = vpop.f32.mrf.mxu2 }
 0x7e0   :  { %v8692_v2 = vld [vmem:[%s10426_s7] ss:$0 sm:$0xff] }
 0x7e1   :  { %v6461_v21 = vpop.f32.mrf.mxu0 }
 0x7e2   :  { %v6497_v50 = vpop.f32.mrf.mxu1 }
 0x7e7   :  { %v6243_v58 = vpop.f32.mrf.mxu3  ;;  %v6533_v57 = vpop.f32.mrf.mxu2 }
 0x7e8   :  { %v6247_v34 = vadd.f32 %v6243_v58, %v6209_v59 }
 0x7e9   :  { %v6603_v40 = vpop.f32.mrf.mxu0 }
 0x7ea   :  { %v6639_v10 = vpop.f32.mrf.mxu1 }
 0x7ef   :  { %v6245_v3 = vpop.f32.mrf.mxu3  ;;  %v6675_v60 = vpop.f32.mrf.mxu2 }
 0x7f0   :  { %v8693_v3 = vld [vmem:[%s10428_s9] ss:$0 sm:$0xff]  ;;  %s8730_s9 = smov [#allocation4]  }
 0x7f1   :  { %v6605_v23 = vpop.f32.mrf.mxu0 }
 0x7f2   :  { %v6641_v6 = vpop.f32.mrf.mxu1 }
 0x7f7   :  { %v6279_v30 = vpop.f32.mrf.mxu3  ;;  %v6677_v61 = vpop.f32.mrf.mxu2 }
 0x7f8   :  { %v6283_v28 = vadd.f32 %v6279_v30, %v6247_v34  ;;  %v8694_v61 = vld [vmem:[%s10430_s11] ss:$0 sm:$0xff] }
 0x7f9   :  { %v6747_v9 = vpop.f32.mrf.mxu0 }
 0x7fa   :  { %v6319_v14 = vadd.f32 %v6315_v44, %v6283_v28  ;;  %v6783_v20 = vpop.f32.mrf.mxu1 }
 0x7fc   :  { %v6355_v37 = vadd.f32 %v6351_v11, %v6319_v14  ;;  %v8682_v11 = vld [vmem:[%s10427_s8] sm:$0xff] }
 0x7fd   :  { %7094 = vmatpush.bf16.msrb.mxu1 %v8682_v11 }
 0x7fe   :  { %v6391_v12 = vadd.f32 %v6387_v46, %v6355_v37 }
 0x7ff   :  { %v6281_v54 = vpop.f32.mrf.mxu3  ;;  %v6819_v33 = vpop.f32.mrf.mxu2 }
 0x801   :  { %v6749_v0 = vpop.f32.mrf.mxu0 }
 0x802   :  { %v6785_v27 = vpop.f32.mrf.mxu1 }
 0x807   :  { %v6423_v13 = vpop.f32.mrf.mxu3  ;;  %v6821_v15 = vpop.f32.mrf.mxu2 }
 0x808   :  { %v6427_v4 = vadd.f32 %v6423_v13, %v6391_v12 }
 0x809   :  { %v6891_v47 = vpop.f32.mrf.mxu0 }
 0x80a   :  { %v6463_v25 = vadd.f32 %v6459_v52, %v6427_v4  ;;  %v6927_v35 = vpop.f32.mrf.mxu1 }
 0x80c   :  { %v6499_v29 = vadd.f32 %v6495_v1, %v6463_v25 }
 0x80e   :  { %v6535_v63 = vadd.f32 %v6531_v19, %v6499_v29 }
 0x80f   :  { %v6425_v18 = vpop.f32.mrf.mxu3  ;;  %v6963_v48 = vpop.f32.mrf.mxu2 }
 0x811   :  { %v6893_v53 = vpop.f32.mrf.mxu0 }
 0x812   :  { %v6929_v31 = vpop.f32.mrf.mxu1 }
 0x817   :  { %v6567_v39 = vpop.f32.mrf.mxu3  ;;  %v6965_v5 = vpop.f32.mrf.mxu2 }
 0x818   :  { %v6571_v22 = vadd.f32 %v6567_v39, %v6535_v63 }
 0x819   :  { %v7035_v45 = vpop.f32.mrf.mxu0 }
 0x81a   :  { %v6607_v42 = vadd.f32 %v6603_v40, %v6571_v22  ;;  %v8687_v40 = vld [vmem:[%s10429_s10 + $0x8] sm:$0xff] }
 0x81b   :  { %7131 = vmatpush.bf16.msrb.mxu2 %v8687_v40 }
 0x81c   :  { %v6643_v24 = vadd.f32 %v6639_v10, %v6607_v42  ;;  %v8686_v10 = vld [vmem:[%s10429_s10] sm:$0xff]  ;;  %s7169_s10 = sshll.u32 %s8730_s9, 4  ;;  %s7170_s10 = int_to_ptr.vmem [resolvable:$true] %s7169_s10 }
 0x81e   :  { %v6679_v16 = vadd.f32 %v6675_v60, %v6643_v24 }
 0x81f   :  { %v6569_v43 = vpop.f32.mrf.mxu3  ;;  %7132 = vmatpush.bf16.msrb.mxu2 %v8686_v10 }
 0x821   :  { %v7037_v44 = vpop.f32.mrf.mxu0 }
 0x827   :  { %v6711_v26 = vpop.f32.mrf.mxu3 }
 0x828   :  { %v6715_v17 = vadd.f32 %v6711_v26, %v6679_v16 }
 0x82a   :  { %v6751_v32 = vadd.f32 %v6747_v9, %v6715_v17 }
 0x82c   :  { %v6787_v49 = vadd.f32 %v6783_v20, %v6751_v32 }
 0x82e   :  { %v6823_v46 = vadd.f32 %v6819_v33, %v6787_v49 }
 0x82f   :  { %v6713_v55 = vpop.f32.mrf.mxu3 }
 0x837   :  { %v6855_v56 = vpop.f32.mrf.mxu3 }
 0x838   :  { %v6859_v36 = vadd.f32 %v6855_v56, %v6823_v46 }
 0x83a   :  { %v6895_v62 = vadd.f32 %v6891_v47, %v6859_v36 }
 0x83c   :  { %v6931_v8 = vadd.f32 %v6927_v35, %v6895_v62 }
 0x83e   :  { %v6967_v59 = vadd.f32 %v6963_v48, %v6931_v8 }
 0x83f   :  { %v6857_v41 = vpop.f32.mrf.mxu3 }
 0x847   :  { %v6999_v52 = vpop.f32.mrf.mxu3 }
 0x848   :  { %v7003_v1 = vadd.f32 %v6999_v52, %v6967_v59 }
 0x84a   :  { %v7039_v19 = vadd.f32 %v7035_v45, %v7003_v1 }
 0x84c   :  { %v7044_v21 = vadd.f32 %v8692_v2, %v7039_v19 }
 0x84e   :  { %v7045_v50 = vmax.f32 %v7044_v21, 0.0 }
 0x84f   :  { %v7001_v58 = vpop.f32.mrf.mxu3 }
 0x850   :  { %v7046_v57 = vpack.c.bf16 %v7045_v50, %v7045_v50 }
 0x852   :  { %8512 = vmatmul.msk.bf16.vlgmr.msrb.gmra.mxu1 %vm7083_vm8, %v7046_v57 }
 0x8cf   :  { %v7096_v60 = vpop.f32.mrf.mxu1 }
 0x8d0   :  { %v7097_v23 = vadd.f32 %v8693_v3, %v7096_v60 }
 0x8d2   :  { %8695 = vtanh.f32 %v7097_v23 }
 0x8d7   :  { %v7098_v6 = vpop.f32.mrf.mxu1 }
 0x8d8   :  { %v8696_v34 = vpop.eup %8695 }
 0x8d9   :  { %v7101_v30 = vpack.c.bf16 %v8696_v34, %v8696_v34 }
 0x8db   :  { %8521 = vmatmul.msk.bf16.vlgmr.msrb.gmra.mxu2 %vm6134_vm6, %v7101_v30 }
 0x95e   :  { %v7134_v28 = vpop.f32.mrf.mxu2 }
 0x95f   :  { %v7135_v9 = vadd.f32 %v8694_v61, %v7134_v28 }
 0x961   :  { %v7139_v14 = vsel %vm7138_vm9, %v7135_v9, -inf }
 0x962   :  { %7140 = vmax.xlane.f32.xlu0 %v7139_v14 }
 0x966   :  { %v7136_v20 = vpop.f32.mrf.mxu2 }
 0x9d5   :  { %v7141_v37 = vpop.xlane.xlu0 %7140 }
 0x9d6   :  { %v7142_v12 = vsub.f32 %v7135_v9, %v7141_v37 }
 0x9d8   :  { %v7143_v54 = vmul.f32 1.442695, %v7142_v12 }
 0x9da   :  { %8697 = vpow2.f32 %v7143_v54 }
 0x9e0   :  { %v8698_v33 = vpop.eup %8697 }
 0x9e1   :  { %v7145_v0 = vsel %vm7138_vm9, %v8698_v33, 0.0 }
 0x9e2   :  { %7146 = vadd.xlane.f32.xlu0 %v7145_v0 }
 0xa55   :  { %v7147_v27 = vpop.xlane.xlu0 %7146 }
 0xa56   :  { %8699 = vrcp.f32 %v7147_v27  ;;  %v7159_v47 = vand.u32 2147483648, %v7147_v27  ;;  %v7157_v35 = vand.u32 2147483647, %v7147_v27  ;;  %vm7153_vm11 = vweird.f32 %v7147_v27 }
 0xa58   :  { %v7160_v63 = vor.u32 1.1754944e-38, %v7159_v47  ;;  %vm7158_vm13 = vcmp.eq.f32.partialorder %v7157_v35, 8.507059e+37 }
 0xa5c   :  { %v8700_v13 = vpop.eup %8699 }
 0xa5d   :  { %v7149_v15 = vmul.f32 %v8700_v13, %v7147_v27  ;;  %vm7154_vm10 = vweird.f32 %v8700_v13 }
 0xa5e   :  { %vm7155_vm12 = vmor %vm7153_vm11, %vm7154_vm10 }
 0xa5f   :  { %v7150_v4 = vsub.f32 1.0, %v7149_v15 }
 0xa61   :  { %v7151_v25 = vmul.f32 %v8700_v13, %v7150_v4 }
 0xa63   :  { %v7152_v29 = vadd.f32 %v8700_v13, %v7151_v25 }
 0xa65   :  { %v7156_v18 = vsel %vm7155_vm12, %v8700_v13, %v7152_v29 }
 0xa66   :  { %v7161_v48 = vsel %vm7158_vm13, %v7160_v63, %v7156_v18 }
 0xa67   :  { %v7162_v53 = vmul.f32 %v8698_v33, %v7161_v48 }
 0xa69   :  { %7163 = vst.msk [vmem:[#allocation4] sm:$0x3] %vm7138_vm9, %v7162_v53 }
 0xa6a   :  { %7174 = dma.vmem_to_hbm [thread:$0]  %s7170_s10, 32, %s7172_s20, [#allocation5]  }
 0xa6b   :  { %8727 = dma.done.wait [#allocation5], 32  }
 0xa6c   :  { %8728 = vsyncadd [#allocation5], 4294967264 }
 0xa6d   :  { %7179 = vsyncpa [#allocation5], 1 }

</bundles_post_ra>
